<compile_context>
chip_gen: v7x
topology: tpu7x:2x2x1
jax: 0.10.0
libtpu: 0.0.40
codegen_flags: <defaults>
</compile_context>

<pallas_src>
import functools

import jax
import jax.numpy as jnp
from jax.experimental import pallas as pl
from jax.experimental.pallas import tpu as pltpu

LEAK = 0.2
BN_EPS = 1e-5

_VMEM_LIMIT = 64 * 1024 * 1024          # safe on v5e/v6e (128 MiB) and v7x (64 MiB)
_FUSED_VMEM_BUDGET = 40 * 1024 * 1024   # activation+weight budget for the 1-step path
_CACHE_VMEM_BUDGET = 40 * 1024 * 1024   # bf16 h2p/h3p cache budget for the 3-pass path


def _leaky_relu(x):
    return jnp.where(x > 0, x, LEAK * x)


def _colsum(x):
    """Column sums via the MXU (ones-matmul) rather than an axis-0 XLU/VPU
    reduction; the MXU has slack during the BN statistics passes.
    Returns shape (1, x.shape[1]) in f32."""
    ones = jnp.ones((8, x.shape[0]), jnp.float32)
    return jnp.dot(ones, x, preferred_element_type=jnp.float32)[0:1, :]


def _bn_fold(sum_x, sum_xx, gamma, beta, inv_n):
    """Fold full-batch statistics into one per-feature scale/shift pair.
    NOTE: E[x^2] - mean^2 in f32 is fine at these batch sizes; switch to a
    shifted/Welford update if batch scales by orders of magnitude."""
    mean = sum_x * inv_n
    var = sum_xx * inv_n - mean * mean          # biased batch variance
    inv = jax.lax.rsqrt(var + BN_EPS) * gamma
    return inv, beta - mean * inv


# --------------------------------------------------------------------------
# Path 1: single-step fused kernel (whole batch resident in VMEM).
# --------------------------------------------------------------------------
def _generator_fused_kernel(z_ref,
                            w1_ref, b1_ref,
                            w2_ref, b2_ref, g2_ref, be2_ref,
                            w3_ref, b3_ref, g3_ref, be3_ref,
                            w4_ref, b4_ref,
                            out_ref, *, batch):
    inv_b = 1.0 / batch

    z = z_ref[...].astype(jnp.bfloat16)
    h1 = _leaky_relu(
        jnp.dot(z, w1_ref[...], preferred_element_type=jnp.float32) + b1_ref[...])

    h2p = jnp.dot(h1.astype(jnp.bfloat16), w2_ref[...],
                  preferred_element_type=jnp.float32) + b2_ref[...]
    sc2, sh2 = _bn_fold(_colsum(h2p), _colsum(h2p * h2p),
                        g2_ref[...], be2_ref[...], inv_b)
    h2 = _leaky_relu(h2p * sc2 + sh2)

    h3p = jnp.dot(h2.astype(jnp.bfloat16), w3_ref[...],
                  preferred_element_type=jnp.float32) + b3_ref[...]
    sc3, sh3 = _bn_fold(_colsum(h3p), _colsum(h3p * h3p),
                        g3_ref[...], be3_ref[...], inv_b)
    h3 = _leaky_relu(h3p * sc3 + sh3)

    h4 = jnp.dot(h3.astype(jnp.bfloat16), w4_ref[...],
                 preferred_element_type=jnp.float32) + b4_ref[...]
    out_ref[...] = jnp.tanh(h4).astype(out_ref.dtype)


# --------------------------------------------------------------------------
# Path 2: 3-pass kernel with batch tiling and a bf16 VMEM activation cache.
# --------------------------------------------------------------------------
def _generator_multipass_kernel(z_ref,
                                w1_ref, b1_ref,
                                w2_ref, b2_ref, g2_ref, be2_ref,
                                w3_ref, b3_ref, g3_ref, be3_ref,
                                w4_ref, b4_ref,
                                out_ref,
                                h2c_ref, h3c_ref,
                                sum2_ref, sq2_ref, scale2_ref, shift2_ref,
                                sum3_ref, sq3_ref, scale3_ref, shift3_ref,
                                *, batch, tile, cache_acts):
    s = pl.program_id(0)      # 0: BN-2 stats, 1: BN-3 stats, 2: final output
    t = pl.program_id(1)      # batch tile
    inv_b = 1.0 / batch
    row0 = pl.multiple_of(t * tile, tile)   # row offset of this tile in the cache

    def layers_1_2():
        z = z_ref[...].astype(jnp.bfloat16)
        h1 = _leaky_relu(
            jnp.dot(z, w1_ref[...], preferred_element_type=jnp.float32) + b1_ref[...])
        return jnp.dot(h1.astype(jnp.bfloat16), w2_ref[...],
                       preferred_element_type=jnp.float32) + b2_ref[...]

    # ---- Pass 0: layers 1-2, accumulate full-batch BN-2 statistics. ----
    @pl.when(s == 0)
    def _():
        @pl.when(t == 0)
        def _():
            sum2_ref[...] = jnp.zeros_like(sum2_ref)
            sq2_ref[...] = jnp.zeros_like(sq2_ref)
            # The output block (0, 0) is held (write-back deferred) until pass
            # 2; define its contents so it is never garbage VMEM.
            out_ref[...] = jnp.zeros_like(out_ref)

        h2p = layers_1_2()
        sum2_ref[...] += _colsum(h2p)
        sq2_ref[...] += _colsum(h2p * h2p)
        if cache_acts:
            h2c_ref[pl.ds(row0, tile), :] = h2p.astype(h2c_ref.dtype)

    # ---- Start of pass 1: fold BN-2 stats into one scale/shift pair. ----
    @pl.when(jnp.logical_and(s == 1, t == 0))
    def _():
        sc, sh = _bn_fold(sum2_ref[...], sq2_ref[...],
                          g2_ref[...], be2_ref[...], inv_b)
        scale2_ref[...] = sc
        shift2_ref[...] = sh
        sum3_ref[...] = jnp.zeros_like(sum3_ref)
        sq3_ref[...] = jnp.zeros_like(sq3_ref)

    # ---- Pass 1: BN-2 + LeakyReLU + layer 3, accumulate BN-3 statistics. ----
    @pl.when(s == 1)
    def _():
        if cache_acts:
            h2p = h2c_ref[pl.ds(row0, tile), :].astype(jnp.float32)
        else:
            h2p = layers_1_2()
        h2 = _leaky_relu(h2p * scale2_ref[...] + shift2_ref[...])
        h3p = jnp.dot(h2.astype(jnp.bfloat16), w3_ref[...],
                      preferred_element_type=jnp.float32) + b3_ref[...]
        sum3_ref[...] += _colsum(h3p)
        sq3_ref[...] += _colsum(h3p * h3p)
        if cache_acts:
            h3c_ref[pl.ds(row0, tile), :] = h3p.astype(h3c_ref.dtype)

    # ---- Start of pass 2: fold BN-3 stats. ----
    @pl.when(jnp.logical_and(s == 2, t == 0))
    def _():
        sc, sh = _bn_fold(sum3_ref[...], sq3_ref[...],
                          g3_ref[...], be3_ref[...], inv_b)
        scale3_ref[...] = sc
        shift3_ref[...] = sh

    # ---- Pass 2: BN-3 + LeakyReLU + layer 4 + Tanh, write output tile. ----
    @pl.when(s == 2)
    def _():
        if cache_acts:
            h3p = h3c_ref[pl.ds(row0, tile), :].astype(jnp.float32)
        else:
            h2p = layers_1_2()
            h2 = _leaky_relu(h2p * scale2_ref[...] + shift2_ref[...])
            h3p = jnp.dot(h2.astype(jnp.bfloat16), w3_ref[...],
                          preferred_element_type=jnp.float32) + b3_ref[...]
        h3 = _leaky_relu(h3p * scale3_ref[...] + shift3_ref[...])
        h4 = jnp.dot(h3.astype(jnp.bfloat16), w4_ref[...],
                     preferred_element_type=jnp.float32) + b4_ref[...]
        out_ref[...] = jnp.tanh(h4).astype(out_ref.dtype)


def generator_forward(z, params, *, tile_batch=None, force_multipass=False,
                      cache_activations=None, out_dtype=jnp.float32):
    batch, latent = z.shape
    img_shape = params["w4"].shape[1]
    img_pad = ((img_shape + 127) // 128) * 128   # lane-dense, unmasked stores

    w4, b4 = params["w4"], params["b4"]
    if img_pad != img_shape:
        w4 = jnp.pad(w4, ((0, 0), (0, img_pad - img_shape)))
        b4 = jnp.pad(b4, ((0, 0), (0, img_pad - img_shape)))

    args = (z,
            params["w1"], params["b1"],
            params["w2"], params["b2"], params["g2"], params["be2"],
            params["w3"], params["b3"], params["g3"], params["be3"],
            w4, b4)
    weight_bytes = sum(int(a.size) * a.dtype.itemsize for a in args[1:])
    model_flops = 2 * batch * (latent * 128 + 128 * 256 + 256 * 512 + 512 * img_pad)
    stats_flops = 2 * 8 * batch * (256 + 512) * 2      # ones-matmul colsums
    out_bytes = batch * img_pad * jnp.dtype(out_dtype).itemsize

    # ---------------- Path 1: single-step fused kernel ----------------
    fused_act_bytes = 4 * batch * (latent + 128 + 2 * 256 + 2 * 512 + img_pad)
    if not force_multipass and fused_act_bytes + weight_bytes <= _FUSED_VMEM_BUDGET:
        cost = pl.CostEstimate(
            flops=model_flops + stats_flops,
            transcendentals=batch * img_pad + 2 * (256 + 512),
            bytes_accessed=int(z.size * 4 + weight_bytes + out_bytes))
        out = pl.pallas_call(
            functools.partial(_generator_fused_kernel, batch=batch),
            out_shape=jax.ShapeDtypeStruct((batch, img_pad), out_dtype),
            grid_spec=pltpu.PrefetchScalarGridSpec(
                num_scalar_prefetch=0,
                grid=(1,),
                in_specs=[pl.BlockSpec(a.shape, lambda i: (0, 0)) for a in args],
                out_specs=pl.BlockSpec((batch, img_pad), lambda i: (0, 0))),
            compiler_params=pltpu.CompilerParams(
                dimension_semantics=("arbitrary",),
                vmem_limit_bytes=_VMEM_LIMIT),
            cost_estimate=cost,
        )(*args)
        return out[:, :img_shape] if img_pad != img_shape else out

    # ---------------- Path 2: 3-pass kernel with batch tiling ----------------
    if tile_batch is None:
        tile_batch = batch
        for cand in (512, 256, 128):   # prefer >=256 to fill the 256x256 MXU
            if batch % cand == 0:
                tile_batch = cand
                break
    assert batch % tile_batch == 0, "batch must be divisible by tile_batch"
    num_tiles = batch // tile_batch

    cache_bytes = 2 * batch * (256 + 512)              # bf16 h2p + h3p caches
    if cache_activations is None:
        cache_activations = cache_bytes <= _CACHE_VMEM_BUDGET

    if cache_activations:
        # Layers 1-3 computed once; pre-BN activations cached bf16 in VMEM;
        # z is only fetched during pass 0.
        z_map = lambda s, t: (jnp.where(s == 0, t, 0), 0)
        h2c = pltpu.VMEM((batch, 256), jnp.bfloat16)
        h3c = pltpu.VMEM((batch, 512), jnp.bfloat16)
        flops = model_flops + stats_flops
        z_reads = 1
    else:
        # TODO(synk): recompute fallback for batches whose activation caches
        # exceed VMEM; layers 1-3 are redone per pass (~2.2x model FLOPs).
        z_map = lambda s, t: (t, 0)
        h2c = pltpu.VMEM((8, 256), jnp.bfloat16)       # unused dummies
        h3c = pltpu.VMEM((8, 512), jnp.bfloat16)
        flops = int(2.2 * model_flops) + stats_flops
        z_reads = 3

    const_map = lambda s, t: (0, 0)                    # weights stay VMEM-resident
    # NOTE: pipeline_mode=pl.Buffered(1) on the constant specs would halve
    # their VMEM footprint (~0.8 MiB); left at the default for robustness.
    in_specs = [pl.BlockSpec((tile_batch, latent), z_map)]
    in_specs += [pl.BlockSpec(a.shape, const_map) for a in args[1:]]
    # Output block index only advances during the final pass (s == 2), so no
    # write-backs happen during the statistics passes.
    out_spec = pl.BlockSpec((tile_batch, img_pad), lambda s, t: (t * (s // 2), 0))

    cost = pl.CostEstimate(
        flops=flops,
        transcendentals=batch * img_pad + 2 * (256 + 512),
        bytes_accessed=int(z_reads * z.size * 4 + weight_bytes + out_bytes))

    out = pl.pallas_call(
        functools.partial(_generator_multipass_kernel, batch=batch,
                          tile=tile_batch, cache_acts=cache_activations),
        out_shape=jax.ShapeDtypeStruct((batch, img_pad), out_dtype),
        grid_spec=pltpu.PrefetchScalarGridSpec(
            num_scalar_prefetch=0,
            grid=(3, num_tiles),
            in_specs=in_specs,
            out_specs=out_spec,
            scratch_shapes=[
                h2c, h3c,
                pltpu.VMEM((1, 256), jnp.float32),   # sum   (BN-2)
                pltpu.VMEM((1, 256), jnp.float32),   # sumsq (BN-2)
                pltpu.VMEM((1, 256), jnp.float32),   # scale (BN-2)
                pltpu.VMEM((1, 256), jnp.float32),   # shift (BN-2)
                pltpu.VMEM((1, 512), jnp.float32),   # sum   (BN-3)
                pltpu.VMEM((1, 512), jnp.float32),   # sumsq (BN-3)
                pltpu.VMEM((1, 512), jnp.float32),   # scale (BN-3)
                pltpu.VMEM((1, 512), jnp.float32),   # shift (BN-3)
            ]),
        compiler_params=pltpu.CompilerParams(
            # Full-batch BN statistics accumulate across tiles, so neither
            # grid axis may be split across cores.
            # TODO(synk): on v7x, shard the tile axis over both TensorCores and
            # reduce the BN partial sums via CMEM + pltpu.core_barrier.
            dimension_semantics=("arbitrary", "arbitrary"),
            vmem_limit_bytes=_VMEM_LIMIT),
        cost_estimate=cost,
    )(*args)

    return out[:, :img_shape] if img_pad != img_shape else out


def init_params(key, latent_dim, img_shape):
    """PyTorch-style init.  Weights stored (in, out), cast to bf16 for the MXU;
    biases and BatchNorm affine params stay f32."""
    dims = [(latent_dim, 128), (128, 256), (256, 512), (512, img_shape)]
    params = {}
    for idx, (fan_in, fan_out) in enumerate(dims, start=1):
        key, kw, kb = jax.random.split(key, 3)
        bound = 1.0 / float(fan_in) ** 0.5
        params[f"w{idx}"] = jax.random.uniform(
            kw, (fan_in, fan_out), jnp.float32, -bound, bound).astype(jnp.bfloat16)
        params[f"b{idx}"] = jax.random.uniform(
            kb, (1, fan_out), jnp.float32, -bound, bound)
    params["g2"] = jnp.ones((1, 256), jnp.float32)
    params["be2"] = jnp.zeros((1, 256), jnp.float32)
    params["g3"] = jnp.ones((1, 512), jnp.float32)
    params["be3"] = jnp.zeros((1, 512), jnp.float32)
    return params


def generator_reference(z, params):
    """Pure-JAX f32 reference (training-mode BatchNorm) for correctness."""
    p = {k: v.astype(jnp.float32) for k, v in params.items()}
    h = z @ p["w1"] + p["b1"]
    h = jnp.where(h > 0, h, LEAK * h)
    for i, g, b in (("2", "g2", "be2"), ("3", "g3", "be3")):
        h = h @ p[f"w{i}"] + p[f"b{i}"]
        mean = jnp.mean(h, axis=0, keepdims=True)
        var = jnp.mean((h - mean) ** 2, axis=0, keepdims=True)
        h = (h - mean) / jnp.sqrt(var + BN_EPS) * p[g] + p[b]
        h = jnp.where(h > 0, h, LEAK * h)
    h = h @ p["w4"] + p["b4"]
    return jnp.tanh(h)


if __name__ == "__main__":
    latent_dim = 32
    img_shape = 64      # flattened image size (padded to 128 lanes in-kernel)
    batch = 256         # full MXU-aligned batch; BN stats taken over all of it

    key = jax.random.PRNGKey(0)
    kp, kz = jax.random.split(key)
    params = init_params(kp, latent_dim, img_shape)
    z = jax.random.normal(kz, (batch, latent_dim), jnp.float32)

    ref = generator_reference(z, params)

    # 1) Fused single-step path (selected automatically at this size).
    out_fused = generator_forward(z, params)
    jax.block_until_ready(out_fused)
    assert out_fused.shape == (batch, img_shape)
    assert jnp.max(jnp.abs(out_fused - ref)) < 5e-2, "fused path mismatch"

    # 2) Multi-pass path with the bf16 VMEM activation cache (2 batch tiles,
    #    exercising the cross-tile BN reduction).
    out_mp = generator_forward(z, params, tile_batch=128, force_multipass=True)
    jax.block_until_ready(out_mp)
    assert out_mp.shape == (batch, img_shape)
    assert jnp.max(jnp.abs(out_mp - ref)) < 5e-2, "multipass (cached) mismatch"

    # 3) Multi-pass recompute fallback (cache disabled).
    out_rc = generator_forward(z, params, tile_batch=128, force_multipass=True,
                               cache_activations=False)
    jax.block_until_ready(out_rc)
    assert jnp.max(jnp.abs(out_rc - ref)) < 5e-2, "multipass (recompute) mismatch"

    # TODO(synk): BatchNorm running_mean/running_var buffer updates (momentum)
    # are not emitted; they do not affect the forward output in training mode.

    print("KERNEL_OK")
</pallas_src>

<mosaic_0001>
module attributes {stable_mosaic.version = 11 : i64} {
  func.func @_generator_fused_kernel(%arg0: i32, %arg1: memref<256x32xf32, #tpu.memory_space<vmem>>, %arg2: memref<32x128xbf16, #tpu.memory_space<vmem>>, %arg3: memref<1x128xf32, #tpu.memory_space<vmem>>, %arg4: memref<128x256xbf16, #tpu.memory_space<vmem>>, %arg5: memref<1x256xf32, #tpu.memory_space<vmem>>, %arg6: memref<1x256xf32, #tpu.memory_space<vmem>>, %arg7: memref<1x256xf32, #tpu.memory_space<vmem>>, %arg8: memref<256x512xbf16, #tpu.memory_space<vmem>>, %arg9: memref<1x512xf32, #tpu.memory_space<vmem>>, %arg10: memref<1x512xf32, #tpu.memory_space<vmem>>, %arg11: memref<1x512xf32, #tpu.memory_space<vmem>>, %arg12: memref<512x128xbf16, #tpu.memory_space<vmem>>, %arg13: memref<1x128xf32, #tpu.memory_space<vmem>>, %arg14: memref<256x128xf32, #tpu.memory_space<vmem>>) attributes {dimension_semantics = [#tpu.dimension_semantics<arbitrary>], iteration_bounds = array<i64: 1>, scalar_prefetch = 0 : i64, scratch_operands = 0 : i64, tpu.core_type = #tpu.core_type<tc>, window_params = [{pipeline_mode = #tpu.pipeline_mode<synchronous>, transform_indices = @transform_0, window_bounds = array<i64: 256, 32>}, {pipeline_mode = #tpu.pipeline_mode<synchronous>, transform_indices = @transform_1, window_bounds = array<i64: 32, 128>}, {pipeline_mode = #tpu.pipeline_mode<synchronous>, transform_indices = @transform_2, window_bounds = array<i64: 1, 128>}, {pipeline_mode = #tpu.pipeline_mode<synchronous>, transform_indices = @transform_3, window_bounds = array<i64: 128, 256>}, {pipeline_mode = #tpu.pipeline_mode<synchronous>, transform_indices = @transform_4, window_bounds = array<i64: 1, 256>}, {pipeline_mode = #tpu.pipeline_mode<synchronous>, transform_indices = @transform_5, window_bounds = array<i64: 1, 256>}, {pipeline_mode = #tpu.pipeline_mode<synchronous>, transform_indices = @transform_6, window_bounds = array<i64: 1, 256>}, {pipeline_mode = #tpu.pipeline_mode<synchronous>, transform_indices = @transform_7, window_bounds = array<i64: 256, 512>}, {pipeline_mode = #tpu.pipeline_mode<synchronous>, transform_indices = @transform_8, window_bounds = array<i64: 1, 512>}, {pipeline_mode = #tpu.pipeline_mode<synchronous>, transform_indices = @transform_9, window_bounds = array<i64: 1, 512>}, {pipeline_mode = #tpu.pipeline_mode<synchronous>, transform_indices = @transform_10, window_bounds = array<i64: 1, 512>}, {pipeline_mode = #tpu.pipeline_mode<synchronous>, transform_indices = @transform_11, window_bounds = array<i64: 512, 128>}, {pipeline_mode = #tpu.pipeline_mode<synchronous>, transform_indices = @transform_12, window_bounds = array<i64: 1, 128>}, {pipeline_mode = #tpu.pipeline_mode<synchronous>, transform_indices = @transform_13, window_bounds = array<i64: 256, 128>}]} {
    %c0 = arith.constant 0 : index
    %c0_0 = arith.constant 0 : index
    %0 = vector.load %arg1[%c0, %c0_0] : memref<256x32xf32, #tpu.memory_space<vmem>>, vector<256x32xf32>
    %1 = arith.truncf %0 : vector<256x32xf32> to vector<256x32xbf16>
    %c0_1 = arith.constant 0 : index
    %c0_2 = arith.constant 0 : index
    %2 = vector.load %arg2[%c0_1, %c0_2] : memref<32x128xbf16, #tpu.memory_space<vmem>>, vector<32x128xbf16>
    %cst = arith.constant dense<0.000000e+00> : vector<256x128xf32>
    %3 = tpu.matmul %1, %2, %cst {dimension_numbers = #tpu.dot_dimension_numbers<[1], [0], [0], [1], [0, 0, 1, 1], [], []>} : vector<256x32xbf16>, vector<32x128xbf16>, vector<256x128xf32> -> vector<256x128xf32>
    %c0_3 = arith.constant 0 : index
    %c0_4 = arith.constant 0 : index
    %4 = vector.load %arg3[%c0_3, %c0_4] : memref<1x128xf32, #tpu.memory_space<vmem>>, vector<1x128xf32>
    %5 = vector.broadcast %4 : vector<1x128xf32> to vector<256x128xf32>
    %6 = arith.addf %3, %5 : vector<256x128xf32>
    %cst_5 = arith.constant 0.000000e+00 : f32
    %7 = vector.broadcast %cst_5 : f32 to vector<256x128xf32>
    %8 = arith.cmpf ogt, %6, %7 : vector<256x128xf32>
    %cst_6 = arith.constant 2.000000e-01 : f32
    %9 = vector.broadcast %cst_6 : f32 to vector<256x128xf32>
    %10 = arith.mulf %9, %6 : vector<256x128xf32>
    %11 = arith.select %8, %6, %10 : vector<256x128xi1>, vector<256x128xf32>
    %12 = arith.truncf %11 : vector<256x128xf32> to vector<256x128xbf16>
    %c0_7 = arith.constant 0 : index
    %c0_8 = arith.constant 0 : index
    %13 = vector.load %arg4[%c0_7, %c0_8] : memref<128x256xbf16, #tpu.memory_space<vmem>>, vector<128x256xbf16>
    %cst_9 = arith.constant dense<0.000000e+00> : vector<256x256xf32>
    %14 = tpu.matmul %12, %13, %cst_9 {dimension_numbers = #tpu.dot_dimension_numbers<[1], [0], [0], [1], [0, 0, 1, 1], [], []>} : vector<256x128xbf16>, vector<128x256xbf16>, vector<256x256xf32> -> vector<256x256xf32>
    %c0_10 = arith.constant 0 : index
    %c0_11 = arith.constant 0 : index
    %15 = vector.load %arg5[%c0_10, %c0_11] : memref<1x256xf32, #tpu.memory_space<vmem>>, vector<1x256xf32>
    %16 = vector.broadcast %15 : vector<1x256xf32> to vector<256x256xf32>
    %17 = arith.addf %14, %16 : vector<256x256xf32>
    %cst_12 = arith.constant 1.000000e+00 : f32
    %18 = vector.broadcast %cst_12 : f32 to vector<8x256xf32>
    %cst_13 = arith.constant dense<0.000000e+00> : vector<8x256xf32>
    %19 = tpu.matmul %18, %17, %cst_13 {dimension_numbers = #tpu.dot_dimension_numbers<[1], [0], [0], [1], [0, 0, 1, 1], [], []>} : vector<8x256xf32>, vector<256x256xf32>, vector<8x256xf32> -> vector<8x256xf32>
    %20 = vector.extract_strided_slice %19 {offsets = [0, 0], sizes = [1, 256], strides = [1, 1]} : vector<8x256xf32> to vector<1x256xf32>
    %21 = arith.mulf %17, %17 : vector<256x256xf32>
    %cst_14 = arith.constant 1.000000e+00 : f32
    %22 = vector.broadcast %cst_14 : f32 to vector<8x256xf32>
    %cst_15 = arith.constant dense<0.000000e+00> : vector<8x256xf32>
    %23 = tpu.matmul %22, %21, %cst_15 {dimension_numbers = #tpu.dot_dimension_numbers<[1], [0], [0], [1], [0, 0, 1, 1], [], []>} : vector<8x256xf32>, vector<256x256xf32>, vector<8x256xf32> -> vector<8x256xf32>
    %24 = vector.extract_strided_slice %23 {offsets = [0, 0], sizes = [1, 256], strides = [1, 1]} : vector<8x256xf32> to vector<1x256xf32>
    %c0_16 = arith.constant 0 : index
    %c0_17 = arith.constant 0 : index
    %25 = vector.load %arg6[%c0_16, %c0_17] : memref<1x256xf32, #tpu.memory_space<vmem>>, vector<1x256xf32>
    %c0_18 = arith.constant 0 : index
    %c0_19 = arith.constant 0 : index
    %26 = vector.load %arg7[%c0_18, %c0_19] : memref<1x256xf32, #tpu.memory_space<vmem>>, vector<1x256xf32>
    %cst_20 = arith.constant 3.906250e-03 : f32
    %27 = vector.broadcast %cst_20 : f32 to vector<1x256xf32>
    %28 = arith.mulf %20, %27 : vector<1x256xf32>
    %cst_21 = arith.constant 3.906250e-03 : f32
    %29 = vector.broadcast %cst_21 : f32 to vector<1x256xf32>
    %30 = arith.mulf %24, %29 : vector<1x256xf32>
    %31 = arith.mulf %28, %28 : vector<1x256xf32>
    %32 = arith.subf %30, %31 : vector<1x256xf32>
    %cst_22 = arith.constant 9.99999974E-6 : f32
    %33 = vector.broadcast %cst_22 : f32 to vector<1x256xf32>
    %34 = arith.addf %32, %33 : vector<1x256xf32>
    %35 = math.rsqrt %34 : vector<1x256xf32>
    %36 = arith.mulf %35, %25 : vector<1x256xf32>
    %37 = arith.mulf %28, %36 : vector<1x256xf32>
    %38 = arith.subf %26, %37 : vector<1x256xf32>
    %39 = vector.broadcast %36 : vector<1x256xf32> to vector<256x256xf32>
    %40 = arith.mulf %17, %39 : vector<256x256xf32>
    %41 = vector.broadcast %38 : vector<1x256xf32> to vector<256x256xf32>
    %42 = arith.addf %40, %41 : vector<256x256xf32>
    %cst_23 = arith.constant 0.000000e+00 : f32
    %43 = vector.broadcast %cst_23 : f32 to vector<256x256xf32>
    %44 = arith.cmpf ogt, %42, %43 : vector<256x256xf32>
    %cst_24 = arith.constant 2.000000e-01 : f32
    %45 = vector.broadcast %cst_24 : f32 to vector<256x256xf32>
    %46 = arith.mulf %45, %42 : vector<256x256xf32>
    %47 = arith.select %44, %42, %46 : vector<256x256xi1>, vector<256x256xf32>
    %48 = arith.truncf %47 : vector<256x256xf32> to vector<256x256xbf16>
    %c0_25 = arith.constant 0 : index
    %c0_26 = arith.constant 0 : index
    %49 = vector.load %arg8[%c0_25, %c0_26] : memref<256x512xbf16, #tpu.memory_space<vmem>>, vector<256x512xbf16>
    %cst_27 = arith.constant dense<0.000000e+00> : vector<256x512xf32>
    %50 = tpu.matmul %48, %49, %cst_27 {dimension_numbers = #tpu.dot_dimension_numbers<[1], [0], [0], [1], [0, 0, 1, 1], [], []>} : vector<256x256xbf16>, vector<256x512xbf16>, vector<256x512xf32> -> vector<256x512xf32>
    %c0_28 = arith.constant 0 : index
    %c0_29 = arith.constant 0 : index
    %51 = vector.load %arg9[%c0_28, %c0_29] : memref<1x512xf32, #tpu.memory_space<vmem>>, vector<1x512xf32>
    %52 = vector.broadcast %51 : vector<1x512xf32> to vector<256x512xf32>
    %53 = arith.addf %50, %52 : vector<256x512xf32>
    %cst_30 = arith.constant 1.000000e+00 : f32
    %54 = vector.broadcast %cst_30 : f32 to vector<8x256xf32>
    %cst_31 = arith.constant dense<0.000000e+00> : vector<8x512xf32>
    %55 = tpu.matmul %54, %53, %cst_31 {dimension_numbers = #tpu.dot_dimension_numbers<[1], [0], [0], [1], [0, 0, 1, 1], [], []>} : vector<8x256xf32>, vector<256x512xf32>, vector<8x512xf32> -> vector<8x512xf32>
    %56 = vector.extract_strided_slice %55 {offsets = [0, 0], sizes = [1, 512], strides = [1, 1]} : vector<8x512xf32> to vector<1x512xf32>
    %57 = arith.mulf %53, %53 : vector<256x512xf32>
    %cst_32 = arith.constant 1.000000e+00 : f32
    %58 = vector.broadcast %cst_32 : f32 to vector<8x256xf32>
    %cst_33 = arith.constant dense<0.000000e+00> : vector<8x512xf32>
    %59 = tpu.matmul %58, %57, %cst_33 {dimension_numbers = #tpu.dot_dimension_numbers<[1], [0], [0], [1], [0, 0, 1, 1], [], []>} : vector<8x256xf32>, vector<256x512xf32>, vector<8x512xf32> -> vector<8x512xf32>
    %60 = vector.extract_strided_slice %59 {offsets = [0, 0], sizes = [1, 512], strides = [1, 1]} : vector<8x512xf32> to vector<1x512xf32>
    %c0_34 = arith.constant 0 : index
    %c0_35 = arith.constant 0 : index
    %61 = vector.load %arg10[%c0_34, %c0_35] : memref<1x512xf32, #tpu.memory_space<vmem>>, vector<1x512xf32>
    %c0_36 = arith.constant 0 : index
    %c0_37 = arith.constant 0 : index
    %62 = vector.load %arg11[%c0_36, %c0_37] : memref<1x512xf32, #tpu.memory_space<vmem>>, vector<1x512xf32>
    %cst_38 = arith.constant 3.906250e-03 : f32
    %63 = vector.broadcast %cst_38 : f32 to vector<1x512xf32>
    %64 = arith.mulf %56, %63 : vector<1x512xf32>
    %cst_39 = arith.constant 3.906250e-03 : f32
    %65 = vector.broadcast %cst_39 : f32 to vector<1x512xf32>
    %66 = arith.mulf %60, %65 : vector<1x512xf32>
    %67 = arith.mulf %64, %64 : vector<1x512xf32>
    %68 = arith.subf %66, %67 : vector<1x512xf32>
    %cst_40 = arith.constant 9.99999974E-6 : f32
    %69 = vector.broadcast %cst_40 : f32 to vector<1x512xf32>
    %70 = arith.addf %68, %69 : vector<1x512xf32>
    %71 = math.rsqrt %70 : vector<1x512xf32>
    %72 = arith.mulf %71, %61 : vector<1x512xf32>
    %73 = arith.mulf %64, %72 : vector<1x512xf32>
    %74 = arith.subf %62, %73 : vector<1x512xf32>
    %75 = vector.broadcast %72 : vector<1x512xf32> to vector<256x512xf32>
    %76 = arith.mulf %53, %75 : vector<256x512xf32>
    %77 = vector.broadcast %74 : vector<1x512xf32> to vector<256x512xf32>
    %78 = arith.addf %76, %77 : vector<256x512xf32>
    %cst_41 = arith.constant 0.000000e+00 : f32
    %79 = vector.broadcast %cst_41 : f32 to vector<256x512xf32>
    %80 = arith.cmpf ogt, %78, %79 : vector<256x512xf32>
    %cst_42 = arith.constant 2.000000e-01 : f32
    %81 = vector.broadcast %cst_42 : f32 to vector<256x512xf32>
    %82 = arith.mulf %81, %78 : vector<256x512xf32>
    %83 = arith.select %80, %78, %82 : vector<256x512xi1>, vector<256x512xf32>
    %84 = arith.truncf %83 : vector<256x512xf32> to vector<256x512xbf16>
    %c0_43 = arith.constant 0 : index
    %c0_44 = arith.constant 0 : index
    %85 = vector.load %arg12[%c0_43, %c0_44] : memref<512x128xbf16, #tpu.memory_space<vmem>>, vector<512x128xbf16>
    %cst_45 = arith.constant dense<0.000000e+00> : vector<256x128xf32>
    %86 = tpu.matmul %84, %85, %cst_45 {dimension_numbers = #tpu.dot_dimension_numbers<[1], [0], [0], [1], [0, 0, 1, 1], [], []>} : vector<256x512xbf16>, vector<512x128xbf16>, vector<256x128xf32> -> vector<256x128xf32>
    %c0_46 = arith.constant 0 : index
    %c0_47 = arith.constant 0 : index
    %87 = vector.load %arg13[%c0_46, %c0_47] : memref<1x128xf32, #tpu.memory_space<vmem>>, vector<1x128xf32>
    %88 = vector.broadcast %87 : vector<1x128xf32> to vector<256x128xf32>
    %89 = arith.addf %86, %88 : vector<256x128xf32>
    %90 = math.tanh %89 : vector<256x128xf32>
    %c0_48 = arith.constant 0 : index
    %c0_49 = arith.constant 0 : index
    %91 = vector.load %arg14[%c0_48, %c0_49] : memref<256x128xf32, #tpu.memory_space<vmem>>, vector<256x128xf32>
    tpu.vector_store %arg14[%c0_48, %c0_49], %90 {strides = array<i32>} : memref<256x128xf32, #tpu.memory_space<vmem>>, vector<256x128xf32>,
    return
  }
  func.func @transform_0(%arg0: i32) -> (i32, i32) {
    %c0_i32 = arith.constant 0 : i32
    %c0_i32_0 = arith.constant 0 : i32
    %c0_i32_1 = arith.constant 0 : i32
    return %c0_i32, %c0_i32_0 : i32, i32
  }
  func.func @transform_1(%arg0: i32) -> (i32, i32) {
    %c0_i32 = arith.constant 0 : i32
    %c0_i32_0 = arith.constant 0 : i32
    %c0_i32_1 = arith.constant 0 : i32
    return %c0_i32, %c0_i32_0 : i32, i32
  }
  func.func @transform_2(%arg0: i32) -> (i32, i32) {
    %c0_i32 = arith.constant 0 : i32
    %c0_i32_0 = arith.constant 0 : i32
    %c0_i32_1 = arith.constant 0 : i32
    return %c0_i32, %c0_i32_0 : i32, i32
  }
  func.func @transform_3(%arg0: i32) -> (i32, i32) {
    %c0_i32 = arith.constant 0 : i32
    %c0_i32_0 = arith.constant 0 : i32
    %c0_i32_1 = arith.constant 0 : i32
    return %c0_i32, %c0_i32_0 : i32, i32
  }
  func.func @transform_4(%arg0: i32) -> (i32, i32) {
    %c0_i32 = arith.constant 0 : i32
    %c0_i32_0 = arith.constant 0 : i32
    %c0_i32_1 = arith.constant 0 : i32
    return %c0_i32, %c0_i32_0 : i32, i32
  }
  func.func @transform_5(%arg0: i32) -> (i32, i32) {
    %c0_i32 = arith.constant 0 : i32
    %c0_i32_0 = arith.constant 0 : i32
    %c0_i32_1 = arith.constant 0 : i32
    return %c0_i32, %c0_i32_0 : i32, i32
  }
  func.func @transform_6(%arg0: i32) -> (i32, i32) {
    %c0_i32 = arith.constant 0 : i32
    %c0_i32_0 = arith.constant 0 : i32
    %c0_i32_1 = arith.constant 0 : i32
    return %c0_i32, %c0_i32_0 : i32, i32
  }
  func.func @transform_7(%arg0: i32) -> (i32, i32) {
    %c0_i32 = arith.constant 0 : i32
    %c0_i32_0 = arith.constant 0 : i32
    %c0_i32_1 = arith.constant 0 : i32
    return %c0_i32, %c0_i32_0 : i32, i32
  }
  func.func @transform_8(%arg0: i32) -> (i32, i32) {
    %c0_i32 = arith.constant 0 : i32
    %c0_i32_0 = arith.constant 0 : i32
    %c0_i32_1 = arith.constant 0 : i32
    return %c0_i32, %c0_i32_0 : i32, i32
  }
  func.func @transform_9(%arg0: i32) -> (i32, i32) {
    %c0_i32 = arith.constant 0 : i32
    %c0_i32_0 = arith.constant 0 : i32
    %c0_i32_1 = arith.constant 0 : i32
    return %c0_i32, %c0_i32_0 : i32, i32
  }
  func.func @transform_10(%arg0: i32) -> (i32, i32) {
    %c0_i32 = arith.constant 0 : i32
    %c0_i32_0 = arith.constant 0 : i32
    %c0_i32_1 = arith.constant 0 : i32
    return %c0_i32, %c0_i32_0 : i32, i32
  }
  func.func @transform_11(%arg0: i32) -> (i32, i32) {
    %c0_i32 = arith.constant 0 : i32
    %c0_i32_0 = arith.constant 0 : i32
    %c0_i32_1 = arith.constant 0 : i32
    return %c0_i32, %c0_i32_0 : i32, i32
  }
  func.func @transform_12(%arg0: i32) -> (i32, i32) {
    %c0_i32 = arith.constant 0 : i32
    %c0_i32_0 = arith.constant 0 : i32
    %c0_i32_1 = arith.constant 0 : i32
    return %c0_i32, %c0_i32_0 : i32, i32
  }
  func.func @transform_13(%arg0: i32) -> (i32, i32) {
    %c0_i32 = arith.constant 0 : i32
    %c0_i32_0 = arith.constant 0 : i32
    %c0_i32_1 = arith.constant 0 : i32
    return %c0_i32, %c0_i32_0 : i32, i32
  }
}

</mosaic_0001>

<bundles_post_ra>
// kernel: tpu_custom_call.1
= control target key start
LH: loop header
LB: loop body
LE: loop exit
PB: predicated region body
PF: predicated region fallthrough
CT: control target
= control target key end

     0   :  { %18 = vsyncpa [#allocation3], 0  ;;  %s9443_s0 = inlined_call_operand.hbm [shape: f32[256,32], index: 0, kind: input, shape index: {}]   ;;  %s9444_s1 = inlined_call_operand.hbm [shape: bf16[32,128], index: 1, kind: input, shape index: {}]   ;;  %s9445_s2 = inlined_call_operand.hbm [shape: f32[1,128], index: 2, kind: input, shape index: {}]   ;;  %s9446_s3 = inlined_call_operand.hbm [shape: bf16[128,256], index: 3, kind: input, shape index: {}]   ;;  %s9447_s4 = inlined_call_operand.hbm [shape: f32[1,256], index: 4, kind: input, shape index: {}]   ;;  %s9448_s5 = inlined_call_operand.hbm [shape: f32[1,256], index: 5, kind: input, shape index: {}]   ;;  %s9449_s6 = inlined_call_operand.hbm [shape: f32[1,256], index: 6, kind: input, shape index: {}]   ;;  %s9450_s7 = inlined_call_operand.hbm [shape: bf16[256,512], index: 7, kind: input, shape index: {}]   ;;  %s9451_s8 = inlined_call_operand.hbm [shape: f32[1,512], index: 8, kind: input, shape index: {}]   ;;  %s9452_s9 = inlined_call_operand.hbm [shape: f32[1,512], index: 9, kind: input, shape index: {}]   ;;  %s9453_s10 = inlined_call_operand.hbm [shape: f32[1,512], index: 10, kind: input, shape index: {}]   ;;  %s9454_s11 = inlined_call_operand.hbm [shape: bf16[512,128], index: 11, kind: input, shape index: {}]   ;;  %s9455_s12 = inlined_call_operand.hbm [shape: f32[1,128], index: 12, kind: input, shape index: {}]   ;;  %s9456_s13 = inlined_call_operand.hbm [shape: f32[256,128], index: 13, kind: output, shape index: {}]  }
   0x1   :  { %19 = vsyncpa [#allocation6], 0 }
   0x2   :  { %20 = vsyncpa [#allocation9], 0 }
   0x3   :  { %21 = vsyncpa [#allocation12], 0 }
   0x4   :  { %22 = vsyncpa [#allocation15], 0 }
   0x5   :  { %23 = vsyncpa [#allocation18], 0 }
   0x6   :  { %24 = vsyncpa [#allocation21], 0 }
   0x7   :  { %25 = vsyncpa [#allocation4], 0  ;;  %s5615_s25 = smov [#allocation5]   ;;  %s5291_s29 = scalar_lea.hbm %s9444_s1, 256 }
   0x8   :  { %s43_s26 = sshll.u32 %s5615_s25, 4  ;;  %p5292_p0 = scmp.ne.s32.totalorder %s9444_s1, %s5291_s29  ;;  %s44_s26 = int_to_ptr.vmem [resolvable:$true] %s43_s26 }
   0x9   :  { %p5295_p1 = scmp.lt.u32.totalorder %s5291_s29, %s9444_s1 }
   0xb   :  { %p5297_p2 = pnand %p5295_p1, %p5292_p0 }
   0xd   :  { %5300 = shalt.err (!%p5297_p2)
}
   0xe   :  { %s5301_s17 = scalar_lea.vmem %s44_s26, 256  ;;  %p5306_p4 = scmp.lt.s32.totalorder %s44_s26, %s44_s26 }
   0xf   :  { %p5302_p3 = scmp.ne.s32.totalorder %s44_s26, %s5301_s17  ;;  %p5307_p5 = scmp.lt.s32.totalorder %s5301_s17, %s5301_s17 }
  0x11   :  { %p5308_p6 = por %p5307_p5, %p5306_p4 }
  0x13   :  { %p5309_p7 = pnand %p5308_p6, %p5302_p3 }
  0x15   :  { %5312 = shalt.err (!%p5309_p7)
}
  0x16   :  { %s5616_s18 = smov 64   ;;  %s5617_s19 = smov 4  }
  0x17   :  { %49 = dma.hbm_to_vmem [thread:$0]  %s9444_s1, 256, %s44_s26, [#allocation6], %s5616_s18, %s5616_s18, %s5617_s19  }
  0x18   :  { %s5618_s22 = smov [#allocation8]   ;;  %s5619_s24 = smov [#allocation11]  }
  0x19   :  { %s65_s23 = sshll.u32 %s5618_s22, 4  ;;  %s88_s25 = sshll.u32 %s5619_s24, 4  ;;  %s66_s23 = int_to_ptr.vmem [resolvable:$true] %s65_s23  ;;  %s89_s25 = int_to_ptr.vmem [resolvable:$true] %s88_s25 }
  0x1a   :  { %s5313_s29 = scalar_lea.hbm %s9446_s3, 2048 }
  0x1b   :  { %p5314_p8 = scmp.ne.s32.totalorder %s9446_s3, %s5313_s29  ;;  %p5317_p9 = scmp.lt.u32.totalorder %s5313_s29, %s9446_s3 }
  0x1d   :  { %p5319_p10 = pnand %p5317_p9, %p5314_p8 }
  0x1f   :  { %5322 = shalt.err (!%p5319_p10)
}
  0x20   :  { %s5323_s1 = scalar_lea.vmem %s66_s23, 2048  ;;  %p5328_p12 = scmp.lt.s32.totalorder %s66_s23, %s66_s23 }
  0x21   :  { %p5324_p11 = scmp.ne.s32.totalorder %s66_s23, %s5323_s1  ;;  %p5329_p13 = scmp.lt.s32.totalorder %s5323_s1, %s5323_s1 }
  0x23   :  { %p5330_p0 = por %p5329_p13, %p5328_p12 }
  0x25   :  { %p5331_p1 = pnand %p5330_p0, %p5324_p11 }
  0x27   :  { %5334 = shalt.err (!%p5331_p1)
}
  0x28   :  { %s5620_s26 = smov 128   ;;  %s5621_s17 = smov 8  }
  0x29   :  { %71 = dma.hbm_to_vmem [thread:$0]  %s9446_s3, 2048, %s66_s23, [#allocation9], %s5620_s26, %s5620_s26, %s5621_s17  }
  0x2a   :  { %s5335_s27 = scalar_lea.hbm %s9448_s5, 32 }
  0x2b   :  { %p5336_p2 = scmp.ne.s32.totalorder %s9448_s5, %s5335_s27  ;;  %p5339_p3 = scmp.lt.u32.totalorder %s5335_s27, %s9448_s5 }
  0x2d   :  { %p5341_p4 = pnand %p5339_p3, %p5336_p2 }
  0x2f   :  { %5344 = shalt.err (!%p5341_p4)
}
  0x30   :  { %s5345_s15 = scalar_lea.vmem %s89_s25, 32  ;;  %p5350_p6 = scmp.lt.s32.totalorder %s89_s25, %s89_s25 }
  0x31   :  { %p5346_p5 = scmp.ne.s32.totalorder %s89_s25, %s5345_s15  ;;  %p5351_p7 = scmp.lt.s32.totalorder %s5345_s15, %s5345_s15 }
  0x33   :  { %p5352_p8 = por %p5351_p7, %p5350_p6 }
  0x35   :  { %p5353_p9 = pnand %p5352_p8, %p5346_p5 }
  0x37   :  { %5356 = shalt.err (!%p5353_p9)
}
  0x38   :  { %91 = dma.hbm_to_vmem [thread:$0]  %s9448_s5, 32, %s89_s25, [#allocation12]  }
  0x39   :  { %s5622_s16 = smov [#allocation14]   ;;  %s5357_s22 = scalar_lea.hbm %s9450_s7, 8192 }
  0x3a   :  { %s107_s1 = sshll.u32 %s5622_s16, 4  ;;  %p5358_p10 = scmp.ne.s32.totalorder %s9450_s7, %s5357_s22  ;;  %s108_s1 = int_to_ptr.vmem [resolvable:$true] %s107_s1 }
  0x3b   :  { %p5361_p11 = scmp.lt.u32.totalorder %s5357_s22, %s9450_s7 }
  0x3d   :  { %p5363_p12 = pnand %p5361_p11, %p5358_p10 }
  0x3f   :  { %5366 = shalt.err (!%p5363_p12)
}
  0x40   :  { %s5367_s30 = scalar_lea.vmem %s108_s1, 8192  ;;  %p5372_p0 = scmp.lt.s32.totalorder %s108_s1, %s108_s1 }
  0x41   :  { %p5368_p13 = scmp.ne.s32.totalorder %s108_s1, %s5367_s30  ;;  %p5373_p1 = scmp.lt.s32.totalorder %s5367_s30, %s5367_s30 }
  0x43   :  { %p5374_p2 = por %p5373_p1, %p5372_p0 }
  0x45   :  { %p5375_p3 = pnand %p5374_p2, %p5368_p13 }
  0x47   :  { %5378 = shalt.err (!%p5375_p3)
}
  0x48   :  { %s5623_s5 = smov 256   ;;  %s5624_s25 = smov 16  }
  0x49   :  { %113 = dma.hbm_to_vmem [thread:$0]  %s9450_s7, 8192, %s108_s1, [#allocation15], %s5623_s5, %s5623_s5, %s5624_s25  }
  0x4a   :  { %s5625_s3 = smov [#allocation17]   ;;  %s5626_s16 = smov [#allocation20]  }
  0x4b   :  { %s130_s23 = sshll.u32 %s5625_s3, 4  ;;  %s149_s20 = sshll.u32 %s5626_s16, 4  ;;  %s131_s23 = int_to_ptr.vmem [resolvable:$true] %s130_s23  ;;  %s5762_s20 = int_to_ptr.vmem [resolvable:$true] %s149_s20 }
  0x4c   :  { %s5379_s24 = scalar_lea.hbm %s9452_s9, 64 }
  0x4d   :  { %p5380_p4 = scmp.ne.s32.totalorder %s9452_s9, %s5379_s24  ;;  %p5383_p5 = scmp.lt.u32.totalorder %s5379_s24, %s9452_s9 }
  0x4f   :  { %p5385_p6 = pnand %p5383_p5, %p5380_p4 }
  0x51   :  { %5388 = shalt.err (!%p5385_p6)
}
  0x52   :  { %s5389_s7 = scalar_lea.vmem %s131_s23, 64  ;;  %p5394_p8 = scmp.lt.s32.totalorder %s131_s23, %s131_s23 }
  0x53   :  { %p5390_p7 = scmp.ne.s32.totalorder %s131_s23, %s5389_s7  ;;  %p5395_p9 = scmp.lt.s32.totalorder %s5389_s7, %s5389_s7 }
  0x55   :  { %p5396_p10 = por %p5395_p9, %p5394_p8 }
  0x57   :  { %p5397_p11 = pnand %p5396_p10, %p5390_p7 }
  0x59   :  { %5400 = shalt.err (!%p5397_p11)
}
  0x5a   :  { %133 = dma.hbm_to_vmem [thread:$0]  %s9452_s9, 64, %s131_s23, [#allocation18]  }
  0x5b   :  { %s5401_s15 = scalar_lea.hbm %s9454_s11, 4096 }
  0x5c   :  { %p5402_p12 = scmp.ne.s32.totalorder %s9454_s11, %s5401_s15  ;;  %p5405_p13 = scmp.lt.u32.totalorder %s5401_s15, %s9454_s11 }
  0x5e   :  { %p5407_p0 = pnand %p5405_p13, %p5402_p12 }
  0x60   :  { %5410 = shalt.err (!%p5407_p0)
}
  0x61   :  { %s5411_s24 = scalar_lea.vmem %s5762_s20, 4096  ;;  %p5416_p2 = scmp.lt.s32.totalorder %s5762_s20, %s5762_s20 }
  0x62   :  { %p5412_p1 = scmp.ne.s32.totalorder %s5762_s20, %s5411_s24  ;;  %p5417_p3 = scmp.lt.s32.totalorder %s5411_s24, %s5411_s24 }
  0x64   :  { %p5418_p4 = por %p5417_p3, %p5416_p2 }
  0x66   :  { %p5419_p5 = pnand %p5418_p4, %p5412_p1 }
  0x68   :  { %5422 = shalt.err (!%p5419_p5)
}
  0x69   :  { %155 = dma.hbm_to_vmem [thread:$0]  %s9454_s11, 4096, %s5762_s20, [#allocation21], %s5616_s18, %s5616_s18, %s5617_s19  }
  0x6a   :  { %s5627_s27 = smov [#allocation2]   ;;  %s5628_s29 = smov [#allocation7]  }
  0x6b   :  { %s31_s28 = sshll.u32 %s5627_s27, 4  ;;  %s56_s30 = sshll.u32 %s5628_s29, 4  ;;  %s32_s28 = int_to_ptr.vmem [resolvable:$true] %s31_s28  ;;  %s57_s30 = int_to_ptr.vmem [resolvable:$true] %s56_s30 }
  0x6c   :  { %s5423_s5 = scalar_lea.hbm %s9443_s0, 4096 }
  0x6d   :  { %p5424_p6 = scmp.ne.s32.totalorder %s9443_s0, %s5423_s5  ;;  %p5427_p7 = scmp.lt.u32.totalorder %s5423_s5, %s9443_s0 }
  0x6f   :  { %p5429_p8 = pnand %p5427_p7, %p5424_p6 }
  0x71   :  { %5432 = shalt.err (!%p5429_p8)
}
  0x72   :  { %s5433_s11 = scalar_lea.vmem %s32_s28, 4096  ;;  %p5438_p10 = scmp.lt.s32.totalorder %s32_s28, %s32_s28 }
  0x73   :  { %p5434_p9 = scmp.ne.s32.totalorder %s32_s28, %s5433_s11  ;;  %p5439_p11 = scmp.lt.s32.totalorder %s5433_s11, %s5433_s11 }
  0x75   :  { %p5440_p12 = por %p5439_p11, %p5438_p10 }
  0x77   :  { %p5441_p13 = pnand %p5440_p12, %p5434_p9 }
  0x79   :  { %5444 = shalt.err (!%p5441_p13)
}
  0x7a   :  { %37 = dma.hbm_to_vmem [thread:$0]  %s9443_s0, 4096, %s32_s28, [#allocation3], %s5620_s26, %s5620_s26, %s5621_s17  }
  0x7b   :  { %s5445_s21 = scalar_lea.hbm %s9445_s2, 16 }
  0x7c   :  { %p5446_p0 = scmp.ne.s32.totalorder %s9445_s2, %s5445_s21  ;;  %p5449_p1 = scmp.lt.u32.totalorder %s5445_s21, %s9445_s2 }
  0x7e   :  { %p5451_p2 = pnand %p5449_p1, %p5446_p0 }
  0x80   :  { %5454 = shalt.err (!%p5451_p2)
}
  0x81   :  { %s5455_s27 = scalar_lea.vmem %s57_s30, 16  ;;  %s5459_s29 = scalar_lea.vmem %s57_s30, 32 }
  0x82   :  { %p5456_p3 = scmp.ne.s32.totalorder %s57_s30, %s5455_s27  ;;  %p5460_p4 = scmp.lt.s32.totalorder %s57_s30, %s57_s30 }
  0x83   :  { %p5461_p5 = scmp.lt.s32.totalorder %s5459_s29, %s5455_s27 }
  0x85   :  { %p5462_p6 = por %p5461_p5, %p5460_p4 }
  0x87   :  { %p5463_p7 = pnand %p5462_p6, %p5456_p3 }
  0x89   :  { %5466 = shalt.err (!%p5463_p7)
}
  0x8a   :  { %59 = dma.hbm_to_vmem [thread:$0]  %s9445_s2, 16, %s57_s30, [#allocation6]  }
  0x8b   :  { %s5629_s7 = smov [#allocation10]   ;;  %s5630_s5 = smov [#allocation13]  }
  0x8c   :  { %s78_s1 = sshll.u32 %s5629_s7, 4  ;;  %s98_s25 = sshll.u32 %s5630_s5, 4  ;;  %s79_s1 = int_to_ptr.vmem [resolvable:$true] %s78_s1  ;;  %s99_s25 = int_to_ptr.vmem [resolvable:$true] %s98_s25 }
  0x8d   :  { %s5467_s3 = scalar_lea.hbm %s9447_s4, 32 }
  0x8e   :  { %p5468_p8 = scmp.ne.s32.totalorder %s9447_s4, %s5467_s3  ;;  %p5471_p9 = scmp.lt.u32.totalorder %s5467_s3, %s9447_s4 }
  0x90   :  { %p5473_p10 = pnand %p5471_p9, %p5468_p8 }
  0x92   :  { %5476 = shalt.err (!%p5473_p10)
}
  0x93   :  { %s5477_s2 = scalar_lea.vmem %s79_s1, 32  ;;  %p5482_p12 = scmp.lt.s32.totalorder %s79_s1, %s79_s1 }
  0x94   :  { %p5478_p11 = scmp.ne.s32.totalorder %s79_s1, %s5477_s2  ;;  %p5483_p13 = scmp.lt.s32.totalorder %s5477_s2, %s5477_s2 }
  0x96   :  { %p5484_p0 = por %p5483_p13, %p5482_p12 }
  0x98   :  { %p5485_p1 = pnand %p5484_p0, %p5478_p11 }
  0x9a   :  { %5488 = shalt.err (!%p5485_p1)
}
  0x9b   :  { %81 = dma.hbm_to_vmem [thread:$0]  %s9447_s4, 32, %s79_s1, [#allocation9]  }
  0x9c   :  { %s5489_s24 = scalar_lea.hbm %s9449_s6, 32 }
  0x9d   :  { %p5490_p2 = scmp.ne.s32.totalorder %s9449_s6, %s5489_s24  ;;  %p5493_p3 = scmp.lt.u32.totalorder %s5489_s24, %s9449_s6 }
  0x9f   :  { %p5495_p4 = pnand %p5493_p3, %p5490_p2 }
  0xa1   :  { %5498 = shalt.err (!%p5495_p4)
}
  0xa2   :  { %s5499_s0 = scalar_lea.vmem %s99_s25, 32  ;;  %p5504_p6 = scmp.lt.s32.totalorder %s99_s25, %s99_s25 }
  0xa3   :  { %p5500_p5 = scmp.ne.s32.totalorder %s99_s25, %s5499_s0  ;;  %p5505_p7 = scmp.lt.s32.totalorder %s5499_s0, %s5499_s0 }
  0xa5   :  { %p5506_p8 = por %p5505_p7, %p5504_p6 }
  0xa7   :  { %p5507_p9 = pnand %p5506_p8, %p5500_p5 }
  0xa9   :  { %5510 = shalt.err (!%p5507_p9)
}
  0xaa   :  { %101 = dma.hbm_to_vmem [thread:$0]  %s9449_s6, 32, %s99_s25, [#allocation12]  }
  0xab   :  { %s5631_s7 = smov [#allocation16]   ;;  %s5632_s5 = smov [#allocation19]  }
  0xac   :  { %s120_s1 = sshll.u32 %s5631_s7, 4  ;;  %s140_s14 = sshll.u32 %s5632_s5, 4  ;;  %s121_s1 = int_to_ptr.vmem [resolvable:$true] %s120_s1  ;;  %s141_s14 = int_to_ptr.vmem [resolvable:$true] %s140_s14 }
  0xad   :  { %s5511_s11 = scalar_lea.hbm %s9451_s8, 64 }
  0xae   :  { %p5512_p10 = scmp.ne.s32.totalorder %s9451_s8, %s5511_s11  ;;  %p5515_p11 = scmp.lt.u32.totalorder %s5511_s11, %s9451_s8 }
  0xb0   :  { %p5517_p12 = pnand %p5515_p11, %p5512_p10 }
  0xb2   :  { %5520 = shalt.err (!%p5517_p12)
}
  0xb3   :  { %s5521_s6 = scalar_lea.vmem %s121_s1, 64  ;;  %p5526_p0 = scmp.lt.s32.totalorder %s121_s1, %s121_s1 }
  0xb4   :  { %p5522_p13 = scmp.ne.s32.totalorder %s121_s1, %s5521_s6  ;;  %p5527_p1 = scmp.lt.s32.totalorder %s5521_s6, %s5521_s6 }
  0xb6   :  { %p5528_p2 = por %p5527_p1, %p5526_p0 }
  0xb8   :  { %p5529_p3 = pnand %p5528_p2, %p5522_p13 }
  0xba   :  { %5532 = shalt.err (!%p5529_p3)
}
  0xbb   :  { %123 = dma.hbm_to_vmem [thread:$0]  %s9451_s8, 64, %s121_s1, [#allocation15]  }
  0xbc   :  { %s5533_s22 = scalar_lea.hbm %s9453_s10, 64 }
  0xbd   :  { %p5534_p4 = scmp.ne.s32.totalorder %s9453_s10, %s5533_s22  ;;  %p5537_p5 = scmp.lt.u32.totalorder %s5533_s22, %s9453_s10 }
  0xbf   :  { %p5539_p6 = pnand %p5537_p5, %p5534_p4 }
  0xc1   :  { %5542 = shalt.err (!%p5539_p6)
}
  0xc2   :  { %s5543_s29 = scalar_lea.vmem %s141_s14, 64  ;;  %p5548_p8 = scmp.lt.s32.totalorder %s141_s14, %s141_s14 }
  0xc3   :  { %p5544_p7 = scmp.ne.s32.totalorder %s141_s14, %s5543_s29  ;;  %p5549_p9 = scmp.lt.s32.totalorder %s5543_s29, %s5543_s29 }
  0xc5   :  { %p5550_p10 = por %p5549_p9, %p5548_p8 }
  0xc7   :  { %p5551_p11 = pnand %p5550_p10, %p5544_p7 }
  0xc9   :  { %5554 = shalt.err (!%p5551_p11)
}
  0xca   :  { %143 = dma.hbm_to_vmem [thread:$0]  %s9453_s10, 64, %s141_s14, [#allocation18]  }
  0xcb   :  { %s5633_s4 = smov [#allocation22]   ;;  %s5555_s5 = scalar_lea.hbm %s9455_s12, 16 }
  0xcc   :  { %s162_s28 = sshll.u32 %s5633_s4, 4  ;;  %p5556_p12 = scmp.ne.s32.totalorder %s9455_s12, %s5555_s5  ;;  %s163_s28 = int_to_ptr.vmem [resolvable:$true] %s162_s28 }
  0xcd   :  { %p5559_p13 = scmp.lt.u32.totalorder %s5555_s5, %s9455_s12 }
  0xcf   :  { %p5561_p0 = pnand %p5559_p13, %p5556_p12 }
  0xd1   :  { %5564 = shalt.err (!%p5561_p0)
}
  0xd2   :  { %s5565_s19 = scalar_lea.vmem %s163_s28, 16  ;;  %s5569_s10 = scalar_lea.vmem %s163_s28, 32 }
  0xd3   :  { %p5566_p1 = scmp.ne.s32.totalorder %s163_s28, %s5565_s19  ;;  %p5570_p2 = scmp.lt.s32.totalorder %s163_s28, %s163_s28 }
  0xd4   :  { %p5571_p3 = scmp.lt.s32.totalorder %s5569_s10, %s5565_s19 }
  0xd6   :  { %p5572_p4 = por %p5571_p3, %p5570_p2 }
  0xd8   :  { %p5573_p5 = pnand %p5572_p4, %p5566_p1 }
  0xda   :  { %5576 = shalt.err (!%p5573_p5)
}
  0xdb   :  { %165 = dma.hbm_to_vmem [thread:$0]  %s9455_s12, 16, %s163_s28, [#allocation21]  }
  0xdc   :  { %5599 = dma.done.wait [#allocation3], 4096  }
  0xdd   :  { %5600 = vsyncadd [#allocation3], 4294963200 }
  0xde   :  { %5601 = dma.done.wait [#allocation6], 272  }
  0xdf   :  { %5602 = vsyncadd [#allocation6], 4294967024 }
  0xe0   :  { %5603 = dma.done.wait [#allocation9], 2080  }
  0xe1   :  { %5604 = vsyncadd [#allocation9], 4294965216 }
  0xe2   :  { %5605 = dma.done.wait [#allocation12], 64  }
  0xe3   :  { %5606 = vsyncadd [#allocation12], 4294967232 }
  0xe4   :  { %5607 = dma.done.wait [#allocation15], 8256  }
  0xe5   :  { %5608 = vsyncadd [#allocation15], 4294959040 }
  0xe6   :  { %5609 = dma.done.wait [#allocation18], 128  }
  0xe7   :  { %5610 = vsyncadd [#allocation18], 4294967168 }
  0xe8   :  { %5611 = dma.done.wait [#allocation21], 4112  }
  0xe9   :  { %5612 = vsyncadd [#allocation21], 4294963184  ;;  %v5060_v0 = vld [vmem:[#allocation5] sm:$0xff]   ;;  %v5061_v1 = vld [vmem:[#allocation5 + $0x8] sm:$0xff]   ;;  %vm277_vm0 = vcmask 261120   ;;  %s5637_s12 = smov [#allocation23]  }
  0xea   :  { %4601 = vmatprep.subr.bf16.mxu0 %v5060_v0  ;;  %v206_v2 = vld [vmem:[#allocation2] sm:$0xff]  ;;  %v207_v3 = vld [vmem:[#allocation2 + $0x8] sm:$0xff]  ;;  %v208_v5 = vld [vmem:[#allocation2 + $0x10] sm:$0xff]  ;;  %s4209_s2 = sshll.u32 %s5637_s12, 4  ;;  %s4210_s2 = int_to_ptr.vmem [resolvable:$true] %s4209_s2 }
  0xeb   :  { %4602 = vmatpush3.bf16.msra.mxu0 %v5060_v0  ;;  %v238_v4 = vpack.c.bf16 %v207_v3, %v206_v2  ;;  %v209_v6 = vld [vmem:[#allocation2 + $0x18] sm:$0xff]  ;;  %v210_v7 = vld [vmem:[#allocation2 + $0x20] sm:$0xff]  ;;  %v211_v8 = vld [vmem:[#allocation2 + $0x28] sm:$0xff]  ;;  %v5634_v2 = vmov 0   ;;  %s5577_s6 = scalar_lea.vmem %s4210_s2, 4096  ;;  %p5582_p7 = scmp.lt.s32.totalorder %s4210_s2, %s4210_s2 }
  0xec   :  { %4603 = vmatprep.subr.bf16.mxu0 %v5061_v1  ;;  %v239_v9 = vpack.c.bf16 %v209_v6, %v208_v5  ;;  %v240_v10 = vpack.c.bf16 %v211_v8, %v210_v7  ;;  %v212_v11 = vld [vmem:[#allocation2 + $0x30] sm:$0xff]  ;;  %v213_v12 = vld [vmem:[#allocation2 + $0x38] sm:$0xff]  ;;  %v214_v13 = vld [vmem:[#allocation2 + $0x40] sm:$0xff]  ;;  %739 = vmatprep.mubr.bf16.mxu1 %v5634_v2  ;;  %p5578_p6 = scmp.ne.s32.totalorder %s4210_s2, %s5577_s6  ;;  %p5583_p8 = scmp.lt.s32.totalorder %s5577_s6, %s5577_s6 }
  0xed   :  { %4605 = vmatprep.mubr.msk.bf16.mxu0 %vm277_vm0, %v238_v4  ;;  %v215_v14 = vld [vmem:[#allocation2 + $0x48] sm:$0xff]  ;;  %v5062_v15 = vld [vmem:[#allocation8 + $0x4] ss:$8 sps:$4 sm:$0xff]   ;;  %v5064_v16 = vld [vmem:[#allocation8] ss:$8 sps:$4 sm:$0xff]   ;;  %v241_v17 = vpack.c.bf16 %v213_v12, %v212_v11 }
  0xee   :  { %v5065_v18 = vld [vmem:[#allocation8 + $0x14] ss:$8 sps:$4 sm:$0xff]   ;;  %v242_v19 = vpack.c.bf16 %v215_v14, %v214_v13  ;;  %707 = vmatprep.subr.bf16.mxu1 %v5062_v15  ;;  %v5067_v20 = vld [vmem:[#allocation8 + $0x10] ss:$8 sps:$4 sm:$0xff]   ;;  %v217_v22 = vld [vmem:[#allocation2 + $0x58] sm:$0xff]  ;;  %p5584_p9 = por %p5583_p8, %p5582_p7 }
  0xef   :  { %4604 = vmatpush3.bf16.msra.mxu0 %v5061_v1  ;;  %708 = vmatpush1.bf16.msra.mxu1 %v5064_v16  ;;  %v216_v21 = vld [vmem:[#allocation2 + $0x50] sm:$0xff]  ;;  %v218_v24 = vld [vmem:[#allocation2 + $0x60] sm:$0xff]  ;;  %v219_v25 = vld [vmem:[#allocation2 + $0x68] sm:$0xff] }
  0xf0   :  { %709 = vmatprep.subr.bf16.mxu1 %v5065_v18  ;;  %v5068_v23 = vld [vmem:[#allocation8 + $0x24] ss:$8 sps:$4 sm:$0xff]   ;;  %v5070_v26 = vld [vmem:[#allocation8 + $0x20] ss:$8 sps:$4 sm:$0xff]   ;;  %v5071_v27 = vld [vmem:[#allocation8 + $0x34] ss:$8 sps:$4 sm:$0xff]   ;;  %v243_v28 = vpack.c.bf16 %v217_v22, %v216_v21  ;;  %v244_v30 = vpack.c.bf16 %v219_v25, %v218_v24  ;;  %p5585_p10 = pnand %p5584_p9, %p5578_p6 }
  0xf1   :  { %v5073_v29 = vld [vmem:[#allocation8 + $0x30] ss:$8 sps:$4 sm:$0xff]   ;;  %v5074_v31 = vld [vmem:[#allocation8 + $0x44] ss:$8 sps:$4 sm:$0xff]   ;;  %v5076_v36 = vld [vmem:[#allocation8 + $0x40] ss:$8 sps:$4 sm:$0xff]  }
  0xf2   :  { %4606 = vmatmul.mubr.msk.bf16.vlgmr.msra.gmra.mrb[0].mxu0 %vm277_vm0, %v239_v9  ;;  %v220_v32 = vld [vmem:[#allocation2 + $0x70] sm:$0xff]  ;;  %v221_v33 = vld [vmem:[#allocation2 + $0x78] sm:$0xff]  ;;  %v222_v34 = vld [vmem:[#allocation2 + $0x80] sm:$0xff] }
  0xf3   :  { %4609 = vmatprep.mubr.msk.bf16.mxu0 %vm277_vm0, %v240_v10  ;;  %710 = vmatpush1.bf16.msra.mxu1 %v5067_v20  ;;  %v223_v35 = vld [vmem:[#allocation2 + $0x88] sm:$0xff]  ;;  %v245_v38 = vpack.c.bf16 %v221_v33, %v220_v32  ;;  %v224_v40 = vld [vmem:[#allocation2 + $0x90] sm:$0xff]  ;;  %v225_v41 = vld [vmem:[#allocation2 + $0x98] sm:$0xff] }
  0xf4   :  { %711 = vmatprep.subr.bf16.mxu1 %v5068_v23  ;;  %v5077_v37 = vld [vmem:[#allocation8 + $0x54] ss:$8 sps:$4 sm:$0xff]   ;;  %v246_v39 = vpack.c.bf16 %v223_v35, %v222_v34  ;;  %v247_v44 = vpack.c.bf16 %v225_v41, %v224_v40  ;;  %v229_v47 = vld [vmem:[#allocation2 + $0xb8] sm:$0xff]  ;;  %v5079_v61 = vld [vmem:[#allocation8 + $0x50] ss:$8 sps:$4 sm:$0xff]  }
  0xf5   :  { %v226_v42 = vld [vmem:[#allocation2 + $0xa0] sm:$0xff]  ;;  %v227_v43 = vld [vmem:[#allocation2 + $0xa8] sm:$0xff]  ;;  %v228_v46 = vld [vmem:[#allocation2 + $0xb0] sm:$0xff] }
  0xf6   :  { %v248_v45 = vpack.c.bf16 %v227_v43, %v226_v42  ;;  %v230_v48 = vld [vmem:[#allocation2 + $0xc0] sm:$0xff]  ;;  %v231_v49 = vld [vmem:[#allocation2 + $0xc8] sm:$0xff]  ;;  %v249_v50 = vpack.c.bf16 %v229_v47, %v228_v46  ;;  %v232_v52 = vld [vmem:[#allocation2 + $0xd0] sm:$0xff] }
  0xf7   :  { %712 = vmatpush1.bf16.msra.mxu1 %v5070_v26  ;;  %v250_v51 = vpack.c.bf16 %v231_v49, %v230_v48  ;;  %v233_v53 = vld [vmem:[#allocation2 + $0xd8] sm:$0xff]  ;;  %v234_v54 = vld [vmem:[#allocation2 + $0xe0] sm:$0xff]  ;;  %v235_v55 = vld [vmem:[#allocation2 + $0xe8] sm:$0xff] }
  0xf8   :  { %713 = vmatprep.subr.bf16.mxu1 %v5071_v27  ;;  %v251_v56 = vpack.c.bf16 %v233_v53, %v232_v52  ;;  %v252_v57 = vpack.c.bf16 %v235_v55, %v234_v54  ;;  %v236_v58 = vld [vmem:[#allocation2 + $0xf0] sm:$0xff]  ;;  %v237_v59 = vld [vmem:[#allocation2 + $0xf8] sm:$0xff]  ;;  %v5085_v1 = vld [vmem:[#allocation8 + $0x70] ss:$8 sps:$4 sm:$0xff]  }
  0xf9   :  { %v253_v60 = vpack.c.bf16 %v237_v59, %v236_v58  ;;  %v5080_v62 = vld [vmem:[#allocation8 + $0x64] ss:$8 sps:$4 sm:$0xff]   ;;  %v5082_v63 = vld [vmem:[#allocation8 + $0x60] ss:$8 sps:$4 sm:$0xff]   ;;  %v5083_v0 = vld [vmem:[#allocation8 + $0x74] ss:$8 sps:$4 sm:$0xff]  }
  0xfa   :  { %4610 = vmatmul.mubr.msk.bf16.gmra.mrb[4].mxu0 %vm277_vm0, %v241_v17  ;;  %v5900_v3 = vld [vmem:[#allocation7] ss:$0 sm:$0xff] }
  0xfb   :  { %4613 = vmatprep.mubr.msk.bf16.mxu0 %vm277_vm0, %v242_v19  ;;  %714 = vmatpush1.bf16.msra.mxu1 %v5073_v29 }
  0xfc   :  { %715 = vmatprep.subr.bf16.mxu1 %v5074_v31 }
  0xff   :  { %716 = vmatpush1.bf16.msra.mxu1 %v5076_v36 }
 0x100   :  { %717 = vmatprep.subr.bf16.mxu1 %v5077_v37 }
 0x102   :  { %4614 = vmatmul.mubr.msk.bf16.gmra.mrb[8].mxu0 %vm277_vm0, %v243_v28 }
 0x103   :  { %4617 = vmatprep.mubr.msk.bf16.mxu0 %vm277_vm0, %v244_v30  ;;  %718 = vmatpush1.bf16.msra.mxu1 %v5079_v61 }
 0x104   :  { %719 = vmatprep.subr.bf16.mxu1 %v5080_v62 }
 0x107   :  { %720 = vmatpush1.bf16.msra.mxu1 %v5082_v63 }
 0x108   :  { %721 = vmatprep.subr.bf16.mxu1 %v5083_v0 }
 0x10a   :  { %4618 = vmatmul.mubr.msk.bf16.gmra.mrb[12].mxu0 %vm277_vm0, %v245_v38 }
 0x10b   :  { %4621 = vmatprep.mubr.msk.bf16.mxu0 %vm277_vm0, %v246_v39  ;;  %722 = vmatpush1.bf16.msra.mxu1 %v5085_v1 }
 0x112   :  { %4622 = vmatmul.mubr.msk.bf16.gmra.mrb[16].mxu0 %vm277_vm0, %v247_v44 }
 0x113   :  { %4625 = vmatprep.mubr.msk.bf16.mxu0 %vm277_vm0, %v248_v45 }
 0x11a   :  { %4626 = vmatmul.mubr.msk.bf16.gmra.mrb[20].mxu0 %vm277_vm0, %v249_v50 }
 0x11b   :  { %4629 = vmatprep.mubr.msk.bf16.mxu0 %vm277_vm0, %v250_v51 }
 0x122   :  { %4630 = vmatmul.mubr.msk.bf16.gmra.mrb[24].mxu0 %vm277_vm0, %v251_v56 }
 0x123   :  { %4633 = vmatprep.mubr.msk.bf16.mxu0 %vm277_vm0, %v252_v57 }
 0x12a   :  { %4634 = vmatmul.mubr.msk.bf16.gmra.mrb[28].mxu0 %vm277_vm0, %v253_v60 }
 0x1c5   :  { %v4607_v4 = vpop.f32.mrb[0].mxu0 }
 0x1c6   :  { %v369_v5 = vadd.f32 %v4607_v4, %v5900_v3  ;;  %v360_v6 = vpop.f32.mrb[1].mxu0 }
 0x1c7   :  { %v361_v7 = vadd.f32 %v5900_v3, %v360_v6  ;;  %v4608_v8 = vpop.f32.mrb[2].mxu0 }
 0x1c8   :  { %v521_v9 = vmul.f32 0.2, %v369_v5  ;;  %v372_v10 = vadd.f32 %v4608_v8, %v5900_v3  ;;  %v363_v11 = vpop.f32.mrb[3].mxu0  ;;  %vm489_vm1 = vcmp.gt.f32.partialorder %v369_v5, 0.0 }
 0x1c9   :  { %v519_v12 = vmul.f32 0.2, %v361_v7  ;;  %v364_v13 = vadd.f32 %v5900_v3, %v363_v11  ;;  %vm487_vm2 = vcmp.gt.f32.partialorder %v361_v7, 0.0 }
 0x1ca   :  { %vm490_vm3 = vcmp.gt.f32.partialorder %v372_v10, 0.0  ;;  %v522_v14 = vmul.f32 0.2, %v372_v10  ;;  %v553_v16 = vsel %vm489_vm1, %v369_v5, %v521_v9 }
 0x1cb   :  { %vm488_vm4 = vcmp.gt.f32.partialorder %v364_v13, 0.0  ;;  %v520_v15 = vmul.f32 0.2, %v364_v13  ;;  %v551_v19 = vsel %vm487_vm2, %v361_v7, %v519_v12 }
 0x1cc   :  { %v554_v17 = vsel %vm490_vm3, %v372_v10, %v522_v14 }
 0x1cd   :  { %v4611_v18 = vpop.f32.mrb[4].mxu0  ;;  %v552_v20 = vsel %vm488_vm4, %v364_v13, %v520_v15  ;;  %v584_v21 = vpack.c.bf16 %v554_v17, %v553_v16 }
 0x1ce   :  { %v385_v22 = vadd.f32 %v4611_v18, %v5900_v3  ;;  %v583_v23 = vpack.c.bf16 %v552_v20, %v551_v19  ;;  %v376_v24 = vpop.f32.mrb[5].mxu0 }
 0x1cf   :  { %v377_v25 = vadd.f32 %v5900_v3, %v376_v24  ;;  %v4612_v26 = vpop.f32.mrb[6].mxu0 }
 0x1d0   :  { %vm493_vm5 = vcmp.gt.f32.partialorder %v385_v22, 0.0  ;;  %v525_v27 = vmul.f32 0.2, %v385_v22  ;;  %740 = vmatmul.mubr.bf16.vlgmr.msra.gmra.mrb[0].mxu1 %v583_v23  ;;  %v388_v28 = vadd.f32 %v4612_v26, %v5900_v3  ;;  %v379_v29 = vpop.f32.mrb[7].mxu0 }
 0x1d1   :  { %vm491_vm6 = vcmp.gt.f32.partialorder %v377_v25, 0.0  ;;  %v523_v30 = vmul.f32 0.2, %v377_v25  ;;  %v380_v31 = vadd.f32 %v5900_v3, %v379_v29  ;;  %749 = vmatprep.mubr.bf16.mxu1 %v5634_v2 }
 0x1d2   :  { %vm494_vm7 = vcmp.gt.f32.partialorder %v388_v28, 0.0  ;;  %v526_v32 = vmul.f32 0.2, %v388_v28  ;;  %v557_v33 = vsel %vm493_vm5, %v385_v22, %v525_v27 }
 0x1d3   :  { %vm492_vm8 = vcmp.gt.f32.partialorder %v380_v31, 0.0  ;;  %v524_v34 = vmul.f32 0.2, %v380_v31  ;;  %v555_v35 = vsel %vm491_vm6, %v377_v25, %v523_v30 }
 0x1d4   :  { %v558_v36 = vsel %vm494_vm7, %v388_v28, %v526_v32 }
 0x1d5   :  { %v4615_v37 = vpop.f32.mrb[8].mxu0  ;;  %v556_v38 = vsel %vm492_vm8, %v380_v31, %v524_v34  ;;  %v586_v39 = vpack.c.bf16 %v558_v36, %v557_v33 }
 0x1d6   :  { %v401_v40 = vadd.f32 %v4615_v37, %v5900_v3  ;;  %v585_v41 = vpack.c.bf16 %v556_v38, %v555_v35  ;;  %v392_v42 = vpop.f32.mrb[9].mxu0 }
 0x1d7   :  { %v393_v43 = vadd.f32 %v5900_v3, %v392_v42  ;;  %v4616_v44 = vpop.f32.mrb[10].mxu0 }
 0x1d8   :  { %750 = vmatmul.mubr.bf16.gmra.mrb[4].mxu1 %v584_v21  ;;  %vm497_vm9 = vcmp.gt.f32.partialorder %v401_v40, 0.0  ;;  %v529_v45 = vmul.f32 0.2, %v401_v40  ;;  %v404_v46 = vadd.f32 %v4616_v44, %v5900_v3  ;;  %v395_v47 = vpop.f32.mrb[11].mxu0 }
 0x1d9   :  { %759 = vmatprep.mubr.bf16.mxu1 %v5634_v2  ;;  %vm495_vm10 = vcmp.gt.f32.partialorder %v393_v43, 0.0  ;;  %v527_v48 = vmul.f32 0.2, %v393_v43  ;;  %v396_v49 = vadd.f32 %v5900_v3, %v395_v47 }
 0x1da   :  { %vm498_vm11 = vcmp.gt.f32.partialorder %v404_v46, 0.0  ;;  %v530_v50 = vmul.f32 0.2, %v404_v46  ;;  %v5916_v51 = vsel %vm497_vm9, %v401_v40, %v529_v45 }
 0x1db   :  { %vm496_vm12 = vcmp.gt.f32.partialorder %v396_v49, 0.0  ;;  %v528_v52 = vmul.f32 0.2, %v396_v49  ;;  %v559_v53 = vsel %vm495_vm10, %v393_v43, %v527_v48 }
 0x1dc   :  { %v5918_v54 = vsel %vm498_vm11, %v404_v46, %v530_v50 }
 0x1dd   :  { %v4619_v55 = vpop.f32.mrb[12].mxu0  ;;  %v560_v56 = vsel %vm496_vm12, %v396_v49, %v528_v52  ;;  %v588_v57 = vpack.c.bf16 %v5918_v54, %v5916_v51 }
 0x1de   :  { %v417_v58 = vadd.f32 %v4619_v55, %v5900_v3  ;;  %v587_v59 = vpack.c.bf16 %v560_v56, %v559_v53  ;;  %v408_v60 = vpop.f32.mrb[13].mxu0 }
 0x1df   :  { %v409_v61 = vadd.f32 %v5900_v3, %v408_v60  ;;  %v4620_v62 = vpop.f32.mrb[14].mxu0 }
 0x1e0   :  { %760 = vmatmul.mubr.bf16.gmra.mrb[8].mxu1 %v585_v41  ;;  %vm501_vm13 = vcmp.gt.f32.partialorder %v417_v58, 0.0  ;;  %v533_v63 = vmul.f32 0.2, %v417_v58  ;;  %v420_v0 = vadd.f32 %v4620_v62, %v5900_v3  ;;  %v411_v1 = vpop.f32.mrb[15].mxu0 }
 0x1e1   :  { %769 = vmatprep.mubr.bf16.mxu1 %v5634_v2  ;;  %vm499_vm14 = vcmp.gt.f32.partialorder %v409_v61, 0.0  ;;  %v531_v4 = vmul.f32 0.2, %v409_v61  ;;  %v412_v5 = vadd.f32 %v5900_v3, %v411_v1 }
 0x1e2   :  { %vm502_vm15 = vcmp.gt.f32.partialorder %v420_v0, 0.0  ;;  %v534_v6 = vmul.f32 0.2, %v420_v0  ;;  %v5927_v7 = vsel %vm501_vm13, %v417_v58, %v533_v63 }
 0x1e3   :  { %vm500_vm0 = vcmp.gt.f32.partialorder %v412_v5, 0.0  ;;  %v532_v8 = vmul.f32 0.2, %v412_v5  ;;  %v5929_v9 = vsel %vm499_vm14, %v409_v61, %v531_v4 }
 0x1e4   :  { %v5931_v10 = vsel %vm502_vm15, %v420_v0, %v534_v6 }
 0x1e5   :  { %v4623_v11 = vpop.f32.mrb[16].mxu0  ;;  %v5933_v12 = vsel %vm500_vm0, %v412_v5, %v532_v8  ;;  %v590_v13 = vpack.c.bf16 %v5931_v10, %v5927_v7 }
 0x1e6   :  { %v433_v14 = vadd.f32 %v4623_v11, %v5900_v3  ;;  %v589_v15 = vpack.c.bf16 %v5933_v12, %v5929_v9  ;;  %v424_v16 = vpop.f32.mrb[17].mxu0 }
 0x1e7   :  { %v425_v17 = vadd.f32 %v5900_v3, %v424_v16  ;;  %v4624_v18 = vpop.f32.mrb[18].mxu0 }
 0x1e8   :  { %770 = vmatmul.mubr.bf16.gmra.mrb[12].mxu1 %v586_v39  ;;  %vm505_vm1 = vcmp.gt.f32.partialorder %v433_v14, 0.0  ;;  %v537_v19 = vmul.f32 0.2, %v433_v14  ;;  %v436_v20 = vadd.f32 %v4624_v18, %v5900_v3  ;;  %v427_v21 = vpop.f32.mrb[19].mxu0 }
 0x1e9   :  { %779 = vmatprep.mubr.bf16.mxu1 %v5634_v2  ;;  %vm503_vm2 = vcmp.gt.f32.partialorder %v425_v17, 0.0  ;;  %v535_v22 = vmul.f32 0.2, %v425_v17  ;;  %v428_v23 = vadd.f32 %v5900_v3, %v427_v21 }
 0x1ea   :  { %vm506_vm3 = vcmp.gt.f32.partialorder %v436_v20, 0.0  ;;  %v538_v24 = vmul.f32 0.2, %v436_v20  ;;  %v5944_v25 = vsel %vm505_vm1, %v433_v14, %v537_v19 }
 0x1eb   :  { %vm504_vm4 = vcmp.gt.f32.partialorder %v428_v23, 0.0  ;;  %v536_v26 = vmul.f32 0.2, %v428_v23  ;;  %v5946_v27 = vsel %vm503_vm2, %v425_v17, %v535_v22 }
 0x1ec   :  { %v5948_v28 = vsel %vm506_vm3, %v436_v20, %v538_v24 }
 0x1ed   :  { %v4627_v29 = vpop.f32.mrb[20].mxu0  ;;  %v5950_v30 = vsel %vm504_vm4, %v428_v23, %v536_v26  ;;  %v592_v31 = vpack.c.bf16 %v5948_v28, %v5944_v25 }
 0x1ee   :  { %v449_v32 = vadd.f32 %v4627_v29, %v5900_v3  ;;  %v591_v33 = vpack.c.bf16 %v5950_v30, %v5946_v27  ;;  %v440_v34 = vpop.f32.mrb[21].mxu0 }
 0x1ef   :  { %v441_v35 = vadd.f32 %v5900_v3, %v440_v34  ;;  %v4628_v36 = vpop.f32.mrb[22].mxu0  ;;  %v9457_v34 = vmov 1.0  }
 0x1f0   :  { %780 = vmatmul.mubr.bf16.gmra.mrb[16].mxu1 %v587_v59  ;;  %vm509_vm5 = vcmp.gt.f32.partialorder %v449_v32, 0.0  ;;  %v541_v37 = vmul.f32 0.2, %v449_v32  ;;  %v452_v38 = vadd.f32 %v4628_v36, %v5900_v3  ;;  %v443_v39 = vpop.f32.mrb[23].mxu0  ;;  %964 = vmatprep.mubr.f32.mxu0 %v9457_v34 }
 0x1f1   :  { %789 = vmatprep.mubr.bf16.mxu1 %v5634_v2  ;;  %vm507_vm6 = vcmp.gt.f32.partialorder %v441_v35, 0.0  ;;  %v539_v40 = vmul.f32 0.2, %v441_v35  ;;  %v444_v41 = vadd.f32 %v5900_v3, %v443_v39 }
 0x1f2   :  { %vm510_vm7 = vcmp.gt.f32.partialorder %v452_v38, 0.0  ;;  %v542_v42 = vmul.f32 0.2, %v452_v38  ;;  %v5961_v43 = vsel %vm509_vm5, %v449_v32, %v541_v37 }
 0x1f3   :  { %vm508_vm8 = vcmp.gt.f32.partialorder %v444_v41, 0.0  ;;  %v540_v44 = vmul.f32 0.2, %v444_v41  ;;  %v571_v45 = vsel %vm507_vm6, %v441_v35, %v539_v40 }
 0x1f4   :  { %v574_v46 = vsel %vm510_vm7, %v452_v38, %v542_v42 }
 0x1f5   :  { %v4631_v47 = vpop.f32.mrb[24].mxu0  ;;  %v572_v48 = vsel %vm508_vm8, %v444_v41, %v540_v44  ;;  %v594_v49 = vpack.c.bf16 %v574_v46, %v5961_v43 }
 0x1f6   :  { %v465_v50 = vadd.f32 %v4631_v47, %v5900_v3  ;;  %v593_v52 = vpack.c.bf16 %v572_v48, %v571_v45  ;;  %v456_v53 = vpop.f32.mrb[25].mxu0 }
 0x1f7   :  { %v457_v55 = vadd.f32 %v5900_v3, %v456_v53  ;;  %v4632_v56 = vpop.f32.mrb[26].mxu0 }
 0x1f8   :  { %790 = vmatmul.mubr.bf16.gmra.mrb[20].mxu1 %v588_v57  ;;  %vm513_vm9 = vcmp.gt.f32.partialorder %v465_v50, 0.0  ;;  %v545_v58 = vmul.f32 0.2, %v465_v50  ;;  %v468_v59 = vadd.f32 %v4632_v56, %v5900_v3  ;;  %v459_v60 = vpop.f32.mrb[27].mxu0 }
 0x1f9   :  { %799 = vmatprep.mubr.bf16.mxu1 %v5634_v2  ;;  %vm511_vm10 = vcmp.gt.f32.partialorder %v457_v55, 0.0  ;;  %v543_v61 = vmul.f32 0.2, %v457_v55  ;;  %v460_v62 = vadd.f32 %v5900_v3, %v459_v60 }
 0x1fa   :  { %vm514_vm11 = vcmp.gt.f32.partialorder %v468_v59, 0.0  ;;  %v546_v63 = vmul.f32 0.2, %v468_v59  ;;  %v577_v0 = vsel %vm513_vm9, %v465_v50, %v545_v58 }
 0x1fb   :  { %vm512_vm12 = vcmp.gt.f32.partialorder %v460_v62, 0.0  ;;  %v544_v1 = vmul.f32 0.2, %v460_v62  ;;  %v575_v4 = vsel %vm511_vm10, %v457_v55, %v543_v61 }
 0x1fc   :  { %v578_v5 = vsel %vm514_vm11, %v468_v59, %v546_v63 }
 0x1fd   :  { %v4635_v51 = vpop.f32.mrb[28].mxu0  ;;  %v576_v54 = vsel %vm512_vm12, %v460_v62, %v544_v1  ;;  %v596_v57 = vpack.c.bf16 %v578_v5, %v577_v0 }
 0x1fe   :  { %v481_v6 = vadd.f32 %v4635_v51, %v5900_v3  ;;  %v595_v8 = vpack.c.bf16 %v576_v54, %v575_v4  ;;  %v472_v11 = vpop.f32.mrb[29].mxu0 }
 0x1ff   :  { %v473_v14 = vadd.f32 %v5900_v3, %v472_v11  ;;  %v4636_v16 = vpop.f32.mrb[30].mxu0 }
 0x200   :  { %800 = vmatmul.mubr.bf16.gmra.mrb[24].mxu1 %v589_v15  ;;  %vm517_vm13 = vcmp.gt.f32.partialorder %v481_v6, 0.0  ;;  %v549_v17 = vmul.f32 0.2, %v481_v6  ;;  %v484_v18 = vadd.f32 %v4636_v16, %v5900_v3  ;;  %v475_v19 = vpop.f32.mrb[31].mxu0 }
 0x201   :  { %809 = vmatprep.mubr.bf16.mxu1 %v5634_v2  ;;  %vm515_vm14 = vcmp.gt.f32.partialorder %v473_v14, 0.0  ;;  %v547_v20 = vmul.f32 0.2, %v473_v14  ;;  %v476_v21 = vadd.f32 %v5900_v3, %v475_v19  ;;  %v617_v3 = vlaneseq }
 0x202   :  { %vm518_vm15 = vcmp.gt.f32.partialorder %v484_v18, 0.0  ;;  %v550_v22 = vmul.f32 0.2, %v484_v18  ;;  %v581_v23 = vsel %vm517_vm13, %v481_v6, %v549_v17 }
 0x203   :  { %vm516_vm0 = vcmp.gt.f32.partialorder %v476_v21, 0.0  ;;  %v548_v24 = vmul.f32 0.2, %v476_v21  ;;  %v579_v26 = vsel %vm515_vm14, %v473_v14, %v547_v20  ;;  %v5997_v7 = vshrl.u32 %v617_v3, 7 }
 0x204   :  { %v582_v29 = vsel %vm518_vm15, %v484_v18, %v550_v22 }
 0x205   :  { %v580_v9 = vsel %vm516_vm0, %v476_v21, %v548_v24  ;;  %v598_v12 = vpack.c.bf16 %v582_v29, %v581_v23  ;;  %9811 = vst [vmem:[#allocation32_spill] sm:$0xff] %v5997_v7  ;;  %v6000_v10 = vsub.s32 1, %v5997_v7  ;;  %v6003_v25 = vsub.s32 0, %v5997_v7 }
 0x206   :  { %v597_v15 = vpack.c.bf16 %v580_v9, %v579_v26 }
 0x207   :  { %9812 = vst [vmem:[#allocation33_spill] sm:$0xff] %v6000_v10  ;;  %9813 = vst [vmem:[#allocation34_spill] sm:$0xff] %v6003_v25 }
 0x208   :  { %810 = vmatmul.mubr.bf16.gmra.mrb[28].mxu1 %v590_v13  ;;  %v615_v13 = vld [vmem:[#allocation10] sm:$0x3] }
 0x209   :  { %819 = vmatprep.mubr.bf16.mxu1 %v5634_v2  ;;  %v6006_v28 = vrot.slane %v615_v13, %v6000_v10  ;;  %v6009_v30 = vrot.slane %v615_v13, %v6003_v25 }
 0x210   :  { %820 = vmatmul.mubr.bf16.gmra.mrb[32].mxu1 %v591_v33 }
 0x211   :  { %829 = vmatprep.mubr.bf16.mxu1 %v5634_v2 }
 0x218   :  { %830 = vmatmul.mubr.bf16.gmra.mrb[36].mxu1 %v592_v31 }
 0x219   :  { %839 = vmatprep.mubr.bf16.mxu1 %v5634_v2 }
 0x220   :  { %840 = vmatmul.mubr.bf16.gmra.mrb[40].mxu1 %v593_v52 }
 0x221   :  { %849 = vmatprep.mubr.bf16.mxu1 %v5634_v2 }
 0x228   :  { %850 = vmatmul.mubr.bf16.gmra.mrb[44].mxu1 %v594_v49 }
 0x229   :  { %859 = vmatprep.mubr.bf16.mxu1 %v5634_v2 }
 0x230   :  { %860 = vmatmul.mubr.bf16.gmra.mrb[48].mxu1 %v595_v8 }
 0x231   :  { %869 = vmatprep.mubr.bf16.mxu1 %v5634_v2 }
 0x238   :  { %870 = vmatmul.mubr.bf16.gmra.mrb[52].mxu1 %v596_v57 }
 0x239   :  { %879 = vmatprep.mubr.bf16.mxu1 %v5634_v2 }
 0x240   :  { %880 = vmatmul.mubr.bf16.gmra.mrb[56].mxu1 %v597_v15 }
 0x241   :  { %889 = vmatprep.mubr.bf16.mxu1 %v5634_v2 }
 0x248   :  { %890 = vmatmul.mubr.bf16.gmra.mrb[60].mxu1 %v598_v12 }
 0x2a3   :  { %v741_v27 = vpop.f32.mrb[0].mxu1 }
 0x2a4   :  { %v743_v31 = vpop.f32.mrb[1].mxu1  ;;  %v6022_v37 = vadd.f32 %v741_v27, %v6009_v30 }
 0x2a5   :  { %v745_v2 = vpop.f32.mrb[2].mxu1  ;;  %v6016_v35 = vadd.f32 %v743_v31, %v6006_v28 }
 0x2a6   :  { %v6012_v32 = vadd.f32 %v745_v2, %v6009_v30  ;;  %v747_v33 = vpop.f32.mrb[3].mxu1 }
 0x2a7   :  { %9815 = vst [vmem:[#allocation36_spill] sm:$0xff] %v6016_v35  ;;  %v6019_v36 = vadd.f32 %v747_v33, %v6006_v28 }
 0x2a8   :  { %9814 = vst [vmem:[#allocation35_spill] sm:$0xff] %v6012_v32  ;;  %v4639_v39 = vpack.c.bf16 %v6012_v32, %v6022_v37 }
 0x2a9   :  { %9816 = vst [vmem:[#allocation37_spill] sm:$0xff] %v6019_v36  ;;  %v4637_v38 = vpack.c.bf16 %v6019_v36, %v6016_v35 }
 0x2ab   :  { %v751_v40 = vpop.f32.mrb[4].mxu1  ;;  %4638 = vmatprep.subr.bf16.mxu0 %v4637_v38 }
 0x2ac   :  { %v753_v41 = vpop.f32.mrb[5].mxu1  ;;  %4640 = vmatpush1.bf16.msra.mxu0 %v4639_v39  ;;  %v6038_v47 = vadd.f32 %v751_v40, %v6009_v30 }
 0x2ad   :  { %v755_v42 = vpop.f32.mrb[6].mxu1  ;;  %v6032_v45 = vadd.f32 %v753_v41, %v6006_v28 }
 0x2ae   :  { %v6029_v43 = vadd.f32 %v755_v42, %v6009_v30  ;;  %v757_v44 = vpop.f32.mrb[7].mxu1 }
 0x2af   :  { %v6035_v46 = vadd.f32 %v757_v44, %v6006_v28 }
 0x2b0   :  { %v4643_v49 = vpack.c.bf16 %v6029_v43, %v6038_v47 }
 0x2b1   :  { %9817 = vst [vmem:[#allocation38_spill] sm:$0xff] %v6035_v46  ;;  %v4641_v48 = vpack.c.bf16 %v6035_v46, %v6032_v45 }
 0x2b3   :  { %v761_v50 = vpop.f32.mrb[8].mxu1  ;;  %4642 = vmatprep.subr.bf16.mxu0 %v4641_v48 }
 0x2b4   :  { %v763_v52 = vpop.f32.mrb[9].mxu1  ;;  %4644 = vmatpush1.bf16.msra.mxu0 %v4643_v49  ;;  %v6054_v60 = vadd.f32 %v761_v50, %v6009_v30 }
 0x2b5   :  { %v765_v53 = vpop.f32.mrb[10].mxu1  ;;  %v6048_v58 = vadd.f32 %v763_v52, %v6006_v28 }
 0x2b6   :  { %v6045_v55 = vadd.f32 %v765_v53, %v6009_v30  ;;  %v767_v56 = vpop.f32.mrb[11].mxu1 }
 0x2b7   :  { %v6051_v59 = vadd.f32 %v767_v56, %v6006_v28 }
 0x2b8   :  { %v4647_v62 = vpack.c.bf16 %v6045_v55, %v6054_v60 }
 0x2b9   :  { %v4645_v61 = vpack.c.bf16 %v6051_v59, %v6048_v58 }
 0x2bb   :  { %v771_v63 = vpop.f32.mrb[12].mxu1  ;;  %4646 = vmatprep.subr.bf16.mxu0 %v4645_v61 }
 0x2bc   :  { %v773_v0 = vpop.f32.mrb[13].mxu1  ;;  %4648 = vmatpush1.bf16.msra.mxu0 %v4647_v62  ;;  %v6070_v57 = vadd.f32 %v771_v63, %v6009_v30 }
 0x2bd   :  { %v775_v1 = vpop.f32.mrb[14].mxu1  ;;  %v6064_v51 = vadd.f32 %v773_v0, %v6006_v28 }
 0x2be   :  { %v6061_v4 = vadd.f32 %v775_v1, %v6009_v30  ;;  %v777_v5 = vpop.f32.mrb[15].mxu1 }
 0x2bf   :  { %v6067_v54 = vadd.f32 %v777_v5, %v6006_v28 }
 0x2c0   :  { %v4651_v8 = vpack.c.bf16 %v6061_v4, %v6070_v57 }
 0x2c1   :  { %v4649_v6 = vpack.c.bf16 %v6067_v54, %v6064_v51 }
 0x2c3   :  { %v781_v11 = vpop.f32.mrb[16].mxu1  ;;  %4650 = vmatprep.subr.bf16.mxu0 %v4649_v6 }
 0x2c4   :  { %v783_v14 = vpop.f32.mrb[17].mxu1  ;;  %4652 = vmatpush1.bf16.msra.mxu0 %v4651_v8  ;;  %v6086_v21 = vadd.f32 %v781_v11, %v6009_v30 }
 0x2c5   :  { %v785_v16 = vpop.f32.mrb[18].mxu1  ;;  %v6080_v19 = vadd.f32 %v783_v14, %v6006_v28 }
 0x2c6   :  { %v6077_v17 = vadd.f32 %v785_v16, %v6009_v30  ;;  %v787_v18 = vpop.f32.mrb[19].mxu1 }
 0x2c7   :  { %v6083_v20 = vadd.f32 %v787_v18, %v6006_v28 }
 0x2c8   :  { %v4655_v23 = vpack.c.bf16 %v6077_v17, %v6086_v21 }
 0x2c9   :  { %v4653_v22 = vpack.c.bf16 %v6083_v20, %v6080_v19 }
 0x2cb   :  { %v791_v24 = vpop.f32.mrb[20].mxu1  ;;  %4654 = vmatprep.subr.bf16.mxu0 %v4653_v22 }
 0x2cc   :  { %v793_v26 = vpop.f32.mrb[21].mxu1  ;;  %4656 = vmatpush1.bf16.msra.mxu0 %v4655_v23  ;;  %v6102_v13 = vadd.f32 %v791_v24, %v6009_v30  ;;  %v5086_v23 = vld [vmem:[#allocation14] ss:$16 sps:$4 sm:$0xff]   ;;  %v5088_v24 = vld [vmem:[#allocation14 + $0x4] ss:$16 sps:$4 sm:$0xff]  }
 0x2cd   :  { %v795_v29 = vpop.f32.mrb[22].mxu1  ;;  %v6096_v15 = vadd.f32 %v793_v26, %v6006_v28  ;;  %1931 = vmatprep.subr.bf16.mxu1 %v5088_v24 }
 0x2ce   :  { %v6093_v9 = vadd.f32 %v795_v29, %v6009_v30  ;;  %v797_v12 = vpop.f32.mrb[23].mxu1  ;;  %v5091_v29 = vld [vmem:[#allocation14 + $0x24] ss:$16 sps:$4 sm:$0xff]   ;;  %1932 = vmatpush1.bf16.msra.mxu1 %v5086_v23 }
 0x2cf   :  { %v6099_v3 = vadd.f32 %v797_v12, %v6006_v28  ;;  %1933 = vmatprep.subr.bf16.mxu1 %v5091_v29 }
 0x2d0   :  { %v4659_v31 = vpack.c.bf16 %v6093_v9, %v6102_v13 }
 0x2d1   :  { %v4657_v27 = vpack.c.bf16 %v6099_v3, %v6096_v15 }
 0x2d3   :  { %v801_v2 = vpop.f32.mrb[24].mxu1  ;;  %4658 = vmatprep.subr.bf16.mxu0 %v4657_v27 }
 0x2d4   :  { %v803_v33 = vpop.f32.mrb[25].mxu1  ;;  %4660 = vmatpush1.bf16.msra.mxu0 %v4659_v31  ;;  %v6118_v44 = vadd.f32 %v801_v2, %v6009_v30  ;;  %v5089_v31 = vld [vmem:[#allocation14 + $0x20] ss:$16 sps:$4 sm:$0xff]  }
 0x2d5   :  { %v805_v38 = vpop.f32.mrb[26].mxu1  ;;  %v6112_v41 = vadd.f32 %v803_v33, %v6006_v28  ;;  %v5094_v33 = vld [vmem:[#allocation14 + $0x44] ss:$16 sps:$4 sm:$0xff]   ;;  %1934 = vmatpush1.bf16.msra.mxu1 %v5089_v31 }
 0x2d6   :  { %v6109_v39 = vadd.f32 %v805_v38, %v6009_v30  ;;  %v807_v40 = vpop.f32.mrb[27].mxu1  ;;  %1935 = vmatprep.subr.bf16.mxu1 %v5094_v33 }
 0x2d7   :  { %9818 = vst [vmem:[#allocation39_spill] sm:$0xff] %v6112_v41  ;;  %v6115_v42 = vadd.f32 %v807_v40, %v6006_v28 }
 0x2d8   :  { %v4663_v49 = vpack.c.bf16 %v6109_v39, %v6118_v44 }
 0x2d9   :  { %9819 = vst [vmem:[#allocation40_spill] sm:$0xff] %v6115_v42  ;;  %v4661_v48 = vpack.c.bf16 %v6115_v42, %v6112_v41 }
 0x2db   :  { %v811_v50 = vpop.f32.mrb[28].mxu1  ;;  %4662 = vmatprep.subr.bf16.mxu0 %v4661_v48 }
 0x2dc   :  { %v813_v52 = vpop.f32.mrb[29].mxu1  ;;  %4664 = vmatpush1.bf16.msra.mxu0 %v4663_v49  ;;  %v6134_v0 = vadd.f32 %v811_v50, %v6009_v30  ;;  %v5092_v50 = vld [vmem:[#allocation14 + $0x40] ss:$16 sps:$4 sm:$0xff]  }
 0x2dd   :  { %v815_v53 = vpop.f32.mrb[30].mxu1  ;;  %v6128_v62 = vadd.f32 %v813_v52, %v6006_v28  ;;  %1936 = vmatpush1.bf16.msra.mxu1 %v5092_v50 }
 0x2de   :  { %v6125_v56 = vadd.f32 %v815_v53, %v6009_v30  ;;  %v817_v61 = vpop.f32.mrb[31].mxu1 }
 0x2df   :  { %9820 = vst [vmem:[#allocation41_spill] sm:$0xff] %v6128_v62  ;;  %v6131_v63 = vadd.f32 %v817_v61, %v6006_v28 }
 0x2e0   :  { %v4667_v5 = vpack.c.bf16 %v6125_v56, %v6134_v0 }
 0x2e1   :  { %9821 = vst [vmem:[#allocation42_spill] sm:$0xff] %v6131_v63  ;;  %v4665_v1 = vpack.c.bf16 %v6131_v63, %v6128_v62 }
 0x2e3   :  { %v821_v6 = vpop.f32.mrb[32].mxu1  ;;  %4666 = vmatprep.subr.bf16.mxu0 %v4665_v1 }
 0x2e4   :  { %v823_v8 = vpop.f32.mrb[33].mxu1  ;;  %4668 = vmatpush1.bf16.msra.mxu0 %v4667_v5  ;;  %v6150_v26 = vadd.f32 %v821_v6, %v6009_v30 }
 0x2e5   :  { %v825_v11 = vpop.f32.mrb[34].mxu1  ;;  %v6144_v18 = vadd.f32 %v823_v8, %v6006_v28 }
 0x2e6   :  { %v6141_v14 = vadd.f32 %v825_v11, %v6009_v30  ;;  %v827_v16 = vpop.f32.mrb[35].mxu1 }
 0x2e7   :  { %9822 = vst [vmem:[#allocation43_spill] sm:$0xff] %v6144_v18  ;;  %v6147_v22 = vadd.f32 %v827_v16, %v6006_v28 }
 0x2e8   :  { %v4671_v27 = vpack.c.bf16 %v6141_v14, %v6150_v26 }
 0x2e9   :  { %9823 = vst [vmem:[#allocation44_spill] sm:$0xff] %v6147_v22  ;;  %v4669_v12 = vpack.c.bf16 %v6147_v22, %v6144_v18 }
 0x2eb   :  { %v831_v2 = vpop.f32.mrb[36].mxu1  ;;  %4670 = vmatprep.subr.bf16.mxu0 %v4669_v12 }
 0x2ec   :  { %v833_v38 = vpop.f32.mrb[37].mxu1  ;;  %4672 = vmatpush1.bf16.msra.mxu0 %v4671_v27  ;;  %v6166_v61 = vadd.f32 %v831_v2, %v6009_v30 }
 0x2ed   :  { %v835_v40 = vpop.f32.mrb[38].mxu1  ;;  %v6160_v52 = vadd.f32 %v833_v38, %v6006_v28 }
 0x2ee   :  { %v6157_v48 = vadd.f32 %v835_v40, %v6009_v30  ;;  %v837_v49 = vpop.f32.mrb[39].mxu1 }
 0x2ef   :  { %9824 = vst [vmem:[#allocation45_spill] sm:$0xff] %v6160_v52  ;;  %v6163_v53 = vadd.f32 %v837_v49, %v6006_v28 }
 0x2f0   :  { %v4675_v5 = vpack.c.bf16 %v6157_v48, %v6166_v61 }
 0x2f1   :  { %9825 = vst [vmem:[#allocation46_spill] sm:$0xff] %v6163_v53  ;;  %v4673_v1 = vpack.c.bf16 %v6163_v53, %v6160_v52 }
 0x2f3   :  { %v841_v6 = vpop.f32.mrb[40].mxu1  ;;  %4674 = vmatprep.subr.bf16.mxu0 %v4673_v1 }
 0x2f4   :  { %v843_v8 = vpop.f32.mrb[41].mxu1  ;;  %4676 = vmatpush1.bf16.msra.mxu0 %v4675_v5  ;;  %v6182_v12 = vadd.f32 %v841_v6, %v6009_v30 }
 0x2f5   :  { %v845_v11 = vpop.f32.mrb[42].mxu1  ;;  %v6176_v24 = vadd.f32 %v843_v8, %v6006_v28 }
 0x2f6   :  { %v6173_v16 = vadd.f32 %v845_v11, %v6009_v30  ;;  %v847_v23 = vpop.f32.mrb[43].mxu1 }
 0x2f7   :  { %9826 = vst [vmem:[#allocation47_spill] sm:$0xff] %v6176_v24  ;;  %v6179_v29 = vadd.f32 %v847_v23, %v6006_v28 }
 0x2f8   :  { %v4679_v31 = vpack.c.bf16 %v6173_v16, %v6182_v12 }
 0x2f9   :  { %9827 = vst [vmem:[#allocation48_spill] sm:$0xff] %v6179_v29  ;;  %v4677_v27 = vpack.c.bf16 %v6179_v29, %v6176_v24 }
 0x2fb   :  { %v851_v2 = vpop.f32.mrb[44].mxu1  ;;  %4678 = vmatprep.subr.bf16.mxu0 %v4677_v27 }
 0x2fc   :  { %v853_v33 = vpop.f32.mrb[45].mxu1  ;;  %4680 = vmatpush1.bf16.msra.mxu0 %v4679_v31  ;;  %v6198_v5 = vadd.f32 %v851_v2, %v6009_v30 }
 0x2fd   :  { %v855_v38 = vpop.f32.mrb[46].mxu1  ;;  %v6192_v50 = vadd.f32 %v853_v33, %v6006_v28 }
 0x2fe   :  { %v6189_v40 = vadd.f32 %v855_v38, %v6009_v30  ;;  %v857_v49 = vpop.f32.mrb[47].mxu1 }
 0x2ff   :  { %9828 = vst [vmem:[#allocation49_spill] sm:$0xff] %v6192_v50  ;;  %v6195_v1 = vadd.f32 %v857_v49, %v6006_v28 }
 0x300   :  { %v4683_v8 = vpack.c.bf16 %v6189_v40, %v6198_v5 }
 0x301   :  { %9829 = vst [vmem:[#allocation50_spill] sm:$0xff] %v6195_v1  ;;  %v4681_v6 = vpack.c.bf16 %v6195_v1, %v6192_v50 }
 0x303   :  { %v861_v11 = vpop.f32.mrb[48].mxu1  ;;  %4682 = vmatprep.subr.bf16.mxu0 %v4681_v6 }
 0x304   :  { %v863_v23 = vpop.f32.mrb[49].mxu1  ;;  %4684 = vmatpush1.bf16.msra.mxu0 %v4683_v8  ;;  %v6214_v49 = vadd.f32 %v861_v11, %v6009_v30 }
 0x305   :  { %v865_v27 = vpop.f32.mrb[50].mxu1  ;;  %v6208_v38 = vadd.f32 %v863_v23, %v6006_v28 }
 0x306   :  { %v6205_v31 = vadd.f32 %v865_v27, %v6009_v30  ;;  %v867_v33 = vpop.f32.mrb[51].mxu1  ;;  %9833 = vst [vmem:[#allocation54_spill] sm:$0xff] %v6214_v49 }
 0x307   :  { %9831 = vst [vmem:[#allocation52_spill] sm:$0xff] %v6208_v38  ;;  %v6211_v2 = vadd.f32 %v867_v33, %v6006_v28 }
 0x308   :  { %9830 = vst [vmem:[#allocation51_spill] sm:$0xff] %v6205_v31  ;;  %v4687_v6 = vpack.c.bf16 %v6205_v31, %v6214_v49 }
 0x309   :  { %9832 = vst [vmem:[#allocation53_spill] sm:$0xff] %v6211_v2  ;;  %v4685_v34 = vpack.c.bf16 %v6211_v2, %v6208_v38 }
 0x30b   :  { %v871_v8 = vpop.f32.mrb[52].mxu1  ;;  %4686 = vmatprep.subr.bf16.mxu0 %v4685_v34 }
 0x30c   :  { %v873_v27 = vpop.f32.mrb[53].mxu1  ;;  %4688 = vmatpush1.bf16.msra.mxu0 %v4687_v6  ;;  %v6230_v25 = vadd.f32 %v871_v8, %v6009_v30 }
 0x30d   :  { %v875_v7 = vpop.f32.mrb[54].mxu1  ;;  %v6224_v33 = vadd.f32 %v873_v27, %v6006_v28 }
 0x30e   :  { %v6221_v23 = vadd.f32 %v875_v7, %v6009_v30  ;;  %v877_v10 = vpop.f32.mrb[55].mxu1  ;;  %9837 = vst [vmem:[#allocation58_spill] sm:$0xff] %v6230_v25 }
 0x30f   :  { %9835 = vst [vmem:[#allocation56_spill] sm:$0xff] %v6224_v33  ;;  %v6227_v11 = vadd.f32 %v877_v10, %v6006_v28 }
 0x310   :  { %9834 = vst [vmem:[#allocation55_spill] sm:$0xff] %v6221_v23  ;;  %v4691_v34 = vpack.c.bf16 %v6221_v23, %v6230_v25 }
 0x311   :  { %9836 = vst [vmem:[#allocation57_spill] sm:$0xff] %v6227_v11  ;;  %v4689_v49 = vpack.c.bf16 %v6227_v11, %v6224_v33 }
 0x313   :  { %v881_v6 = vpop.f32.mrb[56].mxu1  ;;  %4690 = vmatprep.subr.bf16.mxu0 %v4689_v49 }
 0x314   :  { %v883_v7 = vpop.f32.mrb[57].mxu1  ;;  %4692 = vmatpush1.bf16.msra.mxu0 %v4691_v34  ;;  %v6246_v33 = vadd.f32 %v881_v6, %v6009_v30 }
 0x315   :  { %v885_v31 = vpop.f32.mrb[58].mxu1  ;;  %v6240_v10 = vadd.f32 %v883_v7, %v6006_v28 }
 0x316   :  { %v6237_v27 = vadd.f32 %v885_v31, %v6009_v30  ;;  %v887_v38 = vpop.f32.mrb[59].mxu1  ;;  %9840 = vst [vmem:[#allocation61_spill] sm:$0xff] %v6246_v33 }
 0x317   :  { %9838 = vst [vmem:[#allocation59_spill] sm:$0xff] %v6240_v10  ;;  %v6243_v8 = vadd.f32 %v887_v38, %v6006_v28  ;;  %v974_v38 = vmul.f32 %v6019_v36, %v6019_v36 }
 0x318   :  { %v4695_v49 = vpack.c.bf16 %v6237_v27, %v6246_v33 }
 0x319   :  { %9839 = vst [vmem:[#allocation60_spill] sm:$0xff] %v6243_v8  ;;  %v4693_v25 = vpack.c.bf16 %v6243_v8, %v6240_v10 }
 0x31b   :  { %v891_v34 = vpop.f32.mrb[60].mxu1  ;;  %4694 = vmatprep.subr.bf16.mxu0 %v4693_v25  ;;  %v972_v25 = vmul.f32 %v6016_v35, %v6016_v35  ;;  %v977_v35 = vmul.f32 %v6029_v43, %v6029_v43 }
 0x31c   :  { %v893_v31 = vpop.f32.mrb[61].mxu1  ;;  %4696 = vmatpush1.bf16.msra.mxu0 %v4695_v49  ;;  %v6264_v33 = vadd.f32 %v891_v34, %v6009_v30  ;;  %v973_v49 = vmul.f32 %v6012_v32, %v6012_v32  ;;  %v982_v32 = vmul.f32 %v6051_v59, %v6051_v59 }
 0x31d   :  { %v895_v23 = vpop.f32.mrb[62].mxu1  ;;  %v6258_v6 = vadd.f32 %v893_v31, %v6006_v28  ;;  %v978_v31 = vmul.f32 %v6035_v46, %v6035_v46 }
 0x31e   :  { %v6253_v7 = vadd.f32 %v895_v23, %v6009_v30  ;;  %v897_v11 = vpop.f32.mrb[63].mxu1  ;;  %9843 = vst [vmem:[#allocation64_spill] sm:$0xff] %v6264_v33  ;;  %v971_v30 = vmul.f32 %v6022_v37, %v6022_v37 }
 0x31f   :  { %9841 = vst [vmem:[#allocation62_spill] sm:$0xff] %v6258_v6  ;;  %v6261_v10 = vadd.f32 %v897_v11, %v6006_v28  ;;  %v4701_v28 = vpack.c.bf16 %v974_v38, %v972_v25  ;;  %v976_v11 = vmul.f32 %v6032_v45, %v6032_v45  ;;  %v975_v38 = vmul.f32 %v6038_v47, %v6038_v47 }
 0x320   :  { %v4699_v36 = vpack.c.bf16 %v6253_v7, %v6264_v33  ;;  %v4703_v34 = vpack.c.bf16 %v973_v49, %v971_v30  ;;  %v9844_v33 = vmov 1.0   ;;  %v986_v49 = vmul.f32 %v6067_v54, %v6067_v54 }
 0x321   :  { %9842 = vst [vmem:[#allocation63_spill] sm:$0xff] %v6261_v10  ;;  %v4697_v23 = vpack.c.bf16 %v6261_v10, %v6258_v6  ;;  %v4705_v46 = vpack.c.bf16 %v978_v31, %v976_v11  ;;  %v4707_v25 = vpack.c.bf16 %v977_v35, %v975_v38  ;;  %v979_v31 = vmul.f32 %v6054_v60, %v6054_v60 }
 0x322   :  { %v984_v30 = vmul.f32 %v6064_v51, %v6064_v51  ;;  %v990_v35 = vmul.f32 %v6083_v20, %v6083_v20  ;;  %v983_v38 = vmul.f32 %v6070_v57, %v6070_v57 }
 0x323   :  { %4698 = vmatprep.subr.bf16.mxu0 %v4697_v23  ;;  %v981_v23 = vmul.f32 %v6045_v55, %v6045_v55 }
 0x324   :  { %4700 = vmatpush1.bf16.msra.mxu0 %v4699_v36  ;;  %v980_v36 = vmul.f32 %v6048_v58, %v6048_v58 }
 0x325   :  { %4702 = vmatprep.subr.bf16.mxu0 %v4701_v28  ;;  %v4711_v11 = vpack.c.bf16 %v981_v23, %v979_v31  ;;  %v994_v23 = vmul.f32 %v6099_v3, %v6099_v3  ;;  %v987_v31 = vmul.f32 %v6086_v21, %v6086_v21 }
 0x326   :  { %v4709_v28 = vpack.c.bf16 %v982_v32, %v980_v36  ;;  %v988_v32 = vmul.f32 %v6080_v19, %v6080_v19 }
 0x327   :  { %965 = vmatmul.mubr.f32.vlgmr.msra.gmra.mrb[32].mxu0 %v9844_v33 }
 0x328   :  { %4704 = vmatpush1.bf16.msra.mxu0 %v4703_v34  ;;  %1099 = vmatprep.mubr.f32.mxu0 %v9844_v33  ;;  %v4713_v34 = vpack.c.bf16 %v986_v49, %v984_v30  ;;  %v992_v49 = vmul.f32 %v6096_v15, %v6096_v15 }
 0x329   :  { %4706 = vmatprep.subr.bf16.mxu0 %v4705_v46  ;;  %v985_v46 = vmul.f32 %v6061_v4, %v6061_v4 }
 0x32b   :  { %v4715_v36 = vpack.c.bf16 %v985_v46, %v983_v38  ;;  %v998_v46 = vmul.f32 %v6115_v42, %v6115_v42  ;;  %v991_v38 = vmul.f32 %v6102_v13, %v6102_v13 }
 0x32c   :  { %4708 = vmatpush1.bf16.msra.mxu0 %v4707_v25  ;;  %v989_v25 = vmul.f32 %v6077_v17, %v6077_v17 }
 0x32d   :  { %4710 = vmatprep.subr.bf16.mxu0 %v4709_v28  ;;  %v4717_v28 = vpack.c.bf16 %v990_v35, %v988_v32  ;;  %v996_v35 = vmul.f32 %v6112_v41, %v6112_v41 }
 0x32e   :  { %v4719_v30 = vpack.c.bf16 %v989_v25, %v987_v31  ;;  %v1002_v25 = vmul.f32 %v6131_v63, %v6131_v63  ;;  %v995_v31 = vmul.f32 %v6118_v44, %v6118_v44 }
 0x330   :  { %4712 = vmatpush1.bf16.msra.mxu0 %v4711_v11  ;;  %v993_v11 = vmul.f32 %v6093_v9, %v6093_v9 }
 0x331   :  { %4714 = vmatprep.subr.bf16.mxu0 %v4713_v34  ;;  %v4721_v34 = vpack.c.bf16 %v994_v23, %v992_v49  ;;  %v1000_v23 = vmul.f32 %v6128_v62, %v6128_v62 }
 0x332   :  { %v4723_v32 = vpack.c.bf16 %v993_v11, %v991_v38  ;;  %v1006_v11 = vmul.f32 %v6147_v22, %v6147_v22  ;;  %v999_v38 = vmul.f32 %v6134_v0, %v6134_v0 }
 0x334   :  { %4716 = vmatpush1.bf16.msra.mxu0 %v4715_v36  ;;  %v997_v36 = vmul.f32 %v6109_v39, %v6109_v39 }
 0x335   :  { %4718 = vmatprep.subr.bf16.mxu0 %v4717_v28  ;;  %v4725_v28 = vpack.c.bf16 %v998_v46, %v996_v35  ;;  %v1004_v46 = vmul.f32 %v6144_v18, %v6144_v18  ;;  %v9856_v18 = vld [vmem:[#allocation33_spill] sm:$0xff] }
 0x336   :  { %v4727_v49 = vpack.c.bf16 %v997_v36, %v995_v31  ;;  %v1010_v36 = vmul.f32 %v6163_v53, %v6163_v53  ;;  %v1003_v31 = vmul.f32 %v6150_v26, %v6150_v26 }
 0x338   :  { %4720 = vmatpush1.bf16.msra.mxu0 %v4719_v30  ;;  %v1001_v30 = vmul.f32 %v6125_v56, %v6125_v56 }
 0x339   :  { %4722 = vmatprep.subr.bf16.mxu0 %v4721_v34  ;;  %v4729_v34 = vpack.c.bf16 %v1002_v25, %v1000_v23  ;;  %v1008_v25 = vmul.f32 %v6160_v52, %v6160_v52 }
 0x33a   :  { %v4731_v35 = vpack.c.bf16 %v1001_v30, %v999_v38  ;;  %v1014_v30 = vmul.f32 %v6179_v29, %v6179_v29  ;;  %v1007_v38 = vmul.f32 %v6166_v61, %v6166_v61  ;;  %v9848_v29 = vld [vmem:[#allocation54_spill] sm:$0xff] }
 0x33c   :  { %4724 = vmatpush1.bf16.msra.mxu0 %v4723_v32  ;;  %v1005_v32 = vmul.f32 %v6141_v14, %v6141_v14 }
 0x33d   :  { %4726 = vmatprep.subr.bf16.mxu0 %v4725_v28  ;;  %v4733_v28 = vpack.c.bf16 %v1006_v11, %v1004_v46  ;;  %v1012_v11 = vmul.f32 %v6176_v24, %v6176_v24  ;;  %v9850_v24 = vld [vmem:[#allocation55_spill] sm:$0xff] }
 0x33e   :  { %v4735_v23 = vpack.c.bf16 %v1005_v32, %v1003_v31  ;;  %v1018_v32 = vmul.f32 %v6195_v1, %v6195_v1  ;;  %v1011_v31 = vmul.f32 %v6182_v12, %v6182_v12  ;;  %v9846_v1 = vld [vmem:[#allocation51_spill] sm:$0xff] }
 0x340   :  { %4728 = vmatpush1.bf16.msra.mxu0 %v4727_v49  ;;  %v1009_v49 = vmul.f32 %v6157_v48, %v6157_v48 }
 0x341   :  { %4730 = vmatprep.subr.bf16.mxu0 %v4729_v34  ;;  %v4737_v34 = vpack.c.bf16 %v1010_v36, %v1008_v25  ;;  %v1016_v36 = vmul.f32 %v6192_v50, %v6192_v50 }
 0x342   :  { %v4739_v46 = vpack.c.bf16 %v1009_v49, %v1007_v38  ;;  %v1022_v49 = vmul.f32 %v6211_v2, %v6211_v2  ;;  %v1015_v38 = vmul.f32 %v6198_v5, %v6198_v5  ;;  %v1019_v2 = vmul.f32 %v9848_v29, %v9848_v29 }
 0x344   :  { %4732 = vmatpush1.bf16.msra.mxu0 %v4731_v35  ;;  %v1013_v35 = vmul.f32 %v6173_v16, %v6173_v16 }
 0x345   :  { %4734 = vmatprep.subr.bf16.mxu0 %v4733_v28  ;;  %v4741_v28 = vpack.c.bf16 %v1014_v30, %v1012_v11  ;;  %v9845_v30 = vld [vmem:[#allocation52_spill] sm:$0xff] }
 0x346   :  { %v4743_v25 = vpack.c.bf16 %v1013_v35, %v1011_v31  ;;  %v1020_v11 = vmul.f32 %v9845_v30, %v9845_v30  ;;  %v9847_v35 = vld [vmem:[#allocation57_spill] sm:$0xff]  ;;  %v9851_v30 = vld [vmem:[#allocation58_spill] sm:$0xff] }
 0x347   :  { %v1026_v31 = vmul.f32 %v9847_v35, %v9847_v35  ;;  %v1023_v35 = vmul.f32 %v9851_v30, %v9851_v30 }
 0x348   :  { %4736 = vmatpush1.bf16.msra.mxu0 %v4735_v23  ;;  %v1017_v23 = vmul.f32 %v6189_v40, %v6189_v40  ;;  %v4749_v50 = vpack.c.bf16 %v1022_v49, %v1020_v11  ;;  %v9852_v49 = vld [vmem:[#allocation59_spill] sm:$0xff] }
 0x349   :  { %4738 = vmatprep.subr.bf16.mxu0 %v4737_v34  ;;  %v4745_v34 = vpack.c.bf16 %v1018_v32, %v1016_v36  ;;  %v9849_v32 = vld [vmem:[#allocation56_spill] sm:$0xff]  ;;  %v1028_v11 = vmul.f32 %v9852_v49, %v9852_v49 }
 0x34a   :  { %v1024_v36 = vmul.f32 %v9849_v32, %v9849_v32  ;;  %v9853_v32 = vld [vmem:[#allocation61_spill] sm:$0xff] }
 0x34c   :  { %4740 = vmatpush1.bf16.msra.mxu0 %v4739_v46  ;;  %v4747_v46 = vpack.c.bf16 %v1017_v23, %v1015_v38  ;;  %v1030_v23 = vmul.f32 %v6243_v8, %v6243_v8  ;;  %v4753_v38 = vpack.c.bf16 %v1026_v31, %v1024_v36  ;;  %v1027_v8 = vmul.f32 %v9853_v32, %v9853_v32 }
 0x34d   :  { %4742 = vmatprep.subr.bf16.mxu0 %v4741_v28  ;;  %v1021_v28 = vmul.f32 %v9846_v1, %v9846_v1  ;;  %v1032_v31 = vmul.f32 %v6258_v6, %v6258_v6  ;;  %v5103_v6 = vld [vmem:[#allocation14 + $0xa4] ss:$16 sps:$4 sm:$0xff]  }
 0x350   :  { %4744 = vmatpush1.bf16.msra.mxu0 %v4743_v25  ;;  %v4751_v25 = vpack.c.bf16 %v1021_v28, %v1019_v2  ;;  %v1034_v2 = vmul.f32 %v6261_v10, %v6261_v10  ;;  %v4757_v28 = vpack.c.bf16 %v1030_v23, %v1028_v11  ;;  %v5095_v23 = vld [vmem:[#allocation14 + $0x60] ss:$16 sps:$4 sm:$0xff]   ;;  %v5097_v11 = vld [vmem:[#allocation14 + $0x64] ss:$16 sps:$4 sm:$0xff]  }
 0x351   :  { %4746 = vmatprep.subr.bf16.mxu0 %v4745_v34  ;;  %v1025_v34 = vmul.f32 %v9850_v24, %v9850_v24  ;;  %1937 = vmatprep.subr.bf16.mxu1 %v5097_v11  ;;  %v5109_v11 = vld [vmem:[#allocation14 + $0xe4] ss:$16 sps:$4 sm:$0xff]  }
 0x352   :  { %1938 = vmatpush1.bf16.msra.mxu1 %v5095_v23  ;;  %v5127_v23 = vld [vmem:[#allocation14 + $0x6c] ss:$16 sps:$4 sm:$0xff]  }
 0x354   :  { %4748 = vmatpush1.bf16.msra.mxu0 %v4747_v46  ;;  %v4755_v46 = vpack.c.bf16 %v1025_v34, %v1023_v35  ;;  %v4761_v35 = vpack.c.bf16 %v1034_v2, %v1032_v31  ;;  %v9854_v34 = vld [vmem:[#allocation64_spill] sm:$0xff]  ;;  %v5116_v31 = vld [vmem:[#allocation14 + $0x28] ss:$16 sps:$4 sm:$0xff]  }
 0x355   :  { %4750 = vmatprep.subr.bf16.mxu0 %v4749_v50  ;;  %v1029_v50 = vmul.f32 %v6237_v27, %v6237_v27  ;;  %v5118_v2 = vld [vmem:[#allocation14 + $0x2c] ss:$16 sps:$4 sm:$0xff]  }
 0x357   :  { %v4759_v36 = vpack.c.bf16 %v1029_v50, %v1027_v8  ;;  %v5110_v8 = vld [vmem:[#allocation14 + $0x8] ss:$16 sps:$4 sm:$0xff]   ;;  %v5112_v50 = vld [vmem:[#allocation14 + $0xc] ss:$16 sps:$4 sm:$0xff]  }
 0x358   :  { %4752 = vmatpush1.bf16.msra.mxu0 %v4751_v25  ;;  %v1033_v25 = vmul.f32 %v6253_v7, %v6253_v7 }
 0x359   :  { %4754 = vmatprep.subr.bf16.mxu0 %v4753_v38  ;;  %v1031_v38 = vmul.f32 %v9854_v34, %v9854_v34 }
 0x35b   :  { %v4763_v10 = vpack.c.bf16 %v1033_v25, %v1031_v38  ;;  %v5106_v25 = vld [vmem:[#allocation14 + $0xc4] ss:$16 sps:$4 sm:$0xff]   ;;  %v5104_v38 = vld [vmem:[#allocation14 + $0xc0] ss:$16 sps:$4 sm:$0xff]  }
 0x35c   :  { %4756 = vmatpush1.bf16.msra.mxu0 %v4755_v46  ;;  %v5100_v46 = vld [vmem:[#allocation14 + $0x84] ss:$16 sps:$4 sm:$0xff]  }
 0x35d   :  { %4758 = vmatprep.subr.bf16.mxu0 %v4757_v28  ;;  %v5098_v28 = vld [vmem:[#allocation14 + $0x80] ss:$16 sps:$4 sm:$0xff]   ;;  %1939 = vmatprep.subr.bf16.mxu1 %v5100_v46  ;;  %v5125_v46 = vld [vmem:[#allocation14 + $0x68] ss:$16 sps:$4 sm:$0xff]  }
 0x35e   :  { %1940 = vmatpush1.bf16.msra.mxu1 %v5098_v28  ;;  %v5115_v28 = vld [vmem:[#allocation14 + $0x104] ss:$16 sps:$4 sm:$0xff]  }
 0x35f   :  { %1941 = vmatprep.subr.bf16.mxu1 %v5103_v6  ;;  %v5113_v6 = vld [vmem:[#allocation14 + $0x100] ss:$16 sps:$4 sm:$0xff]  }
 0x360   :  { %4760 = vmatpush1.bf16.msra.mxu0 %v4759_v36  ;;  %v5101_v36 = vld [vmem:[#allocation14 + $0xa0] ss:$16 sps:$4 sm:$0xff]  }
 0x361   :  { %4762 = vmatprep.subr.bf16.mxu0 %v4761_v35  ;;  %v5119_v35 = vld [vmem:[#allocation14 + $0x48] ss:$16 sps:$4 sm:$0xff]  }
 0x362   :  { %1942 = vmatpush1.bf16.msra.mxu1 %v5101_v36  ;;  %v5124_v36 = vld [vmem:[#allocation14 + $0x124] ss:$16 sps:$4 sm:$0xff]  }
 0x363   :  { %1943 = vmatprep.subr.bf16.mxu1 %v5106_v25  ;;  %v5122_v25 = vld [vmem:[#allocation14 + $0x120] ss:$16 sps:$4 sm:$0xff]  }
 0x364   :  { %4764 = vmatpush1.bf16.msra.mxu0 %v4763_v10  ;;  %v5121_v10 = vld [vmem:[#allocation14 + $0x4c] ss:$16 sps:$4 sm:$0xff]  }
 0x365   :  { %2124 = vmatprep.subr.bf16.mxu0 %v5112_v50  ;;  %v5107_v50 = vld [vmem:[#allocation14 + $0xe0] ss:$16 sps:$4 sm:$0xff]  }
 0x366   :  { %1944 = vmatpush1.bf16.msra.mxu1 %v5104_v38  ;;  %v5131_v38 = vld [vmem:[#allocation14 + $0x140] ss:$16 sps:$4 sm:$0xff]  }
 0x367   :  { %1100 = vmatmul.mubr.f32.vlgmr.msra.gmra.mrb[34].mxu0 %v9844_v33  ;;  %1945 = vmatprep.subr.bf16.mxu1 %v5109_v11  ;;  %v5137_v11 = vld [vmem:[#allocation14 + $0xc8] ss:$16 sps:$4 sm:$0xff]  }
 0x368   :  { %2125 = vmatpush1.bf16.msra.mxu0 %v5110_v8  ;;  %v5130_v8 = vld [vmem:[#allocation14 + $0x8c] ss:$16 sps:$4 sm:$0xff]  }
 0x369   :  { %2126 = vmatprep.subr.bf16.mxu0 %v5118_v2  ;;  %v5128_v2 = vld [vmem:[#allocation14 + $0x88] ss:$16 sps:$4 sm:$0xff]  }
 0x36a   :  { %1946 = vmatpush1.bf16.msra.mxu1 %v5107_v50  ;;  %v5143_v50 = vld [vmem:[#allocation14 + $0xe8] ss:$16 sps:$4 sm:$0xff]  }
 0x36b   :  { %1947 = vmatprep.subr.bf16.mxu1 %v5115_v28  ;;  %v5146_v28 = vld [vmem:[#allocation14 + $0x108] ss:$16 sps:$4 sm:$0xff]  }
 0x36c   :  { %2127 = vmatpush1.bf16.msra.mxu0 %v5116_v31  ;;  %v5136_v31 = vld [vmem:[#allocation14 + $0xac] ss:$16 sps:$4 sm:$0xff]  }
 0x36d   :  { %2128 = vmatprep.subr.bf16.mxu0 %v5121_v10  ;;  %v5134_v10 = vld [vmem:[#allocation14 + $0xa8] ss:$16 sps:$4 sm:$0xff]  }
 0x36e   :  { %1948 = vmatpush1.bf16.msra.mxu1 %v5113_v6  ;;  %v5152_v6 = vld [vmem:[#allocation14 + $0x128] ss:$16 sps:$4 sm:$0xff]  }
 0x36f   :  { %1949 = vmatprep.subr.bf16.mxu1 %v5124_v36  ;;  %v5155_v36 = vld [vmem:[#allocation14 + $0x148] ss:$16 sps:$4 sm:$0xff]  }
 0x370   :  { %2129 = vmatpush1.bf16.msra.mxu0 %v5119_v35  ;;  %v5133_v35 = vld [vmem:[#allocation14 + $0x144] ss:$16 sps:$4 sm:$0xff]  }
 0x371   :  { %2130 = vmatprep.subr.bf16.mxu0 %v5127_v23  ;;  %v5139_v23 = vld [vmem:[#allocation14 + $0xcc] ss:$16 sps:$4 sm:$0xff]  }
 0x372   :  { %1950 = vmatpush1.bf16.msra.mxu1 %v5122_v25  ;;  %v5163_v25 = vld [vmem:[#allocation14 + $0x16c] ss:$16 sps:$4 sm:$0xff]  }
 0x373   :  { %1951 = vmatprep.subr.bf16.mxu1 %v5133_v35  ;;  %v5140_v35 = vld [vmem:[#allocation14 + $0x160] ss:$16 sps:$4 sm:$0xff]  }
 0x374   :  { %2131 = vmatpush1.bf16.msra.mxu0 %v5125_v46  ;;  %v5145_v46 = vld [vmem:[#allocation14 + $0xec] ss:$16 sps:$4 sm:$0xff]  }
 0x375   :  { %2132 = vmatprep.subr.bf16.mxu0 %v5130_v8  ;;  %v5148_v8 = vld [vmem:[#allocation14 + $0x10c] ss:$16 sps:$4 sm:$0xff]  }
 0x376   :  { %1952 = vmatpush1.bf16.msra.mxu1 %v5131_v38  ;;  %v5161_v38 = vld [vmem:[#allocation14 + $0x168] ss:$16 sps:$4 sm:$0xff]  }
 0x378   :  { %2133 = vmatpush1.bf16.msra.mxu0 %v5128_v2  ;;  %v5154_v2 = vld [vmem:[#allocation14 + $0x12c] ss:$16 sps:$4 sm:$0xff]  }
 0x379   :  { %2134 = vmatprep.subr.bf16.mxu0 %v5136_v31  ;;  %v5157_v31 = vld [vmem:[#allocation14 + $0x14c] ss:$16 sps:$4 sm:$0xff]  }
 0x37c   :  { %2135 = vmatpush1.bf16.msra.mxu0 %v5134_v10  ;;  %v5142_v10 = vld [vmem:[#allocation14 + $0x164] ss:$16 sps:$4 sm:$0xff]  }
 0x37d   :  { %2136 = vmatprep.subr.bf16.mxu0 %v5139_v23  ;;  %1953 = vmatprep.subr.bf16.mxu1 %v5142_v10  ;;  %v5151_v23 = vld [vmem:[#allocation14 + $0x184] ss:$16 sps:$4 sm:$0xff]   ;;  %v5167_v10 = vld [vmem:[#allocation14 + $0x1c0] ss:$16 sps:$4 sm:$0xff]  }
 0x37e   :  { %1954 = vmatpush1.bf16.msra.mxu1 %v5140_v35  ;;  %v5178_v35 = vld [vmem:[#allocation14 + $0x1e4] ss:$16 sps:$4 sm:$0xff]  }
 0x37f   :  { %1955 = vmatprep.subr.bf16.mxu1 %v5151_v23  ;;  %v5176_v23 = vld [vmem:[#allocation14 + $0x1e0] ss:$16 sps:$4 sm:$0xff]  }
 0x380   :  { %2137 = vmatpush1.bf16.msra.mxu0 %v5137_v11  ;;  %v5166_v11 = vld [vmem:[#allocation14 + $0x18c] ss:$16 sps:$4 sm:$0xff]  }
 0x381   :  { %2138 = vmatprep.subr.bf16.mxu0 %v5145_v46  ;;  %v5149_v46 = vld [vmem:[#allocation14 + $0x180] ss:$16 sps:$4 sm:$0xff]  }
 0x382   :  { %1956 = vmatpush1.bf16.msra.mxu1 %v5149_v46 }
 0x384   :  { %2139 = vmatpush1.bf16.msra.mxu0 %v5143_v50  ;;  %v5164_v50 = vld [vmem:[#allocation14 + $0x188] ss:$16 sps:$4 sm:$0xff]  }
 0x385   :  { %2140 = vmatprep.subr.bf16.mxu0 %v5148_v8  ;;  %v5160_v8 = vld [vmem:[#allocation14 + $0x1a4] ss:$16 sps:$4 sm:$0xff]  }
 0x386   :  { %1957 = vmatprep.subr.bf16.mxu1 %v5160_v8 }
 0x388   :  { %2141 = vmatpush1.bf16.msra.mxu0 %v5146_v28  ;;  %v5172_v28 = vld [vmem:[#allocation14 + $0x1ac] ss:$16 sps:$4 sm:$0xff]  }
 0x389   :  { %2142 = vmatprep.subr.bf16.mxu0 %v5154_v2  ;;  %v5158_v2 = vld [vmem:[#allocation14 + $0x1a0] ss:$16 sps:$4 sm:$0xff]  }
 0x38a   :  { %1958 = vmatpush1.bf16.msra.mxu1 %v5158_v2 }
 0x38c   :  { %2143 = vmatpush1.bf16.msra.mxu0 %v5152_v6  ;;  %v5170_v6 = vld [vmem:[#allocation14 + $0x1a8] ss:$16 sps:$4 sm:$0xff]  }
 0x38d   :  { %2144 = vmatprep.subr.bf16.mxu0 %v5157_v31  ;;  %v5169_v31 = vld [vmem:[#allocation14 + $0x1c4] ss:$16 sps:$4 sm:$0xff]  }
 0x38e   :  { %1959 = vmatprep.subr.bf16.mxu1 %v5169_v31 }
 0x38f   :  { %1960 = vmatpush1.bf16.msra.mxu1 %v5167_v10 }
 0x390   :  { %2145 = vmatpush1.bf16.msra.mxu0 %v5155_v36  ;;  %v5175_v36 = vld [vmem:[#allocation14 + $0x1cc] ss:$16 sps:$4 sm:$0xff]   ;;  %1961 = vmatprep.subr.bf16.mxu1 %v5178_v35 }
 0x391   :  { %2146 = vmatprep.subr.bf16.mxu0 %v5163_v25  ;;  %v5173_v25 = vld [vmem:[#allocation14 + $0x1c8] ss:$16 sps:$4 sm:$0xff]   ;;  %v1106_v35 = vld [vmem:[#allocation11] sm:$0x3] }
 0x393   :  { %1962 = vmatpush1.bf16.msra.mxu1 %v5176_v23 }
 0x394   :  { %2147 = vmatpush1.bf16.msra.mxu0 %v5161_v38  ;;  %v5181_v38 = vld [vmem:[#allocation14 + $0x1ec] ss:$16 sps:$4 sm:$0xff]  }
 0x395   :  { %2148 = vmatprep.subr.bf16.mxu0 %v5166_v11  ;;  %v5179_v11 = vld [vmem:[#allocation14 + $0x1e8] ss:$16 sps:$4 sm:$0xff]  }
 0x398   :  { %2149 = vmatpush1.bf16.msra.mxu0 %v5164_v50 }
 0x399   :  { %2150 = vmatprep.subr.bf16.mxu0 %v5172_v28 }
 0x39c   :  { %2151 = vmatpush1.bf16.msra.mxu0 %v5170_v6 }
 0x39d   :  { %2152 = vmatprep.subr.bf16.mxu0 %v5175_v36 }
 0x3a0   :  { %2153 = vmatpush1.bf16.msra.mxu0 %v5173_v25 }
 0x3a1   :  { %2154 = vmatprep.subr.bf16.mxu0 %v5181_v38  ;;  %v9855_v38 = vld [vmem:[#allocation34_spill] sm:$0xff] }
 0x3a2   :  { %v1124_v23 = vrot.slane %v1106_v35, %v9855_v38 }
 0x3a4   :  { %2155 = vmatpush1.bf16.msra.mxu0 %v5179_v11  ;;  %v5636_v11 = vmov 1966171168  }
 0x3a5   :  { %v1139_v22 = vunpack.c.l.s4 %v5636_v11 }
 0x3fa   :  { %v966_v46 = vpop.f32.mrb[32].mxu0 }
 0x3fb   :  { %v968_v50 = vpop.f32.mrb[33].mxu0  ;;  %v1108_v8 = vmul.f32 0.00390625, %v966_v46  ;;  %v1128_v46 = vrot.slane %v1106_v35, %v9856_v18  ;;  %v9861_v35 = vld [vmem:[#allocation37_spill] sm:$0xff] }
 0x3fc   :  { %v1109_v28 = vmul.f32 0.00390625, %v968_v50 }
 0x3fd   :  { %v1112_v6 = vmul.f32 %v1108_v8, %v1108_v8 }
 0x3fe   :  { %v1113_v31 = vmul.f32 %v1109_v28, %v1109_v28 }
 0x43a   :  { %v1101_v2 = vpop.f32.mrb[34].mxu0 }
 0x43b   :  { %v1110_v33 = vmul.f32 0.00390625, %v1101_v2  ;;  %v1103_v49 = vpop.f32.mrb[35].mxu0  ;;  %v1140_v2 = vunpack.c.0.s8 %v1139_v22 }
 0x43c   :  { %v1111_v36 = vmul.f32 0.00390625, %v1103_v49 }
 0x43d   :  { %v1114_v10 = vsub.f32 %v1110_v33, %v1112_v6 }
 0x43e   :  { %v1115_v25 = vsub.f32 %v1111_v36, %v1113_v31  ;;  %v9858_v31 = vld [vmem:[#allocation32_spill] sm:$0xff] }
 0x43f   :  { %v1116_v53 = vadd.f32 1e-05, %v1114_v10  ;;  %v6409_v36 = vsub.s32 %v1140_v2, %v9858_v31  ;;  %v9863_v2 = vld [vmem:[#allocation39_spill] sm:$0xff] }
 0x440   :  { %v1117_v52 = vadd.f32 1e-05, %v1115_v25  ;;  %v9874_v31 = vld [vmem:[#allocation47_spill] sm:$0xff] }
 0x441   :  { %5214 = vrsqrt.f32 %v1116_v53  ;;  %9859 = vst [vmem:[#allocation51_spill] sm:$0xff] %v6409_v36 }
 0x442   :  { %5216 = vrsqrt.f32 %v1117_v52  ;;  %v9857_v52 = vld [vmem:[#allocation35_spill] sm:$0xff] }
 0x44b   :  { %v5215_v50 = vpop.eup %5214 }
 0x44c   :  { %v5217_v63 = vpop.eup %5216  ;;  %v1131_v62 = vmul.f32 %v5215_v50, %v1124_v23 }
 0x44d   :  { %v1132_v42 = vmul.f32 %v5217_v63, %v1128_v46  ;;  %v1107_v46 = vld [vmem:[#allocation13] sm:$0x3] }
 0x44e   :  { %v1133_v41 = vmul.f32 %v1131_v62, %v1108_v8  ;;  %v1157_v33 = vrot.slane %v1131_v62, %v9855_v38 }
 0x44f   :  { %v1134_v49 = vmul.f32 %v1132_v42, %v1109_v28  ;;  %v6412_v10 = vrot.slane %v1132_v42, %v9855_v38  ;;  %v9860_v28 = vld [vmem:[#allocation36_spill] sm:$0xff] }
 0x450   :  { %v6403_v6 = vmul.f32 %v1157_v33, %v6022_v37  ;;  %v6406_v53 = vmul.f32 %v1157_v33, %v9857_v52  ;;  %v6415_v25 = vmul.f32 %v1157_v33, %v6038_v47  ;;  %v6418_v63 = vmul.f32 %v1157_v33, %v6029_v43 }
 0x451   :  { %v6421_v62 = vmul.f32 %v1157_v33, %v6054_v60  ;;  %v6424_v37 = vmul.f32 %v1157_v33, %v6045_v55  ;;  %v6427_v22 = vmul.f32 %v1157_v33, %v6070_v57  ;;  %v6430_v8 = vmul.f32 %v1157_v33, %v6061_v4 }
 0x452   :  { %v6433_v42 = vmul.f32 %v1157_v33, %v6086_v21  ;;  %v6436_v47 = vmul.f32 %v1157_v33, %v6077_v17  ;;  %v6439_v43 = vmul.f32 %v1157_v33, %v6102_v13  ;;  %v6442_v60 = vmul.f32 %v1157_v33, %v6093_v9 }
 0x453   :  { %v6445_v55 = vmul.f32 %v1157_v33, %v6118_v44  ;;  %v6448_v57 = vmul.f32 %v1157_v33, %v6109_v39  ;;  %v6451_v4 = vmul.f32 %v1157_v33, %v6134_v0  ;;  %v6454_v21 = vmul.f32 %v1157_v33, %v6125_v56 }
 0x454   :  { %v6457_v17 = vmul.f32 %v1157_v33, %v6150_v26  ;;  %v6460_v13 = vmul.f32 %v1157_v33, %v6141_v14  ;;  %v6463_v9 = vmul.f32 %v1157_v33, %v6166_v61  ;;  %v6466_v44 = vmul.f32 %v1157_v33, %v6157_v48 }
 0x455   :  { %v6469_v39 = vmul.f32 %v1157_v33, %v6182_v12  ;;  %v6472_v0 = vmul.f32 %v1157_v33, %v6173_v16  ;;  %v6475_v56 = vmul.f32 %v1157_v33, %v6198_v5  ;;  %v6478_v26 = vmul.f32 %v1157_v33, %v6189_v40 }
 0x456   :  { %v6481_v14 = vmul.f32 %v1157_v33, %v9848_v29  ;;  %v6484_v61 = vmul.f32 %v1157_v33, %v9846_v1  ;;  %v6487_v48 = vmul.f32 %v1157_v33, %v9851_v30  ;;  %v6490_v12 = vmul.f32 %v1157_v33, %v9850_v24 }
 0x457   :  { %v6493_v16 = vmul.f32 %v1157_v33, %v9853_v32  ;;  %v6496_v5 = vmul.f32 %v1157_v33, %v6237_v27  ;;  %v6499_v40 = vmul.f32 %v1157_v33, %v9854_v34  ;;  %v6502_v29 = vmul.f32 %v1157_v33, %v6253_v7  ;;  %v9862_v27 = vld [vmem:[#allocation38_spill] sm:$0xff] }
 0x458   :  { %v1137_v1 = vcombine.low %v1133_v41, %v1134_v49  ;;  %v6506_v30 = vmul.f32 %v6412_v10, %v9860_v28  ;;  %v6510_v24 = vmul.f32 %v6412_v10, %v9861_v35  ;;  %v6514_v32 = vmul.f32 %v6412_v10, %v6032_v45  ;;  %v9870_v35 = vld [vmem:[#allocation44_spill] sm:$0xff] }
 0x459   :  { %v6518_v34 = vmul.f32 %v6412_v10, %v9862_v27  ;;  %v6522_v7 = vmul.f32 %v6412_v10, %v6048_v58  ;;  %v6527_v23 = vmul.f32 %v6412_v10, %v6051_v59  ;;  %v6531_v11 = vmul.f32 %v6412_v10, %v6064_v51 }
 0x45a   :  { %v1144_v41 = vrot.slane %v1137_v1, %v6409_v36  ;;  %v6535_v45 = vmul.f32 %v6412_v10, %v6067_v54  ;;  %v6539_v50 = vmul.f32 %v6412_v10, %v6080_v19  ;;  %v6543_v58 = vmul.f32 %v6412_v10, %v6083_v20  ;;  %v9864_v19 = vld [vmem:[#allocation40_spill] sm:$0xff]  ;;  %v9865_v20 = vld [vmem:[#allocation41_spill] sm:$0xff] }
 0x45b   :  { %v6547_v59 = vmul.f32 %v6412_v10, %v6096_v15  ;;  %v6551_v51 = vmul.f32 %v6412_v10, %v6099_v3  ;;  %v6556_v33 = vmul.f32 %v6412_v10, %v9863_v2  ;;  %v6560_v49 = vmul.f32 %v6412_v10, %v9864_v19  ;;  %v9866_v15 = vld [vmem:[#allocation42_spill] sm:$0xff]  ;;  %v9868_v3 = vld [vmem:[#allocation43_spill] sm:$0xff] }
 0x45c   :  { %v1151_v54 = vrot.slane %v1144_v41, %v6409_v36  ;;  %v6564_v52 = vmul.f32 %v6412_v10, %v9865_v20  ;;  %v6568_v1 = vmul.f32 %v6412_v10, %v9866_v15  ;;  %v6572_v28 = vmul.f32 %v6412_v10, %v9868_v3  ;;  %v9872_v41 = vld [vmem:[#allocation45_spill] sm:$0xff]  ;;  %v9873_v36 = vld [vmem:[#allocation46_spill] sm:$0xff] }
 0x45d   :  { %v6576_v27 = vmul.f32 %v6412_v10, %v9870_v35  ;;  %v6580_v2 = vmul.f32 %v6412_v10, %v9872_v41  ;;  %v6584_v20 = vmul.f32 %v6412_v10, %v9873_v36  ;;  %v6588_v15 = vmul.f32 %v6412_v10, %v9874_v31 }
 0x45e   :  { %9867 = vst [vmem:[#allocation54_spill] sm:$0xff] %v6568_v1  ;;  %9869 = vst [vmem:[#allocation55_spill] sm:$0xff] %v6572_v28  ;;  %v1153_v19 = vsub.f32 %v1107_v46, %v1151_v54  ;;  %v9876_v1 = vld [vmem:[#allocation48_spill] sm:$0xff]  ;;  %v9878_v28 = vld [vmem:[#allocation49_spill] sm:$0xff] }
 0x45f   :  { %9871 = vst [vmem:[#allocation58_spill] sm:$0xff] %v6576_v27  ;;  %9875 = vst [vmem:[#allocation61_spill] sm:$0xff] %v6588_v15  ;;  %v6592_v3 = vmul.f32 %v6412_v10, %v9876_v1  ;;  %v6596_v35 = vmul.f32 %v6412_v10, %v9878_v28  ;;  %v9880_v27 = vld [vmem:[#allocation50_spill] sm:$0xff]  ;;  %v9882_v46 = vld [vmem:[#allocation52_spill] sm:$0xff] }
 0x460   :  { %v6600_v41 = vmul.f32 %v6412_v10, %v9880_v27  ;;  %v6604_v36 = vmul.f32 %v6412_v10, %v9882_v46  ;;  %v9884_v54 = vld [vmem:[#allocation53_spill] sm:$0xff]  ;;  %v1230_v15 = vrot.slane %v1153_v19, %v9855_v38  ;;  %v6612_v1 = vrot.slane %v1153_v19, %v9856_v18  ;;  %v9891_v38 = vld [vmem:[#allocation62_spill] sm:$0xff]  ;;  %v9892_v18 = vld [vmem:[#allocation63_spill] sm:$0xff] }
 0x461   :  { %9877 = vst [vmem:[#allocation64_spill] sm:$0xff] %v6592_v3  ;;  %9879 = vst [vmem:[#allocation35_spill] sm:$0xff] %v6596_v35  ;;  %v6608_v31 = vmul.f32 %v6412_v10, %v9884_v54  ;;  %v9885_v3 = vld [vmem:[#allocation56_spill] sm:$0xff]  ;;  %v9887_v35 = vld [vmem:[#allocation57_spill] sm:$0xff]  ;;  %v6632_v19 = vmul.f32 %v6412_v10, %v9891_v38 }
 0x462   :  { %9881 = vst [vmem:[#allocation36_spill] sm:$0xff] %v6600_v41  ;;  %9883 = vst [vmem:[#allocation37_spill] sm:$0xff] %v6604_v36  ;;  %v6616_v28 = vmul.f32 %v6412_v10, %v9885_v3  ;;  %v6620_v27 = vmul.f32 %v6412_v10, %v9887_v35  ;;  %v9888_v41 = vld [vmem:[#allocation59_spill] sm:$0xff]  ;;  %v9889_v36 = vld [vmem:[#allocation60_spill] sm:$0xff]  ;;  %v6636_v3 = vmul.f32 %v6412_v10, %v9892_v18 }
 0x463   :  { %v6624_v46 = vmul.f32 %v6412_v10, %v9888_v41  ;;  %v6628_v54 = vmul.f32 %v6412_v10, %v9889_v36  ;;  %v6642_v35 = vadd.f32 %v1230_v15, %v6406_v53  ;;  %v6645_v41 = vadd.f32 %v1230_v15, %v6415_v25 }
 0x464   :  { %9886 = vst [vmem:[#allocation38_spill] sm:$0xff] %v6616_v28  ;;  %v6639_v28 = vadd.f32 %v1230_v15, %v6403_v6  ;;  %v6648_v36 = vadd.f32 %v1230_v15, %v6418_v63  ;;  %v6654_v38 = vadd.f32 %v1230_v15, %v6424_v37  ;;  %v6657_v18 = vadd.f32 %v1230_v15, %v6427_v22 }
 0x465   :  { %9890 = vst [vmem:[#allocation39_spill] sm:$0xff] %v6628_v54  ;;  %v6651_v54 = vadd.f32 %v1230_v15, %v6421_v62  ;;  %v6660_v6 = vadd.f32 %v1230_v15, %v6430_v8  ;;  %v6663_v53 = vadd.f32 %v1230_v15, %v6433_v42  ;;  %v6666_v10 = vadd.f32 %v1230_v15, %v6436_v47 }
 0x466   :  { %v6669_v25 = vadd.f32 %v1230_v15, %v6439_v43  ;;  %v6672_v63 = vadd.f32 %v1230_v15, %v6442_v60  ;;  %v6675_v62 = vadd.f32 %v1230_v15, %v6445_v55  ;;  %v6678_v37 = vadd.f32 %v1230_v15, %v6448_v57 }
 0x467   :  { %v6681_v22 = vadd.f32 %v1230_v15, %v6451_v4  ;;  %v6684_v8 = vadd.f32 %v1230_v15, %v6454_v21  ;;  %v6687_v42 = vadd.f32 %v1230_v15, %v6457_v17  ;;  %v6690_v47 = vadd.f32 %v1230_v15, %v6460_v13 }
 0x468   :  { %v6693_v43 = vadd.f32 %v1230_v15, %v6463_v9  ;;  %v6696_v60 = vadd.f32 %v1230_v15, %v6466_v44  ;;  %v6699_v55 = vadd.f32 %v1230_v15, %v6469_v39  ;;  %v6702_v57 = vadd.f32 %v1230_v15, %v6472_v0 }
 0x469   :  { %v6705_v4 = vadd.f32 %v1230_v15, %v6475_v56  ;;  %v6708_v21 = vadd.f32 %v1230_v15, %v6478_v26  ;;  %v6711_v17 = vadd.f32 %v1230_v15, %v6481_v14  ;;  %v6714_v13 = vadd.f32 %v1230_v15, %v6484_v61 }
 0x46a   :  { %v6717_v9 = vadd.f32 %v1230_v15, %v6487_v48  ;;  %v6720_v44 = vadd.f32 %v1230_v15, %v6490_v12  ;;  %v6723_v39 = vadd.f32 %v1230_v15, %v6493_v16  ;;  %v6726_v0 = vadd.f32 %v1230_v15, %v6496_v5 }
 0x46b   :  { %9893 = vst [vmem:[#allocation40_spill] sm:$0xff] %v6711_v17  ;;  %9894 = vst [vmem:[#allocation41_spill] sm:$0xff] %v6714_v13  ;;  %v6729_v56 = vadd.f32 %v1230_v15, %v6499_v40  ;;  %v6732_v26 = vadd.f32 %v1230_v15, %v6502_v29  ;;  %v1238_v14 = vadd.f32 %v6612_v1, %v6506_v30  ;;  %v9904_v15 = vld [vmem:[#allocation61_spill] sm:$0xff]  ;;  %vm1301_vm1 = vcmp.gt.f32.partialorder %v6639_v28, 0.0 }
 0x46c   :  { %9895 = vst [vmem:[#allocation42_spill] sm:$0xff] %v6717_v9  ;;  %9896 = vst [vmem:[#allocation43_spill] sm:$0xff] %v6720_v44  ;;  %v1240_v61 = vadd.f32 %v6612_v1, %v6510_v24  ;;  %v1242_v48 = vadd.f32 %v6612_v1, %v6514_v32  ;;  %v1244_v12 = vadd.f32 %v6612_v1, %v6518_v34  ;;  %v9910_v44 = vld [vmem:[#allocation38_spill] sm:$0xff]  ;;  %v9914_v9 = vld [vmem:[#allocation39_spill] sm:$0xff]  ;;  %vm1303_vm2 = vcmp.gt.f32.partialorder %v6642_v35, 0.0 }
 0x46d   :  { %9897 = vst [vmem:[#allocation44_spill] sm:$0xff] %v6723_v39  ;;  %9898 = vst [vmem:[#allocation45_spill] sm:$0xff] %v6726_v0  ;;  %v6744_v16 = vadd.f32 %v6612_v1, %v6522_v7  ;;  %v6748_v5 = vadd.f32 %v6612_v1, %v6527_v23  ;;  %v6752_v40 = vadd.f32 %v6612_v1, %v6531_v11  ;;  %v9907_v0 = vld [vmem:[#allocation36_spill] sm:$0xff]  ;;  %v9908_v39 = vld [vmem:[#allocation37_spill] sm:$0xff]  ;;  %vm1302_vm3 = vcmp.gt.f32.partialorder %v1238_v14, 0.0 }
 0x46e   :  { %9899 = vst [vmem:[#allocation46_spill] sm:$0xff] %v6729_v56  ;;  %9900 = vst [vmem:[#allocation47_spill] sm:$0xff] %v6732_v26  ;;  %v6756_v29 = vadd.f32 %v6612_v1, %v6535_v45  ;;  %v6760_v30 = vadd.f32 %v6612_v1, %v6539_v50  ;;  %v6764_v24 = vadd.f32 %v6612_v1, %v6543_v58  ;;  %v9901_v45 = vld [vmem:[#allocation54_spill] sm:$0xff]  ;;  %v9902_v58 = vld [vmem:[#allocation55_spill] sm:$0xff]  ;;  %vm1304_vm4 = vcmp.gt.f32.partialorder %v1240_v61, 0.0 }
 0x46f   :  { %v6768_v32 = vadd.f32 %v6612_v1, %v6547_v59  ;;  %v6772_v34 = vadd.f32 %v6612_v1, %v6551_v51  ;;  %v6776_v7 = vadd.f32 %v6612_v1, %v6556_v33  ;;  %v6780_v23 = vadd.f32 %v6612_v1, %v6560_v49  ;;  %v9903_v51 = vld [vmem:[#allocation58_spill] sm:$0xff]  ;;  %v9905_v26 = vld [vmem:[#allocation64_spill] sm:$0xff]  ;;  %v9906_v56 = vld [vmem:[#allocation35_spill] sm:$0xff] }
 0x470   :  { %v6784_v11 = vadd.f32 %v6612_v1, %v6564_v52  ;;  %v6788_v50 = vadd.f32 %v6612_v1, %v9901_v45  ;;  %v6792_v59 = vadd.f32 %v6612_v1, %v9902_v58  ;;  %v6796_v33 = vadd.f32 %v6612_v1, %v9903_v51 }
 0x471   :  { %v6800_v49 = vadd.f32 %v6612_v1, %v6580_v2  ;;  %v6804_v52 = vadd.f32 %v6612_v1, %v6584_v20  ;;  %v6808_v45 = vadd.f32 %v6612_v1, %v9904_v15  ;;  %v6812_v58 = vadd.f32 %v6612_v1, %v9905_v26 }
 0x472   :  { %v6816_v51 = vadd.f32 %v6612_v1, %v9906_v56  ;;  %v6820_v2 = vadd.f32 %v6612_v1, %v9907_v0  ;;  %v6824_v20 = vadd.f32 %v6612_v1, %v9908_v39  ;;  %v6828_v15 = vadd.f32 %v6612_v1, %v6608_v31 }
 0x473   :  { %v6832_v26 = vadd.f32 %v6612_v1, %v9910_v44  ;;  %v6836_v56 = vadd.f32 %v6612_v1, %v6620_v27  ;;  %v6840_v0 = vadd.f32 %v6612_v1, %v6624_v46  ;;  %v6844_v39 = vadd.f32 %v6612_v1, %v9914_v9 }
 0x474   :  { %9909 = vst [vmem:[#allocation48_spill] sm:$0xff] %v6828_v15  ;;  %v6848_v31 = vadd.f32 %v6612_v1, %v6632_v19  ;;  %v6852_v44 = vadd.f32 %v6612_v1, %v6636_v3  ;;  %v1365_v27 = vmul.f32 0.2, %v6639_v28  ;;  %v1367_v46 = vmul.f32 0.2, %v6642_v35 }
 0x475   :  { %9911 = vst [vmem:[#allocation49_spill] sm:$0xff] %v6832_v26  ;;  %9912 = vst [vmem:[#allocation50_spill] sm:$0xff] %v6836_v56  ;;  %v1366_v9 = vmul.f32 0.2, %v1238_v14  ;;  %vm1306_vm5 = vcmp.gt.f32.partialorder %v1242_v48, 0.0  ;;  %vm1308_vm6 = vcmp.gt.f32.partialorder %v1244_v12, 0.0 }
 0x476   :  { %9913 = vst [vmem:[#allocation52_spill] sm:$0xff] %v6840_v0  ;;  %9915 = vst [vmem:[#allocation53_spill] sm:$0xff] %v6844_v39  ;;  %v1368_v39 = vmul.f32 0.2, %v1240_v61  ;;  %v1429_v0 = vsel %vm1301_vm1, %v6639_v28, %v1365_v27  ;;  %v1431_v19 = vsel %vm1303_vm2, %v6642_v35, %v1367_v46  ;;  %v1372_v26 = vmul.f32 0.2, %v1244_v12 }
 0x477   :  { %9916 = vst [vmem:[#allocation56_spill] sm:$0xff] %v6848_v31  ;;  %9917 = vst [vmem:[#allocation57_spill] sm:$0xff] %v6852_v44  ;;  %v1430_v1 = vsel %vm1302_vm3, %v1238_v14, %v1366_v9  ;;  %v1493_v44 = vpack.c.bf16 %v1431_v19, %v1429_v0  ;;  %v1370_v31 = vmul.f32 0.2, %v1242_v48  ;;  %vm1305_vm7 = vcmp.gt.f32.partialorder %v6645_v41, 0.0 }
 0x478   :  { %v1432_v3 = vsel %vm1304_vm4, %v1240_v61, %v1368_v39  ;;  %vm1307_vm8 = vcmp.gt.f32.partialorder %v6648_v36, 0.0  ;;  %v1369_v17 = vmul.f32 0.2, %v6645_v41  ;;  %v1371_v15 = vmul.f32 0.2, %v6648_v36 }
 0x479   :  { %v1494_v56 = vpack.c.bf16 %v1432_v3, %v1430_v1  ;;  %v1434_v13 = vsel %vm1306_vm5, %v1242_v48, %v1370_v31  ;;  %vm1310_vm9 = vcmp.gt.f32.partialorder %v6744_v16, 0.0  ;;  %v1436_v28 = vsel %vm1308_vm6, %v1244_v12, %v1372_v26 }
 0x47a   :  { %vm1312_vm10 = vcmp.gt.f32.partialorder %v6748_v5, 0.0  ;;  %v1374_v35 = vmul.f32 0.2, %v6744_v16  ;;  %v1376_v14 = vmul.f32 0.2, %v6748_v5  ;;  %v1496_v61 = vpack.c.bf16 %v1436_v28, %v1434_v13 }
 0x47b   :  { %1963 = vmatprep.mubr.bf16.mxu1 %v1494_v56  ;;  %2156 = vmatprep.mubr.bf16.mxu0 %v1494_v56  ;;  %v1433_v48 = vsel %vm1305_vm7, %v6645_v41, %v1369_v17  ;;  %v1435_v0 = vsel %vm1307_vm8, %v6648_v36, %v1371_v15  ;;  %vm1309_vm11 = vcmp.gt.f32.partialorder %v6651_v54, 0.0  ;;  %vm1311_vm12 = vcmp.gt.f32.partialorder %v6654_v38, 0.0 }
 0x47c   :  { %1964 = vmatmul.mubr.bf16.vlgmr.msra.gmra.mrb[64].mxu1 %v1493_v44  ;;  %2157 = vmatmul.mubr.bf16.vlgmr.msra.gmra.mrb[36].mxu0 %v1493_v44  ;;  %v1495_v39 = vpack.c.bf16 %v1435_v0, %v1433_v48  ;;  %v1438_v31 = vsel %vm1310_vm9, %v6744_v16, %v1374_v35  ;;  %v1440_v12 = vsel %vm1312_vm10, %v6748_v5, %v1376_v14  ;;  %v1373_v56 = vmul.f32 0.2, %v6651_v54 }
 0x47d   :  { %1973 = vmatprep.mubr.bf16.mxu1 %v1496_v61  ;;  %2166 = vmatprep.mubr.bf16.mxu0 %v1496_v61  ;;  %v1498_v26 = vpack.c.bf16 %v1440_v12, %v1438_v31  ;;  %v1375_v13 = vmul.f32 0.2, %v6654_v38  ;;  %vm1314_vm13 = vcmp.gt.f32.partialorder %v6752_v40, 0.0  ;;  %vm1316_vm14 = vcmp.gt.f32.partialorder %v6756_v29, 0.0 }
 0x47e   :  { %v1378_v41 = vmul.f32 0.2, %v6752_v40  ;;  %v1380_v36 = vmul.f32 0.2, %v6756_v29  ;;  %vm1313_vm15 = vcmp.gt.f32.partialorder %v6657_v18, 0.0  ;;  %v1437_v17 = vsel %vm1309_vm11, %v6651_v54, %v1373_v56 }
 0x47f   :  { %v1439_v16 = vsel %vm1311_vm12, %v6654_v38, %v1375_v13  ;;  %vm1315_vm0 = vcmp.gt.f32.partialorder %v6660_v6, 0.0  ;;  %v1377_v5 = vmul.f32 0.2, %v6657_v18  ;;  %v1379_v46 = vmul.f32 0.2, %v6660_v6 }
 0x480   :  { %v1497_v15 = vpack.c.bf16 %v1439_v16, %v1437_v17  ;;  %v1442_v44 = vsel %vm1314_vm13, %v6752_v40, %v1378_v41  ;;  %v1444_v27 = vsel %vm1316_vm14, %v6756_v29, %v1380_v36  ;;  %vm1318_vm1 = vcmp.gt.f32.partialorder %v6760_v30, 0.0 }
 0x481   :  { %v1500_v9 = vpack.c.bf16 %v1444_v27, %v1442_v44  ;;  %v1441_v19 = vsel %vm1313_vm15, %v6657_v18, %v1377_v5  ;;  %vm1320_vm2 = vcmp.gt.f32.partialorder %v6764_v24, 0.0  ;;  %v1443_v54 = vsel %vm1315_vm0, %v6660_v6, %v1379_v46 }
 0x482   :  { %v1382_v38 = vmul.f32 0.2, %v6760_v30  ;;  %v1384_v1 = vmul.f32 0.2, %v6764_v24  ;;  %vm1317_vm3 = vcmp.gt.f32.partialorder %v6663_v53, 0.0  ;;  %v6895_v40 = vpack.c.bf16 %v1443_v54, %v1441_v19 }
 0x483   :  { %vm1319_vm4 = vcmp.gt.f32.partialorder %v6666_v10, 0.0  ;;  %v1381_v18 = vmul.f32 0.2, %v6663_v53  ;;  %v1383_v29 = vmul.f32 0.2, %v6666_v10  ;;  %vm1322_vm5 = vcmp.gt.f32.partialorder %v6768_v32, 0.0 }
 0x484   :  { %1974 = vmatmul.mubr.bf16.gmra.mrb[68].mxu1 %v1495_v39  ;;  %2167 = vmatmul.mubr.bf16.gmra.mrb[40].mxu0 %v1495_v39  ;;  %v1446_v6 = vsel %vm1318_vm1, %v6760_v30, %v1382_v38  ;;  %v1448_v3 = vsel %vm1320_vm2, %v6764_v24, %v1384_v1  ;;  %vm1324_vm6 = vcmp.gt.f32.partialorder %v6772_v34, 0.0  ;;  %v1386_v61 = vmul.f32 0.2, %v6768_v32 }
 0x485   :  { %1983 = vmatprep.mubr.bf16.mxu1 %v1498_v26  ;;  %2176 = vmatprep.mubr.bf16.mxu0 %v1498_v26  ;;  %v6904_v28 = vpack.c.bf16 %v1448_v3, %v1446_v6  ;;  %v1445_v35 = vsel %vm1317_vm3, %v6663_v53, %v1381_v18  ;;  %v1447_v14 = vsel %vm1319_vm4, %v6666_v10, %v1383_v29  ;;  %v1388_v0 = vmul.f32 0.2, %v6772_v34 }
 0x486   :  { %v6909_v48 = vpack.c.bf16 %v1447_v14, %v1445_v35  ;;  %vm1321_vm7 = vcmp.gt.f32.partialorder %v6669_v25, 0.0  ;;  %vm1323_vm8 = vcmp.gt.f32.partialorder %v6672_v63, 0.0  ;;  %v1450_v30 = vsel %vm1322_vm5, %v6768_v32, %v1386_v61 }
 0x487   :  { %v1385_v24 = vmul.f32 0.2, %v6669_v25  ;;  %v1387_v39 = vmul.f32 0.2, %v6672_v63  ;;  %vm1326_vm9 = vcmp.gt.f32.partialorder %v6776_v7, 0.0  ;;  %v1452_v53 = vsel %vm1324_vm6, %v6772_v34, %v1388_v0 }
 0x488   :  { %vm1328_vm10 = vcmp.gt.f32.partialorder %v6780_v23, 0.0  ;;  %v1390_v10 = vmul.f32 0.2, %v6776_v7  ;;  %v1392_v31 = vmul.f32 0.2, %v6780_v23  ;;  %v6922_v12 = vpack.c.bf16 %v1452_v53, %v1450_v30 }
 0x489   :  { %v1449_v26 = vsel %vm1321_vm7, %v6669_v25, %v1385_v24  ;;  %v1451_v32 = vsel %vm1323_vm8, %v6672_v63, %v1387_v39  ;;  %vm1325_vm11 = vcmp.gt.f32.partialorder %v6675_v62, 0.0  ;;  %vm1327_vm12 = vcmp.gt.f32.partialorder %v6678_v37, 0.0 }
 0x48a   :  { %v6927_v56 = vpack.c.bf16 %v1451_v32, %v1449_v26  ;;  %v1454_v13 = vsel %vm1326_vm9, %v6776_v7, %v1390_v10  ;;  %v1456_v34 = vsel %vm1328_vm10, %v6780_v23, %v1392_v31  ;;  %v1389_v36 = vmul.f32 0.2, %v6675_v62 }
 0x48b   :  { %v6932_v41 = vpack.c.bf16 %v1456_v34, %v1454_v13  ;;  %v1391_v25 = vmul.f32 0.2, %v6678_v37  ;;  %vm1330_vm13 = vcmp.gt.f32.partialorder %v6784_v11, 0.0  ;;  %vm1332_vm14 = vcmp.gt.f32.partialorder %v6788_v50, 0.0 }
 0x48c   :  { %1984 = vmatmul.mubr.bf16.gmra.mrb[72].mxu1 %v1497_v15  ;;  %2177 = vmatmul.mubr.bf16.gmra.mrb[44].mxu0 %v1497_v15  ;;  %v1394_v63 = vmul.f32 0.2, %v6784_v11  ;;  %v1396_v7 = vmul.f32 0.2, %v6788_v50  ;;  %vm1329_vm15 = vcmp.gt.f32.partialorder %v6681_v22, 0.0  ;;  %v1453_v23 = vsel %vm1325_vm11, %v6675_v62, %v1389_v36  ;;  %v9919_v36 = vld [vmem:[#allocation40_spill] sm:$0xff] }
 0x48d   :  { %1993 = vmatprep.mubr.bf16.mxu1 %v1500_v9  ;;  %2186 = vmatprep.mubr.bf16.mxu0 %v1500_v9  ;;  %v1455_v17 = vsel %vm1327_vm12, %v6678_v37, %v1391_v25  ;;  %vm1331_vm0 = vcmp.gt.f32.partialorder %v6684_v8, 0.0  ;;  %v1393_v16 = vmul.f32 0.2, %v6681_v22  ;;  %v1395_v27 = vmul.f32 0.2, %v6684_v8 }
 0x48e   :  { %v6947_v5 = vpack.c.bf16 %v1455_v17, %v1453_v23  ;;  %v1458_v15 = vsel %vm1330_vm13, %v6784_v11, %v1394_v63  ;;  %v1460_v44 = vsel %vm1332_vm14, %v6788_v50, %v1396_v7  ;;  %vm1334_vm1 = vcmp.gt.f32.partialorder %v6792_v59, 0.0  ;;  %v9921_v23 = vld [vmem:[#allocation49_spill] sm:$0xff] }
 0x48f   :  { %v6952_v46 = vpack.c.bf16 %v1460_v44, %v1458_v15  ;;  %v1457_v9 = vsel %vm1329_vm15, %v6681_v22, %v1393_v16  ;;  %vm1336_vm2 = vcmp.gt.f32.partialorder %v6796_v33, 0.0  ;;  %v1459_v62 = vsel %vm1331_vm0, %v6684_v8, %v1395_v27 }
 0x490   :  { %v1398_v37 = vmul.f32 0.2, %v6792_v59  ;;  %v1400_v19 = vmul.f32 0.2, %v6796_v33  ;;  %vm1333_vm3 = vcmp.gt.f32.partialorder %v6687_v42, 0.0  ;;  %v6961_v11 = vpack.c.bf16 %v1459_v62, %v1457_v9  ;;  %v9923_v62 = vld [vmem:[#allocation42_spill] sm:$0xff] }
 0x491   :  { %vm1335_vm4 = vcmp.gt.f32.partialorder %v6690_v47, 0.0  ;;  %v1397_v50 = vmul.f32 0.2, %v6687_v42  ;;  %v1399_v22 = vmul.f32 0.2, %v6690_v47  ;;  %vm1338_vm5 = vcmp.gt.f32.partialorder %v6800_v49, 0.0 }
 0x492   :  { %v1462_v54 = vsel %vm1334_vm1, %v6792_v59, %v1398_v37  ;;  %v1464_v38 = vsel %vm1336_vm2, %v6796_v33, %v1400_v19  ;;  %vm1340_vm6 = vcmp.gt.f32.partialorder %v6804_v52, 0.0  ;;  %v1402_v29 = vmul.f32 0.2, %v6800_v49 }
 0x493   :  { %v6972_v8 = vpack.c.bf16 %v1464_v38, %v1462_v54  ;;  %v1461_v1 = vsel %vm1333_vm3, %v6687_v42, %v1397_v50  ;;  %v1463_v18 = vsel %vm1335_vm4, %v6690_v47, %v1399_v22  ;;  %v1404_v33 = vmul.f32 0.2, %v6804_v52  ;;  %v9925_v22 = vld [vmem:[#allocation52_spill] sm:$0xff]  ;;  %v9926_v38 = vld [vmem:[#allocation53_spill] sm:$0xff] }
 0x494   :  { %1994 = vmatmul.mubr.bf16.gmra.mrb[76].mxu1 %v6895_v40  ;;  %2187 = vmatmul.mubr.bf16.gmra.mrb[48].mxu0 %v6895_v40  ;;  %v6979_v59 = vpack.c.bf16 %v1463_v18, %v1461_v1  ;;  %vm1337_vm7 = vcmp.gt.f32.partialorder %v6693_v43, 0.0  ;;  %vm1339_vm8 = vcmp.gt.f32.partialorder %v6696_v60, 0.0  ;;  %v1466_v40 = vsel %vm1338_vm5, %v6800_v49, %v1402_v29 }
 0x495   :  { %2003 = vmatprep.mubr.bf16.mxu1 %v6904_v28  ;;  %2196 = vmatprep.mubr.bf16.mxu0 %v6904_v28  ;;  %v1401_v42 = vmul.f32 0.2, %v6693_v43  ;;  %v1403_v47 = vmul.f32 0.2, %v6696_v60  ;;  %vm1342_vm9 = vcmp.gt.f32.partialorder %v6808_v45, 0.0  ;;  %v1468_v6 = vsel %vm1340_vm6, %v6804_v52, %v1404_v33 }
 0x496   :  { %vm1344_vm10 = vcmp.gt.f32.partialorder %v6812_v58, 0.0  ;;  %v1406_v3 = vmul.f32 0.2, %v6808_v45  ;;  %v1408_v28 = vmul.f32 0.2, %v6812_v58  ;;  %v6994_v35 = vpack.c.bf16 %v1468_v6, %v1466_v40  ;;  %v9927_v40 = vld [vmem:[#allocation44_spill] sm:$0xff] }
 0x497   :  { %v1465_v49 = vsel %vm1337_vm7, %v6693_v43, %v1401_v42  ;;  %v1467_v14 = vsel %vm1339_vm8, %v6696_v60, %v1403_v47  ;;  %vm1341_vm11 = vcmp.gt.f32.partialorder %v6699_v55, 0.0  ;;  %vm1343_vm12 = vcmp.gt.f32.partialorder %v6702_v57, 0.0  ;;  %v9928_v6 = vld [vmem:[#allocation45_spill] sm:$0xff] }
 0x498   :  { %v6999_v61 = vpack.c.bf16 %v1467_v14, %v1465_v49  ;;  %v1470_v0 = vsel %vm1342_vm9, %v6808_v45, %v1406_v3  ;;  %v1472_v52 = vsel %vm1344_vm10, %v6812_v58, %v1408_v28  ;;  %v1405_v24 = vmul.f32 0.2, %v6699_v55  ;;  %v9929_v14 = vld [vmem:[#allocation56_spill] sm:$0xff] }
 0x499   :  { %v7004_v30 = vpack.c.bf16 %v1472_v52, %v1470_v0  ;;  %v1407_v39 = vmul.f32 0.2, %v6702_v57  ;;  %vm1346_vm13 = vcmp.gt.f32.partialorder %v6816_v51, 0.0  ;;  %vm1348_vm14 = vcmp.gt.f32.partialorder %v6820_v2, 0.0  ;;  %v9930_v0 = vld [vmem:[#allocation57_spill] sm:$0xff] }
 0x49a   :  { %v1410_v43 = vmul.f32 0.2, %v6816_v51  ;;  %v1412_v60 = vmul.f32 0.2, %v6820_v2  ;;  %vm1345_vm15 = vcmp.gt.f32.partialorder %v6705_v4, 0.0  ;;  %v1469_v45 = vsel %vm1341_vm11, %v6699_v55, %v1405_v24 }
 0x49b   :  { %v1471_v58 = vsel %vm1343_vm12, %v6702_v57, %v1407_v39  ;;  %vm1347_vm0 = vcmp.gt.f32.partialorder %v6708_v21, 0.0  ;;  %v1409_v53 = vmul.f32 0.2, %v6705_v4  ;;  %vm1350_vm1 = vcmp.gt.f32.partialorder %v6824_v20, 0.0  ;;  %v9918_v57 = vld [vmem:[#allocation48_spill] sm:$0xff]  ;;  %v9931_v39 = vld [vmem:[#allocation46_spill] sm:$0xff] }
 0x49c   :  { %2004 = vmatmul.mubr.bf16.gmra.mrb[80].mxu1 %v6909_v48  ;;  %2197 = vmatmul.mubr.bf16.gmra.mrb[52].mxu0 %v6909_v48  ;;  %v7021_v10 = vpack.c.bf16 %v1471_v58, %v1469_v45  ;;  %v1474_v31 = vsel %vm1346_vm13, %v6816_v51, %v1410_v43  ;;  %v1476_v26 = vsel %vm1348_vm14, %v6820_v2, %v1412_v60  ;;  %v1411_v48 = vmul.f32 0.2, %v6708_v21  ;;  %v9920_v2 = vld [vmem:[#allocation41_spill] sm:$0xff]  ;;  %v9932_v45 = vld [vmem:[#allocation47_spill] sm:$0xff] }
 0x49d   :  { %2013 = vmatprep.mubr.bf16.mxu1 %v6922_v12  ;;  %2206 = vmatprep.mubr.bf16.mxu0 %v6922_v12  ;;  %v7026_v32 = vpack.c.bf16 %v1476_v26, %v1474_v31  ;;  %v1473_v55 = vsel %vm1345_vm15, %v6705_v4, %v1409_v53  ;;  %vm1352_vm2 = vcmp.gt.f32.partialorder %v9918_v57, 0.0  ;;  %v1414_v12 = vmul.f32 0.2, %v6824_v20 }
 0x49e   :  { %v1475_v13 = vsel %vm1347_vm0, %v6708_v21, %v1411_v48  ;;  %v1416_v34 = vmul.f32 0.2, %v9918_v57  ;;  %vm1349_vm3 = vcmp.gt.f32.partialorder %v9919_v36, 0.0  ;;  %vm1351_vm4 = vcmp.gt.f32.partialorder %v9920_v2, 0.0  ;;  %v9922_v21 = vld [vmem:[#allocation50_spill] sm:$0xff] }
 0x49f   :  { %v7035_v51 = vpack.c.bf16 %v1475_v13, %v1473_v55  ;;  %v1413_v25 = vmul.f32 0.2, %v9919_v36  ;;  %v1415_v4 = vmul.f32 0.2, %v9920_v2  ;;  %v1478_v63 = vsel %vm1350_vm1, %v6824_v20, %v1414_v12  ;;  %v9924_v20 = vld [vmem:[#allocation43_spill] sm:$0xff] }
 0x4a0   :  { %v1480_v7 = vsel %vm1352_vm2, %v9918_v57, %v1416_v34  ;;  %vm1354_vm5 = vcmp.gt.f32.partialorder %v9921_v23, 0.0  ;;  %vm1356_vm6 = vcmp.gt.f32.partialorder %v9922_v21, 0.0  ;;  %v1418_v44 = vmul.f32 0.2, %v9921_v23  ;;  %v9938_v34 = vld [vmem:[#allocation34_spill] sm:$0xff] }
 0x4a1   :  { %v7044_v17 = vpack.c.bf16 %v1480_v7, %v1478_v63  ;;  %v1477_v16 = vsel %vm1349_vm3, %v9919_v36, %v1413_v25  ;;  %v1479_v15 = vsel %vm1351_vm4, %v9920_v2, %v1415_v4  ;;  %v1420_v9 = vmul.f32 0.2, %v9922_v21 }
 0x4a2   :  { %v7049_v27 = vpack.c.bf16 %v1479_v15, %v1477_v16  ;;  %vm1353_vm7 = vcmp.gt.f32.partialorder %v9923_v62, 0.0  ;;  %vm1355_vm8 = vcmp.gt.f32.partialorder %v9924_v20, 0.0  ;;  %v1482_v37 = vsel %vm1354_vm5, %v9921_v23, %v1418_v44 }
 0x4a3   :  { %v1417_v19 = vmul.f32 0.2, %v9923_v62  ;;  %v1419_v50 = vmul.f32 0.2, %v9924_v20  ;;  %vm1358_vm9 = vcmp.gt.f32.partialorder %v9925_v22, 0.0  ;;  %v1484_v54 = vsel %vm1356_vm6, %v9922_v21, %v1420_v9 }
 0x4a4   :  { %2014 = vmatmul.mubr.bf16.gmra.mrb[84].mxu1 %v6927_v56  ;;  %2207 = vmatmul.mubr.bf16.gmra.mrb[56].mxu0 %v6927_v56  ;;  %vm1360_vm10 = vcmp.gt.f32.partialorder %v9926_v38, 0.0  ;;  %v1422_v56 = vmul.f32 0.2, %v9925_v22  ;;  %v1424_v1 = vmul.f32 0.2, %v9926_v38  ;;  %v1520_v18 = vpack.c.bf16 %v1484_v54, %v1482_v37 }
 0x4a5   :  { %2023 = vmatprep.mubr.bf16.mxu1 %v6932_v41  ;;  %2216 = vmatprep.mubr.bf16.mxu0 %v6932_v41  ;;  %v1481_v29 = vsel %vm1353_vm7, %v9923_v62, %v1417_v19  ;;  %v1483_v33 = vsel %vm1355_vm8, %v9924_v20, %v1419_v50  ;;  %vm1357_vm11 = vcmp.gt.f32.partialorder %v9927_v40, 0.0  ;;  %vm1359_vm12 = vcmp.gt.f32.partialorder %v9928_v6, 0.0 }
 0x4a6   :  { %v1519_v42 = vpack.c.bf16 %v1483_v33, %v1481_v29  ;;  %v1486_v41 = vsel %vm1358_vm9, %v9925_v22, %v1422_v56  ;;  %v1488_v47 = vsel %vm1360_vm10, %v9926_v38, %v1424_v1  ;;  %v1421_v28 = vmul.f32 0.2, %v9927_v40 }
 0x4a7   :  { %v1522_v3 = vpack.c.bf16 %v1488_v47, %v1486_v41  ;;  %v1423_v49 = vmul.f32 0.2, %v9928_v6  ;;  %vm1362_vm13 = vcmp.gt.f32.partialorder %v9929_v14, 0.0  ;;  %vm1364_vm14 = vcmp.gt.f32.partialorder %v9930_v0, 0.0 }
 0x4a8   :  { %v1426_v52 = vmul.f32 0.2, %v9929_v14  ;;  %v1428_v24 = vmul.f32 0.2, %v9930_v0  ;;  %vm1361_vm15 = vcmp.gt.f32.partialorder %v9931_v39, 0.0  ;;  %v1485_v43 = vsel %vm1357_vm11, %v9927_v40, %v1421_v28 }
 0x4a9   :  { %v1487_v60 = vsel %vm1359_vm12, %v9928_v6, %v1423_v49  ;;  %vm1363_vm0 = vcmp.gt.f32.partialorder %v9932_v45, 0.0  ;;  %v1425_v58 = vmul.f32 0.2, %v9931_v39  ;;  %v1427_v48 = vmul.f32 0.2, %v9932_v45 }
 0x4aa   :  { %v1521_v53 = vpack.c.bf16 %v1487_v60, %v1485_v43  ;;  %v1490_v31 = vsel %vm1362_vm13, %v9929_v14, %v1426_v52  ;;  %v1492_v26 = vsel %vm1364_vm14, %v9930_v0, %v1428_v24 }
 0x4ab   :  { %v1524_v55 = vpack.c.bf16 %v1492_v26, %v1490_v31  ;;  %v1489_v57 = vsel %vm1361_vm15, %v9931_v39, %v1425_v58  ;;  %v1491_v13 = vsel %vm1363_vm0, %v9932_v45, %v1427_v48 }
 0x4ac   :  { %2024 = vmatmul.mubr.bf16.gmra.mrb[88].mxu1 %v6947_v5  ;;  %2217 = vmatmul.mubr.bf16.gmra.mrb[60].mxu0 %v6947_v5  ;;  %v1523_v12 = vpack.c.bf16 %v1491_v13, %v1489_v57  ;;  %v9933_v5 = vmov 1.0  }
 0x4ad   :  { %2033 = vmatprep.mubr.bf16.mxu1 %v6952_v46  ;;  %2226 = vmatprep.mubr.bf16.mxu0 %v6952_v46  ;;  %v9934_v46 = vld [vmem:[#allocation32_spill] sm:$0xff] }
 0x4b4   :  { %2034 = vmatmul.mubr.bf16.gmra.mrb[92].mxu1 %v6961_v11  ;;  %2227 = vmatmul.mubr.bf16.gmra.mrb[64].mxu0 %v6961_v11  ;;  %v7119_v11 = vsub.s32 3, %v9934_v46 }
 0x4b5   :  { %2043 = vmatprep.mubr.bf16.mxu1 %v6972_v8  ;;  %2236 = vmatprep.mubr.bf16.mxu0 %v6972_v8  ;;  %v1589_v8 = vld [vmem:[#allocation16] sm:$0xf] }
 0x4b6   :  { %9935 = vst [vmem:[#allocation59_spill] sm:$0xff] %v7119_v11  ;;  %v7131_v36 = vrot.slane %v1589_v8, %v9938_v34 }
 0x4bc   :  { %2044 = vmatmul.mubr.bf16.gmra.mrb[96].mxu1 %v6979_v59  ;;  %2237 = vmatmul.mubr.bf16.gmra.mrb[68].mxu0 %v6979_v59  ;;  %v7122_v59 = vsub.s32 2, %v9934_v46 }
 0x4bd   :  { %2053 = vmatprep.mubr.bf16.mxu1 %v6994_v35  ;;  %2246 = vmatprep.mubr.bf16.mxu0 %v6994_v35 }
 0x4be   :  { %9936 = vst [vmem:[#allocation60_spill] sm:$0xff] %v7122_v59 }
 0x4c4   :  { %2054 = vmatmul.mubr.bf16.gmra.mrb[100].mxu1 %v6999_v61  ;;  %2247 = vmatmul.mubr.bf16.gmra.mrb[72].mxu0 %v6999_v61 }
 0x4c5   :  { %2063 = vmatprep.mubr.bf16.mxu1 %v7004_v30  ;;  %2256 = vmatprep.mubr.bf16.mxu0 %v7004_v30  ;;  %v9937_v30 = vld [vmem:[#allocation33_spill] sm:$0xff] }
 0x4cc   :  { %2064 = vmatmul.mubr.bf16.gmra.mrb[104].mxu1 %v7021_v10  ;;  %2257 = vmatmul.mubr.bf16.gmra.mrb[76].mxu0 %v7021_v10  ;;  %v7125_v10 = vrot.slane %v1589_v8, %v9937_v30 }
 0x4cd   :  { %2073 = vmatprep.mubr.bf16.mxu1 %v7026_v32  ;;  %2266 = vmatprep.mubr.bf16.mxu0 %v7026_v32  ;;  %v7128_v32 = vrot.slane %v1589_v8, %v7119_v11 }
 0x4d4   :  { %2074 = vmatmul.mubr.bf16.gmra.mrb[108].mxu1 %v7035_v51  ;;  %2267 = vmatmul.mubr.bf16.gmra.mrb[80].mxu0 %v7035_v51  ;;  %v7134_v51 = vrot.slane %v1589_v8, %v7122_v59 }
 0x4d5   :  { %2083 = vmatprep.mubr.bf16.mxu1 %v7044_v17  ;;  %2276 = vmatprep.mubr.bf16.mxu0 %v7044_v17 }
 0x4dc   :  { %2084 = vmatmul.mubr.bf16.gmra.mrb[112].mxu1 %v7049_v27  ;;  %2277 = vmatmul.mubr.bf16.gmra.mrb[84].mxu0 %v7049_v27 }
 0x4dd   :  { %2093 = vmatprep.mubr.bf16.mxu1 %v1520_v18  ;;  %2286 = vmatprep.mubr.bf16.mxu0 %v1520_v18 }
 0x4e4   :  { %2094 = vmatmul.mubr.bf16.gmra.mrb[116].mxu1 %v1519_v42  ;;  %2287 = vmatmul.mubr.bf16.gmra.mrb[88].mxu0 %v1519_v42 }
 0x4e5   :  { %2103 = vmatprep.mubr.bf16.mxu1 %v1522_v3  ;;  %2296 = vmatprep.mubr.bf16.mxu0 %v1522_v3 }
 0x4ec   :  { %2104 = vmatmul.mubr.bf16.gmra.mrb[120].mxu1 %v1521_v53  ;;  %2297 = vmatmul.mubr.bf16.gmra.mrb[92].mxu0 %v1521_v53 }
 0x4ed   :  { %2113 = vmatprep.mubr.bf16.mxu1 %v1524_v55  ;;  %2306 = vmatprep.mubr.bf16.mxu0 %v1524_v55 }
 0x4f4   :  { %2114 = vmatmul.mubr.bf16.gmra.mrb[124].mxu1 %v1523_v12  ;;  %2307 = vmatmul.mubr.bf16.gmra.mrb[96].mxu0 %v1523_v12 }
 0x4f5   :  { %2381 = vmatprep.mubr.f32.mxu1 %v9933_v5  ;;  %2452 = vmatprep.mubr.f32.mxu0 %v9933_v5 }
 0x54f   :  { %v1965_v35 = vpop.f32.mrb[64].mxu1  ;;  %v2158_v61 = vpop.f32.mrb[36].mxu0 }
 0x550   :  { %v1967_v2 = vpop.f32.mrb[65].mxu1  ;;  %v2160_v25 = vpop.f32.mrb[37].mxu0  ;;  %v7155_v9 = vadd.f32 %v1965_v35, %v7131_v36  ;;  %v7158_v62 = vadd.f32 %v2158_v61, %v7134_v51 }
 0x551   :  { %v1969_v4 = vpop.f32.mrb[66].mxu1  ;;  %v2162_v63 = vpop.f32.mrb[38].mxu0  ;;  %v7143_v16 = vadd.f32 %v1967_v2, %v7125_v10  ;;  %v7146_v15 = vadd.f32 %v2160_v25, %v7128_v32 }
 0x552   :  { %v7137_v7 = vadd.f32 %v1969_v4, %v7131_v36  ;;  %v7140_v23 = vadd.f32 %v2162_v63, %v7134_v51  ;;  %v1971_v21 = vpop.f32.mrb[67].mxu1  ;;  %v2164_v17 = vpop.f32.mrb[39].mxu0  ;;  %9945 = vst [vmem:[#allocation64_spill] sm:$0xff] %v7155_v9 }
 0x553   :  { %9941 = vst [vmem:[#allocation54_spill] sm:$0xff] %v7143_v16  ;;  %9942 = vst [vmem:[#allocation55_spill] sm:$0xff] %v7146_v15  ;;  %v7149_v44 = vadd.f32 %v1971_v21, %v7125_v10  ;;  %v7152_v27 = vadd.f32 %v2164_v17, %v7128_v32 }
 0x554   :  { %9939 = vst [vmem:[#allocation62_spill] sm:$0xff] %v7137_v7  ;;  %9940 = vst [vmem:[#allocation63_spill] sm:$0xff] %v7140_v23  ;;  %v4767_v19 = vpack.c.bf16 %v7137_v7, %v7155_v9  ;;  %v4831_v50 = vpack.c.bf16 %v7140_v23, %v7158_v62 }
 0x555   :  { %9943 = vst [vmem:[#allocation58_spill] sm:$0xff] %v7149_v44  ;;  %9944 = vst [vmem:[#allocation61_spill] sm:$0xff] %v7152_v27  ;;  %v4765_v20 = vpack.c.bf16 %v7149_v44, %v7143_v16  ;;  %v4829_v37 = vpack.c.bf16 %v7152_v27, %v7146_v15 }
 0x557   :  { %v1975_v22 = vpop.f32.mrb[68].mxu1  ;;  %v2168_v54 = vpop.f32.mrb[40].mxu0  ;;  %4766 = vmatprep.subr.bf16.mxu1 %v4765_v20  ;;  %4830 = vmatprep.subr.bf16.mxu0 %v4829_v37 }
 0x558   :  { %v1977_v38 = vpop.f32.mrb[69].mxu1  ;;  %v2170_v56 = vpop.f32.mrb[41].mxu0  ;;  %4768 = vmatpush1.bf16.msra.mxu1 %v4767_v19  ;;  %4832 = vmatpush1.bf16.msra.mxu0 %v4831_v50  ;;  %v7187_v28 = vadd.f32 %v1975_v22, %v7131_v36  ;;  %v7190_v49 = vadd.f32 %v2168_v54, %v7134_v51 }
 0x559   :  { %v1979_v1 = vpop.f32.mrb[70].mxu1  ;;  %v2172_v18 = vpop.f32.mrb[42].mxu0  ;;  %v7175_v41 = vadd.f32 %v1977_v38, %v7125_v10  ;;  %v7178_v47 = vadd.f32 %v2170_v56, %v7128_v32 }
 0x55a   :  { %v7169_v29 = vadd.f32 %v1979_v1, %v7131_v36  ;;  %v7172_v33 = vadd.f32 %v2172_v18, %v7134_v51  ;;  %v1981_v40 = vpop.f32.mrb[71].mxu1  ;;  %v2174_v42 = vpop.f32.mrb[43].mxu0 }
 0x55b   :  { %9946 = vst [vmem:[#allocation35_spill] sm:$0xff] %v7175_v41  ;;  %9947 = vst [vmem:[#allocation36_spill] sm:$0xff] %v7178_v47  ;;  %v7181_v6 = vadd.f32 %v1981_v40, %v7125_v10  ;;  %v7184_v3 = vadd.f32 %v2174_v42, %v7128_v32 }
 0x55c   :  { %v4771_v52 = vpack.c.bf16 %v7169_v29, %v7187_v28  ;;  %v4835_v24 = vpack.c.bf16 %v7172_v33, %v7190_v49 }
 0x55d   :  { %9948 = vst [vmem:[#allocation37_spill] sm:$0xff] %v7181_v6  ;;  %9949 = vst [vmem:[#allocation38_spill] sm:$0xff] %v7184_v3  ;;  %v4769_v14 = vpack.c.bf16 %v7181_v6, %v7175_v41  ;;  %v4833_v0 = vpack.c.bf16 %v7184_v3, %v7178_v47 }
 0x55f   :  { %v1985_v39 = vpop.f32.mrb[72].mxu1  ;;  %v2178_v43 = vpop.f32.mrb[44].mxu0  ;;  %4770 = vmatprep.subr.bf16.mxu1 %v4769_v14  ;;  %4834 = vmatprep.subr.bf16.mxu0 %v4833_v0 }
 0x560   :  { %v1987_v60 = vpop.f32.mrb[73].mxu1  ;;  %v2180_v45 = vpop.f32.mrb[45].mxu0  ;;  %4772 = vmatpush1.bf16.msra.mxu1 %v4771_v52  ;;  %4836 = vmatpush1.bf16.msra.mxu0 %v4835_v24  ;;  %v7219_v8 = vadd.f32 %v1985_v39, %v7131_v36  ;;  %v7222_v35 = vadd.f32 %v2178_v43, %v7134_v51 }
 0x561   :  { %v1989_v58 = vpop.f32.mrb[74].mxu1  ;;  %v2182_v53 = vpop.f32.mrb[46].mxu0  ;;  %v7207_v57 = vadd.f32 %v1987_v60, %v7125_v10  ;;  %v7210_v13 = vadd.f32 %v2180_v45, %v7128_v32 }
 0x562   :  { %v7201_v31 = vadd.f32 %v1989_v58, %v7131_v36  ;;  %v7204_v26 = vadd.f32 %v2182_v53, %v7134_v51  ;;  %v1991_v48 = vpop.f32.mrb[75].mxu1  ;;  %v2184_v55 = vpop.f32.mrb[47].mxu0 }
 0x563   :  { %9950 = vst [vmem:[#allocation39_spill] sm:$0xff] %v7207_v57  ;;  %9951 = vst [vmem:[#allocation48_spill] sm:$0xff] %v7210_v13  ;;  %v7213_v12 = vadd.f32 %v1991_v48, %v7125_v10  ;;  %v7216_v46 = vadd.f32 %v2184_v55, %v7128_v32 }
 0x564   :  { %v4775_v25 = vpack.c.bf16 %v7201_v31, %v7219_v8  ;;  %v4839_v4 = vpack.c.bf16 %v7204_v26, %v7222_v35 }
 0x565   :  { %9952 = vst [vmem:[#allocation40_spill] sm:$0xff] %v7213_v12  ;;  %9953 = vst [vmem:[#allocation41_spill] sm:$0xff] %v7216_v46  ;;  %v4773_v61 = vpack.c.bf16 %v7213_v12, %v7207_v57  ;;  %v4837_v2 = vpack.c.bf16 %v7216_v46, %v7210_v13 }
 0x567   :  { %v1995_v63 = vpop.f32.mrb[76].mxu1  ;;  %v2188_v21 = vpop.f32.mrb[48].mxu0  ;;  %4774 = vmatprep.subr.bf16.mxu1 %v4773_v61  ;;  %4838 = vmatprep.subr.bf16.mxu0 %v4837_v2 }
 0x568   :  { %v1997_v17 = vpop.f32.mrb[77].mxu1  ;;  %v2190_v20 = vpop.f32.mrb[49].mxu0  ;;  %4776 = vmatpush1.bf16.msra.mxu1 %v4775_v25  ;;  %4840 = vmatpush1.bf16.msra.mxu0 %v4839_v4  ;;  %v7251_v42 = vadd.f32 %v1995_v63, %v7131_v36  ;;  %v7254_v14 = vadd.f32 %v2188_v21, %v7134_v51 }
 0x569   :  { %v1999_v37 = vpop.f32.mrb[78].mxu1  ;;  %v2192_v19 = vpop.f32.mrb[50].mxu0  ;;  %v7239_v56 = vadd.f32 %v1997_v17, %v7125_v10  ;;  %v7242_v1 = vadd.f32 %v2190_v20, %v7128_v32 }
 0x56a   :  { %v7233_v50 = vadd.f32 %v1999_v37, %v7131_v36  ;;  %v7236_v22 = vadd.f32 %v2192_v19, %v7134_v51  ;;  %v2001_v54 = vpop.f32.mrb[79].mxu1  ;;  %v2194_v38 = vpop.f32.mrb[51].mxu0 }
 0x56b   :  { %9954 = vst [vmem:[#allocation49_spill] sm:$0xff] %v7239_v56  ;;  %9955 = vst [vmem:[#allocation50_spill] sm:$0xff] %v7242_v1  ;;  %v7245_v18 = vadd.f32 %v2001_v54, %v7125_v10  ;;  %v7248_v40 = vadd.f32 %v2194_v38, %v7128_v32 }
 0x56c   :  { %v4779_v24 = vpack.c.bf16 %v7233_v50, %v7251_v42  ;;  %v4843_v39 = vpack.c.bf16 %v7236_v22, %v7254_v14 }
 0x56d   :  { %9956 = vst [vmem:[#allocation42_spill] sm:$0xff] %v7245_v18  ;;  %9957 = vst [vmem:[#allocation43_spill] sm:$0xff] %v7248_v40  ;;  %v4777_v0 = vpack.c.bf16 %v7245_v18, %v7239_v56  ;;  %v4841_v52 = vpack.c.bf16 %v7248_v40, %v7242_v1 }
 0x56f   :  { %v2005_v43 = vpop.f32.mrb[80].mxu1  ;;  %v2198_v60 = vpop.f32.mrb[52].mxu0  ;;  %4778 = vmatprep.subr.bf16.mxu1 %v4777_v0  ;;  %4842 = vmatprep.subr.bf16.mxu0 %v4841_v52 }
 0x570   :  { %v2007_v45 = vpop.f32.mrb[81].mxu1  ;;  %v2200_v58 = vpop.f32.mrb[53].mxu0  ;;  %4780 = vmatpush1.bf16.msra.mxu1 %v4779_v24  ;;  %4844 = vmatpush1.bf16.msra.mxu0 %v4843_v39  ;;  %v7283_v20 = vadd.f32 %v2005_v43, %v7131_v36  ;;  %v7286_v37 = vadd.f32 %v2198_v60, %v7134_v51 }
 0x571   :  { %v2009_v53 = vpop.f32.mrb[82].mxu1  ;;  %v2202_v48 = vpop.f32.mrb[54].mxu0  ;;  %v7271_v4 = vadd.f32 %v2007_v45, %v7125_v10  ;;  %v7274_v63 = vadd.f32 %v2200_v58, %v7128_v32 }
 0x572   :  { %v7265_v55 = vadd.f32 %v2009_v53, %v7131_v36  ;;  %v7268_v61 = vadd.f32 %v2202_v48, %v7134_v51  ;;  %v2011_v2 = vpop.f32.mrb[83].mxu1  ;;  %v2204_v25 = vpop.f32.mrb[55].mxu0  ;;  %9963 = vst [vmem:[#allocation57_spill] sm:$0xff] %v7286_v37 }
 0x573   :  { %9959 = vst [vmem:[#allocation53_spill] sm:$0xff] %v7271_v4  ;;  %9960 = vst [vmem:[#allocation44_spill] sm:$0xff] %v7274_v63  ;;  %v7277_v21 = vadd.f32 %v2011_v2, %v7125_v10  ;;  %v7280_v17 = vadd.f32 %v2204_v25, %v7128_v32 }
 0x574   :  { %9958 = vst [vmem:[#allocation52_spill] sm:$0xff] %v7268_v61  ;;  %v4783_v38 = vpack.c.bf16 %v7265_v55, %v7283_v20  ;;  %v4847_v0 = vpack.c.bf16 %v7268_v61, %v7286_v37 }
 0x575   :  { %9961 = vst [vmem:[#allocation45_spill] sm:$0xff] %v7277_v21  ;;  %9962 = vst [vmem:[#allocation56_spill] sm:$0xff] %v7280_v17  ;;  %v4781_v19 = vpack.c.bf16 %v7277_v21, %v7271_v4  ;;  %v4845_v54 = vpack.c.bf16 %v7280_v17, %v7274_v63 }
 0x577   :  { %v2015_v52 = vpop.f32.mrb[84].mxu1  ;;  %v2208_v24 = vpop.f32.mrb[56].mxu0  ;;  %4782 = vmatprep.subr.bf16.mxu1 %v4781_v19  ;;  %4846 = vmatprep.subr.bf16.mxu0 %v4845_v54 }
 0x578   :  { %v2017_v39 = vpop.f32.mrb[85].mxu1  ;;  %v2210_v43 = vpop.f32.mrb[57].mxu0  ;;  %4784 = vmatpush1.bf16.msra.mxu1 %v4783_v38  ;;  %4848 = vmatpush1.bf16.msra.mxu0 %v4847_v0  ;;  %v7315_v0 = vadd.f32 %v2015_v52, %v7131_v36 }
 0x579   :  { %v2019_v60 = vpop.f32.mrb[86].mxu1  ;;  %v2212_v45 = vpop.f32.mrb[58].mxu0  ;;  %v7303_v25 = vadd.f32 %v2017_v39, %v7125_v10  ;;  %v7306_v19 = vadd.f32 %v2210_v43, %v7128_v32 }
 0x57a   :  { %v7297_v58 = vadd.f32 %v2019_v60, %v7131_v36  ;;  %v7300_v53 = vadd.f32 %v2212_v45, %v7134_v51  ;;  %v2021_v48 = vpop.f32.mrb[87].mxu1  ;;  %v2214_v2 = vpop.f32.mrb[59].mxu0  ;;  %9970 = vst [vmem:[#allocation68_spill] sm:$0xff] %v7315_v0  ;;  %v7318_v60 = vadd.f32 %v2208_v24, %v7134_v51 }
 0x57b   :  { %9966 = vst [vmem:[#allocation32_spill] sm:$0xff] %v7303_v25  ;;  %9967 = vst [vmem:[#allocation65_spill] sm:$0xff] %v7306_v19  ;;  %v7309_v54 = vadd.f32 %v2021_v48, %v7125_v10  ;;  %v7312_v38 = vadd.f32 %v2214_v2, %v7128_v32 }
 0x57c   :  { %9964 = vst [vmem:[#allocation46_spill] sm:$0xff] %v7297_v58  ;;  %9965 = vst [vmem:[#allocation47_spill] sm:$0xff] %v7300_v53  ;;  %v4787_v43 = vpack.c.bf16 %v7297_v58, %v7315_v0  ;;  %v4851_v48 = vpack.c.bf16 %v7300_v53, %v7318_v60 }
 0x57d   :  { %9968 = vst [vmem:[#allocation66_spill] sm:$0xff] %v7309_v54  ;;  %9969 = vst [vmem:[#allocation67_spill] sm:$0xff] %v7312_v38  ;;  %v4785_v45 = vpack.c.bf16 %v7309_v54, %v7303_v25  ;;  %v4849_v39 = vpack.c.bf16 %v7312_v38, %v7306_v19 }
 0x57e   :  { %9971 = vst [vmem:[#allocation69_spill] sm:$0xff] %v7318_v60 }
 0x57f   :  { %v2025_v2 = vpop.f32.mrb[88].mxu1  ;;  %v2218_v11 = vpop.f32.mrb[60].mxu0  ;;  %4786 = vmatprep.subr.bf16.mxu1 %v4785_v45  ;;  %4850 = vmatprep.subr.bf16.mxu0 %v4849_v39 }
 0x580   :  { %v2027_v52 = vpop.f32.mrb[89].mxu1  ;;  %v2220_v30 = vpop.f32.mrb[61].mxu0  ;;  %4788 = vmatpush1.bf16.msra.mxu1 %v4787_v43  ;;  %4852 = vmatpush1.bf16.msra.mxu0 %v4851_v48  ;;  %v7347_v48 = vadd.f32 %v2025_v2, %v7131_v36 }
 0x581   :  { %v2029_v24 = vpop.f32.mrb[90].mxu1  ;;  %v2222_v59 = vpop.f32.mrb[62].mxu0  ;;  %v7335_v60 = vadd.f32 %v2027_v52, %v7125_v10  ;;  %v7338_v45 = vadd.f32 %v2220_v30, %v7128_v32 }
 0x582   :  { %v7329_v34 = vadd.f32 %v2029_v24, %v7131_v36  ;;  %v7332_v19 = vadd.f32 %v2222_v59, %v7134_v51  ;;  %v2031_v0 = vpop.f32.mrb[91].mxu1  ;;  %v2224_v58 = vpop.f32.mrb[63].mxu0  ;;  %9978 = vst [vmem:[#allocation76_spill] sm:$0xff] %v7347_v48  ;;  %v7350_v59 = vadd.f32 %v2218_v11, %v7134_v51 }
 0x583   :  { %9974 = vst [vmem:[#allocation72_spill] sm:$0xff] %v7335_v60  ;;  %9975 = vst [vmem:[#allocation73_spill] sm:$0xff] %v7338_v45  ;;  %v7341_v39 = vadd.f32 %v2031_v0, %v7125_v10  ;;  %v7344_v43 = vadd.f32 %v2224_v58, %v7128_v32 }
 0x584   :  { %9972 = vst [vmem:[#allocation70_spill] sm:$0xff] %v7329_v34  ;;  %9973 = vst [vmem:[#allocation71_spill] sm:$0xff] %v7332_v19  ;;  %v4791_v30 = vpack.c.bf16 %v7329_v34, %v7347_v48  ;;  %v4855_v0 = vpack.c.bf16 %v7332_v19, %v7350_v59 }
 0x585   :  { %9976 = vst [vmem:[#allocation74_spill] sm:$0xff] %v7341_v39  ;;  %9977 = vst [vmem:[#allocation75_spill] sm:$0xff] %v7344_v43  ;;  %v4789_v24 = vpack.c.bf16 %v7341_v39, %v7335_v60  ;;  %v4853_v52 = vpack.c.bf16 %v7344_v43, %v7338_v45 }
 0x586   :  { %9979 = vst [vmem:[#allocation77_spill] sm:$0xff] %v7350_v59 }
 0x587   :  { %v2035_v58 = vpop.f32.mrb[92].mxu1  ;;  %v2228_v53 = vpop.f32.mrb[64].mxu0  ;;  %4790 = vmatprep.subr.bf16.mxu1 %v4789_v24  ;;  %4854 = vmatprep.subr.bf16.mxu0 %v4853_v52 }
 0x588   :  { %v2037_v2 = vpop.f32.mrb[93].mxu1  ;;  %v2230_v25 = vpop.f32.mrb[65].mxu0  ;;  %4792 = vmatpush1.bf16.msra.mxu1 %v4791_v30  ;;  %4856 = vmatpush1.bf16.msra.mxu0 %v4855_v0  ;;  %v7379_v0 = vadd.f32 %v2035_v58, %v7131_v36 }
 0x589   :  { %v2039_v11 = vpop.f32.mrb[94].mxu1  ;;  %v2232_v37 = vpop.f32.mrb[66].mxu0  ;;  %v7367_v59 = vadd.f32 %v2037_v2, %v7125_v10  ;;  %v7370_v24 = vadd.f32 %v2230_v25, %v7128_v32 }
 0x58a   :  { %v7361_v60 = vadd.f32 %v2039_v11, %v7131_v36  ;;  %v7364_v45 = vadd.f32 %v2232_v37, %v7134_v51  ;;  %v2041_v48 = vpop.f32.mrb[95].mxu1  ;;  %v2234_v34 = vpop.f32.mrb[67].mxu0  ;;  %9986 = vst [vmem:[#allocation84_spill] sm:$0xff] %v7379_v0  ;;  %v7382_v37 = vadd.f32 %v2228_v53, %v7134_v51 }
 0x58b   :  { %9982 = vst [vmem:[#allocation80_spill] sm:$0xff] %v7367_v59  ;;  %9983 = vst [vmem:[#allocation81_spill] sm:$0xff] %v7370_v24  ;;  %v7373_v52 = vadd.f32 %v2041_v48, %v7125_v10  ;;  %v7376_v30 = vadd.f32 %v2234_v34, %v7128_v32 }
 0x58c   :  { %9980 = vst [vmem:[#allocation78_spill] sm:$0xff] %v7361_v60  ;;  %9981 = vst [vmem:[#allocation79_spill] sm:$0xff] %v7364_v45  ;;  %v4795_v25 = vpack.c.bf16 %v7361_v60, %v7379_v0  ;;  %v4859_v48 = vpack.c.bf16 %v7364_v45, %v7382_v37 }
 0x58d   :  { %9984 = vst [vmem:[#allocation82_spill] sm:$0xff] %v7373_v52  ;;  %9985 = vst [vmem:[#allocation83_spill] sm:$0xff] %v7376_v30  ;;  %v4793_v11 = vpack.c.bf16 %v7373_v52, %v7367_v59  ;;  %v4857_v2 = vpack.c.bf16 %v7376_v30, %v7370_v24 }
 0x58e   :  { %9987 = vst [vmem:[#allocation85_spill] sm:$0xff] %v7382_v37 }
 0x58f   :  { %v2045_v34 = vpop.f32.mrb[96].mxu1  ;;  %v2238_v19 = vpop.f32.mrb[68].mxu0  ;;  %4794 = vmatprep.subr.bf16.mxu1 %v4793_v11  ;;  %4858 = vmatprep.subr.bf16.mxu0 %v4857_v2 }
 0x590   :  { %v2047_v58 = vpop.f32.mrb[97].mxu1  ;;  %v2240_v43 = vpop.f32.mrb[69].mxu0  ;;  %4796 = vmatpush1.bf16.msra.mxu1 %v4795_v25  ;;  %4860 = vmatpush1.bf16.msra.mxu0 %v4859_v48  ;;  %v7411_v48 = vadd.f32 %v2045_v34, %v7131_v36 }
 0x591   :  { %v2049_v53 = vpop.f32.mrb[98].mxu1  ;;  %v2242_v39 = vpop.f32.mrb[70].mxu0  ;;  %v7399_v37 = vadd.f32 %v2047_v58, %v7125_v10  ;;  %v7402_v11 = vadd.f32 %v2240_v43, %v7128_v32 }
 0x592   :  { %v7393_v59 = vadd.f32 %v2049_v53, %v7131_v36  ;;  %v7396_v24 = vadd.f32 %v2242_v39, %v7134_v51  ;;  %v2051_v0 = vpop.f32.mrb[99].mxu1  ;;  %v2244_v60 = vpop.f32.mrb[71].mxu0  ;;  %9994 = vst [vmem:[#allocation92_spill] sm:$0xff] %v7411_v48  ;;  %v7414_v39 = vadd.f32 %v2238_v19, %v7134_v51 }
 0x593   :  { %9990 = vst [vmem:[#allocation88_spill] sm:$0xff] %v7399_v37  ;;  %9991 = vst [vmem:[#allocation89_spill] sm:$0xff] %v7402_v11  ;;  %v7405_v2 = vadd.f32 %v2051_v0, %v7125_v10  ;;  %v7408_v25 = vadd.f32 %v2244_v60, %v7128_v32 }
 0x594   :  { %9988 = vst [vmem:[#allocation86_spill] sm:$0xff] %v7393_v59  ;;  %9989 = vst [vmem:[#allocation87_spill] sm:$0xff] %v7396_v24  ;;  %v4799_v43 = vpack.c.bf16 %v7393_v59, %v7411_v48  ;;  %v4863_v0 = vpack.c.bf16 %v7396_v24, %v7414_v39 }
 0x595   :  { %9992 = vst [vmem:[#allocation90_spill] sm:$0xff] %v7405_v2  ;;  %9993 = vst [vmem:[#allocation91_spill] sm:$0xff] %v7408_v25  ;;  %v4797_v53 = vpack.c.bf16 %v7405_v2, %v7399_v37  ;;  %v4861_v58 = vpack.c.bf16 %v7408_v25, %v7402_v11 }
 0x596   :  { %9995 = vst [vmem:[#allocation93_spill] sm:$0xff] %v7414_v39 }
 0x597   :  { %v2055_v60 = vpop.f32.mrb[100].mxu1  ;;  %v2248_v45 = vpop.f32.mrb[72].mxu0  ;;  %4798 = vmatprep.subr.bf16.mxu1 %v4797_v53  ;;  %4862 = vmatprep.subr.bf16.mxu0 %v4861_v58 }
 0x598   :  { %v2057_v34 = vpop.f32.mrb[101].mxu1  ;;  %v2250_v30 = vpop.f32.mrb[73].mxu0  ;;  %4800 = vmatpush1.bf16.msra.mxu1 %v4799_v43  ;;  %4864 = vmatpush1.bf16.msra.mxu0 %v4863_v0  ;;  %v7443_v0 = vadd.f32 %v2055_v60, %v7131_v36 }
 0x599   :  { %v2059_v19 = vpop.f32.mrb[102].mxu1  ;;  %v2252_v52 = vpop.f32.mrb[74].mxu0  ;;  %v7431_v39 = vadd.f32 %v2057_v34, %v7125_v10  ;;  %v7434_v53 = vadd.f32 %v2250_v30, %v7128_v32 }
 0x59a   :  { %v7425_v37 = vadd.f32 %v2059_v19, %v7131_v36  ;;  %v7428_v11 = vadd.f32 %v2252_v52, %v7134_v51  ;;  %v2061_v48 = vpop.f32.mrb[103].mxu1  ;;  %v2254_v59 = vpop.f32.mrb[75].mxu0  ;;  %10002 = vst [vmem:[#allocation100_spill] sm:$0xff] %v7443_v0  ;;  %v7446_v52 = vadd.f32 %v2248_v45, %v7134_v51 }
 0x59b   :  { %9998 = vst [vmem:[#allocation96_spill] sm:$0xff] %v7431_v39  ;;  %9999 = vst [vmem:[#allocation97_spill] sm:$0xff] %v7434_v53  ;;  %v7437_v58 = vadd.f32 %v2061_v48, %v7125_v10  ;;  %v7440_v43 = vadd.f32 %v2254_v59, %v7128_v32 }
 0x59c   :  { %9996 = vst [vmem:[#allocation94_spill] sm:$0xff] %v7425_v37  ;;  %9997 = vst [vmem:[#allocation95_spill] sm:$0xff] %v7428_v11  ;;  %v4803_v30 = vpack.c.bf16 %v7425_v37, %v7443_v0  ;;  %v4867_v48 = vpack.c.bf16 %v7428_v11, %v7446_v52 }
 0x59d   :  { %10000 = vst [vmem:[#allocation98_spill] sm:$0xff] %v7437_v58  ;;  %10001 = vst [vmem:[#allocation99_spill] sm:$0xff] %v7440_v43  ;;  %v4801_v19 = vpack.c.bf16 %v7437_v58, %v7431_v39  ;;  %v4865_v34 = vpack.c.bf16 %v7440_v43, %v7434_v53 }
 0x59e   :  { %10003 = vst [vmem:[#allocation101_spill] sm:$0xff] %v7446_v52 }
 0x59f   :  { %v2065_v59 = vpop.f32.mrb[104].mxu1  ;;  %v2258_v24 = vpop.f32.mrb[76].mxu0  ;;  %4802 = vmatprep.subr.bf16.mxu1 %v4801_v19  ;;  %4866 = vmatprep.subr.bf16.mxu0 %v4865_v34 }
 0x5a0   :  { %v2067_v60 = vpop.f32.mrb[105].mxu1  ;;  %v2260_v25 = vpop.f32.mrb[77].mxu0  ;;  %4804 = vmatpush1.bf16.msra.mxu1 %v4803_v30  ;;  %4868 = vmatpush1.bf16.msra.mxu0 %v4867_v48  ;;  %v7475_v48 = vadd.f32 %v2065_v59, %v7131_v36 }
 0x5a1   :  { %v2069_v45 = vpop.f32.mrb[106].mxu1  ;;  %v2262_v2 = vpop.f32.mrb[78].mxu0  ;;  %v7463_v52 = vadd.f32 %v2067_v60, %v7125_v10  ;;  %v7466_v19 = vadd.f32 %v2260_v25, %v7128_v32 }
 0x5a2   :  { %v7457_v39 = vadd.f32 %v2069_v45, %v7131_v36  ;;  %v7460_v53 = vadd.f32 %v2262_v2, %v7134_v51  ;;  %v2071_v0 = vpop.f32.mrb[107].mxu1  ;;  %v2264_v37 = vpop.f32.mrb[79].mxu0  ;;  %10010 = vst [vmem:[#allocation108_spill] sm:$0xff] %v7475_v48  ;;  %v7478_v2 = vadd.f32 %v2258_v24, %v7134_v51 }
 0x5a3   :  { %10006 = vst [vmem:[#allocation104_spill] sm:$0xff] %v7463_v52  ;;  %10007 = vst [vmem:[#allocation105_spill] sm:$0xff] %v7466_v19  ;;  %v7469_v34 = vadd.f32 %v2071_v0, %v7125_v10  ;;  %v7472_v30 = vadd.f32 %v2264_v37, %v7128_v32 }
 0x5a4   :  { %10004 = vst [vmem:[#allocation102_spill] sm:$0xff] %v7457_v39  ;;  %10005 = vst [vmem:[#allocation103_spill] sm:$0xff] %v7460_v53  ;;  %v4807_v25 = vpack.c.bf16 %v7457_v39, %v7475_v48  ;;  %v4871_v0 = vpack.c.bf16 %v7460_v53, %v7478_v2 }
 0x5a5   :  { %10008 = vst [vmem:[#allocation106_spill] sm:$0xff] %v7469_v34  ;;  %10009 = vst [vmem:[#allocation107_spill] sm:$0xff] %v7472_v30  ;;  %v4805_v45 = vpack.c.bf16 %v7469_v34, %v7463_v52  ;;  %v4869_v60 = vpack.c.bf16 %v7472_v30, %v7466_v19 }
 0x5a6   :  { %10011 = vst [vmem:[#allocation109_spill] sm:$0xff] %v7478_v2 }
 0x5a7   :  { %v2075_v37 = vpop.f32.mrb[108].mxu1  ;;  %v2268_v11 = vpop.f32.mrb[80].mxu0  ;;  %4806 = vmatprep.subr.bf16.mxu1 %v4805_v45  ;;  %4870 = vmatprep.subr.bf16.mxu0 %v4869_v60 }
 0x5a8   :  { %v2077_v59 = vpop.f32.mrb[109].mxu1  ;;  %v2270_v43 = vpop.f32.mrb[81].mxu0  ;;  %4808 = vmatpush1.bf16.msra.mxu1 %v4807_v25  ;;  %4872 = vmatpush1.bf16.msra.mxu0 %v4871_v0  ;;  %v7507_v0 = vadd.f32 %v2075_v37, %v7131_v36 }
 0x5a9   :  { %v2079_v24 = vpop.f32.mrb[110].mxu1  ;;  %v2272_v58 = vpop.f32.mrb[82].mxu0  ;;  %v7495_v2 = vadd.f32 %v2077_v59, %v7125_v10  ;;  %v7498_v45 = vadd.f32 %v2270_v43, %v7128_v32 }
 0x5aa   :  { %v7489_v52 = vadd.f32 %v2079_v24, %v7131_v36  ;;  %v7492_v19 = vadd.f32 %v2272_v58, %v7134_v51  ;;  %v2081_v48 = vpop.f32.mrb[111].mxu1  ;;  %v2274_v39 = vpop.f32.mrb[83].mxu0  ;;  %10018 = vst [vmem:[#allocation116_spill] sm:$0xff] %v7507_v0  ;;  %v7510_v58 = vadd.f32 %v2268_v11, %v7134_v51 }
 0x5ab   :  { %10014 = vst [vmem:[#allocation112_spill] sm:$0xff] %v7495_v2  ;;  %10015 = vst [vmem:[#allocation113_spill] sm:$0xff] %v7498_v45  ;;  %v7501_v60 = vadd.f32 %v2081_v48, %v7125_v10  ;;  %v7504_v25 = vadd.f32 %v2274_v39, %v7128_v32 }
 0x5ac   :  { %10012 = vst [vmem:[#allocation110_spill] sm:$0xff] %v7489_v52  ;;  %10013 = vst [vmem:[#allocation111_spill] sm:$0xff] %v7492_v19  ;;  %v4811_v43 = vpack.c.bf16 %v7489_v52, %v7507_v0  ;;  %v4875_v48 = vpack.c.bf16 %v7492_v19, %v7510_v58 }
 0x5ad   :  { %10016 = vst [vmem:[#allocation114_spill] sm:$0xff] %v7501_v60  ;;  %10017 = vst [vmem:[#allocation115_spill] sm:$0xff] %v7504_v25  ;;  %v4809_v24 = vpack.c.bf16 %v7501_v60, %v7495_v2  ;;  %v4873_v59 = vpack.c.bf16 %v7504_v25, %v7498_v45 }
 0x5ae   :  { %10019 = vst [vmem:[#allocation117_spill] sm:$0xff] %v7510_v58 }
 0x5af   :  { %v2085_v39 = vpop.f32.mrb[112].mxu1  ;;  %v2278_v53 = vpop.f32.mrb[84].mxu0  ;;  %4810 = vmatprep.subr.bf16.mxu1 %v4809_v24  ;;  %4874 = vmatprep.subr.bf16.mxu0 %v4873_v59 }
 0x5b0   :  { %v2087_v37 = vpop.f32.mrb[113].mxu1  ;;  %v2280_v30 = vpop.f32.mrb[85].mxu0  ;;  %4812 = vmatpush1.bf16.msra.mxu1 %v4811_v43  ;;  %4876 = vmatpush1.bf16.msra.mxu0 %v4875_v48  ;;  %v7539_v48 = vadd.f32 %v2085_v39, %v7131_v36 }
 0x5b1   :  { %v2089_v11 = vpop.f32.mrb[114].mxu1  ;;  %v2282_v34 = vpop.f32.mrb[86].mxu0  ;;  %v7527_v58 = vadd.f32 %v2087_v37, %v7125_v10  ;;  %v7530_v24 = vadd.f32 %v2280_v30, %v7128_v32 }
 0x5b2   :  { %v7521_v2 = vadd.f32 %v2089_v11, %v7131_v36  ;;  %v7524_v45 = vadd.f32 %v2282_v34, %v7134_v51  ;;  %v2091_v0 = vpop.f32.mrb[115].mxu1  ;;  %v2284_v52 = vpop.f32.mrb[87].mxu0  ;;  %10026 = vst [vmem:[#allocation124_spill] sm:$0xff] %v7539_v48  ;;  %v7542_v34 = vadd.f32 %v2278_v53, %v7134_v51 }
 0x5b3   :  { %10022 = vst [vmem:[#allocation120_spill] sm:$0xff] %v7527_v58  ;;  %10023 = vst [vmem:[#allocation121_spill] sm:$0xff] %v7530_v24  ;;  %v7533_v59 = vadd.f32 %v2091_v0, %v7125_v10  ;;  %v7536_v43 = vadd.f32 %v2284_v52, %v7128_v32 }
 0x5b4   :  { %10020 = vst [vmem:[#allocation118_spill] sm:$0xff] %v7521_v2  ;;  %10021 = vst [vmem:[#allocation119_spill] sm:$0xff] %v7524_v45  ;;  %v4815_v30 = vpack.c.bf16 %v7521_v2, %v7539_v48  ;;  %v4879_v0 = vpack.c.bf16 %v7524_v45, %v7542_v34 }
 0x5b5   :  { %10024 = vst [vmem:[#allocation122_spill] sm:$0xff] %v7533_v59  ;;  %10025 = vst [vmem:[#allocation123_spill] sm:$0xff] %v7536_v43  ;;  %v4813_v11 = vpack.c.bf16 %v7533_v59, %v7527_v58  ;;  %v4877_v37 = vpack.c.bf16 %v7536_v43, %v7530_v24 }
 0x5b6   :  { %10027 = vst [vmem:[#allocation125_spill] sm:$0xff] %v7542_v34 }
 0x5b7   :  { %v2095_v52 = vpop.f32.mrb[116].mxu1  ;;  %v2288_v19 = vpop.f32.mrb[88].mxu0  ;;  %4814 = vmatprep.subr.bf16.mxu1 %v4813_v11  ;;  %4878 = vmatprep.subr.bf16.mxu0 %v4877_v37 }
 0x5b8   :  { %v2097_v39 = vpop.f32.mrb[117].mxu1  ;;  %v2290_v25 = vpop.f32.mrb[89].mxu0  ;;  %4816 = vmatpush1.bf16.msra.mxu1 %v4815_v30  ;;  %4880 = vmatpush1.bf16.msra.mxu0 %v4879_v0  ;;  %v7571_v0 = vadd.f32 %v2095_v52, %v7131_v36 }
 0x5b9   :  { %v2099_v53 = vpop.f32.mrb[118].mxu1  ;;  %v2292_v60 = vpop.f32.mrb[90].mxu0  ;;  %v7559_v34 = vadd.f32 %v2097_v39, %v7125_v10  ;;  %v7562_v11 = vadd.f32 %v2290_v25, %v7128_v32 }
 0x5ba   :  { %v7553_v58 = vadd.f32 %v2099_v53, %v7131_v36  ;;  %v7556_v24 = vadd.f32 %v2292_v60, %v7134_v51  ;;  %v2101_v48 = vpop.f32.mrb[119].mxu1  ;;  %v2294_v2 = vpop.f32.mrb[91].mxu0  ;;  %10034 = vst [vmem:[#allocation132_spill] sm:$0xff] %v7571_v0  ;;  %v7574_v60 = vadd.f32 %v2288_v19, %v7134_v51 }
 0x5bb   :  { %10030 = vst [vmem:[#allocation128_spill] sm:$0xff] %v7559_v34  ;;  %10031 = vst [vmem:[#allocation129_spill] sm:$0xff] %v7562_v11  ;;  %v7565_v37 = vadd.f32 %v2101_v48, %v7125_v10  ;;  %v7568_v30 = vadd.f32 %v2294_v2, %v7128_v32 }
 0x5bc   :  { %10028 = vst [vmem:[#allocation126_spill] sm:$0xff] %v7553_v58  ;;  %10029 = vst [vmem:[#allocation127_spill] sm:$0xff] %v7556_v24  ;;  %v4819_v25 = vpack.c.bf16 %v7553_v58, %v7571_v0  ;;  %v4883_v48 = vpack.c.bf16 %v7556_v24, %v7574_v60 }
 0x5bd   :  { %10032 = vst [vmem:[#allocation130_spill] sm:$0xff] %v7565_v37  ;;  %10033 = vst [vmem:[#allocation131_spill] sm:$0xff] %v7568_v30  ;;  %v4817_v53 = vpack.c.bf16 %v7565_v37, %v7559_v34  ;;  %v4881_v39 = vpack.c.bf16 %v7568_v30, %v7562_v11 }
 0x5be   :  { %10035 = vst [vmem:[#allocation133_spill] sm:$0xff] %v7574_v60 }
 0x5bf   :  { %v2105_v2 = vpop.f32.mrb[120].mxu1  ;;  %v2298_v45 = vpop.f32.mrb[92].mxu0  ;;  %4818 = vmatprep.subr.bf16.mxu1 %v4817_v53  ;;  %4882 = vmatprep.subr.bf16.mxu0 %v4881_v39 }
 0x5c0   :  { %v2107_v52 = vpop.f32.mrb[121].mxu1  ;;  %v2300_v43 = vpop.f32.mrb[93].mxu0  ;;  %4820 = vmatpush1.bf16.msra.mxu1 %v4819_v25  ;;  %4884 = vmatpush1.bf16.msra.mxu0 %v4883_v48  ;;  %v7603_v48 = vadd.f32 %v2105_v2, %v7131_v36 }
 0x5c1   :  { %v2109_v19 = vpop.f32.mrb[122].mxu1  ;;  %v2302_v59 = vpop.f32.mrb[94].mxu0  ;;  %v7591_v60 = vadd.f32 %v2107_v52, %v7125_v10  ;;  %v7594_v53 = vadd.f32 %v2300_v43, %v7128_v32 }
 0x5c2   :  { %v7585_v34 = vadd.f32 %v2109_v19, %v7131_v36  ;;  %v7588_v11 = vadd.f32 %v2302_v59, %v7134_v51  ;;  %v2111_v0 = vpop.f32.mrb[123].mxu1  ;;  %v2304_v58 = vpop.f32.mrb[95].mxu0  ;;  %10041 = vst [vmem:[#allocation139_spill] sm:$0xff] %v7603_v48  ;;  %v7606_v59 = vadd.f32 %v2298_v45, %v7134_v51 }
 0x5c3   :  { %10037 = vst [vmem:[#allocation135_spill] sm:$0xff] %v7591_v60  ;;  %10038 = vst [vmem:[#allocation136_spill] sm:$0xff] %v7594_v53  ;;  %v7597_v39 = vadd.f32 %v2111_v0, %v7125_v10  ;;  %v7600_v25 = vadd.f32 %v2304_v58, %v7128_v32 }
 0x5c4   :  { %10036 = vst [vmem:[#allocation134_spill] sm:$0xff] %v7588_v11  ;;  %10042 = vst [vmem:[#allocation140_spill] sm:$0xff] %v7606_v59  ;;  %v4823_v43 = vpack.c.bf16 %v7585_v34, %v7603_v48  ;;  %v4887_v0 = vpack.c.bf16 %v7588_v11, %v7606_v59 }
 0x5c5   :  { %10039 = vst [vmem:[#allocation137_spill] sm:$0xff] %v7597_v39  ;;  %10040 = vst [vmem:[#allocation138_spill] sm:$0xff] %v7600_v25  ;;  %v4821_v19 = vpack.c.bf16 %v7597_v39, %v7591_v60  ;;  %v4885_v52 = vpack.c.bf16 %v7600_v25, %v7594_v53  ;;  %v2464_v60 = vmul.f32 %v7149_v44, %v7149_v44 }
 0x5c6   :  { %v2466_v53 = vmul.f32 %v7152_v27, %v7152_v27 }
 0x5c7   :  { %v2115_v58 = vpop.f32.mrb[124].mxu1  ;;  %v2308_v24 = vpop.f32.mrb[96].mxu0  ;;  %4822 = vmatprep.subr.bf16.mxu1 %v4821_v19  ;;  %4886 = vmatprep.subr.bf16.mxu0 %v4885_v52 }
 0x5c8   :  { %v2117_v2 = vpop.f32.mrb[125].mxu1  ;;  %v2310_v30 = vpop.f32.mrb[97].mxu0  ;;  %4824 = vmatpush1.bf16.msra.mxu1 %v4823_v43  ;;  %4888 = vmatpush1.bf16.msra.mxu0 %v4887_v0  ;;  %v7643_v27 = vadd.f32 %v2115_v58, %v7131_v36  ;;  %v2474_v58 = vmul.f32 %v7184_v3, %v7184_v3  ;;  %v10062_v3 = vld [vmem:[#allocation82_spill] sm:$0xff] }
 0x5c9   :  { %v2119_v45 = vpop.f32.mrb[126].mxu1  ;;  %v2312_v37 = vpop.f32.mrb[98].mxu0  ;;  %v7627_v11 = vadd.f32 %v2117_v2, %v7125_v10  ;;  %v7630_v43 = vadd.f32 %v2310_v30, %v7128_v32  ;;  %v7646_v2 = vadd.f32 %v2308_v24, %v7134_v51  ;;  %v2462_v30 = vmul.f32 %v7146_v15, %v7146_v15 }
 0x5ca   :  { %v7621_v48 = vadd.f32 %v2119_v45, %v7131_v36  ;;  %v7624_v59 = vadd.f32 %v2312_v37, %v7134_v51  ;;  %v2121_v19 = vpop.f32.mrb[127].mxu1  ;;  %v2314_v52 = vpop.f32.mrb[99].mxu0  ;;  %v2459_v45 = vmul.f32 %v7155_v9, %v7155_v9  ;;  %v2460_v37 = vmul.f32 %v7143_v16, %v7143_v16 }
 0x5cb   :  { %10044 = vst [vmem:[#allocation142_spill] sm:$0xff] %v7627_v11  ;;  %10045 = vst [vmem:[#allocation143_spill] sm:$0xff] %v7630_v43  ;;  %v7633_v0 = vadd.f32 %v2121_v19, %v7125_v10  ;;  %v7636_v44 = vadd.f32 %v2314_v52, %v7128_v32  ;;  %v2463_v10 = vmul.f32 %v7137_v7, %v7137_v7 }
 0x5cc   :  { %10043 = vst [vmem:[#allocation141_spill] sm:$0xff] %v7624_v59  ;;  %10048 = vst [vmem:[#allocation146_spill] sm:$0xff] %v7646_v2  ;;  %v2465_v52 = vmul.f32 %v7140_v23, %v7140_v23  ;;  %v2472_v36 = vmul.f32 %v7181_v6, %v7181_v6  ;;  %v4827_v51 = vpack.c.bf16 %v7621_v48, %v7643_v27 }
 0x5cd   :  { %10046 = vst [vmem:[#allocation144_spill] sm:$0xff] %v7633_v0  ;;  %10047 = vst [vmem:[#allocation145_spill] sm:$0xff] %v7636_v44  ;;  %v4825_v32 = vpack.c.bf16 %v7633_v0, %v7627_v11  ;;  %v4889_v19 = vpack.c.bf16 %v7636_v44, %v7630_v43  ;;  %v4891_v24 = vpack.c.bf16 %v7624_v59, %v7646_v2 }
 0x5ce   :  { %v4893_v15 = vpack.c.bf16 %v2464_v60, %v2460_v37  ;;  %v4957_v16 = vpack.c.bf16 %v2466_v53, %v2462_v30  ;;  %v2461_v7 = vmul.f32 %v7158_v62, %v7158_v62  ;;  %v2468_v23 = vmul.f32 %v7175_v41, %v7175_v41  ;;  %v10080_v41 = vld [vmem:[#allocation92_spill] sm:$0xff] }
 0x5cf   :  { %4826 = vmatprep.subr.bf16.mxu1 %v4825_v32  ;;  %4890 = vmatprep.subr.bf16.mxu0 %v4889_v19  ;;  %v4895_v6 = vpack.c.bf16 %v2463_v10, %v2459_v45  ;;  %v2470_v9 = vmul.f32 %v7178_v47, %v7178_v47  ;;  %v2471_v2 = vmul.f32 %v7169_v29, %v7169_v29 }
 0x5d0   :  { %4828 = vmatpush1.bf16.msra.mxu1 %v4827_v51  ;;  %4892 = vmatpush1.bf16.msra.mxu0 %v4891_v24  ;;  %v4959_v32 = vpack.c.bf16 %v2465_v52, %v2461_v7  ;;  %v2467_v60 = vmul.f32 %v7187_v28, %v7187_v28  ;;  %v2473_v53 = vmul.f32 %v7172_v33, %v7172_v33 }
 0x5d1   :  { %4894 = vmatprep.subr.bf16.mxu1 %v4893_v15  ;;  %4958 = vmatprep.subr.bf16.mxu0 %v4957_v16  ;;  %v4897_v37 = vpack.c.bf16 %v2472_v36, %v2468_v23  ;;  %v2480_v30 = vmul.f32 %v7213_v12, %v7213_v12  ;;  %v2482_v45 = vmul.f32 %v7216_v46, %v7216_v46  ;;  %v10056_v46 = vld [vmem:[#allocation68_spill] sm:$0xff] }
 0x5d2   :  { %v4961_v15 = vpack.c.bf16 %v2474_v58, %v2470_v9  ;;  %v2469_v7 = vmul.f32 %v7190_v49, %v7190_v49  ;;  %v4899_v16 = vpack.c.bf16 %v2471_v2, %v2467_v60  ;;  %v2476_v23 = vmul.f32 %v7207_v57, %v7207_v57 }
 0x5d3   :  { %2382 = vmatmul.mubr.f32.vlgmr.msra.gmra.mrb[128].mxu1 %v9933_v5  ;;  %2453 = vmatmul.mubr.f32.vlgmr.msra.gmra.mrb[100].mxu0 %v9933_v5  ;;  %v2478_v10 = vmul.f32 %v7210_v13, %v7210_v13  ;;  %v2479_v52 = vmul.f32 %v7201_v31, %v7201_v31  ;;  %v2481_v9 = vmul.f32 %v7204_v26, %v7204_v26 }
 0x5d4   :  { %4896 = vmatpush1.bf16.msra.mxu1 %v4895_v6  ;;  %4960 = vmatpush1.bf16.msra.mxu0 %v4959_v32  ;;  %v4963_v19 = vpack.c.bf16 %v2473_v53, %v2469_v7  ;;  %v2488_v6 = vmul.f32 %v7245_v18, %v7245_v18  ;;  %v2490_v2 = vmul.f32 %v7248_v40, %v7248_v40  ;;  %v10072_v18 = vld [vmem:[#allocation84_spill] sm:$0xff] }
 0x5d5   :  { %4898 = vmatprep.subr.bf16.mxu1 %v4897_v37  ;;  %4962 = vmatprep.subr.bf16.mxu0 %v4961_v15  ;;  %v4901_v36 = vpack.c.bf16 %v2480_v30, %v2476_v23  ;;  %v4965_v51 = vpack.c.bf16 %v2482_v45, %v2478_v10  ;;  %v2475_v24 = vmul.f32 %v7219_v8, %v7219_v8 }
 0x5d6   :  { %2651 = vmatprep.mubr.f32.mxu1 %v9933_v5  ;;  %2722 = vmatprep.mubr.f32.mxu0 %v9933_v5  ;;  %v2477_v58 = vmul.f32 %v7222_v35, %v7222_v35  ;;  %v2484_v32 = vmul.f32 %v7239_v56, %v7239_v56  ;;  %v2486_v60 = vmul.f32 %v7242_v1, %v7242_v1  ;;  %v10078_v56 = vld [vmem:[#allocation98_spill] sm:$0xff] }
 0x5d7   :  { %v4903_v53 = vpack.c.bf16 %v2479_v52, %v2475_v24  ;;  %v2487_v30 = vmul.f32 %v7233_v50, %v7233_v50  ;;  %v2489_v45 = vmul.f32 %v7236_v22, %v7236_v22  ;;  %v2496_v15 = vmul.f32 %v7277_v21, %v7277_v21 }
 0x5d8   :  { %4900 = vmatpush1.bf16.msra.mxu1 %v4899_v16  ;;  %4964 = vmatpush1.bf16.msra.mxu0 %v4963_v19  ;;  %v4967_v37 = vpack.c.bf16 %v2481_v9, %v2477_v58  ;;  %v2498_v7 = vmul.f32 %v7280_v17, %v7280_v17  ;;  %v4905_v16 = vpack.c.bf16 %v2488_v6, %v2484_v32  ;;  %v10054_v17 = vld [vmem:[#allocation74_spill] sm:$0xff] }
 0x5d9   :  { %4902 = vmatprep.subr.bf16.mxu1 %v4901_v36  ;;  %4966 = vmatprep.subr.bf16.mxu0 %v4965_v51  ;;  %v4969_v23 = vpack.c.bf16 %v2490_v2, %v2486_v60  ;;  %v2483_v10 = vmul.f32 %v7251_v42, %v7251_v42  ;;  %v2485_v19 = vmul.f32 %v7254_v14, %v7254_v14 }
 0x5da   :  { %v2492_v52 = vmul.f32 %v7271_v4, %v7271_v4  ;;  %v2494_v9 = vmul.f32 %v7274_v63, %v7274_v63  ;;  %v2495_v6 = vmul.f32 %v7265_v55, %v7265_v55  ;;  %v2497_v2 = vmul.f32 %v7268_v61, %v7268_v61 }
 0x5db   :  { %v4907_v36 = vpack.c.bf16 %v2487_v30, %v2483_v10  ;;  %v4971_v51 = vpack.c.bf16 %v2489_v45, %v2485_v19  ;;  %v2504_v24 = vmul.f32 %v7309_v54, %v7309_v54  ;;  %v2506_v58 = vmul.f32 %v7312_v38, %v7312_v38  ;;  %v10050_v45 = vld [vmem:[#allocation32_spill] sm:$0xff] }
 0x5dc   :  { %4904 = vmatpush1.bf16.msra.mxu1 %v4903_v53  ;;  %4968 = vmatpush1.bf16.msra.mxu0 %v4967_v37  ;;  %v4909_v32 = vpack.c.bf16 %v2496_v15, %v2492_v52  ;;  %v4973_v60 = vpack.c.bf16 %v2498_v7, %v2494_v9  ;;  %v2491_v53 = vmul.f32 %v7283_v20, %v7283_v20  ;;  %v10049_v37 = vld [vmem:[#allocation57_spill] sm:$0xff]  ;;  %v10052_v15 = vld [vmem:[#allocation46_spill] sm:$0xff]  ;;  %v10053_v52 = vld [vmem:[#allocation47_spill] sm:$0xff] }
 0x5dd   :  { %4906 = vmatprep.subr.bf16.mxu1 %v4905_v16  ;;  %4970 = vmatprep.subr.bf16.mxu0 %v4969_v23  ;;  %v2493_v30 = vmul.f32 %v10049_v37, %v10049_v37  ;;  %v2500_v16 = vmul.f32 %v10050_v45, %v10050_v45  ;;  %v10051_v23 = vld [vmem:[#allocation65_spill] sm:$0xff]  ;;  %v2503_v7 = vmul.f32 %v10052_v15, %v10052_v15  ;;  %v10064_v54 = vld [vmem:[#allocation76_spill] sm:$0xff]  ;;  %v10070_v45 = vld [vmem:[#allocation90_spill] sm:$0xff] }
 0x5de   :  { %v2502_v10 = vmul.f32 %v10051_v23, %v10051_v23  ;;  %v4911_v19 = vpack.c.bf16 %v2495_v6, %v2491_v53  ;;  %v2505_v9 = vmul.f32 %v10053_v52, %v10053_v52  ;;  %v10112_v37 = vld [vmem:[#allocation124_spill] sm:$0xff] }
 0x5df   :  { %v4975_v38 = vpack.c.bf16 %v2497_v2, %v2493_v30  ;;  %v4913_v40 = vpack.c.bf16 %v2504_v24, %v2500_v16  ;;  %v10058_v2 = vld [vmem:[#allocation72_spill] sm:$0xff]  ;;  %v10059_v30 = vld [vmem:[#allocation73_spill] sm:$0xff]  ;;  %v10060_v24 = vld [vmem:[#allocation70_spill] sm:$0xff] }
 0x5e0   :  { %4908 = vmatpush1.bf16.msra.mxu1 %v4907_v36  ;;  %4972 = vmatpush1.bf16.msra.mxu0 %v4971_v51  ;;  %v2512_v36 = vmul.f32 %v10054_v17, %v10054_v17  ;;  %v10055_v51 = vld [vmem:[#allocation75_spill] sm:$0xff]  ;;  %v4977_v1 = vpack.c.bf16 %v2506_v58, %v2502_v10  ;;  %v2508_v53 = vmul.f32 %v10058_v2, %v10058_v2 }
 0x5e1   :  { %4910 = vmatprep.subr.bf16.mxu1 %v4909_v32  ;;  %4974 = vmatprep.subr.bf16.mxu0 %v4973_v60  ;;  %v2514_v63 = vmul.f32 %v10055_v51, %v10055_v51  ;;  %v2499_v32 = vmul.f32 %v10056_v46, %v10056_v46  ;;  %v10057_v60 = vld [vmem:[#allocation69_spill] sm:$0xff]  ;;  %v2510_v23 = vmul.f32 %v10059_v30, %v10059_v30  ;;  %v10061_v16 = vld [vmem:[#allocation71_spill] sm:$0xff] }
 0x5e2   :  { %v2501_v6 = vmul.f32 %v10057_v60, %v10057_v60  ;;  %v2511_v58 = vmul.f32 %v10060_v24, %v10060_v24  ;;  %v2513_v10 = vmul.f32 %v10061_v16, %v10061_v16  ;;  %v4917_v17 = vpack.c.bf16 %v2512_v36, %v2508_v53  ;;  %v10068_v36 = vld [vmem:[#allocation78_spill] sm:$0xff]  ;;  %v10104_v60 = vld [vmem:[#allocation116_spill] sm:$0xff] }
 0x5e3   :  { %v4915_v13 = vpack.c.bf16 %v2503_v7, %v2499_v32  ;;  %v4981_v2 = vpack.c.bf16 %v2514_v63, %v2510_v23  ;;  %v2519_v63 = vmul.f32 %v10068_v36, %v10068_v36  ;;  %v10069_v23 = vld [vmem:[#allocation79_spill] sm:$0xff] }
 0x5e4   :  { %4912 = vmatpush1.bf16.msra.mxu1 %v4911_v19  ;;  %4976 = vmatpush1.bf16.msra.mxu0 %v4975_v38  ;;  %v4979_v51 = vpack.c.bf16 %v2505_v9, %v2501_v6  ;;  %v2520_v19 = vmul.f32 %v10062_v3, %v10062_v3  ;;  %v10063_v38 = vld [vmem:[#allocation83_spill] sm:$0xff]  ;;  %v10066_v9 = vld [vmem:[#allocation80_spill] sm:$0xff]  ;;  %v10067_v6 = vld [vmem:[#allocation81_spill] sm:$0xff]  ;;  %v2521_v53 = vmul.f32 %v10069_v23, %v10069_v23 }
 0x5e5   :  { %4914 = vmatprep.subr.bf16.mxu1 %v4913_v40  ;;  %4978 = vmatprep.subr.bf16.mxu0 %v4977_v1  ;;  %v2522_v47 = vmul.f32 %v10063_v38, %v10063_v38  ;;  %v2507_v40 = vmul.f32 %v10064_v54, %v10064_v54  ;;  %v10065_v1 = vld [vmem:[#allocation77_spill] sm:$0xff]  ;;  %v2516_v32 = vmul.f32 %v10066_v9, %v10066_v9 }
 0x5e6   :  { %v2509_v7 = vmul.f32 %v10065_v1, %v10065_v1  ;;  %v2518_v30 = vmul.f32 %v10067_v6, %v10067_v6  ;;  %v10096_v1 = vld [vmem:[#allocation108_spill] sm:$0xff] }
 0x5e7   :  { %v4919_v3 = vpack.c.bf16 %v2511_v58, %v2507_v40  ;;  %v4921_v9 = vpack.c.bf16 %v2520_v19, %v2516_v32  ;;  %v10076_v19 = vld [vmem:[#allocation86_spill] sm:$0xff] }
 0x5e8   :  { %4916 = vmatpush1.bf16.msra.mxu1 %v4915_v13  ;;  %4980 = vmatpush1.bf16.msra.mxu0 %v4979_v51  ;;  %v4983_v38 = vpack.c.bf16 %v2513_v10, %v2509_v7  ;;  %v2528_v13 = vmul.f32 %v10070_v45, %v10070_v45  ;;  %v10071_v51 = vld [vmem:[#allocation91_spill] sm:$0xff]  ;;  %v4985_v4 = vpack.c.bf16 %v2522_v47, %v2518_v30  ;;  %v10074_v10 = vld [vmem:[#allocation88_spill] sm:$0xff]  ;;  %v10075_v7 = vld [vmem:[#allocation89_spill] sm:$0xff] }
 0x5e9   :  { %4918 = vmatprep.subr.bf16.mxu1 %v4917_v17  ;;  %4982 = vmatprep.subr.bf16.mxu0 %v4981_v2  ;;  %v2530_v21 = vmul.f32 %v10071_v51, %v10071_v51  ;;  %v2515_v17 = vmul.f32 %v10072_v18, %v10072_v18  ;;  %v10073_v2 = vld [vmem:[#allocation85_spill] sm:$0xff]  ;;  %v2524_v40 = vmul.f32 %v10074_v10, %v10074_v10  ;;  %v10077_v30 = vld [vmem:[#allocation87_spill] sm:$0xff] }
 0x5ea   :  { %v2517_v58 = vmul.f32 %v10073_v2, %v10073_v2  ;;  %v2526_v6 = vmul.f32 %v10075_v7, %v10075_v7  ;;  %v2527_v47 = vmul.f32 %v10076_v19, %v10076_v19  ;;  %v2529_v32 = vmul.f32 %v10077_v30, %v10077_v30  ;;  %v10086_v30 = vld [vmem:[#allocation106_spill] sm:$0xff]  ;;  %v10088_v2 = vld [vmem:[#allocation100_spill] sm:$0xff] }
 0x5eb   :  { %v4923_v45 = vpack.c.bf16 %v2519_v63, %v2515_v17  ;;  %v4925_v10 = vpack.c.bf16 %v2528_v13, %v2524_v40  ;;  %v10084_v13 = vld [vmem:[#allocation94_spill] sm:$0xff] }
 0x5ec   :  { %4920 = vmatpush1.bf16.msra.mxu1 %v4919_v3  ;;  %4984 = vmatpush1.bf16.msra.mxu0 %v4983_v38  ;;  %v4987_v51 = vpack.c.bf16 %v2521_v53, %v2517_v58  ;;  %v2536_v3 = vmul.f32 %v10078_v56, %v10078_v56  ;;  %v10079_v38 = vld [vmem:[#allocation99_spill] sm:$0xff]  ;;  %v4989_v57 = vpack.c.bf16 %v2530_v21, %v2526_v6  ;;  %v10082_v53 = vld [vmem:[#allocation96_spill] sm:$0xff]  ;;  %v10083_v58 = vld [vmem:[#allocation97_spill] sm:$0xff] }
 0x5ed   :  { %4922 = vmatprep.subr.bf16.mxu1 %v4921_v9  ;;  %4986 = vmatprep.subr.bf16.mxu0 %v4985_v4  ;;  %v2538_v12 = vmul.f32 %v10079_v38, %v10079_v38  ;;  %v2523_v9 = vmul.f32 %v10080_v41, %v10080_v41  ;;  %v10081_v4 = vld [vmem:[#allocation93_spill] sm:$0xff]  ;;  %v2532_v17 = vmul.f32 %v10082_v53, %v10082_v53  ;;  %v10085_v6 = vld [vmem:[#allocation95_spill] sm:$0xff] }
 0x5ee   :  { %v2525_v63 = vmul.f32 %v10081_v4, %v10081_v4  ;;  %v2534_v7 = vmul.f32 %v10083_v58, %v10083_v58  ;;  %v2535_v21 = vmul.f32 %v10084_v13, %v10084_v13  ;;  %v2537_v40 = vmul.f32 %v10085_v6, %v10085_v6  ;;  %v10094_v6 = vld [vmem:[#allocation114_spill] sm:$0xff] }
 0x5ef   :  { %v4927_v56 = vpack.c.bf16 %v2527_v47, %v2523_v9  ;;  %v4929_v53 = vpack.c.bf16 %v2536_v3, %v2532_v17  ;;  %v10092_v3 = vld [vmem:[#allocation102_spill] sm:$0xff] }
 0x5f0   :  { %4924 = vmatpush1.bf16.msra.mxu1 %v4923_v45  ;;  %4988 = vmatpush1.bf16.msra.mxu0 %v4987_v51  ;;  %v4991_v38 = vpack.c.bf16 %v2529_v32, %v2525_v63  ;;  %v2544_v45 = vmul.f32 %v10086_v30, %v10086_v30  ;;  %v10087_v51 = vld [vmem:[#allocation107_spill] sm:$0xff]  ;;  %v4993_v23 = vpack.c.bf16 %v2538_v12, %v2534_v7  ;;  %v10090_v32 = vld [vmem:[#allocation104_spill] sm:$0xff]  ;;  %v10091_v63 = vld [vmem:[#allocation105_spill] sm:$0xff] }
 0x5f1   :  { %4926 = vmatprep.subr.bf16.mxu1 %v4925_v10  ;;  %4990 = vmatprep.subr.bf16.mxu0 %v4989_v57  ;;  %v2546_v4 = vmul.f32 %v10087_v51, %v10087_v51  ;;  %v2531_v10 = vmul.f32 %v10088_v2, %v10088_v2  ;;  %v10089_v57 = vld [vmem:[#allocation101_spill] sm:$0xff]  ;;  %v2540_v9 = vmul.f32 %v10090_v32, %v10090_v32  ;;  %v10093_v7 = vld [vmem:[#allocation103_spill] sm:$0xff] }
 0x5f2   :  { %v2533_v47 = vmul.f32 %v10089_v57, %v10089_v57  ;;  %v2542_v58 = vmul.f32 %v10091_v63, %v10091_v63  ;;  %v2543_v12 = vmul.f32 %v10092_v3, %v10092_v3  ;;  %v2545_v17 = vmul.f32 %v10093_v7, %v10093_v7  ;;  %v10102_v7 = vld [vmem:[#allocation122_spill] sm:$0xff] }
 0x5f3   :  { %v4931_v30 = vpack.c.bf16 %v2535_v21, %v2531_v10  ;;  %v4933_v32 = vpack.c.bf16 %v2544_v45, %v2540_v9  ;;  %v10100_v45 = vld [vmem:[#allocation110_spill] sm:$0xff] }
 0x5f4   :  { %4928 = vmatpush1.bf16.msra.mxu1 %v4927_v56  ;;  %4992 = vmatpush1.bf16.msra.mxu0 %v4991_v38  ;;  %v4995_v51 = vpack.c.bf16 %v2537_v40, %v2533_v47  ;;  %v2552_v56 = vmul.f32 %v10094_v6, %v10094_v6  ;;  %v10095_v38 = vld [vmem:[#allocation115_spill] sm:$0xff]  ;;  %v4997_v16 = vpack.c.bf16 %v2546_v4, %v2542_v58  ;;  %v10098_v40 = vld [vmem:[#allocation112_spill] sm:$0xff]  ;;  %v10099_v47 = vld [vmem:[#allocation113_spill] sm:$0xff] }
 0x5f5   :  { %4930 = vmatprep.subr.bf16.mxu1 %v4929_v53  ;;  %4994 = vmatprep.subr.bf16.mxu0 %v4993_v23  ;;  %v2554_v57 = vmul.f32 %v10095_v38, %v10095_v38  ;;  %v2539_v53 = vmul.f32 %v10096_v1, %v10096_v1  ;;  %v10097_v23 = vld [vmem:[#allocation109_spill] sm:$0xff]  ;;  %v2548_v10 = vmul.f32 %v10098_v40, %v10098_v40  ;;  %v10101_v58 = vld [vmem:[#allocation111_spill] sm:$0xff] }
 0x5f6   :  { %v2541_v21 = vmul.f32 %v10097_v23, %v10097_v23  ;;  %v2550_v63 = vmul.f32 %v10099_v47, %v10099_v47  ;;  %v2551_v4 = vmul.f32 %v10100_v45, %v10100_v45  ;;  %v2553_v9 = vmul.f32 %v10101_v58, %v10101_v58  ;;  %v10110_v58 = vld [vmem:[#allocation130_spill] sm:$0xff] }
 0x5f7   :  { %v4935_v6 = vpack.c.bf16 %v2543_v12, %v2539_v53  ;;  %v4937_v40 = vpack.c.bf16 %v2552_v56, %v2548_v10  ;;  %v10108_v56 = vld [vmem:[#allocation118_spill] sm:$0xff] }
 0x5f8   :  { %4932 = vmatpush1.bf16.msra.mxu1 %v4931_v30  ;;  %4996 = vmatpush1.bf16.msra.mxu0 %v4995_v51  ;;  %v4999_v38 = vpack.c.bf16 %v2545_v17, %v2541_v21  ;;  %v2560_v30 = vmul.f32 %v10102_v7, %v10102_v7  ;;  %v10103_v51 = vld [vmem:[#allocation123_spill] sm:$0xff]  ;;  %v5001_v52 = vpack.c.bf16 %v2554_v57, %v2550_v63  ;;  %v10106_v17 = vld [vmem:[#allocation120_spill] sm:$0xff]  ;;  %v10107_v21 = vld [vmem:[#allocation121_spill] sm:$0xff] }
 0x5f9   :  { %4934 = vmatprep.subr.bf16.mxu1 %v4933_v32  ;;  %4998 = vmatprep.subr.bf16.mxu0 %v4997_v16  ;;  %v2562_v23 = vmul.f32 %v10103_v51, %v10103_v51  ;;  %v2547_v32 = vmul.f32 %v10104_v60, %v10104_v60  ;;  %v10105_v16 = vld [vmem:[#allocation117_spill] sm:$0xff]  ;;  %v2556_v53 = vmul.f32 %v10106_v17, %v10106_v17  ;;  %v10109_v63 = vld [vmem:[#allocation119_spill] sm:$0xff] }
 0x5fa   :  { %v2549_v12 = vmul.f32 %v10105_v16, %v10105_v16  ;;  %v2558_v47 = vmul.f32 %v10107_v21, %v10107_v21  ;;  %v2559_v57 = vmul.f32 %v10108_v56, %v10108_v56  ;;  %v2561_v10 = vmul.f32 %v10109_v63, %v10109_v63 }
 0x5fb   :  { %v4939_v7 = vpack.c.bf16 %v2551_v4, %v2547_v32  ;;  %v4941_v17 = vpack.c.bf16 %v2560_v30, %v2556_v53  ;;  %v10116_v30 = vld [vmem:[#allocation126_spill] sm:$0xff] }
 0x5fc   :  { %4936 = vmatpush1.bf16.msra.mxu1 %v4935_v6  ;;  %5000 = vmatpush1.bf16.msra.mxu0 %v4999_v38  ;;  %v5003_v51 = vpack.c.bf16 %v2553_v9, %v2549_v12  ;;  %v2568_v6 = vmul.f32 %v10110_v58, %v10110_v58  ;;  %v10111_v38 = vld [vmem:[#allocation131_spill] sm:$0xff]  ;;  %v5005_v61 = vpack.c.bf16 %v2562_v23, %v2558_v47  ;;  %v10114_v9 = vld [vmem:[#allocation128_spill] sm:$0xff]  ;;  %v10115_v12 = vld [vmem:[#allocation129_spill] sm:$0xff] }
 0x5fd   :  { %4938 = vmatprep.subr.bf16.mxu1 %v4937_v40  ;;  %5002 = vmatprep.subr.bf16.mxu0 %v5001_v52  ;;  %v2570_v16 = vmul.f32 %v10111_v38, %v10111_v38  ;;  %v2555_v40 = vmul.f32 %v10112_v37, %v10112_v37  ;;  %v10113_v52 = vld [vmem:[#allocation125_spill] sm:$0xff]  ;;  %v2564_v32 = vmul.f32 %v10114_v9, %v10114_v9  ;;  %v10117_v47 = vld [vmem:[#allocation127_spill] sm:$0xff] }
 0x5fe   :  { %v2557_v4 = vmul.f32 %v10113_v52, %v10113_v52  ;;  %v2566_v21 = vmul.f32 %v10115_v12, %v10115_v12  ;;  %v2567_v23 = vmul.f32 %v10116_v30, %v10116_v30  ;;  %v2569_v53 = vmul.f32 %v10117_v47, %v10117_v47  ;;  %v10118_v52 = vld [vmem:[#allocation132_spill] sm:$0xff]  ;;  %v10123_v47 = vld [vmem:[#allocation139_spill] sm:$0xff] }
 0x5ff   :  { %v4943_v58 = vpack.c.bf16 %v2559_v57, %v2555_v40  ;;  %v4945_v9 = vpack.c.bf16 %v2568_v6, %v2564_v32 }
 0x600   :  { %4940 = vmatpush1.bf16.msra.mxu1 %v4939_v7  ;;  %5004 = vmatpush1.bf16.msra.mxu0 %v5003_v51  ;;  %v5007_v38 = vpack.c.bf16 %v2561_v10, %v2557_v4  ;;  %v2576_v7 = vmul.f32 %v7597_v39, %v7597_v39  ;;  %v2578_v51 = vmul.f32 %v7600_v25, %v7600_v25  ;;  %v10120_v10 = vld [vmem:[#allocation135_spill] sm:$0xff]  ;;  %v10121_v4 = vld [vmem:[#allocation136_spill] sm:$0xff] }
 0x601   :  { %4942 = vmatprep.subr.bf16.mxu1 %v4941_v17  ;;  %5006 = vmatprep.subr.bf16.mxu0 %v5005_v61  ;;  %v5009_v63 = vpack.c.bf16 %v2570_v16, %v2566_v21  ;;  %v2563_v17 = vmul.f32 %v10118_v52, %v10118_v52  ;;  %v10119_v61 = vld [vmem:[#allocation133_spill] sm:$0xff]  ;;  %v2572_v40 = vmul.f32 %v10120_v10, %v10120_v10  ;;  %v10122_v21 = vld [vmem:[#allocation134_spill] sm:$0xff] }
 0x602   :  { %v2565_v57 = vmul.f32 %v10119_v61, %v10119_v61  ;;  %v2574_v12 = vmul.f32 %v10121_v4, %v10121_v4  ;;  %v2575_v16 = vmul.f32 %v7585_v34, %v7585_v34  ;;  %v2577_v6 = vmul.f32 %v10122_v21, %v10122_v21 }
 0x603   :  { %v4947_v39 = vpack.c.bf16 %v2567_v23, %v2563_v17  ;;  %v4949_v32 = vpack.c.bf16 %v2576_v7, %v2572_v40  ;;  %v2582_v17 = vmul.f32 %v7630_v43, %v7630_v43  ;;  %v2585_v7 = vmul.f32 %v7624_v59, %v7624_v59 }
 0x604   :  { %4944 = vmatpush1.bf16.msra.mxu1 %v4943_v58  ;;  %5008 = vmatpush1.bf16.msra.mxu0 %v5007_v38  ;;  %v5011_v25 = vpack.c.bf16 %v2569_v53, %v2565_v57  ;;  %v2584_v58 = vmul.f32 %v7633_v0, %v7633_v0  ;;  %v2586_v38 = vmul.f32 %v7636_v44, %v7636_v44 }
 0x605   :  { %4946 = vmatprep.subr.bf16.mxu1 %v4945_v9  ;;  %5010 = vmatprep.subr.bf16.mxu0 %v5009_v63  ;;  %v5013_v10 = vpack.c.bf16 %v2578_v51, %v2574_v12  ;;  %v2571_v9 = vmul.f32 %v10123_v47, %v10123_v47  ;;  %v10124_v63 = vld [vmem:[#allocation140_spill] sm:$0xff]  ;;  %v2580_v53 = vmul.f32 %v7627_v11, %v7627_v11 }
 0x606   :  { %v2573_v23 = vmul.f32 %v10124_v63, %v10124_v63  ;;  %v2583_v12 = vmul.f32 %v7621_v48, %v7621_v48  ;;  %v5017_v40 = vpack.c.bf16 %v2586_v38, %v2582_v17  ;;  %v5188_v17 = vld [vmem:[#allocation20 + $0x8] sm:$0xff]  }
 0x607   :  { %v4951_v57 = vpack.c.bf16 %v2575_v16, %v2571_v9  ;;  %v4953_v51 = vpack.c.bf16 %v2584_v58, %v2580_v53  ;;  %v5182_v9 = vld [vmem:[#allocation20 + $0x40] sm:$0xff]  }
 0x608   :  { %4948 = vmatpush1.bf16.msra.mxu1 %v4947_v39  ;;  %5012 = vmatpush1.bf16.msra.mxu0 %v5011_v25  ;;  %v5015_v44 = vpack.c.bf16 %v2577_v6, %v2573_v23  ;;  %v2579_v39 = vmul.f32 %v7643_v27, %v7643_v27  ;;  %v10125_v25 = vld [vmem:[#allocation146_spill] sm:$0xff]  ;;  %v5184_v23 = vld [vmem:[#allocation20] sm:$0xff]  }
 0x609   :  { %4950 = vmatprep.subr.bf16.mxu1 %v4949_v32  ;;  %5014 = vmatprep.subr.bf16.mxu0 %v5013_v10  ;;  %v2581_v4 = vmul.f32 %v10125_v25, %v10125_v25  ;;  %v7918_v53 = vld [vmem:[#allocation20 + $0x80] sm:$0xff]   ;;  %v10141_v25 = vld [vmem:[#allocation34_spill] sm:$0xff] }
 0x60a   :  { %v4955_v10 = vpack.c.bf16 %v2583_v12, %v2579_v39  ;;  %10126 = vst [vmem:[#allocation46_spill] sm:$0xff] %v7918_v53  ;;  %v5190_v12 = vld [vmem:[#allocation20 + $0x50] sm:$0xff]   ;;  %v5194_v39 = vld [vmem:[#allocation20 + $0x58] sm:$0xff]   ;;  %v10142_v63 = vld [vmem:[#allocation60_spill] sm:$0xff] }
 0x60b   :  { %v5019_v16 = vpack.c.bf16 %v2585_v7, %v2581_v4  ;;  %v5186_v4 = vld [vmem:[#allocation20 + $0x48] sm:$0xff]   ;;  %v7927_v7 = vld [vmem:[#allocation20 + $0xd0] sm:$0xff]  }
 0x60c   :  { %4952 = vmatpush1.bf16.msra.mxu1 %v4951_v57  ;;  %5016 = vmatpush1.bf16.msra.mxu0 %v5015_v44  ;;  %v5183_v44 = vld [vmem:[#allocation20 + $0xc0] sm:$0xff]   ;;  %v7923_v57 = vld [vmem:[#allocation20 + $0x88] sm:$0xff]   ;;  %10129 = vst [vmem:[#allocation76_spill] sm:$0xff] %v7927_v7 }
 0x60d   :  { %4954 = vmatprep.subr.bf16.mxu1 %v4953_v51  ;;  %5018 = vmatprep.subr.bf16.mxu0 %v5017_v40  ;;  %10128 = vst [vmem:[#allocation70_spill] sm:$0xff] %v7923_v57  ;;  %v5192_v51 = vld [vmem:[#allocation20 + $0x10] sm:$0xff]  }
 0x60e   :  { %v7929_v40 = vld [vmem:[#allocation20 + $0x90] sm:$0xff]  }
 0x60f   :  { %10130 = vst [vmem:[#allocation78_spill] sm:$0xff] %v7929_v40 }
 0x610   :  { %4956 = vmatpush1.bf16.msra.mxu1 %v4955_v10  ;;  %5020 = vmatpush1.bf16.msra.mxu0 %v5019_v16  ;;  %v7933_v10 = vld [vmem:[#allocation20 + $0xd8] sm:$0xff]  }
 0x611   :  { %4377 = vmatprep.subr.bf16.mxu1 %v5182_v9  ;;  %4489 = vmatprep.subr.bf16.mxu0 %v5183_v44  ;;  %10131 = vst [vmem:[#allocation84_spill] sm:$0xff] %v7933_v10  ;;  %v5196_v16 = vld [vmem:[#allocation20 + $0x18] sm:$0xff]  }
 0x612   :  { %v7935_v9 = vld [vmem:[#allocation20 + $0x98] sm:$0xff]  }
 0x613   :  { %2652 = vmatmul.mubr.f32.vlgmr.msra.gmra.mrb[130].mxu1 %v9933_v5  ;;  %2723 = vmatmul.mubr.f32.vlgmr.msra.gmra.mrb[102].mxu0 %v9933_v5  ;;  %v7921_v5 = vld [vmem:[#allocation20 + $0xc8] sm:$0xff]   ;;  %10132 = vst [vmem:[#allocation86_spill] sm:$0xff] %v7935_v9 }
 0x614   :  { %4378 = vmatpush3.bf16.msra.mxu1 %v5184_v23  ;;  %4490 = vmatpush3.bf16.msra.mxu0 %v7918_v53  ;;  %10127 = vst [vmem:[#allocation68_spill] sm:$0xff] %v7921_v5  ;;  %v5198_v23 = vld [vmem:[#allocation20 + $0x60] sm:$0xff]  }
 0x615   :  { %4379 = vmatprep.subr.bf16.mxu1 %v5186_v4  ;;  %4491 = vmatprep.subr.bf16.mxu0 %v7921_v5  ;;  %v7939_v4 = vld [vmem:[#allocation20 + $0xe0] sm:$0xff]  }
 0x616   :  { %10133 = vst [vmem:[#allocation92_spill] sm:$0xff] %v7939_v4 }
 0x618   :  { %4380 = vmatpush3.bf16.msra.mxu1 %v5188_v17  ;;  %4492 = vmatpush3.bf16.msra.mxu0 %v7923_v57  ;;  %v5200_v17 = vld [vmem:[#allocation20 + $0x20] sm:$0xff]  }
 0x619   :  { %4381 = vmatprep.subr.bf16.mxu1 %v5190_v12  ;;  %4493 = vmatprep.subr.bf16.mxu0 %v7927_v7  ;;  %v7941_v12 = vld [vmem:[#allocation20 + $0xa0] sm:$0xff]  }
 0x61a   :  { %10134 = vst [vmem:[#allocation94_spill] sm:$0xff] %v7941_v12 }
 0x61c   :  { %4382 = vmatpush3.bf16.msra.mxu1 %v5192_v51  ;;  %4494 = vmatpush3.bf16.msra.mxu0 %v7929_v40  ;;  %v5202_v51 = vld [vmem:[#allocation20 + $0x68] sm:$0xff]  }
 0x61d   :  { %4383 = vmatprep.subr.bf16.mxu1 %v5194_v39  ;;  %4495 = vmatprep.subr.bf16.mxu0 %v7933_v10  ;;  %v7945_v40 = vld [vmem:[#allocation20 + $0xe8] sm:$0xff]  }
 0x61e   :  { %10135 = vst [vmem:[#allocation100_spill] sm:$0xff] %v7945_v40  ;;  %v5204_v39 = vld [vmem:[#allocation20 + $0x28] sm:$0xff]  }
 0x61f   :  { %v7947_v10 = vld [vmem:[#allocation20 + $0xa8] sm:$0xff]  }
 0x620   :  { %4384 = vmatpush3.bf16.msra.mxu1 %v5196_v16  ;;  %4496 = vmatpush3.bf16.msra.mxu0 %v7935_v9  ;;  %10136 = vst [vmem:[#allocation102_spill] sm:$0xff] %v7947_v10  ;;  %v5206_v16 = vld [vmem:[#allocation20 + $0x70] sm:$0xff]  }
 0x621   :  { %4385 = vmatprep.subr.bf16.mxu1 %v5198_v23  ;;  %4497 = vmatprep.subr.bf16.mxu0 %v7939_v4  ;;  %v7951_v9 = vld [vmem:[#allocation20 + $0xf0] sm:$0xff]  }
 0x622   :  { %10137 = vst [vmem:[#allocation108_spill] sm:$0xff] %v7951_v9  ;;  %v5208_v23 = vld [vmem:[#allocation20 + $0x30] sm:$0xff]  }
 0x623   :  { %v7953_v4 = vld [vmem:[#allocation20 + $0xb0] sm:$0xff]  }
 0x624   :  { %4386 = vmatpush3.bf16.msra.mxu1 %v5200_v17  ;;  %4498 = vmatpush3.bf16.msra.mxu0 %v7941_v12  ;;  %10138 = vst [vmem:[#allocation110_spill] sm:$0xff] %v7953_v4  ;;  %v5210_v17 = vld [vmem:[#allocation20 + $0x78] sm:$0xff]  }
 0x625   :  { %4387 = vmatprep.subr.bf16.mxu1 %v5202_v51  ;;  %4499 = vmatprep.subr.bf16.mxu0 %v7945_v40  ;;  %v7957_v12 = vld [vmem:[#allocation20 + $0xf8] sm:$0xff]  }
 0x626   :  { %10139 = vst [vmem:[#allocation116_spill] sm:$0xff] %v7957_v12  ;;  %v5212_v51 = vld [vmem:[#allocation20 + $0x38] sm:$0xff]  }
 0x627   :  { %v5213_v40 = vld [vmem:[#allocation20 + $0xb8] sm:$0xff]  }
 0x628   :  { %4388 = vmatpush3.bf16.msra.mxu1 %v5204_v39  ;;  %4500 = vmatpush3.bf16.msra.mxu0 %v7947_v10 }
 0x629   :  { %4389 = vmatprep.subr.bf16.mxu1 %v5206_v16  ;;  %4501 = vmatprep.subr.bf16.mxu0 %v7951_v9 }
 0x62c   :  { %4390 = vmatpush3.bf16.msra.mxu1 %v5208_v23  ;;  %4502 = vmatpush3.bf16.msra.mxu0 %v7953_v4 }
 0x62d   :  { %4391 = vmatprep.subr.bf16.mxu1 %v5210_v17  ;;  %4503 = vmatprep.subr.bf16.mxu0 %v7957_v12 }
 0x630   :  { %4392 = vmatpush3.bf16.msra.mxu1 %v5212_v51  ;;  %4504 = vmatpush3.bf16.msra.mxu0 %v5213_v40 }
 0x631   :  { %5021 = vmatprep.subr.bf16.mxu1 %v5183_v44 }
 0x6a6   :  { %v7910_v6 = vpop.f32.mrb[128].mxu1  ;;  %v7912_v58 = vpop.f32.mrb[100].mxu0 }
 0x6a7   :  { %v7914_v38 = vpop.f32.mrb[129].mxu1  ;;  %v7916_v32 = vpop.f32.mrb[101].mxu0  ;;  %v2731_v39 = vmul.f32 0.00390625, %v7910_v6  ;;  %v2733_v16 = vmul.f32 0.00390625, %v7912_v58 }
 0x6a8   :  { %v7963_v9 = vmul.f32 0.00390625, %v7914_v38  ;;  %v7966_v23 = vmul.f32 0.00390625, %v7916_v32 }
 0x6a9   :  { %v2739_v7 = vmul.f32 %v2731_v39, %v2731_v39  ;;  %v2741_v57 = vmul.f32 %v2733_v16, %v2733_v16 }
 0x6aa   :  { %10140 = vst [vmem:[#allocation118_spill] sm:$0xff] %v7966_v23  ;;  %v2740_v44 = vmul.f32 %v7963_v9, %v7963_v9  ;;  %v2742_v6 = vmul.f32 %v7966_v23, %v7966_v23 }
 0x6e6   :  { %v2653_v4 = vpop.f32.mrb[130].mxu1  ;;  %v2724_v10 = vpop.f32.mrb[102].mxu0 }
 0x6e7   :  { %v2735_v17 = vmul.f32 0.00390625, %v2653_v4  ;;  %v2737_v5 = vmul.f32 0.00390625, %v2724_v10  ;;  %v2655_v12 = vpop.f32.mrb[131].mxu1  ;;  %v2726_v51 = vpop.f32.mrb[103].mxu0  ;;  %v2729_v10 = vld [vmem:[#allocation17] sm:$0xf] }
 0x6e8   :  { %v2736_v58 = vmul.f32 0.00390625, %v2655_v12  ;;  %v2738_v38 = vmul.f32 0.00390625, %v2726_v51  ;;  %v2759_v21 = vrot.slane %v2729_v10, %v10141_v25  ;;  %v2767_v61 = vrot.slane %v2729_v10, %v10142_v63 }
 0x6e9   :  { %v2743_v40 = vsub.f32 %v2735_v17, %v2739_v7  ;;  %v2745_v53 = vsub.f32 %v2737_v5, %v2741_v57  ;;  %v10143_v5 = vld [vmem:[#allocation33_spill] sm:$0xff] }
 0x6ea   :  { %v2744_v32 = vsub.f32 %v2736_v58, %v2740_v44  ;;  %v2746_v43 = vsub.f32 %v2738_v38, %v2742_v6  ;;  %v2763_v57 = vrot.slane %v2729_v10, %v10143_v5  ;;  %v10145_v38 = vld [vmem:[#allocation64_spill] sm:$0xff] }
 0x6eb   :  { %v2747_v0 = vadd.f32 1e-05, %v2743_v40  ;;  %v2749_v11 = vadd.f32 1e-05, %v2745_v53 }
 0x6ec   :  { %v2748_v59 = vadd.f32 1e-05, %v2744_v32  ;;  %v2750_v4 = vadd.f32 1e-05, %v2746_v43  ;;  %v10144_v43 = vld [vmem:[#allocation59_spill] sm:$0xff] }
 0x6ed   :  { %5218 = vrsqrt.f32 %v2747_v0 }
 0x6ee   :  { %5220 = vrsqrt.f32 %v2749_v11  ;;  %v2771_v11 = vrot.slane %v2729_v10, %v10144_v43 }
 0x6ef   :  { %5222 = vrsqrt.f32 %v2748_v59 }
 0x6f0   :  { %5224 = vrsqrt.f32 %v2750_v4 }
 0x6f7   :  { %v5219_v23 = vpop.eup %5218 }
 0x6f8   :  { %v5221_v12 = vpop.eup %5220  ;;  %v2776_v51 = vmul.f32 %v5219_v23, %v2759_v21 }
 0x6f9   :  { %v2778_v7 = vmul.f32 %v5221_v12, %v2767_v61  ;;  %v5223_v17 = vpop.eup %5222  ;;  %v10146_v61 = vld [vmem:[#allocation62_spill] sm:$0xff] }
 0x6fa   :  { %v7975_v44 = vmul.f32 %v2776_v51, %v2731_v39  ;;  %v2817_v0 = vrot.slane %v2776_v51, %v10141_v25  ;;  %v5225_v59 = vpop.eup %5224  ;;  %v2777_v58 = vmul.f32 %v5223_v17, %v2763_v57  ;;  %v10167_v57 = vld [vmem:[#allocation52_spill] sm:$0xff]  ;;  %v10168_v17 = vld [vmem:[#allocation69_spill] sm:$0xff] }
 0x6fb   :  { %v7979_v53 = vmul.f32 %v2778_v7, %v2733_v16  ;;  %v7982_v6 = vrot.slane %v2778_v7, %v10141_v25  ;;  %v7993_v23 = vmul.f32 %v5225_v59, %v2771_v11  ;;  %v10166_v7 = vld [vmem:[#allocation57_spill] sm:$0xff]  ;;  %v10171_v59 = vld [vmem:[#allocation71_spill] sm:$0xff] }
 0x6fc   :  { %v7985_v40 = vmul.f32 %v2817_v0, %v10145_v38  ;;  %v7988_v21 = vmul.f32 %v2817_v0, %v10146_v61  ;;  %v7991_v39 = vmul.f32 %v2817_v0, %v7187_v28  ;;  %v7996_v32 = vmul.f32 %v2817_v0, %v7169_v29  ;;  %v10170_v11 = vld [vmem:[#allocation77_spill] sm:$0xff] }
 0x6fd   :  { %v7999_v16 = vmul.f32 %v2817_v0, %v7219_v8  ;;  %v8002_v4 = vmul.f32 %v2817_v0, %v7201_v31  ;;  %v8005_v10 = vmul.f32 %v2817_v0, %v7251_v42  ;;  %v8008_v12 = vmul.f32 %v2817_v0, %v7233_v50  ;;  %v10173_v61 = vld [vmem:[#allocation85_spill] sm:$0xff] }
 0x6fe   :  { %v8011_v28 = vmul.f32 %v2817_v0, %v7283_v20  ;;  %v8014_v51 = vmul.f32 %v2817_v0, %v7265_v55  ;;  %v8017_v29 = vmul.f32 %v2817_v0, %v10056_v46  ;;  %v8020_v8 = vmul.f32 %v2817_v0, %v10052_v15 }
 0x6ff   :  { %v8023_v31 = vmul.f32 %v2817_v0, %v10064_v54  ;;  %v8026_v42 = vmul.f32 %v2817_v0, %v10060_v24  ;;  %v8029_v50 = vmul.f32 %v2817_v0, %v10072_v18  ;;  %v8032_v20 = vmul.f32 %v2817_v0, %v10068_v36 }
 0x700   :  { %v8035_v55 = vmul.f32 %v2817_v0, %v10080_v41  ;;  %v8038_v46 = vmul.f32 %v2817_v0, %v10076_v19  ;;  %v8041_v15 = vmul.f32 %v2817_v0, %v10088_v2  ;;  %v8044_v54 = vmul.f32 %v2817_v0, %v10084_v13 }
 0x701   :  { %10147 = vst [vmem:[#allocation124_spill] sm:$0xff] %v8029_v50  ;;  %10148 = vst [vmem:[#allocation126_spill] sm:$0xff] %v8032_v20  ;;  %v8047_v24 = vmul.f32 %v2817_v0, %v10096_v1  ;;  %v8050_v18 = vmul.f32 %v2817_v0, %v10092_v3  ;;  %v8053_v36 = vmul.f32 %v2817_v0, %v10104_v60 }
 0x702   :  { %10149 = vst [vmem:[#allocation132_spill] sm:$0xff] %v8035_v55  ;;  %10150 = vst [vmem:[#allocation139_spill] sm:$0xff] %v8038_v46  ;;  %v8056_v41 = vmul.f32 %v2817_v0, %v10100_v45  ;;  %v8059_v19 = vmul.f32 %v2817_v0, %v10112_v37  ;;  %v8062_v2 = vmul.f32 %v2817_v0, %v10108_v56  ;;  %v10223_v46 = vld [vmem:[#allocation72_spill] sm:$0xff] }
 0x703   :  { %10151 = vst [vmem:[#allocation34_spill] sm:$0xff] %v8041_v15  ;;  %10152 = vst [vmem:[#allocation60_spill] sm:$0xff] %v8044_v54  ;;  %v8065_v13 = vmul.f32 %v2817_v0, %v10118_v52  ;;  %v8068_v1 = vmul.f32 %v2817_v0, %v10116_v30  ;;  %v8071_v3 = vmul.f32 %v2817_v0, %v10123_v47  ;;  %v10165_v52 = vld [vmem:[#allocation63_spill] sm:$0xff]  ;;  %v10219_v54 = vld [vmem:[#allocation53_spill] sm:$0xff] }
 0x704   :  { %10153 = vst [vmem:[#allocation33_spill] sm:$0xff] %v8047_v24  ;;  %10154 = vst [vmem:[#allocation59_spill] sm:$0xff] %v8050_v18  ;;  %v8074_v60 = vmul.f32 %v2817_v0, %v7585_v34  ;;  %v8077_v45 = vmul.f32 %v2817_v0, %v7643_v27  ;;  %v8080_v37 = vmul.f32 %v2817_v0, %v7621_v48  ;;  %v10169_v0 = vld [vmem:[#allocation47_spill] sm:$0xff]  ;;  %v10221_v15 = vld [vmem:[#allocation32_spill] sm:$0xff] }
 0x705   :  { %10155 = vst [vmem:[#allocation64_spill] sm:$0xff] %v8053_v36  ;;  %10156 = vst [vmem:[#allocation62_spill] sm:$0xff] %v8056_v41  ;;  %v8084_v56 = vmul.f32 %v7982_v6, %v7158_v62  ;;  %v8088_v30 = vmul.f32 %v7982_v6, %v10165_v52  ;;  %v8092_v47 = vmul.f32 %v7982_v6, %v7190_v49  ;;  %v10193_v41 = vld [vmem:[#allocation118_spill] sm:$0xff]  ;;  %v10194_v36 = vld [vmem:[#allocation125_spill] sm:$0xff] }
 0x706   :  { %10157 = vst [vmem:[#allocation147_spill] sm:$0xff] %v8059_v19  ;;  %10158 = vst [vmem:[#allocation148_spill] sm:$0xff] %v8062_v2  ;;  %v8096_v34 = vmul.f32 %v7982_v6, %v7172_v33  ;;  %v8100_v27 = vmul.f32 %v7982_v6, %v7222_v35  ;;  %v8104_v62 = vmul.f32 %v7982_v6, %v7204_v26  ;;  %v10191_v2 = vld [vmem:[#allocation111_spill] sm:$0xff] }
 0x707   :  { %10159 = vst [vmem:[#allocation149_spill] sm:$0xff] %v8065_v13  ;;  %10160 = vst [vmem:[#allocation150_spill] sm:$0xff] %v8068_v1  ;;  %v8108_v48 = vmul.f32 %v7982_v6, %v7254_v14  ;;  %v8112_v49 = vmul.f32 %v7982_v6, %v7236_v22  ;;  %v8116_v33 = vmul.f32 %v7982_v6, %v10166_v7  ;;  %v10175_v7 = vld [vmem:[#allocation79_spill] sm:$0xff]  ;;  %v10189_v13 = vld [vmem:[#allocation117_spill] sm:$0xff] }
 0x708   :  { %10161 = vst [vmem:[#allocation151_spill] sm:$0xff] %v8071_v3  ;;  %10162 = vst [vmem:[#allocation152_spill] sm:$0xff] %v8074_v60  ;;  %v8120_v35 = vmul.f32 %v7982_v6, %v10167_v57  ;;  %v8124_v26 = vmul.f32 %v7982_v6, %v10168_v17  ;;  %v8128_v14 = vmul.f32 %v7982_v6, %v10169_v0  ;;  %v10177_v17 = vld [vmem:[#allocation93_spill] sm:$0xff]  ;;  %v10183_v60 = vld [vmem:[#allocation95_spill] sm:$0xff] }
 0x709   :  { %10163 = vst [vmem:[#allocation153_spill] sm:$0xff] %v8077_v45  ;;  %10164 = vst [vmem:[#allocation154_spill] sm:$0xff] %v8080_v37  ;;  %v8132_v22 = vmul.f32 %v7982_v6, %v10170_v11  ;;  %v8136_v38 = vmul.f32 %v7982_v6, %v10171_v59  ;;  %v8140_v52 = vmul.f32 %v7982_v6, %v10173_v61  ;;  %v10179_v37 = vld [vmem:[#allocation87_spill] sm:$0xff]  ;;  %v10181_v45 = vld [vmem:[#allocation101_spill] sm:$0xff] }
 0x70a   :  { %v8144_v57 = vmul.f32 %v7982_v6, %v10175_v7  ;;  %v8148_v0 = vmul.f32 %v7982_v6, %v10177_v17  ;;  %v8152_v11 = vmul.f32 %v7982_v6, %v10179_v37  ;;  %v8156_v59 = vmul.f32 %v7982_v6, %v10181_v45  ;;  %v10185_v3 = vld [vmem:[#allocation109_spill] sm:$0xff]  ;;  %v10187_v1 = vld [vmem:[#allocation103_spill] sm:$0xff] }
 0x70b   :  { %10172 = vst [vmem:[#allocation63_spill] sm:$0xff] %v8136_v38  ;;  %10174 = vst [vmem:[#allocation57_spill] sm:$0xff] %v8140_v52  ;;  %v8160_v61 = vmul.f32 %v7982_v6, %v10183_v60  ;;  %v8164_v7 = vmul.f32 %v7982_v6, %v10185_v3  ;;  %v8168_v17 = vmul.f32 %v7982_v6, %v10187_v1  ;;  %v10196_v1 = vld [vmem:[#allocation119_spill] sm:$0xff] }
 0x70c   :  { %10176 = vst [vmem:[#allocation52_spill] sm:$0xff] %v8144_v57  ;;  %10178 = vst [vmem:[#allocation69_spill] sm:$0xff] %v8148_v0  ;;  %v8172_v37 = vmul.f32 %v7982_v6, %v10189_v13  ;;  %v8176_v45 = vmul.f32 %v7982_v6, %v10191_v2  ;;  %v2781_v19 = vmul.f32 %v2777_v58, %v7963_v9  ;;  %v10198_v13 = vld [vmem:[#allocation133_spill] sm:$0xff]  ;;  %v10200_v2 = vld [vmem:[#allocation127_spill] sm:$0xff] }
 0x70d   :  { %10180 = vst [vmem:[#allocation47_spill] sm:$0xff] %v8152_v11  ;;  %10182 = vst [vmem:[#allocation77_spill] sm:$0xff] %v8156_v59  ;;  %v2821_v60 = vrot.slane %v2777_v58, %v10141_v25  ;;  %v2783_v3 = vmul.f32 %v7993_v23, %v10193_v41  ;;  %v8184_v18 = vmul.f32 %v7982_v6, %v10194_v36  ;;  %v10202_v58 = vld [vmem:[#allocation140_spill] sm:$0xff]  ;;  %v10204_v41 = vld [vmem:[#allocation134_spill] sm:$0xff] }
 0x70e   :  { %10184 = vst [vmem:[#allocation71_spill] sm:$0xff] %v8160_v61  ;;  %10186 = vst [vmem:[#allocation85_spill] sm:$0xff] %v8164_v7  ;;  %v8196_v9 = vmul.f32 %v7982_v6, %v10200_v2  ;;  %v8204_v36 = vmul.f32 %v7982_v6, %v10204_v41  ;;  %v10210_v2 = vld [vmem:[#allocation54_spill] sm:$0xff]  ;;  %v8223_v41 = vrot.slane %v7993_v23, %v10141_v25  ;;  %v10220_v59 = vld [vmem:[#allocation45_spill] sm:$0xff] }
 0x70f   :  { %10188 = vst [vmem:[#allocation79_spill] sm:$0xff] %v8168_v17  ;;  %10190 = vst [vmem:[#allocation93_spill] sm:$0xff] %v8172_v37  ;;  %v8188_v17 = vmul.f32 %v7982_v6, %v10196_v1  ;;  %v8192_v37 = vmul.f32 %v7982_v6, %v10198_v13  ;;  %v10208_v13 = vld [vmem:[#allocation141_spill] sm:$0xff]  ;;  %v10211_v7 = vld [vmem:[#allocation58_spill] sm:$0xff] }
 0x710   :  { %10192 = vst [vmem:[#allocation87_spill] sm:$0xff] %v8176_v45  ;;  %10195 = vst [vmem:[#allocation101_spill] sm:$0xff] %v8184_v18  ;;  %v8200_v45 = vmul.f32 %v7982_v6, %v10202_v58  ;;  %v10206_v18 = vld [vmem:[#allocation146_spill] sm:$0xff]  ;;  %v8219_v58 = vmul.f32 %v2821_v60, %v10211_v7  ;;  %v10217_v7 = vld [vmem:[#allocation49_spill] sm:$0xff] }
 0x711   :  { %10197 = vst [vmem:[#allocation95_spill] sm:$0xff] %v8188_v17  ;;  %10199 = vst [vmem:[#allocation109_spill] sm:$0xff] %v8192_v37  ;;  %v8208_v1 = vmul.f32 %v7982_v6, %v10206_v18  ;;  %v2788_v17 = vcombine.low %v7975_v44, %v2781_v19  ;;  %v8213_v37 = vmul.f32 %v7982_v6, %v10208_v13  ;;  %v10213_v18 = vld [vmem:[#allocation37_spill] sm:$0xff]  ;;  %v10214_v44 = vld [vmem:[#allocation39_spill] sm:$0xff] }
 0x712   :  { %10201 = vst [vmem:[#allocation103_spill] sm:$0xff] %v8196_v9  ;;  %10203 = vst [vmem:[#allocation117_spill] sm:$0xff] %v8200_v45  ;;  %v8216_v9 = vmul.f32 %v2821_v60, %v10210_v2  ;;  %v8232_v19 = vmul.f32 %v2821_v60, %v10214_v44  ;;  %v10215_v6 = vld [vmem:[#allocation40_spill] sm:$0xff]  ;;  %v10216_v2 = vld [vmem:[#allocation51_spill] sm:$0xff]  ;;  %v8239_v24 = vmul.f32 %v2821_v60, %v10217_v7 }
 0x713   :  { %10205 = vst [vmem:[#allocation111_spill] sm:$0xff] %v8204_v36  ;;  %10207 = vst [vmem:[#allocation118_spill] sm:$0xff] %v8208_v1  ;;  %v10212_v36 = vld [vmem:[#allocation35_spill] sm:$0xff]  ;;  %v8229_v1 = vmul.f32 %v2821_v60, %v10213_v18  ;;  %v8235_v13 = vmul.f32 %v2821_v60, %v10215_v6  ;;  %v10218_v61 = vld [vmem:[#allocation42_spill] sm:$0xff]  ;;  %v8248_v18 = vmul.f32 %v2821_v60, %v10220_v59 }
 0x714   :  { %10209 = vst [vmem:[#allocation125_spill] sm:$0xff] %v8213_v37  ;;  %v8226_v45 = vmul.f32 %v2821_v60, %v10212_v36  ;;  %v2796_v37 = vrot.slane %v2788_v17, %v10216_v2  ;;  %v8242_v23 = vmul.f32 %v2821_v60, %v10218_v61  ;;  %v8245_v36 = vmul.f32 %v2821_v60, %v10219_v54  ;;  %v10222_v11 = vld [vmem:[#allocation66_spill] sm:$0xff]  ;;  %v10226_v61 = vld [vmem:[#allocation80_spill] sm:$0xff] }
 0x715   :  { %v8251_v44 = vmul.f32 %v2821_v60, %v10221_v15  ;;  %v8254_v6 = vmul.f32 %v2821_v60, %v10222_v11  ;;  %v8257_v17 = vmul.f32 %v2821_v60, %v10223_v46  ;;  %v10224_v7 = vld [vmem:[#allocation74_spill] sm:$0xff]  ;;  %v8263_v55 = vmul.f32 %v2821_v60, %v10226_v61  ;;  %v10230_v59 = vld [vmem:[#allocation88_spill] sm:$0xff] }
 0x716   :  { %v8260_v0 = vmul.f32 %v2821_v60, %v10224_v7  ;;  %v10228_v54 = vld [vmem:[#allocation82_spill] sm:$0xff]  ;;  %v8269_v20 = vmul.f32 %v2821_v60, %v10230_v59  ;;  %v10234_v11 = vld [vmem:[#allocation96_spill] sm:$0xff] }
 0x717   :  { %10227 = vst [vmem:[#allocation133_spill] sm:$0xff] %v8263_v55  ;;  %v8266_v57 = vmul.f32 %v2821_v60, %v10228_v54  ;;  %v10232_v15 = vld [vmem:[#allocation90_spill] sm:$0xff]  ;;  %v8275_v50 = vmul.f32 %v2821_v60, %v10234_v11  ;;  %v10238_v7 = vld [vmem:[#allocation104_spill] sm:$0xff] }
 0x718   :  { %10225 = vst [vmem:[#allocation119_spill] sm:$0xff] %v8260_v0  ;;  %10231 = vst [vmem:[#allocation140_spill] sm:$0xff] %v8269_v20  ;;  %v8272_v52 = vmul.f32 %v2821_v60, %v10232_v15  ;;  %v10236_v46 = vld [vmem:[#allocation98_spill] sm:$0xff]  ;;  %v8281_v0 = vmul.f32 %v2821_v60, %v10238_v7  ;;  %v10242_v54 = vld [vmem:[#allocation112_spill] sm:$0xff] }
 0x719   :  { %10229 = vst [vmem:[#allocation127_spill] sm:$0xff] %v8266_v57  ;;  %10235 = vst [vmem:[#allocation146_spill] sm:$0xff] %v8275_v50  ;;  %v8278_v38 = vmul.f32 %v2821_v60, %v10236_v46  ;;  %v10240_v61 = vld [vmem:[#allocation106_spill] sm:$0xff]  ;;  %v8287_v57 = vmul.f32 %v2821_v60, %v10242_v54  ;;  %v10246_v15 = vld [vmem:[#allocation120_spill] sm:$0xff] }
 0x71a   :  { %10233 = vst [vmem:[#allocation134_spill] sm:$0xff] %v8272_v52  ;;  %10239 = vst [vmem:[#allocation54_spill] sm:$0xff] %v8281_v0  ;;  %v8284_v55 = vmul.f32 %v2821_v60, %v10240_v61  ;;  %v10244_v59 = vld [vmem:[#allocation114_spill] sm:$0xff]  ;;  %v8293_v52 = vmul.f32 %v2821_v60, %v10246_v15  ;;  %v10249_v46 = vld [vmem:[#allocation128_spill] sm:$0xff]  ;;  %v2789_v61 = vcombine.low %v7979_v53, %v2783_v3 }
 0x71b   :  { %10237 = vst [vmem:[#allocation141_spill] sm:$0xff] %v8278_v38  ;;  %10243 = vst [vmem:[#allocation35_spill] sm:$0xff] %v8287_v57  ;;  %v8290_v20 = vmul.f32 %v2821_v60, %v10244_v59  ;;  %v10248_v11 = vld [vmem:[#allocation122_spill] sm:$0xff]  ;;  %v8299_v38 = vmul.f32 %v2821_v60, %v10249_v46  ;;  %v10254_v57 = vld [vmem:[#allocation137_spill] sm:$0xff] }
 0x71c   :  { %10241 = vst [vmem:[#allocation58_spill] sm:$0xff] %v8284_v55  ;;  %10247 = vst [vmem:[#allocation39_spill] sm:$0xff] %v8293_v52  ;;  %v8296_v50 = vmul.f32 %v2821_v60, %v10248_v11  ;;  %v10251_v7 = vld [vmem:[#allocation130_spill] sm:$0xff]  ;;  %v10253_v55 = vld [vmem:[#allocation135_spill] sm:$0xff]  ;;  %v8309_v59 = vmul.f32 %v2821_v60, %v10254_v57  ;;  %v2803_v46 = vrot.slane %v2789_v61, %v10216_v2 }
 0x71d   :  { %10245 = vst [vmem:[#allocation37_spill] sm:$0xff] %v8290_v20  ;;  %10250 = vst [vmem:[#allocation40_spill] sm:$0xff] %v8299_v38  ;;  %v8302_v0 = vmul.f32 %v2821_v60, %v10251_v7  ;;  %v8306_v54 = vmul.f32 %v2821_v60, %v10253_v55  ;;  %v10255_v20 = vld [vmem:[#allocation142_spill] sm:$0xff]  ;;  %v10256_v52 = vld [vmem:[#allocation144_spill] sm:$0xff] }
 0x71e   :  { %v8312_v15 = vmul.f32 %v2821_v60, %v10255_v20  ;;  %v8315_v11 = vmul.f32 %v2821_v60, %v10256_v52  ;;  %v10258_v38 = vld [vmem:[#allocation55_spill] sm:$0xff]  ;;  %v10262_v55 = vld [vmem:[#allocation36_spill] sm:$0xff]  ;;  %v10264_v3 = vld [vmem:[#allocation38_spill] sm:$0xff] }
 0x71f   :  { %10252 = vst [vmem:[#allocation51_spill] sm:$0xff] %v8302_v0  ;;  %v8320_v7 = vmul.f32 %v8223_v41, %v10258_v38  ;;  %v10260_v0 = vld [vmem:[#allocation61_spill] sm:$0xff]  ;;  %v8328_v57 = vmul.f32 %v8223_v41, %v10262_v55  ;;  %v8332_v20 = vmul.f32 %v8223_v41, %v10264_v3  ;;  %v10266_v52 = vld [vmem:[#allocation48_spill] sm:$0xff] }
 0x720   :  { %10257 = vst [vmem:[#allocation49_spill] sm:$0xff] %v8315_v11  ;;  %v8324_v53 = vmul.f32 %v8223_v41, %v10260_v0  ;;  %v8336_v60 = vmul.f32 %v8223_v41, %v10266_v52  ;;  %v10268_v61 = vld [vmem:[#allocation41_spill] sm:$0xff]  ;;  %v10271_v11 = vld [vmem:[#allocation43_spill] sm:$0xff] }
 0x721   :  { %10259 = vst [vmem:[#allocation42_spill] sm:$0xff] %v8320_v7  ;;  %10263 = vst [vmem:[#allocation45_spill] sm:$0xff] %v8328_v57  ;;  %v8340_v38 = vmul.f32 %v8223_v41, %v10268_v61  ;;  %v10270_v7 = vld [vmem:[#allocation50_spill] sm:$0xff]  ;;  %v8348_v55 = vmul.f32 %v8223_v41, %v10271_v11  ;;  %v10273_v57 = vld [vmem:[#allocation44_spill] sm:$0xff] }
 0x722   :  { %10261 = vst [vmem:[#allocation53_spill] sm:$0xff] %v8324_v53  ;;  %10265 = vst [vmem:[#allocation32_spill] sm:$0xff] %v8332_v20  ;;  %v8344_v0 = vmul.f32 %v8223_v41, %v10270_v7  ;;  %v2804_v53 = vcombine.low %v2796_v37, %v2803_v46  ;;  %v8352_v3 = vmul.f32 %v8223_v41, %v10273_v57  ;;  %v10275_v20 = vld [vmem:[#allocation56_spill] sm:$0xff]  ;;  %v10277_v61 = vld [vmem:[#allocation65_spill] sm:$0xff] }
 0x723   :  { %10267 = vst [vmem:[#allocation66_spill] sm:$0xff] %v8336_v60  ;;  %10269 = vst [vmem:[#allocation72_spill] sm:$0xff] %v8340_v38  ;;  %v8356_v52 = vmul.f32 %v8223_v41, %v10275_v20  ;;  %v2730_v60 = vld [vmem:[#allocation19] sm:$0xf]  ;;  %v8360_v38 = vmul.f32 %v8223_v41, %v10277_v61  ;;  %v10281_v46 = vld [vmem:[#allocation73_spill] sm:$0xff] }
 0x724   :  { %10272 = vst [vmem:[#allocation74_spill] sm:$0xff] %v8348_v55  ;;  %10274 = vst [vmem:[#allocation80_spill] sm:$0xff] %v8352_v3  ;;  %v10279_v7 = vld [vmem:[#allocation67_spill] sm:$0xff]  ;;  %v8368_v11 = vmul.f32 %v8223_v41, %v10281_v46  ;;  %v2811_v20 = vrot.slane %v2804_v53, %v10216_v2 }
 0x725   :  { %10276 = vst [vmem:[#allocation82_spill] sm:$0xff] %v8356_v52  ;;  %10278 = vst [vmem:[#allocation88_spill] sm:$0xff] %v8360_v38  ;;  %v8364_v37 = vmul.f32 %v8223_v41, %v10279_v7  ;;  %v10283_v55 = vld [vmem:[#allocation75_spill] sm:$0xff]  ;;  %v10285_v52 = vld [vmem:[#allocation81_spill] sm:$0xff] }
 0x726   :  { %10282 = vst [vmem:[#allocation96_spill] sm:$0xff] %v8368_v11  ;;  %v8372_v57 = vmul.f32 %v8223_v41, %v10283_v55  ;;  %v8377_v3 = vmul.f32 %v8223_v41, %v10285_v52  ;;  %v10287_v61 = vld [vmem:[#allocation83_spill] sm:$0xff]  ;;  %v10289_v7 = vld [vmem:[#allocation89_spill] sm:$0xff] }
 0x727   :  { %10280 = vst [vmem:[#allocation90_spill] sm:$0xff] %v8364_v37  ;;  %v8381_v38 = vmul.f32 %v8223_v41, %v10287_v61  ;;  %v8385_v37 = vmul.f32 %v8223_v41, %v10289_v7  ;;  %v10291_v46 = vld [vmem:[#allocation91_spill] sm:$0xff]  ;;  %v10293_v55 = vld [vmem:[#allocation97_spill] sm:$0xff] }
 0x728   :  { %10284 = vst [vmem:[#allocation98_spill] sm:$0xff] %v8372_v57  ;;  %10286 = vst [vmem:[#allocation104_spill] sm:$0xff] %v8377_v3  ;;  %v8389_v11 = vmul.f32 %v8223_v41, %v10291_v46  ;;  %v8393_v57 = vmul.f32 %v8223_v41, %v10293_v55  ;;  %v10295_v2 = vld [vmem:[#allocation99_spill] sm:$0xff]  ;;  %v10297_v52 = vld [vmem:[#allocation105_spill] sm:$0xff] }
 0x729   :  { %10288 = vst [vmem:[#allocation106_spill] sm:$0xff] %v8381_v38  ;;  %10290 = vst [vmem:[#allocation112_spill] sm:$0xff] %v8385_v37  ;;  %v8397_v53 = vmul.f32 %v8223_v41, %v10295_v2  ;;  %v8401_v61 = vmul.f32 %v8223_v41, %v10297_v52  ;;  %v2813_v38 = vsub.f32 %v2730_v60, %v2811_v20  ;;  %v10298_v3 = vld [vmem:[#allocation107_spill] sm:$0xff]  ;;  %v10299_v37 = vld [vmem:[#allocation113_spill] sm:$0xff] }
 0x72a   :  { %10292 = vst [vmem:[#allocation114_spill] sm:$0xff] %v8389_v11  ;;  %10294 = vst [vmem:[#allocation120_spill] sm:$0xff] %v8393_v57  ;;  %v8405_v7 = vmul.f32 %v8223_v41, %v10298_v3  ;;  %v8409_v46 = vmul.f32 %v8223_v41, %v10299_v37  ;;  %v10301_v11 = vld [vmem:[#allocation115_spill] sm:$0xff]  ;;  %v10302_v57 = vld [vmem:[#allocation121_spill] sm:$0xff] }
 0x72b   :  { %10296 = vst [vmem:[#allocation122_spill] sm:$0xff] %v8397_v53  ;;  %v8413_v55 = vmul.f32 %v8223_v41, %v10301_v11  ;;  %v8417_v2 = vmul.f32 %v8223_v41, %v10302_v57  ;;  %v10304_v53 = vld [vmem:[#allocation123_spill] sm:$0xff]  ;;  %v10306_v60 = vld [vmem:[#allocation129_spill] sm:$0xff]  ;;  %v8435_v11 = vrot.slane %v2813_v38, %v10143_v5  ;;  %v8438_v57 = vrot.slane %v2813_v38, %v10142_v63 }
 0x72c   :  { %10300 = vst [vmem:[#allocation128_spill] sm:$0xff] %v8409_v46  ;;  %v8421_v52 = vmul.f32 %v8223_v41, %v10304_v53  ;;  %v8425_v3 = vmul.f32 %v8223_v41, %v10306_v60  ;;  %v10308_v20 = vld [vmem:[#allocation131_spill] sm:$0xff]  ;;  %v8432_v46 = vrot.slane %v2813_v38, %v10141_v25  ;;  %v8445_v60 = vrot.slane %v2813_v38, %v10144_v43  ;;  %v10313_v5 = vld [vmem:[#allocation145_spill] sm:$0xff] }
 0x72d   :  { %10303 = vst [vmem:[#allocation130_spill] sm:$0xff] %v8417_v2  ;;  %v8429_v37 = vmul.f32 %v8223_v41, %v10308_v20  ;;  %v10310_v2 = vld [vmem:[#allocation136_spill] sm:$0xff]  ;;  %v8465_v43 = vadd.f32 %v8435_v11, %v8216_v9  ;;  %v8469_v38 = vadd.f32 %v8438_v57, %v8084_v56  ;;  %v8489_v56 = vadd.f32 %v8435_v11, %v8226_v45 }
 0x72e   :  { %10305 = vst [vmem:[#allocation135_spill] sm:$0xff] %v8421_v52  ;;  %10307 = vst [vmem:[#allocation137_spill] sm:$0xff] %v8425_v3  ;;  %v8442_v53 = vmul.f32 %v8223_v41, %v10310_v2  ;;  %v10311_v3 = vld [vmem:[#allocation138_spill] sm:$0xff]  ;;  %v8457_v52 = vmul.f32 %v8223_v41, %v10313_v5  ;;  %v8461_v63 = vadd.f32 %v8432_v46, %v7985_v40  ;;  %v10326_v5 = vld [vmem:[#allocation124_spill] sm:$0xff] }
 0x72f   :  { %10309 = vst [vmem:[#allocation142_spill] sm:$0xff] %v8429_v37  ;;  %v8449_v20 = vmul.f32 %v8223_v41, %v10311_v3  ;;  %v10312_v37 = vld [vmem:[#allocation143_spill] sm:$0xff]  ;;  %v8473_v2 = vadd.f32 %v8432_v46, %v7988_v21  ;;  %v8481_v40 = vadd.f32 %v8438_v57, %v8088_v30  ;;  %v8485_v9 = vadd.f32 %v8432_v46, %v7991_v39 }
 0x730   :  { %v8453_v25 = vmul.f32 %v8223_v41, %v10312_v37  ;;  %v8477_v41 = vadd.f32 %v8435_v11, %v8219_v58  ;;  %v8493_v21 = vadd.f32 %v8438_v57, %v8092_v47  ;;  %v8497_v58 = vadd.f32 %v8432_v46, %v7996_v32  ;;  %v10322_v3 = vld [vmem:[#allocation119_spill] sm:$0xff] }
 0x731   :  { %v8501_v30 = vadd.f32 %v8435_v11, %v8229_v1  ;;  %v8505_v39 = vadd.f32 %v8438_v57, %v8096_v34  ;;  %v8509_v45 = vadd.f32 %v8432_v46, %v7999_v16  ;;  %v8513_v47 = vadd.f32 %v8435_v11, %v8232_v19  ;;  %v10324_v37 = vld [vmem:[#allocation63_spill] sm:$0xff] }
 0x732   :  { %v8517_v32 = vadd.f32 %v8438_v57, %v8100_v27  ;;  %v8521_v1 = vadd.f32 %v8432_v46, %v8002_v4  ;;  %v8525_v34 = vadd.f32 %v8435_v11, %v8235_v13  ;;  %v8529_v16 = vadd.f32 %v8438_v57, %v8104_v62 }
 0x733   :  { %v8533_v19 = vadd.f32 %v8432_v46, %v8005_v10  ;;  %v8537_v27 = vadd.f32 %v8435_v11, %v8239_v24  ;;  %v8541_v4 = vadd.f32 %v8438_v57, %v8108_v48  ;;  %v8545_v13 = vadd.f32 %v8432_v46, %v8008_v12 }
 0x734   :  { %v8549_v62 = vadd.f32 %v8435_v11, %v8242_v23  ;;  %v8553_v10 = vadd.f32 %v8438_v57, %v8112_v49  ;;  %v8557_v24 = vadd.f32 %v8432_v46, %v8011_v28  ;;  %v8561_v48 = vadd.f32 %v8435_v11, %v8245_v36 }
 0x735   :  { %v8565_v12 = vadd.f32 %v8438_v57, %v8116_v33  ;;  %v8569_v23 = vadd.f32 %v8432_v46, %v8014_v51  ;;  %v8573_v49 = vadd.f32 %v8435_v11, %v8248_v18  ;;  %v8577_v28 = vadd.f32 %v8438_v57, %v8120_v35 }
 0x736   :  { %v8581_v36 = vadd.f32 %v8432_v46, %v8017_v29  ;;  %v8585_v33 = vadd.f32 %v8435_v11, %v8251_v44  ;;  %v8589_v51 = vadd.f32 %v8438_v57, %v8124_v26  ;;  %v8593_v18 = vadd.f32 %v8432_v46, %v8020_v8 }
 0x737   :  { %v8597_v35 = vadd.f32 %v8435_v11, %v8254_v6  ;;  %v8601_v29 = vadd.f32 %v8438_v57, %v8128_v14  ;;  %v8605_v44 = vadd.f32 %v8432_v46, %v8023_v31  ;;  %v8609_v26 = vadd.f32 %v8435_v11, %v8257_v17 }
 0x738   :  { %10314 = vst [vmem:[#allocation144_spill] sm:$0xff] %v8581_v36  ;;  %10315 = vst [vmem:[#allocation55_spill] sm:$0xff] %v8589_v51  ;;  %v8613_v8 = vadd.f32 %v8438_v57, %v8132_v22  ;;  %v8617_v6 = vadd.f32 %v8432_v46, %v8026_v42  ;;  %v8621_v14 = vadd.f32 %v8435_v11, %v10322_v3  ;;  %v10444_v51 = vld [vmem:[#allocation104_spill] sm:$0xff]  ;;  %vm3108_vm3 = vcmp.gt.f32.partialorder %v8465_v43, 0.0 }
 0x739   :  { %10316 = vst [vmem:[#allocation61_spill] sm:$0xff] %v8593_v18  ;;  %10317 = vst [vmem:[#allocation36_spill] sm:$0xff] %v8601_v29  ;;  %v8625_v31 = vadd.f32 %v8438_v57, %v10324_v37  ;;  %v8629_v17 = vadd.f32 %v8432_v46, %v10326_v5  ;;  %v10442_v29 = vld [vmem:[#allocation98_spill] sm:$0xff]  ;;  %v10446_v36 = vld [vmem:[#allocation112_spill] sm:$0xff]  ;;  %vm3112_vm4 = vcmp.gt.f32.partialorder %v8477_v41, 0.0  ;;  %vm3107_vm7 = vcmp.gt.f32.partialorder %v8461_v63, 0.0 }
 0x73a   :  { %10318 = vst [vmem:[#allocation38_spill] sm:$0xff] %v8605_v44  ;;  %10319 = vst [vmem:[#allocation48_spill] sm:$0xff] %v8609_v26  ;;  %v10328_v44 = vld [vmem:[#allocation133_spill] sm:$0xff]  ;;  %v10440_v26 = vld [vmem:[#allocation96_spill] sm:$0xff]  ;;  %vm3111_vm8 = vcmp.gt.f32.partialorder %v8473_v2, 0.0  ;;  %vm3109_vm9 = vcmp.gt.f32.partialorder %v8469_v38, 0.0 }
 0x73b   :  { %10320 = vst [vmem:[#allocation41_spill] sm:$0xff] %v8613_v8  ;;  %10321 = vst [vmem:[#allocation50_spill] sm:$0xff] %v8617_v6  ;;  %v8633_v22 = vadd.f32 %v8435_v11, %v10328_v44  ;;  %v10330_v8 = vld [vmem:[#allocation57_spill] sm:$0xff]  ;;  %v10332_v6 = vld [vmem:[#allocation126_spill] sm:$0xff]  ;;  %vm3113_vm10 = vcmp.gt.f32.partialorder %v8481_v40, 0.0  ;;  %vm3116_vm11 = vcmp.gt.f32.partialorder %v8489_v56, 0.0 }
 0x73c   :  { %10323 = vst [vmem:[#allocation43_spill] sm:$0xff] %v8621_v14  ;;  %10325 = vst [vmem:[#allocation44_spill] sm:$0xff] %v8625_v31  ;;  %v8637_v42 = vadd.f32 %v8438_v57, %v10330_v8  ;;  %v8641_v3 = vadd.f32 %v8432_v46, %v10332_v6  ;;  %v10334_v14 = vld [vmem:[#allocation127_spill] sm:$0xff]  ;;  %v10336_v31 = vld [vmem:[#allocation52_spill] sm:$0xff]  ;;  %vm3120_vm12 = vcmp.gt.f32.partialorder %v8501_v30, 0.0  ;;  %vm3115_vm15 = vcmp.gt.f32.partialorder %v8485_v9, 0.0 }
 0x73d   :  { %10327 = vst [vmem:[#allocation56_spill] sm:$0xff] %v8629_v17  ;;  %10329 = vst [vmem:[#allocation65_spill] sm:$0xff] %v8633_v22  ;;  %v8645_v37 = vadd.f32 %v8435_v11, %v10334_v14  ;;  %v8649_v5 = vadd.f32 %v8438_v57, %v10336_v31  ;;  %v10338_v17 = vld [vmem:[#allocation132_spill] sm:$0xff]  ;;  %v10445_v18 = vld [vmem:[#allocation106_spill] sm:$0xff]  ;;  %vm3119_vm0 = vcmp.gt.f32.partialorder %v8497_v58, 0.0 }
 0x73e   :  { %10331 = vst [vmem:[#allocation67_spill] sm:$0xff] %v8637_v42  ;;  %10333 = vst [vmem:[#allocation73_spill] sm:$0xff] %v8641_v3  ;;  %v8653_v44 = vadd.f32 %v8432_v46, %v10338_v17  ;;  %v10340_v22 = vld [vmem:[#allocation140_spill] sm:$0xff]  ;;  %v10342_v42 = vld [vmem:[#allocation69_spill] sm:$0xff] }
 0x73f   :  { %10335 = vst [vmem:[#allocation75_spill] sm:$0xff] %v8645_v37  ;;  %10337 = vst [vmem:[#allocation81_spill] sm:$0xff] %v8649_v5  ;;  %v8657_v8 = vadd.f32 %v8435_v11, %v10340_v22  ;;  %v8661_v6 = vadd.f32 %v8438_v57, %v10342_v42  ;;  %v10344_v3 = vld [vmem:[#allocation139_spill] sm:$0xff]  ;;  %v10346_v37 = vld [vmem:[#allocation134_spill] sm:$0xff] }
 0x740   :  { %10339 = vst [vmem:[#allocation83_spill] sm:$0xff] %v8653_v44  ;;  %v8665_v14 = vadd.f32 %v8432_v46, %v10344_v3  ;;  %v8669_v31 = vadd.f32 %v8435_v11, %v10346_v37  ;;  %v10348_v5 = vld [vmem:[#allocation47_spill] sm:$0xff]  ;;  %v10350_v44 = vld [vmem:[#allocation34_spill] sm:$0xff] }
 0x741   :  { %10341 = vst [vmem:[#allocation89_spill] sm:$0xff] %v8657_v8  ;;  %10343 = vst [vmem:[#allocation91_spill] sm:$0xff] %v8661_v6  ;;  %v8673_v17 = vadd.f32 %v8438_v57, %v10348_v5  ;;  %v8677_v22 = vadd.f32 %v8432_v46, %v10350_v44  ;;  %v10352_v8 = vld [vmem:[#allocation146_spill] sm:$0xff]  ;;  %v10354_v6 = vld [vmem:[#allocation77_spill] sm:$0xff] }
 0x742   :  { %10345 = vst [vmem:[#allocation97_spill] sm:$0xff] %v8665_v14  ;;  %10347 = vst [vmem:[#allocation99_spill] sm:$0xff] %v8669_v31  ;;  %v8681_v42 = vadd.f32 %v8435_v11, %v10352_v8  ;;  %v8685_v3 = vadd.f32 %v8438_v57, %v10354_v6  ;;  %v10356_v14 = vld [vmem:[#allocation60_spill] sm:$0xff]  ;;  %v10358_v31 = vld [vmem:[#allocation141_spill] sm:$0xff] }
 0x743   :  { %10349 = vst [vmem:[#allocation105_spill] sm:$0xff] %v8673_v17  ;;  %10351 = vst [vmem:[#allocation107_spill] sm:$0xff] %v8677_v22  ;;  %v8689_v37 = vadd.f32 %v8432_v46, %v10356_v14  ;;  %v8693_v5 = vadd.f32 %v8435_v11, %v10358_v31  ;;  %v10360_v17 = vld [vmem:[#allocation71_spill] sm:$0xff]  ;;  %v10362_v22 = vld [vmem:[#allocation33_spill] sm:$0xff] }
 0x744   :  { %10353 = vst [vmem:[#allocation113_spill] sm:$0xff] %v8681_v42  ;;  %10355 = vst [vmem:[#allocation115_spill] sm:$0xff] %v8685_v3  ;;  %v8697_v44 = vadd.f32 %v8438_v57, %v10360_v17  ;;  %v8701_v8 = vadd.f32 %v8432_v46, %v10362_v22  ;;  %v10364_v42 = vld [vmem:[#allocation54_spill] sm:$0xff]  ;;  %v10366_v3 = vld [vmem:[#allocation85_spill] sm:$0xff] }
 0x745   :  { %10357 = vst [vmem:[#allocation121_spill] sm:$0xff] %v8689_v37  ;;  %10359 = vst [vmem:[#allocation123_spill] sm:$0xff] %v8693_v5  ;;  %v8705_v6 = vadd.f32 %v8435_v11, %v10364_v42  ;;  %v8709_v14 = vadd.f32 %v8438_v57, %v10366_v3  ;;  %v10368_v37 = vld [vmem:[#allocation59_spill] sm:$0xff]  ;;  %v10370_v5 = vld [vmem:[#allocation58_spill] sm:$0xff] }
 0x746   :  { %10361 = vst [vmem:[#allocation129_spill] sm:$0xff] %v8697_v44  ;;  %10363 = vst [vmem:[#allocation131_spill] sm:$0xff] %v8701_v8  ;;  %v8713_v31 = vadd.f32 %v8432_v46, %v10368_v37  ;;  %v8717_v17 = vadd.f32 %v8435_v11, %v10370_v5  ;;  %v10372_v44 = vld [vmem:[#allocation79_spill] sm:$0xff]  ;;  %v10374_v8 = vld [vmem:[#allocation64_spill] sm:$0xff] }
 0x747   :  { %10365 = vst [vmem:[#allocation136_spill] sm:$0xff] %v8705_v6  ;;  %10367 = vst [vmem:[#allocation138_spill] sm:$0xff] %v8709_v14  ;;  %v8721_v22 = vadd.f32 %v8438_v57, %v10372_v44  ;;  %v8725_v42 = vadd.f32 %v8432_v46, %v10374_v8  ;;  %v10376_v6 = vld [vmem:[#allocation35_spill] sm:$0xff]  ;;  %v10378_v14 = vld [vmem:[#allocation93_spill] sm:$0xff] }
 0x748   :  { %10369 = vst [vmem:[#allocation143_spill] sm:$0xff] %v8713_v31  ;;  %10371 = vst [vmem:[#allocation145_spill] sm:$0xff] %v8717_v17  ;;  %v8729_v3 = vadd.f32 %v8435_v11, %v10376_v6  ;;  %v8733_v37 = vadd.f32 %v8438_v57, %v10378_v14  ;;  %v10380_v31 = vld [vmem:[#allocation62_spill] sm:$0xff]  ;;  %v10382_v17 = vld [vmem:[#allocation37_spill] sm:$0xff] }
 0x749   :  { %10373 = vst [vmem:[#allocation119_spill] sm:$0xff] %v8721_v22  ;;  %10375 = vst [vmem:[#allocation63_spill] sm:$0xff] %v8725_v42  ;;  %v8737_v5 = vadd.f32 %v8432_v46, %v10380_v31  ;;  %v8741_v44 = vadd.f32 %v8435_v11, %v10382_v17  ;;  %v10384_v22 = vld [vmem:[#allocation87_spill] sm:$0xff] }
 0x74a   :  { %10377 = vst [vmem:[#allocation124_spill] sm:$0xff] %v8729_v3  ;;  %10379 = vst [vmem:[#allocation133_spill] sm:$0xff] %v8733_v37  ;;  %v8745_v8 = vadd.f32 %v8438_v57, %v10384_v22  ;;  %v10386_v42 = vld [vmem:[#allocation147_spill] sm:$0xff]  ;;  %v10390_v37 = vld [vmem:[#allocation101_spill] sm:$0xff]  ;;  %v8765_v22 = vadd.f32 %v8435_v11, %v8296_v50 }
 0x74b   :  { %10381 = vst [vmem:[#allocation57_spill] sm:$0xff] %v8737_v5  ;;  %10383 = vst [vmem:[#allocation126_spill] sm:$0xff] %v8741_v44  ;;  %v8749_v6 = vadd.f32 %v8432_v46, %v10386_v42  ;;  %v10388_v3 = vld [vmem:[#allocation39_spill] sm:$0xff]  ;;  %v8757_v31 = vadd.f32 %v8438_v57, %v10390_v37  ;;  %v10392_v5 = vld [vmem:[#allocation148_spill] sm:$0xff] }
 0x74c   :  { %10385 = vst [vmem:[#allocation127_spill] sm:$0xff] %v8745_v8  ;;  %v8753_v14 = vadd.f32 %v8435_v11, %v10388_v3  ;;  %v8761_v17 = vadd.f32 %v8432_v46, %v10392_v5  ;;  %10394 = vst [vmem:[#allocation139_spill] sm:$0xff] %v8765_v22  ;;  %v10395_v8 = vld [vmem:[#allocation95_spill] sm:$0xff]  ;;  %v10438_v44 = vld [vmem:[#allocation90_spill] sm:$0xff] }
 0x74d   :  { %10387 = vst [vmem:[#allocation52_spill] sm:$0xff] %v8749_v6  ;;  %10391 = vst [vmem:[#allocation140_spill] sm:$0xff] %v8757_v31  ;;  %v8769_v42 = vadd.f32 %v8438_v57, %v10395_v8  ;;  %v10397_v6 = vld [vmem:[#allocation149_spill] sm:$0xff]  ;;  %v10405_v22 = vld [vmem:[#allocation51_spill] sm:$0xff] }
 0x74e   :  { %10389 = vst [vmem:[#allocation132_spill] sm:$0xff] %v8753_v14  ;;  %10393 = vst [vmem:[#allocation69_spill] sm:$0xff] %v8761_v17  ;;  %v8773_v3 = vadd.f32 %v8432_v46, %v10397_v6  ;;  %v10399_v14 = vld [vmem:[#allocation40_spill] sm:$0xff]  ;;  %v10401_v31 = vld [vmem:[#allocation109_spill] sm:$0xff]  ;;  %v8789_v8 = vadd.f32 %v8435_v11, %v10405_v22  ;;  %v8811_v22 = vadd.f32 %v8435_v11, %v8309_v59 }
 0x74f   :  { %10396 = vst [vmem:[#allocation134_spill] sm:$0xff] %v8769_v42  ;;  %v8777_v37 = vadd.f32 %v8435_v11, %v10399_v14  ;;  %v8781_v5 = vadd.f32 %v8438_v57, %v10401_v31  ;;  %v10403_v17 = vld [vmem:[#allocation150_spill] sm:$0xff]  ;;  %v10407_v42 = vld [vmem:[#allocation103_spill] sm:$0xff]  ;;  %v8801_v31 = vadd.f32 %v8435_v11, %v8306_v54  ;;  %v8821_v54 = vadd.f32 %v8435_v11, %v8312_v15  ;;  %v10424_v59 = vld [vmem:[#allocation49_spill] sm:$0xff] }
 0x750   :  { %10398 = vst [vmem:[#allocation47_spill] sm:$0xff] %v8773_v3  ;;  %v8785_v50 = vadd.f32 %v8432_v46, %v10403_v17  ;;  %10406 = vst [vmem:[#allocation60_spill] sm:$0xff] %v8789_v8  ;;  %v8793_v6 = vadd.f32 %v8438_v57, %v10407_v42  ;;  %v10409_v3 = vld [vmem:[#allocation151_spill] sm:$0xff] }
 0x751   :  { %10400 = vst [vmem:[#allocation34_spill] sm:$0xff] %v8777_v37  ;;  %10402 = vst [vmem:[#allocation146_spill] sm:$0xff] %v8781_v5  ;;  %v8797_v14 = vadd.f32 %v8432_v46, %v10409_v3  ;;  %v10412_v5 = vld [vmem:[#allocation117_spill] sm:$0xff]  ;;  %v10416_v42 = vld [vmem:[#allocation111_spill] sm:$0xff] }
 0x752   :  { %10404 = vst [vmem:[#allocation77_spill] sm:$0xff] %v8785_v50  ;;  %10408 = vst [vmem:[#allocation141_spill] sm:$0xff] %v8793_v6  ;;  %v3093_v17 = vadd.f32 %v8438_v57, %v10412_v5  ;;  %v10413_v50 = vld [vmem:[#allocation152_spill] sm:$0xff]  ;;  %v3097_v6 = vadd.f32 %v8438_v57, %v10416_v42  ;;  %v10417_v3 = vld [vmem:[#allocation153_spill] sm:$0xff] }
 0x753   :  { %10410 = vst [vmem:[#allocation71_spill] sm:$0xff] %v8797_v14  ;;  %10411 = vst [vmem:[#allocation33_spill] sm:$0xff] %v8801_v31  ;;  %v8807_v37 = vadd.f32 %v8432_v46, %v10413_v50  ;;  %v8817_v14 = vadd.f32 %v8432_v46, %v10417_v3  ;;  %v10420_v5 = vld [vmem:[#allocation118_spill] sm:$0xff]  ;;  %v10426_v42 = vld [vmem:[#allocation125_spill] sm:$0xff] }
 0x754   :  { %10415 = vst [vmem:[#allocation85_spill] sm:$0xff] %v8811_v22  ;;  %10419 = vst [vmem:[#allocation58_spill] sm:$0xff] %v8821_v54  ;;  %v8825_v31 = vadd.f32 %v8438_v57, %v10420_v5  ;;  %v10422_v50 = vld [vmem:[#allocation154_spill] sm:$0xff]  ;;  %v8833_v22 = vadd.f32 %v8435_v11, %v10424_v59  ;;  %v8837_v3 = vadd.f32 %v8438_v57, %v10426_v42  ;;  %v10429_v54 = vld [vmem:[#allocation53_spill] sm:$0xff]  ;;  %vm3221_vm1 = vcmp.gt.f32.partialorder %v3093_v17, 0.0 }
 0x755   :  { %10414 = vst [vmem:[#allocation54_spill] sm:$0xff] %v8807_v37  ;;  %10418 = vst [vmem:[#allocation59_spill] sm:$0xff] %v8817_v14  ;;  %v8829_v37 = vadd.f32 %v8432_v46, %v10422_v50  ;;  %v10428_v14 = vld [vmem:[#allocation42_spill] sm:$0xff]  ;;  %v2986_v8 = vadd.f32 %v8445_v60, %v10429_v54  ;;  %v10430_v5 = vld [vmem:[#allocation45_spill] sm:$0xff]  ;;  %vm3225_vm2 = vcmp.gt.f32.partialorder %v3097_v6, 0.0 }
 0x756   :  { %10421 = vst [vmem:[#allocation79_spill] sm:$0xff] %v8825_v31  ;;  %10425 = vst [vmem:[#allocation35_spill] sm:$0xff] %v8833_v22  ;;  %v2982_v15 = vadd.f32 %v8445_v60, %v10428_v14  ;;  %v8845_v31 = vadd.f32 %v8445_v60, %v10430_v5  ;;  %v10431_v46 = vld [vmem:[#allocation32_spill] sm:$0xff]  ;;  %v10432_v11 = vld [vmem:[#allocation66_spill] sm:$0xff]  ;;  %v8861_v14 = vadd.f32 %v8445_v60, %v8344_v0 }
 0x757   :  { %10423 = vst [vmem:[#allocation64_spill] sm:$0xff] %v8829_v37  ;;  %10427 = vst [vmem:[#allocation93_spill] sm:$0xff] %v8837_v3  ;;  %v8849_v50 = vadd.f32 %v8445_v60, %v10431_v46  ;;  %v8853_v59 = vadd.f32 %v8445_v60, %v10432_v11  ;;  %v10433_v57 = vld [vmem:[#allocation72_spill] sm:$0xff]  ;;  %v10434_v54 = vld [vmem:[#allocation74_spill] sm:$0xff]  ;;  %v8881_v0 = vadd.f32 %v8445_v60, %v10438_v44  ;;  %vm3114_vm6 = vcmp.gt.f32.partialorder %v2986_v8, 0.0 }
 0x758   :  { %v8857_v42 = vadd.f32 %v8445_v60, %v10433_v57  ;;  %v8865_v5 = vadd.f32 %v8445_v60, %v10434_v54  ;;  %v10435_v3 = vld [vmem:[#allocation80_spill] sm:$0xff]  ;;  %v10436_v37 = vld [vmem:[#allocation82_spill] sm:$0xff]  ;;  %v8885_v54 = vadd.f32 %v8445_v60, %v10440_v26  ;;  %v8901_v44 = vadd.f32 %v8445_v60, %v10446_v36 }
 0x759   :  { %v8869_v46 = vadd.f32 %v8445_v60, %v10435_v3  ;;  %v8873_v11 = vadd.f32 %v8445_v60, %v10436_v37  ;;  %v10437_v22 = vld [vmem:[#allocation88_spill] sm:$0xff]  ;;  %10439 = vst [vmem:[#allocation62_spill] sm:$0xff] %v8881_v0  ;;  %v8889_v3 = vadd.f32 %v8445_v60, %v10442_v29  ;;  %v8893_v37 = vadd.f32 %v8445_v60, %v10444_v51  ;;  %v10448_v0 = vld [vmem:[#allocation114_spill] sm:$0xff] }
 0x75a   :  { %v8877_v57 = vadd.f32 %v8445_v60, %v10437_v22  ;;  %10441 = vst [vmem:[#allocation37_spill] sm:$0xff] %v8885_v54  ;;  %v8897_v22 = vadd.f32 %v8445_v60, %v10445_v18  ;;  %10447 = vst [vmem:[#allocation147_spill] sm:$0xff] %v8901_v44  ;;  %v8905_v26 = vadd.f32 %v8445_v60, %v10448_v0  ;;  %v10449_v54 = vld [vmem:[#allocation120_spill] sm:$0xff]  ;;  %vm3110_vm5 = vcmp.gt.f32.partialorder %v2982_v15, 0.0 }
 0x75b   :  { %10443 = vst [vmem:[#allocation87_spill] sm:$0xff] %v8889_v3  ;;  %v8909_v29 = vadd.f32 %v8445_v60, %v10449_v54  ;;  %v10451_v3 = vld [vmem:[#allocation122_spill] sm:$0xff]  ;;  %v8917_v18 = vadd.f32 %v8445_v60, %v8401_v61  ;;  %v8921_v36 = vadd.f32 %v8445_v60, %v8405_v7  ;;  %v10455_v44 = vld [vmem:[#allocation128_spill] sm:$0xff]  ;;  %v8929_v54 = vadd.f32 %v8445_v60, %v8413_v55 }
 0x75c   :  { %v8913_v51 = vadd.f32 %v8445_v60, %v10451_v3  ;;  %v8925_v0 = vadd.f32 %v8445_v60, %v10455_v44  ;;  %v8949_v55 = vadd.f32 %v8445_v60, %v8442_v53  ;;  %v3239_v53 = vmul.f32 0.2, %v8473_v2 }
 0x75d   :  { %10450 = vst [vmem:[#allocation39_spill] sm:$0xff] %v8909_v29  ;;  %10453 = vst [vmem:[#allocation148_spill] sm:$0xff] %v8917_v18  ;;  %v10458_v29 = vld [vmem:[#allocation130_spill] sm:$0xff]  ;;  %v10462_v18 = vld [vmem:[#allocation137_spill] sm:$0xff]  ;;  %vm3118_vm13 = vcmp.gt.f32.partialorder %v8845_v31, 0.0  ;;  %vm3122_vm14 = vcmp.gt.f32.partialorder %v8849_v50, 0.0 }
 0x75e   :  { %10452 = vst [vmem:[#allocation101_spill] sm:$0xff] %v8913_v51  ;;  %10454 = vst [vmem:[#allocation95_spill] sm:$0xff] %v8921_v36  ;;  %v8933_v3 = vadd.f32 %v8445_v60, %v10458_v29  ;;  %v10460_v51 = vld [vmem:[#allocation135_spill] sm:$0xff]  ;;  %v8941_v7 = vadd.f32 %v8445_v60, %v10462_v18  ;;  %v10464_v36 = vld [vmem:[#allocation142_spill] sm:$0xff]  ;;  %v8953_v29 = vadd.f32 %v8445_v60, %v8449_v20  ;;  %v3349_v20 = vmul.f32 0.2, %v3093_v17 }
 0x75f   :  { %10456 = vst [vmem:[#allocation149_spill] sm:$0xff] %v8925_v0  ;;  %10457 = vst [vmem:[#allocation40_spill] sm:$0xff] %v8929_v54  ;;  %v8937_v61 = vadd.f32 %v8445_v60, %v10460_v51  ;;  %v8945_v44 = vadd.f32 %v8445_v60, %v10464_v36  ;;  %v8957_v51 = vadd.f32 %v8445_v60, %v8453_v25  ;;  %v3235_v36 = vmul.f32 0.2, %v8461_v63 }
 0x760   :  { %10459 = vst [vmem:[#allocation109_spill] sm:$0xff] %v8933_v3  ;;  %10463 = vst [vmem:[#allocation51_spill] sm:$0xff] %v8941_v7  ;;  %v8961_v18 = vadd.f32 %v8445_v60, %v8457_v52  ;;  %v3236_v25 = vmul.f32 0.2, %v8465_v43  ;;  %v8970_v52 = vsel %vm3221_vm1, %v3093_v17, %v3349_v20  ;;  %v3240_v60 = vmul.f32 0.2, %v8477_v41 }
 0x761   :  { %10461 = vst [vmem:[#allocation150_spill] sm:$0xff] %v8937_v61  ;;  %10465 = vst [vmem:[#allocation103_spill] sm:$0xff] %v8945_v44  ;;  %v3237_v44 = vmul.f32 0.2, %v8469_v38  ;;  %v3238_v7 = vmul.f32 0.2, %v2982_v15  ;;  %v3363_v54 = vsel %vm3107_vm7, %v8461_v63, %v3235_v36 }
 0x762   :  { %10466 = vst [vmem:[#allocation151_spill] sm:$0xff] %v8949_v55  ;;  %10467 = vst [vmem:[#allocation117_spill] sm:$0xff] %v8953_v29  ;;  %v3241_v55 = vmul.f32 0.2, %v8481_v40  ;;  %v3353_v29 = vmul.f32 0.2, %v3097_v6  ;;  %v3368_v3 = vsel %vm3112_vm4, %v8477_v41, %v3240_v60 }
 0x763   :  { %10468 = vst [vmem:[#allocation152_spill] sm:$0xff] %v8957_v51  ;;  %10469 = vst [vmem:[#allocation111_spill] sm:$0xff] %v8961_v18  ;;  %v3364_v51 = vsel %vm3108_vm3, %v8465_v43, %v3236_v25  ;;  %v3242_v61 = vmul.f32 0.2, %v2986_v8  ;;  %v3366_v20 = vsel %vm3110_vm5, %v2982_v15, %v3238_v7  ;;  %v3365_v43 = vsel %vm3109_vm9, %v8469_v38, %v3237_v44 }
 0x764   :  { %10470 = vst [vmem:[#allocation153_spill] sm:$0xff] %v8970_v52  ;;  %v8973_v18 = vsel %vm3225_vm2, %v3097_v6, %v3353_v29  ;;  %v3492_v17 = vpack.c.bf16 %v3368_v3, %v3364_v51  ;;  %v3367_v6 = vsel %vm3111_vm8, %v8473_v2, %v3239_v53  ;;  %v3369_v29 = vsel %vm3113_vm10, %v8481_v40, %v3241_v55  ;;  %v10472_v51 = vld [vmem:[#allocation68_spill] sm:$0xff] }
 0x765   :  { %v3370_v52 = vsel %vm3114_vm6, %v2986_v8, %v3242_v61  ;;  %v3491_v41 = vpack.c.bf16 %v3367_v6, %v3363_v54  ;;  %v3493_v15 = vpack.c.bf16 %v3369_v29, %v3365_v43  ;;  %v3244_v8 = vmul.f32 0.2, %v8489_v56  ;;  %v10471_v54 = vld [vmem:[#allocation46_spill] sm:$0xff] }
 0x766   :  { %v3494_v0 = vpack.c.bf16 %v3370_v52, %v3366_v20  ;;  %3850 = vmatprep.mubr.bf16.mxu1 %v3492_v17  ;;  %v3248_v63 = vmul.f32 0.2, %v8501_v30  ;;  %v3246_v38 = vmul.f32 0.2, %v8845_v31  ;;  %v3250_v2 = vmul.f32 0.2, %v8849_v50 }
 0x767   :  { %3851 = vmatmul.mubr.bf16.vlgmr.msra.gmra.mrb[132].mxu1 %v3491_v41  ;;  %v3372_v40 = vsel %vm3116_vm11, %v8489_v56, %v3244_v8  ;;  %v3243_v3 = vmul.f32 0.2, %v8485_v9  ;;  %v3247_v55 = vmul.f32 0.2, %v8497_v58  ;;  %vm3117_vm1 = vcmp.gt.f32.partialorder %v8493_v21, 0.0  ;;  %v10473_v52 = vld [vmem:[#allocation70_spill] sm:$0xff] }
 0x768   :  { %4011 = vmatprep.mubr.bf16.mxu0 %v3494_v0  ;;  %v3376_v0 = vsel %vm3120_vm12, %v8501_v30, %v3248_v63  ;;  %5029 = vmatpush3.bf16.msra.mxu1 %v10471_v54  ;;  %v3374_v7 = vsel %vm3118_vm13, %v8845_v31, %v3246_v38  ;;  %v3378_v44 = vsel %vm3122_vm14, %v8849_v50, %v3250_v2  ;;  %vm3121_vm2 = vcmp.gt.f32.partialorder %v8505_v39, 0.0  ;;  %v10474_v17 = vld [vmem:[#allocation76_spill] sm:$0xff] }
 0x769   :  { %4012 = vmatmul.mubr.bf16.vlgmr.msra.gmra.mrb[104].mxu0 %v3493_v15  ;;  %v3496_v61 = vpack.c.bf16 %v3376_v0, %v3372_v40  ;;  %5022 = vmatprep.subr.bf16.mxu1 %v10472_v51  ;;  %v3498_v36 = vpack.c.bf16 %v3378_v44, %v3374_v7  ;;  %v3371_v56 = vsel %vm3115_vm15, %v8485_v9, %v3243_v3  ;;  %v3245_v53 = vmul.f32 0.2, %v8493_v21 }
 0x76a   :  { %v3375_v30 = vsel %vm3119_vm0, %v8497_v58, %v3247_v55  ;;  %v3249_v31 = vmul.f32 0.2, %v8505_v39  ;;  %vm3124_vm3 = vcmp.gt.f32.partialorder %v8513_v47, 0.0  ;;  %vm3128_vm4 = vcmp.gt.f32.partialorder %v8525_v34, 0.0 }
 0x76b   :  { %3858 = vmatprep.mubr.bf16.mxu1 %v3496_v61  ;;  %4019 = vmatprep.mubr.bf16.mxu0 %v3498_v36  ;;  %v3495_v50 = vpack.c.bf16 %v3375_v30, %v3371_v56  ;;  %v3252_v25 = vmul.f32 0.2, %v8513_v47  ;;  %v3256_v9 = vmul.f32 0.2, %v8525_v34  ;;  %v3373_v60 = vsel %vm3117_vm1, %v8493_v21, %v3245_v53 }
 0x76c   :  { %5030 = vmatpush3.bf16.msra.mxu1 %v10473_v52  ;;  %v3377_v58 = vsel %vm3121_vm2, %v8505_v39, %v3249_v31  ;;  %vm3126_vm5 = vcmp.gt.f32.partialorder %v8853_v59, 0.0  ;;  %vm3130_vm6 = vcmp.gt.f32.partialorder %v8857_v42, 0.0  ;;  %v3254_v41 = vmul.f32 0.2, %v8853_v59 }
 0x76d   :  { %5023 = vmatprep.subr.bf16.mxu1 %v10474_v17  ;;  %v3497_v20 = vpack.c.bf16 %v3377_v58, %v3373_v60  ;;  %v3380_v6 = vsel %vm3124_vm3, %v8513_v47, %v3252_v25  ;;  %v3384_v43 = vsel %vm3128_vm4, %v8525_v34, %v3256_v9  ;;  %v3258_v15 = vmul.f32 0.2, %v8857_v42  ;;  %v10475_v47 = vld [vmem:[#allocation78_spill] sm:$0xff] }
 0x76e   :  { %v3500_v29 = vpack.c.bf16 %v3384_v43, %v3380_v6  ;;  %vm3123_vm7 = vcmp.gt.f32.partialorder %v8509_v45, 0.0  ;;  %vm3127_vm8 = vcmp.gt.f32.partialorder %v8521_v1, 0.0  ;;  %v3382_v21 = vsel %vm3126_vm5, %v8853_v59, %v3254_v41  ;;  %v10476_v59 = vld [vmem:[#allocation84_spill] sm:$0xff]  ;;  %v10481_v41 = vld [vmem:[#allocation102_spill] sm:$0xff] }
 0x76f   :  { %3859 = vmatmul.mubr.bf16.gmra.mrb[136].mxu1 %v3495_v50  ;;  %v3251_v39 = vmul.f32 0.2, %v8509_v45  ;;  %v3255_v8 = vmul.f32 0.2, %v8521_v1  ;;  %vm3125_vm9 = vcmp.gt.f32.partialorder %v8517_v32, 0.0  ;;  %v3386_v34 = vsel %vm3130_vm6, %v8857_v42, %v3258_v15 }
 0x770   :  { %5031 = vmatpush3.bf16.msra.mxu1 %v10475_v47  ;;  %3866 = vmatprep.mubr.bf16.mxu1 %v3500_v29  ;;  %vm3129_vm10 = vcmp.gt.f32.partialorder %v8529_v16, 0.0  ;;  %v3253_v63 = vmul.f32 0.2, %v8517_v32  ;;  %v3257_v38 = vmul.f32 0.2, %v8529_v16  ;;  %v3502_v2 = vpack.c.bf16 %v3386_v34, %v3382_v21 }
 0x771   :  { %4020 = vmatmul.mubr.bf16.gmra.mrb[108].mxu0 %v3497_v20  ;;  %5024 = vmatprep.subr.bf16.mxu1 %v10476_v59  ;;  %v3379_v40 = vsel %vm3123_vm7, %v8509_v45, %v3251_v39  ;;  %v3383_v0 = vsel %vm3127_vm8, %v8521_v1, %v3255_v8  ;;  %vm3132_vm11 = vcmp.gt.f32.partialorder %v8537_v27, 0.0  ;;  %vm3136_vm12 = vcmp.gt.f32.partialorder %v8549_v62, 0.0  ;;  %v10477_v45 = vld [vmem:[#allocation86_spill] sm:$0xff] }
 0x772   :  { %v3499_v54 = vpack.c.bf16 %v3383_v0, %v3379_v40  ;;  %v3381_v3 = vsel %vm3125_vm9, %v8517_v32, %v3253_v63  ;;  %v3385_v42 = vsel %vm3129_vm10, %v8529_v16, %v3257_v38  ;;  %4027 = vmatprep.mubr.bf16.mxu0 %v3502_v2  ;;  %v3260_v7 = vmul.f32 0.2, %v8537_v27  ;;  %v10478_v16 = vld [vmem:[#allocation92_spill] sm:$0xff]  ;;  %v10483_v59 = vld [vmem:[#allocation110_spill] sm:$0xff] }
 0x773   :  { %v3501_v61 = vpack.c.bf16 %v3385_v42, %v3381_v3  ;;  %v3264_v44 = vmul.f32 0.2, %v8549_v62  ;;  %vm3134_vm13 = vcmp.gt.f32.partialorder %v8861_v14, 0.0  ;;  %vm3138_vm14 = vcmp.gt.f32.partialorder %v8865_v5, 0.0 }
 0x774   :  { %5032 = vmatpush3.bf16.msra.mxu1 %v10477_v45  ;;  %v3262_v1 = vmul.f32 0.2, %v8861_v14  ;;  %v3266_v32 = vmul.f32 0.2, %v8865_v5  ;;  %vm3131_vm15 = vcmp.gt.f32.partialorder %v8533_v19, 0.0  ;;  %v3388_v55 = vsel %vm3132_vm11, %v8537_v27, %v3260_v7  ;;  %v10479_v27 = vld [vmem:[#allocation94_spill] sm:$0xff] }
 0x775   :  { %5025 = vmatprep.subr.bf16.mxu1 %v10478_v16  ;;  %v3392_v51 = vsel %vm3136_vm12, %v8549_v62, %v3264_v44  ;;  %vm3135_vm0 = vcmp.gt.f32.partialorder %v8545_v13, 0.0  ;;  %v3259_v36 = vmul.f32 0.2, %v8533_v19  ;;  %v3263_v31 = vmul.f32 0.2, %v8545_v13  ;;  %v5290_v16 = vld [vmem:[#allocation20 + $0xb8] sm:$0xff]  }
 0x776   :  { %v3504_v56 = vpack.c.bf16 %v3392_v51, %v3388_v55  ;;  %v3390_v30 = vsel %vm3134_vm13, %v8861_v14, %v3262_v1  ;;  %v3394_v53 = vsel %vm3138_vm14, %v8865_v5, %v3266_v32  ;;  %vm3133_vm1 = vcmp.gt.f32.partialorder %v8541_v4, 0.0  ;;  %v10480_v5 = vld [vmem:[#allocation100_spill] sm:$0xff] }
 0x777   :  { %3867 = vmatmul.mubr.bf16.gmra.mrb[140].mxu1 %v3499_v54  ;;  %v3506_v50 = vpack.c.bf16 %v3394_v53, %v3390_v30  ;;  %v3387_v25 = vsel %vm3131_vm15, %v8533_v19, %v3259_v36  ;;  %vm3137_vm2 = vcmp.gt.f32.partialorder %v8553_v10, 0.0  ;;  %v3391_v62 = vsel %vm3135_vm0, %v8545_v13, %v3263_v31  ;;  %v10486_v54 = vld [vmem:[#allocation144_spill] sm:$0xff]  ;;  %v10488_v36 = vld [vmem:[#allocation55_spill] sm:$0xff] }
 0x778   :  { %5033 = vmatpush3.bf16.msra.mxu1 %v10479_v27  ;;  %3874 = vmatprep.mubr.bf16.mxu1 %v3504_v56  ;;  %v3261_v9 = vmul.f32 0.2, %v8541_v4  ;;  %v3265_v14 = vmul.f32 0.2, %v8553_v10  ;;  %vm3140_vm3 = vcmp.gt.f32.partialorder %v8561_v48, 0.0  ;;  %v3503_v52 = vpack.c.bf16 %v3391_v62, %v3387_v25  ;;  %v10490_v30 = vld [vmem:[#allocation48_spill] sm:$0xff] }
 0x779   :  { %4028 = vmatmul.mubr.bf16.gmra.mrb[112].mxu0 %v3501_v61  ;;  %5026 = vmatprep.subr.bf16.mxu1 %v10480_v5  ;;  %vm3144_vm4 = vcmp.gt.f32.partialorder %v8573_v49, 0.0  ;;  %v3268_v19 = vmul.f32 0.2, %v8561_v48  ;;  %v3272_v60 = vmul.f32 0.2, %v8573_v49  ;;  %vm3142_vm5 = vcmp.gt.f32.partialorder %v8869_v46, 0.0 }
 0x77a   :  { %4035 = vmatprep.mubr.bf16.mxu0 %v3506_v50  ;;  %v3389_v58 = vsel %vm3133_vm1, %v8541_v4, %v3261_v9  ;;  %v3393_v13 = vsel %vm3137_vm2, %v8553_v10, %v3265_v14  ;;  %vm3146_vm6 = vcmp.gt.f32.partialorder %v8873_v11, 0.0  ;;  %v3270_v43 = vmul.f32 0.2, %v8869_v46  ;;  %v10482_v4 = vld [vmem:[#allocation108_spill] sm:$0xff]  ;;  %v10487_v61 = vld [vmem:[#allocation61_spill] sm:$0xff]  ;;  %v10491_v31 = vld [vmem:[#allocation43_spill] sm:$0xff] }
 0x77b   :  { %v3505_v17 = vpack.c.bf16 %v3393_v13, %v3389_v58  ;;  %v3396_v20 = vsel %vm3140_vm3, %v8561_v48, %v3268_v19  ;;  %v3400_v6 = vsel %vm3144_vm4, %v8573_v49, %v3272_v60  ;;  %v3274_v15 = vmul.f32 0.2, %v8873_v11  ;;  %v10492_v9 = vld [vmem:[#allocation37_spill] sm:$0xff]  ;;  %v10493_v14 = vld [vmem:[#allocation87_spill] sm:$0xff] }
 0x77c   :  { %5034 = vmatpush3.bf16.msra.mxu1 %v10481_v41  ;;  %v3508_v29 = vpack.c.bf16 %v3400_v6, %v3396_v20  ;;  %vm3139_vm7 = vcmp.gt.f32.partialorder %v8557_v24, 0.0  ;;  %vm3143_vm8 = vcmp.gt.f32.partialorder %v8569_v23, 0.0  ;;  %v3398_v10 = vsel %vm3142_vm5, %v8869_v46, %v3270_v43  ;;  %v10495_v20 = vld [vmem:[#allocation50_spill] sm:$0xff] }
 0x77d   :  { %5027 = vmatprep.subr.bf16.mxu1 %v10482_v4  ;;  %v3267_v21 = vmul.f32 0.2, %v8557_v24  ;;  %v3271_v48 = vmul.f32 0.2, %v8569_v23  ;;  %vm3141_vm9 = vcmp.gt.f32.partialorder %v8565_v12, 0.0  ;;  %v3402_v49 = vsel %vm3146_vm6, %v8873_v11, %v3274_v15  ;;  %v10497_v4 = vld [vmem:[#allocation44_spill] sm:$0xff] }
 0x77e   :  { %vm3145_vm10 = vcmp.gt.f32.partialorder %v8577_v28, 0.0  ;;  %v3269_v39 = vmul.f32 0.2, %v8565_v12  ;;  %v3273_v8 = vmul.f32 0.2, %v8577_v28  ;;  %v3510_v46 = vpack.c.bf16 %v3402_v49, %v3398_v10 }
 0x77f   :  { %3875 = vmatmul.mubr.bf16.gmra.mrb[144].mxu1 %v3503_v52  ;;  %v3395_v47 = vsel %vm3139_vm7, %v8557_v24, %v3267_v21  ;;  %v3399_v34 = vsel %vm3143_vm8, %v8569_v23, %v3271_v48  ;;  %vm3148_vm11 = vcmp.gt.f32.partialorder %v8585_v33, 0.0  ;;  %vm3152_vm12 = vcmp.gt.f32.partialorder %v8597_v35, 0.0  ;;  %v10484_v24 = vld [vmem:[#allocation116_spill] sm:$0xff]  ;;  %v10485_v23 = vld [vmem:[#allocation62_spill] sm:$0xff] }
 0x780   :  { %3882 = vmatprep.mubr.bf16.mxu1 %v3508_v29  ;;  %v3507_v63 = vpack.c.bf16 %v3399_v34, %v3395_v47  ;;  %v3397_v38 = vsel %vm3141_vm9, %v8565_v12, %v3269_v39  ;;  %v3401_v11 = vsel %vm3145_vm10, %v8577_v28, %v3273_v8  ;;  %5035 = vmatpush3.bf16.msra.mxu1 %v10483_v59  ;;  %v3276_v40 = vmul.f32 0.2, %v8585_v33  ;;  %v10496_v29 = vld [vmem:[#allocation41_spill] sm:$0xff] }
 0x781   :  { %4036 = vmatmul.mubr.bf16.gmra.mrb[116].mxu0 %v3505_v17  ;;  %v3509_v2 = vpack.c.bf16 %v3401_v11, %v3397_v38  ;;  %v3280_v0 = vmul.f32 0.2, %v8597_v35  ;;  %vm3150_vm13 = vcmp.gt.f32.partialorder %v8877_v57, 0.0  ;;  %5028 = vmatprep.subr.bf16.mxu1 %v10484_v24  ;;  %vm3154_vm14 = vcmp.gt.f32.partialorder %v10485_v23, 0.0  ;;  %v10494_v17 = vld [vmem:[#allocation38_spill] sm:$0xff]  ;;  %v10498_v8 = vld [vmem:[#allocation65_spill] sm:$0xff] }
 0x782   :  { %4043 = vmatprep.mubr.bf16.mxu0 %v3510_v46  ;;  %v3278_v12 = vmul.f32 0.2, %v8877_v57  ;;  %v3282_v28 = vmul.f32 0.2, %v10485_v23  ;;  %vm3147_vm15 = vcmp.gt.f32.partialorder %v10486_v54, 0.0  ;;  %v3404_v3 = vsel %vm3148_vm11, %v8585_v33, %v3276_v40  ;;  %v10489_v33 = vld [vmem:[#allocation36_spill] sm:$0xff] }
 0x783   :  { %v3408_v42 = vsel %vm3152_vm12, %v8597_v35, %v3280_v0  ;;  %vm3151_vm0 = vcmp.gt.f32.partialorder %v10487_v61, 0.0  ;;  %v3275_v7 = vmul.f32 0.2, %v10486_v54  ;;  %v3279_v32 = vmul.f32 0.2, %v10487_v61  ;;  %v10500_v0 = vld [vmem:[#allocation56_spill] sm:$0xff] }
 0x784   :  { %v3512_v44 = vpack.c.bf16 %v3408_v42, %v3404_v3  ;;  %v3406_v45 = vsel %vm3150_vm13, %v8877_v57, %v3278_v12  ;;  %v3410_v1 = vsel %vm3154_vm14, %v10485_v23, %v3282_v28  ;;  %5036 = vmatpush3.bf16.msra.mxu1 %v5290_v16  ;;  %vm3149_vm1 = vcmp.gt.f32.partialorder %v10488_v36, 0.0  ;;  %v10501_v12 = vld [vmem:[#allocation73_spill] sm:$0xff] }
 0x785   :  { %v3514_v55 = vpack.c.bf16 %v3410_v1, %v3406_v45  ;;  %v3403_v51 = vsel %vm3147_vm15, %v10486_v54, %v3275_v7  ;;  %vm3153_vm2 = vcmp.gt.f32.partialorder %v10489_v33, 0.0  ;;  %v3407_v35 = vsel %vm3151_vm0, %v10487_v61, %v3279_v32  ;;  %v10502_v45 = vld [vmem:[#allocation67_spill] sm:$0xff]  ;;  %v10503_v1 = vld [vmem:[#allocation81_spill] sm:$0xff] }
 0x786   :  { %v3277_v56 = vmul.f32 0.2, %v10488_v36  ;;  %v3281_v57 = vmul.f32 0.2, %v10489_v33  ;;  %vm3156_vm3 = vcmp.gt.f32.partialorder %v10490_v30, 0.0  ;;  %v3511_v53 = vpack.c.bf16 %v3407_v35, %v3403_v51  ;;  %v10504_v51 = vld [vmem:[#allocation89_spill] sm:$0xff] }
 0x787   :  { %3883 = vmatmul.mubr.bf16.gmra.mrb[148].mxu1 %v3507_v63  ;;  %vm3160_vm4 = vcmp.gt.f32.partialorder %v10491_v31, 0.0  ;;  %v3284_v50 = vmul.f32 0.2, %v10490_v30  ;;  %v3288_v25 = vmul.f32 0.2, %v10491_v31  ;;  %vm3158_vm5 = vcmp.gt.f32.partialorder %v10492_v9, 0.0 }
 0x788   :  { %3890 = vmatprep.mubr.bf16.mxu1 %v3512_v44  ;;  %v3405_v27 = vsel %vm3149_vm1, %v10488_v36, %v3277_v56  ;;  %v3409_v62 = vsel %vm3153_vm2, %v10489_v33, %v3281_v57  ;;  %vm3162_vm6 = vcmp.gt.f32.partialorder %v10493_v14, 0.0  ;;  %v3286_v60 = vmul.f32 0.2, %v10492_v9  ;;  %v10499_v63 = vld [vmem:[#allocation75_spill] sm:$0xff] }
 0x789   :  { %4044 = vmatmul.mubr.bf16.gmra.mrb[120].mxu0 %v3509_v2  ;;  %v3513_v5 = vpack.c.bf16 %v3409_v62, %v3405_v27  ;;  %v3412_v52 = vsel %vm3156_vm3, %v10490_v30, %v3284_v50  ;;  %v3416_v19 = vsel %vm3160_vm4, %v10491_v31, %v3288_v25  ;;  %v3290_v13 = vmul.f32 0.2, %v10493_v14  ;;  %v10505_v36 = vld [vmem:[#allocation99_spill] sm:$0xff] }
 0x78a   :  { %4051 = vmatprep.mubr.bf16.mxu0 %v3514_v55  ;;  %v3516_v58 = vpack.c.bf16 %v3416_v19, %v3412_v52  ;;  %vm3155_vm7 = vcmp.gt.f32.partialorder %v10494_v17, 0.0  ;;  %vm3159_vm8 = vcmp.gt.f32.partialorder %v10495_v20, 0.0  ;;  %v3414_v6 = vsel %vm3158_vm5, %v10492_v9, %v3286_v60  ;;  %v10506_v57 = vld [vmem:[#allocation147_spill] sm:$0xff]  ;;  %v10508_v9 = vld [vmem:[#allocation97_spill] sm:$0xff] }
 0x78b   :  { %v3283_v43 = vmul.f32 0.2, %v10494_v17  ;;  %v3287_v41 = vmul.f32 0.2, %v10495_v20  ;;  %vm3157_vm9 = vcmp.gt.f32.partialorder %v10496_v29, 0.0  ;;  %v3418_v15 = vsel %vm3162_vm6, %v10493_v14, %v3290_v13  ;;  %v10507_v62 = vld [vmem:[#allocation83_spill] sm:$0xff] }
 0x78c   :  { %vm3161_vm10 = vcmp.gt.f32.partialorder %v10497_v4, 0.0  ;;  %v3285_v10 = vmul.f32 0.2, %v10496_v29  ;;  %v3289_v21 = vmul.f32 0.2, %v10497_v4  ;;  %v3518_v48 = vpack.c.bf16 %v3418_v15, %v3414_v6  ;;  %v10509_v19 = vld [vmem:[#allocation91_spill] sm:$0xff] }
 0x78d   :  { %v3411_v49 = vsel %vm3155_vm7, %v10494_v17, %v3283_v43  ;;  %v3415_v39 = vsel %vm3159_vm8, %v10495_v20, %v3287_v41  ;;  %vm3164_vm11 = vcmp.gt.f32.partialorder %v10498_v8, 0.0  ;;  %vm3168_vm12 = vcmp.gt.f32.partialorder %v10499_v63, 0.0  ;;  %v10511_v41 = vld [vmem:[#allocation113_spill] sm:$0xff] }
 0x78e   :  { %v3515_v46 = vpack.c.bf16 %v3415_v39, %v3411_v49  ;;  %v3413_v47 = vsel %vm3157_vm9, %v10496_v29, %v3285_v10  ;;  %v3417_v34 = vsel %vm3161_vm10, %v10497_v4, %v3289_v21  ;;  %v3292_v11 = vmul.f32 0.2, %v10498_v8  ;;  %v10512_v10 = vld [vmem:[#allocation123_spill] sm:$0xff]  ;;  %v10514_v39 = vld [vmem:[#allocation101_spill] sm:$0xff] }
 0x78f   :  { %3891 = vmatmul.mubr.bf16.gmra.mrb[152].mxu1 %v3511_v53  ;;  %v3517_v38 = vpack.c.bf16 %v3417_v34, %v3413_v47  ;;  %v3296_v59 = vmul.f32 0.2, %v10499_v63  ;;  %vm3166_vm13 = vcmp.gt.f32.partialorder %v8893_v37, 0.0  ;;  %vm3170_vm14 = vcmp.gt.f32.partialorder %v8897_v22, 0.0  ;;  %v10513_v49 = vld [vmem:[#allocation39_spill] sm:$0xff] }
 0x790   :  { %3898 = vmatprep.mubr.bf16.mxu1 %v3516_v58  ;;  %v3294_v2 = vmul.f32 0.2, %v8893_v37  ;;  %v3298_v40 = vmul.f32 0.2, %v8897_v22  ;;  %vm3163_vm15 = vcmp.gt.f32.partialorder %v10500_v0, 0.0  ;;  %v3420_v24 = vsel %vm3164_vm11, %v10498_v8, %v3292_v11  ;;  %v10510_v58 = vld [vmem:[#allocation105_spill] sm:$0xff] }
 0x791   :  { %4052 = vmatmul.mubr.bf16.gmra.mrb[124].mxu0 %v3513_v5  ;;  %v3424_v23 = vsel %vm3168_vm12, %v10499_v63, %v3296_v59  ;;  %vm3167_vm0 = vcmp.gt.f32.partialorder %v10501_v12, 0.0  ;;  %v3291_v28 = vmul.f32 0.2, %v10500_v0  ;;  %v3295_v61 = vmul.f32 0.2, %v10501_v12  ;;  %v10515_v47 = vld [vmem:[#allocation107_spill] sm:$0xff] }
 0x792   :  { %4059 = vmatprep.mubr.bf16.mxu0 %v3518_v48  ;;  %v3520_v54 = vpack.c.bf16 %v3424_v23, %v3420_v24  ;;  %v3422_v3 = vsel %vm3166_vm13, %v8893_v37, %v3294_v2  ;;  %v3426_v42 = vsel %vm3170_vm14, %v8897_v22, %v3298_v40  ;;  %vm3165_vm1 = vcmp.gt.f32.partialorder %v10502_v45, 0.0 }
 0x793   :  { %v3522_v7 = vpack.c.bf16 %v3426_v42, %v3422_v3  ;;  %v3419_v44 = vsel %vm3163_vm15, %v10500_v0, %v3291_v28  ;;  %vm3169_vm2 = vcmp.gt.f32.partialorder %v10503_v1, 0.0  ;;  %v3423_v32 = vsel %vm3167_vm0, %v10501_v12, %v3295_v61  ;;  %v10517_v12 = vld [vmem:[#allocation115_spill] sm:$0xff]  ;;  %v10518_v28 = vld [vmem:[#allocation129_spill] sm:$0xff]  ;;  %v10519_v61 = vld [vmem:[#allocation136_spill] sm:$0xff] }
 0x794   :  { %v3293_v16 = vmul.f32 0.2, %v10502_v45  ;;  %v3297_v55 = vmul.f32 0.2, %v10503_v1  ;;  %vm3172_vm3 = vcmp.gt.f32.partialorder %v10504_v51, 0.0  ;;  %v3519_v37 = vpack.c.bf16 %v3423_v32, %v3419_v44  ;;  %v10520_v44 = vld [vmem:[#allocation145_spill] sm:$0xff] }
 0x795   :  { %vm3176_vm4 = vcmp.gt.f32.partialorder %v10505_v36, 0.0  ;;  %v3300_v22 = vmul.f32 0.2, %v10504_v51  ;;  %v3304_v33 = vmul.f32 0.2, %v10505_v36  ;;  %vm3174_vm5 = vcmp.gt.f32.partialorder %v10506_v57, 0.0 }
 0x796   :  { %v3421_v35 = vsel %vm3165_vm1, %v10502_v45, %v3293_v16  ;;  %v3425_v56 = vsel %vm3169_vm2, %v10503_v1, %v3297_v55  ;;  %vm3178_vm6 = vcmp.gt.f32.partialorder %v8905_v26, 0.0  ;;  %v3302_v50 = vmul.f32 0.2, %v10506_v57  ;;  %v10521_v55 = vld [vmem:[#allocation148_spill] sm:$0xff] }
 0x797   :  { %3899 = vmatmul.mubr.bf16.gmra.mrb[156].mxu1 %v3515_v46  ;;  %v3521_v30 = vpack.c.bf16 %v3425_v56, %v3421_v35  ;;  %v3428_v53 = vsel %vm3172_vm3, %v10504_v51, %v3300_v22  ;;  %v3432_v31 = vsel %vm3176_vm4, %v10505_v36, %v3304_v33  ;;  %v3306_v27 = vmul.f32 0.2, %v8905_v26  ;;  %v10522_v51 = vld [vmem:[#allocation95_spill] sm:$0xff] }
 0x798   :  { %3906 = vmatprep.mubr.bf16.mxu1 %v3520_v54  ;;  %v3524_v25 = vpack.c.bf16 %v3432_v31, %v3428_v53  ;;  %vm3171_vm7 = vcmp.gt.f32.partialorder %v10507_v62, 0.0  ;;  %vm3175_vm8 = vcmp.gt.f32.partialorder %v10508_v9, 0.0  ;;  %v3430_v14 = vsel %vm3174_vm5, %v10506_v57, %v3302_v50  ;;  %v10523_v57 = vld [vmem:[#allocation131_spill] sm:$0xff] }
 0x799   :  { %4060 = vmatmul.mubr.bf16.gmra.mrb[128].mxu0 %v3517_v38  ;;  %v3299_v5 = vmul.f32 0.2, %v10507_v62  ;;  %v3303_v52 = vmul.f32 0.2, %v10508_v9  ;;  %vm3173_vm9 = vcmp.gt.f32.partialorder %v10509_v19, 0.0  ;;  %v3434_v60 = vsel %vm3178_vm6, %v8905_v26, %v3306_v27  ;;  %v10516_v38 = vld [vmem:[#allocation121_spill] sm:$0xff] }
 0x79a   :  { %4067 = vmatprep.mubr.bf16.mxu0 %v3522_v7  ;;  %vm3177_vm10 = vcmp.gt.f32.partialorder %v10510_v58, 0.0  ;;  %v3301_v13 = vmul.f32 0.2, %v10509_v19  ;;  %v3305_v17 = vmul.f32 0.2, %v10510_v58  ;;  %v3526_v20 = vpack.c.bf16 %v3434_v60, %v3430_v14  ;;  %v10527_v60 = vld [vmem:[#allocation124_spill] sm:$0xff] }
 0x79b   :  { %v3427_v6 = vsel %vm3171_vm7, %v10507_v62, %v3299_v5  ;;  %v3431_v43 = vsel %vm3175_vm8, %v10508_v9, %v3303_v52  ;;  %vm3180_vm11 = vcmp.gt.f32.partialorder %v10511_v41, 0.0  ;;  %vm3184_vm12 = vcmp.gt.f32.partialorder %v10512_v10, 0.0  ;;  %v10526_v62 = vld [vmem:[#allocation119_spill] sm:$0xff] }
 0x79c   :  { %v3523_v29 = vpack.c.bf16 %v3431_v43, %v3427_v6  ;;  %v3429_v15 = vsel %vm3173_vm9, %v10509_v19, %v3301_v13  ;;  %v3433_v4 = vsel %vm3177_vm10, %v10510_v58, %v3305_v17  ;;  %v3308_v21 = vmul.f32 0.2, %v10511_v41 }
 0x79d   :  { %v3525_v26 = vpack.c.bf16 %v3433_v4, %v3429_v15  ;;  %v3312_v48 = vmul.f32 0.2, %v10512_v10  ;;  %vm3182_vm13 = vcmp.gt.f32.partialorder %v10513_v49, 0.0  ;;  %vm3186_vm14 = vcmp.gt.f32.partialorder %v10514_v39, 0.0  ;;  %v10530_v15 = vld [vmem:[#allocation40_spill] sm:$0xff] }
 0x79e   :  { %v3310_v8 = vmul.f32 0.2, %v10513_v49  ;;  %v3314_v46 = vmul.f32 0.2, %v10514_v39  ;;  %vm3179_vm15 = vcmp.gt.f32.partialorder %v10515_v47, 0.0  ;;  %v3436_v34 = vsel %vm3180_vm11, %v10511_v41, %v3308_v21 }
 0x79f   :  { %3907 = vmatmul.mubr.bf16.gmra.mrb[160].mxu1 %v3519_v37  ;;  %v3440_v63 = vsel %vm3184_vm12, %v10512_v10, %v3312_v48  ;;  %vm3183_vm0 = vcmp.gt.f32.partialorder %v10516_v38, 0.0  ;;  %v3307_v11 = vmul.f32 0.2, %v10515_v47  ;;  %v3311_v0 = vmul.f32 0.2, %v10516_v38 }
 0x7a0   :  { %3914 = vmatprep.mubr.bf16.mxu1 %v3524_v25  ;;  %v3528_v59 = vpack.c.bf16 %v3440_v63, %v3436_v34  ;;  %v3438_v2 = vsel %vm3182_vm13, %v10513_v49, %v3310_v8  ;;  %v3442_v40 = vsel %vm3186_vm14, %v10514_v39, %v3314_v46  ;;  %vm3181_vm1 = vcmp.gt.f32.partialorder %v10517_v12, 0.0  ;;  %v10525_v25 = vld [vmem:[#allocation138_spill] sm:$0xff]  ;;  %v10532_v49 = vld [vmem:[#allocation57_spill] sm:$0xff] }
 0x7a1   :  { %4068 = vmatmul.mubr.bf16.gmra.mrb[132].mxu0 %v3521_v30  ;;  %v3530_v24 = vpack.c.bf16 %v3442_v40, %v3438_v2  ;;  %v3435_v23 = vsel %vm3179_vm15, %v10515_v47, %v3307_v11  ;;  %vm3185_vm2 = vcmp.gt.f32.partialorder %v10518_v28, 0.0  ;;  %v3439_v54 = vsel %vm3183_vm0, %v10516_v38, %v3311_v0  ;;  %v10524_v30 = vld [vmem:[#allocation143_spill] sm:$0xff]  ;;  %v10533_v11 = vld [vmem:[#allocation133_spill] sm:$0xff] }
 0x7a2   :  { %4075 = vmatprep.mubr.bf16.mxu0 %v3526_v20  ;;  %v3309_v3 = vmul.f32 0.2, %v10517_v12  ;;  %v3313_v42 = vmul.f32 0.2, %v10518_v28  ;;  %vm3188_vm3 = vcmp.gt.f32.partialorder %v10519_v61, 0.0  ;;  %v3527_v7 = vpack.c.bf16 %v3439_v54, %v3435_v23  ;;  %v10528_v20 = vld [vmem:[#allocation126_spill] sm:$0xff] }
 0x7a3   :  { %vm3192_vm4 = vcmp.gt.f32.partialorder %v10520_v44, 0.0  ;;  %v3316_v45 = vmul.f32 0.2, %v10519_v61  ;;  %v3320_v1 = vmul.f32 0.2, %v10520_v44  ;;  %vm3190_vm5 = vcmp.gt.f32.partialorder %v10521_v55, 0.0 }
 0x7a4   :  { %v3437_v32 = vsel %vm3181_vm1, %v10517_v12, %v3309_v3  ;;  %v3441_v16 = vsel %vm3185_vm2, %v10518_v28, %v3313_v42  ;;  %vm3194_vm6 = vcmp.gt.f32.partialorder %v10522_v51, 0.0  ;;  %v3318_v33 = vmul.f32 0.2, %v10521_v55  ;;  %v10536_v12 = vld [vmem:[#allocation139_spill] sm:$0xff] }
 0x7a5   :  { %v3529_v37 = vpack.c.bf16 %v3441_v16, %v3437_v32  ;;  %v3444_v36 = vsel %vm3188_vm3, %v10519_v61, %v3316_v45  ;;  %v3448_v22 = vsel %vm3192_vm4, %v10520_v44, %v3320_v1  ;;  %v3322_v56 = vmul.f32 0.2, %v10522_v51  ;;  %v10537_v61 = vld [vmem:[#allocation109_spill] sm:$0xff] }
 0x7a6   :  { %v3532_v35 = vpack.c.bf16 %v3448_v22, %v3444_v36  ;;  %vm3187_vm7 = vcmp.gt.f32.partialorder %v10523_v57, 0.0  ;;  %vm3191_vm8 = vcmp.gt.f32.partialorder %v10524_v30, 0.0  ;;  %v3446_v53 = vsel %vm3190_vm5, %v10521_v55, %v3318_v33 }
 0x7a7   :  { %3915 = vmatmul.mubr.bf16.gmra.mrb[164].mxu1 %v3523_v29  ;;  %v3315_v31 = vmul.f32 0.2, %v10523_v57  ;;  %v3319_v50 = vmul.f32 0.2, %v10524_v30  ;;  %vm3189_vm9 = vcmp.gt.f32.partialorder %v10525_v25, 0.0  ;;  %v3450_v27 = vsel %vm3194_vm6, %v10522_v51, %v3322_v56  ;;  %v10529_v29 = vld [vmem:[#allocation149_spill] sm:$0xff] }
 0x7a8   :  { %3922 = vmatprep.mubr.bf16.mxu1 %v3528_v59  ;;  %vm3193_vm10 = vcmp.gt.f32.partialorder %v10526_v62, 0.0  ;;  %v3317_v9 = vmul.f32 0.2, %v10525_v25  ;;  %v3321_v14 = vmul.f32 0.2, %v10526_v62  ;;  %v3534_v5 = vpack.c.bf16 %v3450_v27, %v3446_v53  ;;  %v10534_v59 = vld [vmem:[#allocation127_spill] sm:$0xff] }
 0x7a9   :  { %4076 = vmatmul.mubr.bf16.gmra.mrb[136].mxu0 %v3525_v26  ;;  %v3443_v52 = vsel %vm3187_vm7, %v10523_v57, %v3315_v31  ;;  %v3447_v19 = vsel %vm3191_vm8, %v10524_v30, %v3319_v50  ;;  %vm3196_vm11 = vcmp.gt.f32.partialorder %v10527_v60, 0.0  ;;  %vm3200_vm12 = vcmp.gt.f32.partialorder %v10528_v20, 0.0  ;;  %v10531_v26 = vld [vmem:[#allocation63_spill] sm:$0xff]  ;;  %v10539_v51 = vld [vmem:[#allocation52_spill] sm:$0xff]  ;;  %v10542_v57 = vld [vmem:[#allocation134_spill] sm:$0xff] }
 0x7aa   :  { %4083 = vmatprep.mubr.bf16.mxu0 %v3530_v24  ;;  %v3531_v58 = vpack.c.bf16 %v3447_v19, %v3443_v52  ;;  %v3445_v13 = vsel %vm3189_vm9, %v10525_v25, %v3317_v9  ;;  %v3449_v17 = vsel %vm3193_vm10, %v10526_v62, %v3321_v14  ;;  %v3324_v43 = vmul.f32 0.2, %v10527_v60  ;;  %v10535_v24 = vld [vmem:[#allocation132_spill] sm:$0xff]  ;;  %v10543_v27 = vld [vmem:[#allocation34_spill] sm:$0xff] }
 0x7ab   :  { %v3533_v6 = vpack.c.bf16 %v3449_v17, %v3445_v13  ;;  %v3328_v41 = vmul.f32 0.2, %v10528_v20  ;;  %vm3198_vm13 = vcmp.gt.f32.partialorder %v10529_v29, 0.0  ;;  %vm3202_vm14 = vcmp.gt.f32.partialorder %v10530_v15, 0.0  ;;  %v10546_v13 = vld [vmem:[#allocation103_spill] sm:$0xff] }
 0x7ac   :  { %v3326_v4 = vmul.f32 0.2, %v10529_v29  ;;  %v3330_v10 = vmul.f32 0.2, %v10530_v15  ;;  %vm3195_vm15 = vcmp.gt.f32.partialorder %v10531_v26, 0.0  ;;  %v3452_v21 = vsel %vm3196_vm11, %v10527_v60, %v3324_v43 }
 0x7ad   :  { %v3456_v48 = vsel %vm3200_vm12, %v10528_v20, %v3328_v41  ;;  %vm3199_vm0 = vcmp.gt.f32.partialorder %v10532_v49, 0.0  ;;  %v3323_v39 = vmul.f32 0.2, %v10531_v26  ;;  %v3327_v34 = vmul.f32 0.2, %v10532_v49 }
 0x7ae   :  { %v3536_v8 = vpack.c.bf16 %v3456_v48, %v3452_v21  ;;  %v3454_v46 = vsel %vm3198_vm13, %v10529_v29, %v3326_v4  ;;  %v3458_v47 = vsel %vm3202_vm14, %v10530_v15, %v3330_v10  ;;  %vm3197_vm1 = vcmp.gt.f32.partialorder %v10533_v11, 0.0  ;;  %v10548_v29 = vld [vmem:[#allocation77_spill] sm:$0xff] }
 0x7af   :  { %3923 = vmatmul.mubr.bf16.gmra.mrb[168].mxu1 %v3527_v7  ;;  %v3538_v63 = vpack.c.bf16 %v3458_v47, %v3454_v46  ;;  %v9272_v38 = vsel %vm3195_vm15, %v10531_v26, %v3323_v39  ;;  %vm3201_vm2 = vcmp.gt.f32.partialorder %v10534_v59, 0.0  ;;  %v3455_v2 = vsel %vm3199_vm0, %v10532_v49, %v3327_v34  ;;  %v10538_v7 = vld [vmem:[#allocation150_spill] sm:$0xff] }
 0x7b0   :  { %3930 = vmatprep.mubr.bf16.mxu1 %v3532_v35  ;;  %v3325_v40 = vmul.f32 0.2, %v10533_v11  ;;  %v3329_v0 = vmul.f32 0.2, %v10534_v59  ;;  %vm3204_vm3 = vcmp.gt.f32.partialorder %v10535_v24, 0.0  ;;  %v3535_v23 = vpack.c.bf16 %v3455_v2, %v9272_v38  ;;  %v10541_v35 = vld [vmem:[#allocation140_spill] sm:$0xff] }
 0x7b1   :  { %4084 = vmatmul.mubr.bf16.gmra.mrb[140].mxu0 %v3529_v37  ;;  %vm3208_vm4 = vcmp.gt.f32.partialorder %v10536_v12, 0.0  ;;  %v3332_v28 = vmul.f32 0.2, %v10535_v24  ;;  %v3336_v54 = vmul.f32 0.2, %v10536_v12  ;;  %vm3206_vm5 = vcmp.gt.f32.partialorder %v10537_v61, 0.0 }
 0x7b2   :  { %4091 = vmatprep.mubr.bf16.mxu0 %v3534_v5  ;;  %v3453_v3 = vsel %vm3197_vm1, %v10533_v11, %v3325_v40  ;;  %v3457_v42 = vsel %vm3201_vm2, %v10534_v59, %v3329_v0  ;;  %vm3210_vm6 = vcmp.gt.f32.partialorder %v10538_v7, 0.0  ;;  %v3334_v32 = vmul.f32 0.2, %v10537_v61  ;;  %v10540_v37 = vld [vmem:[#allocation69_spill] sm:$0xff]  ;;  %v10544_v5 = vld [vmem:[#allocation60_spill] sm:$0xff]  ;;  %v10549_v39 = vld [vmem:[#allocation146_spill] sm:$0xff] }
 0x7b3   :  { %v3537_v44 = vpack.c.bf16 %v3457_v42, %v3453_v3  ;;  %v3460_v45 = vsel %vm3204_vm3, %v10535_v24, %v3332_v28  ;;  %v3464_v1 = vsel %vm3208_vm4, %v10536_v12, %v3336_v54  ;;  %v3338_v55 = vmul.f32 0.2, %v10538_v7  ;;  %v10552_v11 = vld [vmem:[#allocation85_spill] sm:$0xff]  ;;  %v10553_v24 = vld [vmem:[#allocation71_spill] sm:$0xff] }
 0x7b4   :  { %v3540_v16 = vpack.c.bf16 %v3464_v1, %v3460_v45  ;;  %vm3203_vm7 = vcmp.gt.f32.partialorder %v10539_v51, 0.0  ;;  %vm3207_vm8 = vcmp.gt.f32.partialorder %v10540_v37, 0.0  ;;  %v3462_v36 = vsel %vm3206_vm5, %v10537_v61, %v3334_v32 }
 0x7b5   :  { %v3331_v22 = vmul.f32 0.2, %v10539_v51  ;;  %v3335_v33 = vmul.f32 0.2, %v10540_v37  ;;  %vm3205_vm9 = vcmp.gt.f32.partialorder %v10541_v35, 0.0  ;;  %v3466_v56 = vsel %vm3210_vm6, %v10538_v7, %v3338_v55  ;;  %v10555_v7 = vld [vmem:[#allocation58_spill] sm:$0xff] }
 0x7b6   :  { %vm3209_vm10 = vcmp.gt.f32.partialorder %v10542_v57, 0.0  ;;  %v3333_v30 = vmul.f32 0.2, %v10541_v35  ;;  %v3337_v53 = vmul.f32 0.2, %v10542_v57  ;;  %v3542_v31 = vpack.c.bf16 %v3466_v56, %v3462_v36  ;;  %v10559_v56 = vld [vmem:[#allocation151_spill] sm:$0xff] }
 0x7b7   :  { %3931 = vmatmul.mubr.bf16.gmra.mrb[172].mxu1 %v3531_v58  ;;  %v9303_v50 = vsel %vm3203_vm7, %v10539_v51, %v3331_v22  ;;  %v9306_v25 = vsel %vm3207_vm8, %v10540_v37, %v3335_v33  ;;  %vm3212_vm11 = vcmp.gt.f32.partialorder %v10543_v27, 0.0  ;;  %vm3216_vm12 = vcmp.gt.f32.partialorder %v10544_v5, 0.0  ;;  %v10545_v58 = vld [vmem:[#allocation51_spill] sm:$0xff]  ;;  %v10558_v51 = vld [vmem:[#allocation64_spill] sm:$0xff] }
 0x7b8   :  { %3938 = vmatprep.mubr.bf16.mxu1 %v3536_v8  ;;  %v3539_v62 = vpack.c.bf16 %v9306_v25, %v9303_v50  ;;  %v9312_v9 = vsel %vm3205_vm9, %v10541_v35, %v3333_v30  ;;  %v9315_v14 = vsel %vm3209_vm10, %v10542_v57, %v3337_v53  ;;  %v3340_v19 = vmul.f32 0.2, %v10543_v27  ;;  %v10550_v8 = vld [vmem:[#allocation141_spill] sm:$0xff] }
 0x7b9   :  { %4092 = vmatmul.mubr.bf16.gmra.mrb[144].mxu0 %v3533_v6  ;;  %v3541_v52 = vpack.c.bf16 %v9315_v14, %v9312_v9  ;;  %v3344_v60 = vmul.f32 0.2, %v10544_v5  ;;  %vm3214_vm13 = vcmp.gt.f32.partialorder %v10545_v58, 0.0  ;;  %vm3218_vm14 = vcmp.gt.f32.partialorder %v10546_v13, 0.0  ;;  %v10547_v6 = vld [vmem:[#allocation47_spill] sm:$0xff]  ;;  %v10561_v9 = vld [vmem:[#allocation153_spill] sm:$0xff] }
 0x7ba   :  { %4099 = vmatprep.mubr.bf16.mxu0 %v3538_v63  ;;  %v3342_v17 = vmul.f32 0.2, %v10545_v58  ;;  %v3346_v20 = vmul.f32 0.2, %v10546_v13  ;;  %vm3211_vm15 = vcmp.gt.f32.partialorder %v10547_v6, 0.0  ;;  %v3468_v43 = vsel %vm3212_vm11, %v10543_v27, %v3340_v19  ;;  %v10551_v63 = vld [vmem:[#allocation33_spill] sm:$0xff] }
 0x7bb   :  { %v3472_v41 = vsel %vm3216_vm12, %v10544_v5, %v3344_v60  ;;  %vm3215_vm0 = vcmp.gt.f32.partialorder %v10548_v29, 0.0  ;;  %v3339_v15 = vmul.f32 0.2, %v10547_v6  ;;  %v3343_v21 = vmul.f32 0.2, %v10548_v29  ;;  %v10562_v5 = vld [vmem:[#allocation152_spill] sm:$0xff] }
 0x7bc   :  { %v3544_v4 = vpack.c.bf16 %v3472_v41, %v3468_v43  ;;  %v3470_v10 = vsel %vm3214_vm13, %v10545_v58, %v3342_v17  ;;  %v3474_v26 = vsel %vm3218_vm14, %v10546_v13, %v3346_v20  ;;  %vm3213_vm1 = vcmp.gt.f32.partialorder %v10549_v39, 0.0  ;;  %v10564_v13 = vld [vmem:[#allocation79_spill] sm:$0xff]  ;;  %v10565_v17 = vld [vmem:[#allocation93_spill] sm:$0xff] }
 0x7bd   :  { %v3546_v48 = vpack.c.bf16 %v3474_v26, %v3470_v10  ;;  %v9335_v49 = vsel %vm3211_vm15, %v10547_v6, %v3339_v15  ;;  %vm3217_vm2 = vcmp.gt.f32.partialorder %v10550_v8, 0.0  ;;  %v9340_v46 = vsel %vm3215_vm0, %v10548_v29, %v3343_v21 }
 0x7be   :  { %v3341_v47 = vmul.f32 0.2, %v10549_v39  ;;  %v3345_v34 = vmul.f32 0.2, %v10550_v8  ;;  %vm3220_vm3 = vcmp.gt.f32.partialorder %v10551_v63, 0.0  ;;  %v3543_v38 = vpack.c.bf16 %v9340_v46, %v9335_v49 }
 0x7bf   :  { %3939 = vmatmul.mubr.bf16.gmra.mrb[176].mxu1 %v3535_v23  ;;  %vm3224_vm4 = vcmp.gt.f32.partialorder %v10552_v11, 0.0  ;;  %v3348_v59 = vmul.f32 0.2, %v10551_v63  ;;  %v3352_v2 = vmul.f32 0.2, %v10552_v11  ;;  %vm3219_vm5 = vcmp.gt.f32.partialorder %v10553_v24, 0.0 }
 0x7c0   :  { %3946 = vmatprep.mubr.bf16.mxu1 %v3540_v16  ;;  %v3469_v40 = vsel %vm3213_vm1, %v10549_v39, %v3341_v47  ;;  %v3473_v0 = vsel %vm3217_vm2, %v10550_v8, %v3345_v34  ;;  %v10554_v23 = vld [vmem:[#allocation54_spill] sm:$0xff]  ;;  %v3347_v3 = vmul.f32 0.2, %v10553_v24  ;;  %vm3228_vm7 = vcmp.gt.f32.partialorder %v10555_v7, 0.0  ;;  %v10557_v16 = vld [vmem:[#allocation59_spill] sm:$0xff] }
 0x7c1   :  { %4100 = vmatmul.mubr.bf16.gmra.mrb[148].mxu0 %v3537_v44  ;;  %vm3223_vm6 = vcmp.gt.f32.partialorder %v10554_v23, 0.0  ;;  %v3545_v12 = vpack.c.bf16 %v3473_v0, %v3469_v40  ;;  %v3476_v28 = vsel %vm3220_vm3, %v10551_v63, %v3348_v59  ;;  %v3480_v54 = vsel %vm3224_vm4, %v10552_v11, %v3352_v2  ;;  %v10556_v44 = vld [vmem:[#allocation35_spill] sm:$0xff] }
 0x7c2   :  { %4107 = vmatprep.mubr.bf16.mxu0 %v3542_v31  ;;  %v3548_v42 = vpack.c.bf16 %v3480_v54, %v3476_v28  ;;  %v3351_v61 = vmul.f32 0.2, %v10554_v23  ;;  %vm3232_vm8 = vcmp.gt.f32.partialorder %v10556_v44, 0.0  ;;  %v3475_v45 = vsel %vm3219_vm5, %v10553_v24, %v3347_v3  ;;  %v10560_v31 = vld [vmem:[#allocation117_spill] sm:$0xff] }
 0x7c3   :  { %v3356_v1 = vmul.f32 0.2, %v10555_v7  ;;  %v3360_v32 = vmul.f32 0.2, %v10556_v44  ;;  %vm3227_vm9 = vcmp.gt.f32.partialorder %v10557_v16, 0.0  ;;  %vm3231_vm10 = vcmp.gt.f32.partialorder %v10558_v51, 0.0 }
 0x7c4   :  { %v3479_v55 = vsel %vm3223_vm6, %v10554_v23, %v3351_v61  ;;  %v3355_v37 = vmul.f32 0.2, %v10557_v16  ;;  %v3359_v36 = vmul.f32 0.2, %v10558_v51  ;;  %vm3222_vm11 = vcmp.gt.f32.partialorder %v10559_v56, 0.0 }
 0x7c5   :  { %v3547_v22 = vpack.c.bf16 %v3479_v55, %v3475_v45  ;;  %v3484_v33 = vsel %vm3228_vm7, %v10555_v7, %v3356_v1  ;;  %v3488_v35 = vsel %vm3232_vm8, %v10556_v44, %v3360_v32  ;;  %vm3226_vm12 = vcmp.gt.f32.partialorder %v10560_v31, 0.0 }
 0x7c6   :  { %v3552_v57 = vpack.c.bf16 %v3488_v35, %v3484_v33  ;;  %v3483_v30 = vsel %vm3227_vm9, %v10557_v16, %v3355_v37  ;;  %v3487_v53 = vsel %vm3231_vm10, %v10558_v51, %v3359_v36  ;;  %v3350_v25 = vmul.f32 0.2, %v10559_v56 }
 0x7c7   :  { %3947 = vmatmul.mubr.bf16.gmra.mrb[180].mxu1 %v3539_v62  ;;  %v3551_v50 = vpack.c.bf16 %v3487_v53, %v3483_v30  ;;  %v3354_v27 = vmul.f32 0.2, %v10560_v31  ;;  %v3549_v14 = vpack.c.bf16 %v8973_v18, %v10561_v9  ;;  %vm3230_vm13 = vcmp.gt.f32.partialorder %v10562_v5, 0.0  ;;  %v10563_v62 = vld [vmem:[#allocation111_spill] sm:$0xff] }
 0x7c8   :  { %3954 = vmatprep.mubr.bf16.mxu1 %v3544_v4  ;;  %vm3234_vm14 = vcmp.gt.f32.partialorder %v10563_v62, 0.0  ;;  %v3358_v19 = vmul.f32 0.2, %v10562_v5  ;;  %v3362_v60 = vmul.f32 0.2, %v10563_v62  ;;  %vm3229_vm15 = vcmp.gt.f32.partialorder %v10564_v13, 0.0 }
 0x7c9   :  { %4108 = vmatmul.mubr.bf16.gmra.mrb[152].mxu0 %v3541_v52  ;;  %v3478_v52 = vsel %vm3222_vm11, %v10559_v56, %v3350_v25  ;;  %v3482_v58 = vsel %vm3226_vm12, %v10560_v31, %v3354_v27  ;;  %vm3233_vm0 = vcmp.gt.f32.partialorder %v10565_v17, 0.0  ;;  %v3357_v43 = vmul.f32 0.2, %v10564_v13 }
 0x7ca   :  { %4115 = vmatprep.mubr.bf16.mxu0 %v3546_v48  ;;  %v3550_v18 = vpack.c.bf16 %v3482_v58, %v3478_v52  ;;  %v3486_v20 = vsel %vm3230_vm13, %v10562_v5, %v3358_v19  ;;  %v3490_v6 = vsel %vm3234_vm14, %v10563_v62, %v3362_v60  ;;  %v3361_v29 = vmul.f32 0.2, %v10565_v17  ;;  %v9394_v48 = vld [vmem:[#allocation22] ss:$0 sm:$0xff] }
 0x7cb   :  { %v3554_v41 = vpack.c.bf16 %v3490_v6, %v3486_v20  ;;  %v3485_v15 = vsel %vm3229_vm15, %v10564_v13, %v3357_v43 }
 0x7cc   :  { %v3489_v4 = vsel %vm3233_vm0, %v10565_v17, %v3361_v29 }
 0x7cd   :  { %v3553_v10 = vpack.c.bf16 %v3489_v4, %v3485_v15 }
 0x7cf   :  { %3955 = vmatmul.mubr.bf16.gmra.mrb[184].mxu1 %v3543_v38 }
 0x7d0   :  { %3962 = vmatprep.mubr.bf16.mxu1 %v3548_v42 }
 0x7d1   :  { %4116 = vmatmul.mubr.bf16.gmra.mrb[156].mxu0 %v3545_v12 }
 0x7d7   :  { %3963 = vmatmul.mubr.bf16.gmra.mrb[188].mxu1 %v3547_v22 }
 0x7d8   :  { %3970 = vmatprep.mubr.bf16.mxu1 %v3552_v57 }
 0x7df   :  { %3971 = vmatmul.mubr.bf16.gmra.mrb[192].mxu1 %v3551_v50 }
 0x7e0   :  { %4123 = vmatprep.mubr.bf16.mxu1 %v3550_v18 }
 0x7e7   :  { %4124 = vmatmul.mubr.bf16.vlgmr.msra.gmra.mrb[196].mxu1 %v3549_v14 }
 0x7e8   :  { %4131 = vmatprep.mubr.bf16.mxu1 %v3554_v41 }
 0x7ef   :  { %4132 = vmatmul.mubr.bf16.gmra.mrb[200].mxu1 %v3553_v10 }
 0x83a   :  { %v4393_v26 = vpop.f32.mrb[132].mxu1 }
 0x83b   :  { %v4394_v49 = vpop.f32.mrb[133].mxu1 }
 0x83c   :  { %v4505_v21 = vpop.f32.mrb[104].mxu0  ;;  %v4395_v39 = vadd.f32 %v4394_v49, %v4393_v26  ;;  %v4396_v46 = vpop.f32.mrb[134].mxu1 }
 0x83d   :  { %v4506_v8 = vpop.f32.mrb[105].mxu0  ;;  %v4397_v63 = vpop.f32.mrb[135].mxu1 }
 0x83e   :  { %v4507_v47 = vadd.f32 %v4506_v8, %v4505_v21  ;;  %v4508_v34 = vpop.f32.mrb[106].mxu0  ;;  %v3853_v38 = vadd.f32 %v4395_v39, %v9394_v48  ;;  %v4398_v11 = vadd.f32 %v4397_v63, %v4396_v46 }
 0x83f   :  { %v4509_v59 = vpop.f32.mrb[107].mxu0 }
 0x840   :  { %v4510_v2 = vadd.f32 %v4509_v59, %v4508_v34  ;;  %v4014_v40 = vadd.f32 %v4507_v47, %v3853_v38  ;;  %v3856_v0 = vadd.f32 %v4398_v11, %v9394_v48 }
 0x842   :  { %5226 = vtanh.f32 %v4014_v40  ;;  %v4017_v24 = vadd.f32 %v4510_v2, %v3856_v0  ;;  %v4399_v23 = vpop.f32.mrb[136].mxu1 }
 0x843   :  { %v4400_v28 = vpop.f32.mrb[137].mxu1 }
 0x844   :  { %v4511_v12 = vpop.f32.mrb[108].mxu0  ;;  %5228 = vtanh.f32 %v4017_v24  ;;  %v4401_v54 = vadd.f32 %v4400_v28, %v4399_v23  ;;  %v4402_v42 = vpop.f32.mrb[138].mxu1 }
 0x845   :  { %v4512_v3 = vpop.f32.mrb[109].mxu0  ;;  %v4403_v44 = vpop.f32.mrb[139].mxu1 }
 0x846   :  { %v4513_v61 = vadd.f32 %v4512_v3, %v4511_v12  ;;  %v4514_v7 = vpop.f32.mrb[110].mxu0  ;;  %v3861_v45 = vadd.f32 %v4401_v54, %v9394_v48  ;;  %v4404_v1 = vadd.f32 %v4403_v44, %v4402_v42 }
 0x847   :  { %v4515_v32 = vpop.f32.mrb[111].mxu0 }
 0x848   :  { %v4516_v16 = vadd.f32 %v4515_v32, %v4514_v7  ;;  %v4022_v55 = vadd.f32 %v4513_v61, %v3861_v45  ;;  %v3864_v51 = vadd.f32 %v4404_v1, %v9394_v48 }
 0x84a   :  { %5230 = vtanh.f32 %v4022_v55  ;;  %v4025_v37 = vadd.f32 %v4516_v16, %v3864_v51  ;;  %v4405_v36 = vpop.f32.mrb[140].mxu1 }
 0x84b   :  { %v4406_v33 = vpop.f32.mrb[141].mxu1 }
 0x84c   :  { %v4517_v22 = vpop.f32.mrb[112].mxu0  ;;  %v5227_v35 = vpop.eup %5226  ;;  %5232 = vtanh.f32 %v4025_v37  ;;  %v4407_v56 = vadd.f32 %v4406_v33, %v4405_v36 }
 0x84d   :  { %v4518_v57 = vpop.f32.mrb[113].mxu0  ;;  %v4408_v30 = vpop.f32.mrb[142].mxu1  ;;  %4172 = vst [vmem:[#allocation23] sm:$0xff] %v5227_v35 }
 0x84e   :  { %v4519_v53 = vadd.f32 %v4518_v57, %v4517_v22  ;;  %v4520_v31 = vpop.f32.mrb[114].mxu0  ;;  %v4409_v50 = vpop.f32.mrb[143].mxu1  ;;  %v3869_v27 = vadd.f32 %v4407_v56, %v9394_v48 }
 0x84f   :  { %v5229_v25 = vpop.eup %5228  ;;  %v4410_v9 = vadd.f32 %v4409_v50, %v4408_v30  ;;  %v4521_v14 = vpop.f32.mrb[115].mxu0 }
 0x850   :  { %4173 = vst [vmem:[#allocation23 + $0x8] sm:$0xff] %v5229_v25  ;;  %v4522_v5 = vadd.f32 %v4521_v14, %v4520_v31  ;;  %v4030_v62 = vadd.f32 %v4519_v53, %v3869_v27 }
 0x851   :  { %v3872_v19 = vadd.f32 %v4410_v9, %v9394_v48 }
 0x852   :  { %5234 = vtanh.f32 %v4030_v62  ;;  %v4411_v52 = vpop.f32.mrb[144].mxu1 }
 0x853   :  { %v4033_v60 = vadd.f32 %v4522_v5, %v3872_v19  ;;  %v4412_v13 = vpop.f32.mrb[145].mxu1 }
 0x854   :  { %v4523_v58 = vpop.f32.mrb[116].mxu0  ;;  %v5231_v17 = vpop.eup %5230  ;;  %v4413_v18 = vadd.f32 %v4412_v13, %v4411_v52 }
 0x855   :  { %5236 = vtanh.f32 %v4033_v60  ;;  %v4524_v20 = vpop.f32.mrb[117].mxu0  ;;  %v4414_v6 = vpop.f32.mrb[146].mxu1  ;;  %4174 = vst [vmem:[#allocation23 + $0x10] sm:$0xff] %v5231_v17 }
 0x856   :  { %v4525_v43 = vadd.f32 %v4524_v20, %v4523_v58  ;;  %v4526_v41 = vpop.f32.mrb[118].mxu0  ;;  %v4415_v29 = vpop.f32.mrb[147].mxu1  ;;  %v3877_v4 = vadd.f32 %v4413_v18, %v9394_v48 }
 0x857   :  { %v5233_v15 = vpop.eup %5232  ;;  %v4416_v10 = vadd.f32 %v4415_v29, %v4414_v6  ;;  %v4527_v26 = vpop.f32.mrb[119].mxu0 }
 0x858   :  { %4175 = vst [vmem:[#allocation23 + $0x18] sm:$0xff] %v5233_v15  ;;  %v4528_v21 = vadd.f32 %v4527_v26, %v4526_v41  ;;  %v4038_v49 = vadd.f32 %v4525_v43, %v3877_v4 }
 0x859   :  { %v3880_v39 = vadd.f32 %v4416_v10, %v9394_v48 }
 0x85a   :  { %5238 = vtanh.f32 %v4038_v49  ;;  %v4417_v46 = vpop.f32.mrb[148].mxu1 }
 0x85b   :  { %v4041_v8 = vadd.f32 %v4528_v21, %v3880_v39  ;;  %v4418_v34 = vpop.f32.mrb[149].mxu1 }
 0x85c   :  { %v4529_v47 = vpop.f32.mrb[120].mxu0  ;;  %v5235_v63 = vpop.eup %5234  ;;  %v4419_v38 = vadd.f32 %v4418_v34, %v4417_v46 }
 0x85d   :  { %5240 = vtanh.f32 %v4041_v8  ;;  %v4530_v11 = vpop.f32.mrb[121].mxu0  ;;  %v4420_v59 = vpop.f32.mrb[150].mxu1  ;;  %4176 = vst [vmem:[#allocation23 + $0x20] sm:$0xff] %v5235_v63 }
 0x85e   :  { %v4531_v2 = vadd.f32 %v4530_v11, %v4529_v47  ;;  %v4532_v40 = vpop.f32.mrb[122].mxu0  ;;  %v4421_v0 = vpop.f32.mrb[151].mxu1  ;;  %v3885_v23 = vadd.f32 %v4419_v38, %v9394_v48 }
 0x85f   :  { %v5237_v24 = vpop.eup %5236  ;;  %v4422_v12 = vadd.f32 %v4421_v0, %v4420_v59  ;;  %v4533_v28 = vpop.f32.mrb[123].mxu0 }
 0x860   :  { %4177 = vst [vmem:[#allocation23 + $0x28] sm:$0xff] %v5237_v24  ;;  %v4534_v54 = vadd.f32 %v4533_v28, %v4532_v40  ;;  %v4046_v3 = vadd.f32 %v4531_v2, %v3885_v23 }
 0x861   :  { %v3888_v42 = vadd.f32 %v4422_v12, %v9394_v48 }
 0x862   :  { %5242 = vtanh.f32 %v4046_v3  ;;  %v4423_v7 = vpop.f32.mrb[152].mxu1 }
 0x863   :  { %v4049_v61 = vadd.f32 %v4534_v54, %v3888_v42  ;;  %v4424_v45 = vpop.f32.mrb[153].mxu1 }
 0x864   :  { %v4535_v44 = vpop.f32.mrb[124].mxu0  ;;  %v5239_v1 = vpop.eup %5238  ;;  %v4425_v32 = vadd.f32 %v4424_v45, %v4423_v7 }
 0x865   :  { %5244 = vtanh.f32 %v4049_v61  ;;  %v4536_v16 = vpop.f32.mrb[125].mxu0  ;;  %v4426_v55 = vpop.f32.mrb[154].mxu1  ;;  %4178 = vst [vmem:[#allocation23 + $0x30] sm:$0xff] %v5239_v1 }
 0x866   :  { %v4537_v51 = vadd.f32 %v4536_v16, %v4535_v44  ;;  %v4538_v37 = vpop.f32.mrb[126].mxu0  ;;  %v4427_v36 = vpop.f32.mrb[155].mxu1  ;;  %v3893_v33 = vadd.f32 %v4425_v32, %v9394_v48 }
 0x867   :  { %v5241_v22 = vpop.eup %5240  ;;  %v4428_v35 = vadd.f32 %v4427_v36, %v4426_v55  ;;  %v4539_v56 = vpop.f32.mrb[127].mxu0 }
 0x868   :  { %4179 = vst [vmem:[#allocation23 + $0x38] sm:$0xff] %v5241_v22  ;;  %v4540_v57 = vadd.f32 %v4539_v56, %v4538_v37  ;;  %v4054_v30 = vadd.f32 %v4537_v51, %v3893_v33 }
 0x869   :  { %v3896_v53 = vadd.f32 %v4428_v35, %v9394_v48 }
 0x86a   :  { %5246 = vtanh.f32 %v4054_v30  ;;  %v4429_v50 = vpop.f32.mrb[156].mxu1 }
 0x86b   :  { %v4057_v31 = vadd.f32 %v4540_v57, %v3896_v53  ;;  %v4430_v27 = vpop.f32.mrb[157].mxu1 }
 0x86c   :  { %v4541_v25 = vpop.f32.mrb[128].mxu0  ;;  %v5243_v9 = vpop.eup %5242  ;;  %v4431_v14 = vadd.f32 %v4430_v27, %v4429_v50 }
 0x86d   :  { %5248 = vtanh.f32 %v4057_v31  ;;  %v4542_v5 = vpop.f32.mrb[129].mxu0  ;;  %v4432_v62 = vpop.f32.mrb[158].mxu1  ;;  %4180 = vst [vmem:[#allocation23 + $0x40] sm:$0xff] %v5243_v9 }
 0x86e   :  { %v4543_v19 = vadd.f32 %v4542_v5, %v4541_v25  ;;  %v4544_v60 = vpop.f32.mrb[130].mxu0  ;;  %v4433_v52 = vpop.f32.mrb[159].mxu1  ;;  %v3901_v13 = vadd.f32 %v4431_v14, %v9394_v48 }
 0x86f   :  { %v5245_v58 = vpop.eup %5244  ;;  %v4434_v17 = vadd.f32 %v4433_v52, %v4432_v62  ;;  %v4545_v18 = vpop.f32.mrb[131].mxu0 }
 0x870   :  { %4181 = vst [vmem:[#allocation23 + $0x48] sm:$0xff] %v5245_v58  ;;  %v4546_v20 = vadd.f32 %v4545_v18, %v4544_v60  ;;  %v4062_v6 = vadd.f32 %v4543_v19, %v3901_v13 }
 0x871   :  { %v3904_v43 = vadd.f32 %v4434_v17, %v9394_v48 }
 0x872   :  { %5250 = vtanh.f32 %v4062_v6  ;;  %v4435_v29 = vpop.f32.mrb[160].mxu1 }
 0x873   :  { %v4065_v41 = vadd.f32 %v4546_v20, %v3904_v43  ;;  %v4436_v4 = vpop.f32.mrb[161].mxu1 }
 0x874   :  { %v4547_v15 = vpop.f32.mrb[132].mxu0  ;;  %v5247_v10 = vpop.eup %5246  ;;  %v4437_v26 = vadd.f32 %v4436_v4, %v4435_v29 }
 0x875   :  { %5252 = vtanh.f32 %v4065_v41  ;;  %v4548_v21 = vpop.f32.mrb[133].mxu0  ;;  %v4438_v49 = vpop.f32.mrb[162].mxu1  ;;  %4182 = vst [vmem:[#allocation23 + $0x50] sm:$0xff] %v5247_v10 }
 0x876   :  { %v4549_v39 = vadd.f32 %v4548_v21, %v4547_v15  ;;  %v4550_v8 = vpop.f32.mrb[134].mxu0  ;;  %v4439_v46 = vpop.f32.mrb[163].mxu1  ;;  %v3909_v34 = vadd.f32 %v4437_v26, %v9394_v48 }
 0x877   :  { %v5249_v47 = vpop.eup %5248  ;;  %v4440_v63 = vadd.f32 %v4439_v46, %v4438_v49  ;;  %v4551_v38 = vpop.f32.mrb[135].mxu0 }
 0x878   :  { %4183 = vst [vmem:[#allocation23 + $0x58] sm:$0xff] %v5249_v47  ;;  %v4552_v11 = vadd.f32 %v4551_v38, %v4550_v8  ;;  %v4070_v59 = vadd.f32 %v4549_v39, %v3909_v34 }
 0x879   :  { %v3912_v2 = vadd.f32 %v4440_v63, %v9394_v48 }
 0x87a   :  { %5254 = vtanh.f32 %v4070_v59  ;;  %v4441_v0 = vpop.f32.mrb[164].mxu1 }
 0x87b   :  { %v4073_v40 = vadd.f32 %v4552_v11, %v3912_v2  ;;  %v4442_v23 = vpop.f32.mrb[165].mxu1 }
 0x87c   :  { %v4553_v24 = vpop.f32.mrb[136].mxu0  ;;  %v5251_v12 = vpop.eup %5250  ;;  %v4443_v28 = vadd.f32 %v4442_v23, %v4441_v0 }
 0x87d   :  { %5256 = vtanh.f32 %v4073_v40  ;;  %v4554_v54 = vpop.f32.mrb[137].mxu0  ;;  %v4444_v3 = vpop.f32.mrb[166].mxu1  ;;  %4184 = vst [vmem:[#allocation23 + $0x60] sm:$0xff] %v5251_v12 }
 0x87e   :  { %v4555_v42 = vadd.f32 %v4554_v54, %v4553_v24  ;;  %v4556_v61 = vpop.f32.mrb[138].mxu0  ;;  %v4445_v7 = vpop.f32.mrb[167].mxu1  ;;  %v3917_v45 = vadd.f32 %v4443_v28, %v9394_v48 }
 0x87f   :  { %v5253_v44 = vpop.eup %5252  ;;  %v4446_v1 = vadd.f32 %v4445_v7, %v4444_v3  ;;  %v4557_v32 = vpop.f32.mrb[139].mxu0 }
 0x880   :  { %4185 = vst [vmem:[#allocation23 + $0x68] sm:$0xff] %v5253_v44  ;;  %v4558_v16 = vadd.f32 %v4557_v32, %v4556_v61  ;;  %v4078_v55 = vadd.f32 %v4555_v42, %v3917_v45 }
 0x881   :  { %v3920_v51 = vadd.f32 %v4446_v1, %v9394_v48 }
 0x882   :  { %5258 = vtanh.f32 %v4078_v55  ;;  %v4447_v36 = vpop.f32.mrb[168].mxu1 }
 0x883   :  { %v4081_v37 = vadd.f32 %v4558_v16, %v3920_v51  ;;  %v4448_v33 = vpop.f32.mrb[169].mxu1 }
 0x884   :  { %v4559_v22 = vpop.f32.mrb[140].mxu0  ;;  %v5255_v35 = vpop.eup %5254  ;;  %v4449_v56 = vadd.f32 %v4448_v33, %v4447_v36 }
 0x885   :  { %5260 = vtanh.f32 %v4081_v37  ;;  %v4560_v57 = vpop.f32.mrb[141].mxu0  ;;  %v4450_v30 = vpop.f32.mrb[170].mxu1  ;;  %4186 = vst [vmem:[#allocation23 + $0x70] sm:$0xff] %v5255_v35 }
 0x886   :  { %v4561_v53 = vadd.f32 %v4560_v57, %v4559_v22  ;;  %v4562_v31 = vpop.f32.mrb[142].mxu0  ;;  %v4451_v50 = vpop.f32.mrb[171].mxu1  ;;  %v3925_v27 = vadd.f32 %v4449_v56, %v9394_v48 }
 0x887   :  { %v5257_v25 = vpop.eup %5256  ;;  %v4452_v9 = vadd.f32 %v4451_v50, %v4450_v30  ;;  %v4563_v14 = vpop.f32.mrb[143].mxu0 }
 0x888   :  { %4187 = vst [vmem:[#allocation23 + $0x78] sm:$0xff] %v5257_v25  ;;  %v4564_v5 = vadd.f32 %v4563_v14, %v4562_v31  ;;  %v4086_v62 = vadd.f32 %v4561_v53, %v3925_v27 }
 0x889   :  { %v3928_v19 = vadd.f32 %v4452_v9, %v9394_v48 }
 0x88a   :  { %5262 = vtanh.f32 %v4086_v62  ;;  %v4453_v52 = vpop.f32.mrb[172].mxu1 }
 0x88b   :  { %v4089_v60 = vadd.f32 %v4564_v5, %v3928_v19  ;;  %v4454_v13 = vpop.f32.mrb[173].mxu1 }
 0x88c   :  { %v4565_v58 = vpop.f32.mrb[144].mxu0  ;;  %v5259_v17 = vpop.eup %5258  ;;  %v4455_v18 = vadd.f32 %v4454_v13, %v4453_v52 }
 0x88d   :  { %5264 = vtanh.f32 %v4089_v60  ;;  %v4566_v20 = vpop.f32.mrb[145].mxu0  ;;  %v4456_v6 = vpop.f32.mrb[174].mxu1  ;;  %4188 = vst [vmem:[#allocation23 + $0x80] sm:$0xff] %v5259_v17 }
 0x88e   :  { %v4567_v43 = vadd.f32 %v4566_v20, %v4565_v58  ;;  %v4568_v41 = vpop.f32.mrb[146].mxu0  ;;  %v4457_v29 = vpop.f32.mrb[175].mxu1  ;;  %v3933_v4 = vadd.f32 %v4455_v18, %v9394_v48 }
 0x88f   :  { %v5261_v15 = vpop.eup %5260  ;;  %v4458_v10 = vadd.f32 %v4457_v29, %v4456_v6  ;;  %v4569_v26 = vpop.f32.mrb[147].mxu0 }
 0x890   :  { %4189 = vst [vmem:[#allocation23 + $0x88] sm:$0xff] %v5261_v15  ;;  %v4570_v21 = vadd.f32 %v4569_v26, %v4568_v41  ;;  %v4094_v49 = vadd.f32 %v4567_v43, %v3933_v4 }
 0x891   :  { %v3936_v39 = vadd.f32 %v4458_v10, %v9394_v48 }
 0x892   :  { %5266 = vtanh.f32 %v4094_v49  ;;  %v4459_v46 = vpop.f32.mrb[176].mxu1 }
 0x893   :  { %v4097_v8 = vadd.f32 %v4570_v21, %v3936_v39  ;;  %v4460_v34 = vpop.f32.mrb[177].mxu1 }
 0x894   :  { %v4571_v47 = vpop.f32.mrb[148].mxu0  ;;  %v5263_v63 = vpop.eup %5262  ;;  %v4461_v38 = vadd.f32 %v4460_v34, %v4459_v46 }
 0x895   :  { %5268 = vtanh.f32 %v4097_v8  ;;  %v4572_v11 = vpop.f32.mrb[149].mxu0  ;;  %v4462_v59 = vpop.f32.mrb[178].mxu1  ;;  %4190 = vst [vmem:[#allocation23 + $0x90] sm:$0xff] %v5263_v63 }
 0x896   :  { %v4573_v2 = vadd.f32 %v4572_v11, %v4571_v47  ;;  %v4574_v40 = vpop.f32.mrb[150].mxu0  ;;  %v4463_v0 = vpop.f32.mrb[179].mxu1  ;;  %v3941_v23 = vadd.f32 %v4461_v38, %v9394_v48 }
 0x897   :  { %v5265_v24 = vpop.eup %5264  ;;  %v4464_v12 = vadd.f32 %v4463_v0, %v4462_v59  ;;  %v4575_v28 = vpop.f32.mrb[151].mxu0 }
 0x898   :  { %4191 = vst [vmem:[#allocation23 + $0x98] sm:$0xff] %v5265_v24  ;;  %v4576_v54 = vadd.f32 %v4575_v28, %v4574_v40  ;;  %v4102_v3 = vadd.f32 %v4573_v2, %v3941_v23 }
 0x899   :  { %v3944_v42 = vadd.f32 %v4464_v12, %v9394_v48 }
 0x89a   :  { %5270 = vtanh.f32 %v4102_v3  ;;  %v4465_v7 = vpop.f32.mrb[180].mxu1 }
 0x89b   :  { %v4105_v61 = vadd.f32 %v4576_v54, %v3944_v42  ;;  %v4466_v45 = vpop.f32.mrb[181].mxu1 }
 0x89c   :  { %v4577_v44 = vpop.f32.mrb[152].mxu0  ;;  %v5267_v1 = vpop.eup %5266  ;;  %v4467_v32 = vadd.f32 %v4466_v45, %v4465_v7 }
 0x89d   :  { %5272 = vtanh.f32 %v4105_v61  ;;  %v4578_v16 = vpop.f32.mrb[153].mxu0  ;;  %v4468_v55 = vpop.f32.mrb[182].mxu1  ;;  %4192 = vst [vmem:[#allocation23 + $0xa0] sm:$0xff] %v5267_v1 }
 0x89e   :  { %v4579_v51 = vadd.f32 %v4578_v16, %v4577_v44  ;;  %v4580_v37 = vpop.f32.mrb[154].mxu0  ;;  %v4469_v36 = vpop.f32.mrb[183].mxu1  ;;  %v3949_v33 = vadd.f32 %v4467_v32, %v9394_v48 }
 0x89f   :  { %v5269_v22 = vpop.eup %5268  ;;  %v4470_v35 = vadd.f32 %v4469_v36, %v4468_v55  ;;  %v4581_v56 = vpop.f32.mrb[155].mxu0 }
 0x8a0   :  { %4193 = vst [vmem:[#allocation23 + $0xa8] sm:$0xff] %v5269_v22  ;;  %v4582_v57 = vadd.f32 %v4581_v56, %v4580_v37  ;;  %v4110_v30 = vadd.f32 %v4579_v51, %v3949_v33 }
 0x8a1   :  { %v3952_v53 = vadd.f32 %v4470_v35, %v9394_v48 }
 0x8a2   :  { %5274 = vtanh.f32 %v4110_v30  ;;  %v4471_v50 = vpop.f32.mrb[184].mxu1 }
 0x8a3   :  { %v4113_v31 = vadd.f32 %v4582_v57, %v3952_v53  ;;  %v4472_v27 = vpop.f32.mrb[185].mxu1 }
 0x8a4   :  { %v4583_v25 = vpop.f32.mrb[156].mxu0  ;;  %v5271_v9 = vpop.eup %5270  ;;  %v4473_v14 = vadd.f32 %v4472_v27, %v4471_v50 }
 0x8a5   :  { %5276 = vtanh.f32 %v4113_v31  ;;  %v4584_v5 = vpop.f32.mrb[157].mxu0  ;;  %v4474_v62 = vpop.f32.mrb[186].mxu1  ;;  %4194 = vst [vmem:[#allocation23 + $0xb0] sm:$0xff] %v5271_v9 }
 0x8a6   :  { %v4585_v19 = vadd.f32 %v4584_v5, %v4583_v25  ;;  %v4586_v60 = vpop.f32.mrb[158].mxu0  ;;  %v4475_v52 = vpop.f32.mrb[187].mxu1  ;;  %v3957_v13 = vadd.f32 %v4473_v14, %v9394_v48 }
 0x8a7   :  { %v5273_v58 = vpop.eup %5272  ;;  %v4476_v17 = vadd.f32 %v4475_v52, %v4474_v62  ;;  %v4587_v18 = vpop.f32.mrb[159].mxu0 }
 0x8a8   :  { %4195 = vst [vmem:[#allocation23 + $0xb8] sm:$0xff] %v5273_v58  ;;  %v4588_v20 = vadd.f32 %v4587_v18, %v4586_v60  ;;  %v4118_v6 = vadd.f32 %v4585_v19, %v3957_v13 }
 0x8a9   :  { %v3960_v43 = vadd.f32 %v4476_v17, %v9394_v48 }
 0x8aa   :  { %5278 = vtanh.f32 %v4118_v6  ;;  %v4477_v29 = vpop.f32.mrb[188].mxu1 }
 0x8ab   :  { %v4121_v41 = vadd.f32 %v4588_v20, %v3960_v43  ;;  %v4478_v15 = vpop.f32.mrb[189].mxu1 }
 0x8ac   :  { %v5275_v4 = vpop.eup %5274  ;;  %v4479_v10 = vadd.f32 %v4478_v15, %v4477_v29  ;;  %v4480_v26 = vpop.f32.mrb[190].mxu1 }
 0x8ad   :  { %5280 = vtanh.f32 %v4121_v41  ;;  %4196 = vst [vmem:[#allocation23 + $0xc0] sm:$0xff] %v5275_v4  ;;  %v4481_v21 = vpop.f32.mrb[191].mxu1 }
 0x8ae   :  { %v4482_v39 = vadd.f32 %v4481_v21, %v4480_v26  ;;  %v3965_v0 = vadd.f32 %v4479_v10, %v9394_v48 }
 0x8af   :  { %v5277_v49 = vpop.eup %5276 }
 0x8b0   :  { %4197 = vst [vmem:[#allocation23 + $0xc8] sm:$0xff] %v5277_v49  ;;  %v3968_v28 = vadd.f32 %v4482_v39, %v9394_v48 }
 0x8b2   :  { %v4483_v8 = vpop.f32.mrb[192].mxu1 }
 0x8b3   :  { %v4484_v46 = vpop.f32.mrb[193].mxu1 }
 0x8b4   :  { %v5279_v47 = vpop.eup %5278  ;;  %v4485_v34 = vadd.f32 %v4484_v46, %v4483_v8  ;;  %v4486_v63 = vpop.f32.mrb[194].mxu1 }
 0x8b5   :  { %4198 = vst [vmem:[#allocation23 + $0xd0] sm:$0xff] %v5279_v47  ;;  %v4487_v38 = vpop.f32.mrb[195].mxu1 }
 0x8b6   :  { %v4488_v59 = vadd.f32 %v4487_v38, %v4486_v63  ;;  %v3973_v44 = vadd.f32 %v4485_v34, %v9394_v48 }
 0x8b7   :  { %v5281_v11 = vpop.eup %5280 }
 0x8b8   :  { %4199 = vst [vmem:[#allocation23 + $0xd8] sm:$0xff] %v5281_v11  ;;  %v3976_v16 = vadd.f32 %v4488_v59, %v9394_v48 }
 0x8ba   :  { %v4589_v2 = vpop.f32.mrb[196].mxu1 }
 0x8bb   :  { %v4590_v40 = vpop.f32.mrb[197].mxu1 }
 0x8bc   :  { %v4591_v24 = vadd.f32 %v4590_v40, %v4589_v2  ;;  %v4592_v23 = vpop.f32.mrb[198].mxu1 }
 0x8bd   :  { %v4593_v12 = vpop.f32.mrb[199].mxu1 }
 0x8be   :  { %v4126_v54 = vadd.f32 %v4591_v24, %v3965_v0  ;;  %v4594_v3 = vadd.f32 %v4593_v12, %v4592_v23 }
 0x8c0   :  { %5282 = vtanh.f32 %v4126_v54  ;;  %v4129_v42 = vadd.f32 %v4594_v3, %v3968_v28 }
 0x8c2   :  { %5284 = vtanh.f32 %v4129_v42  ;;  %v4595_v61 = vpop.f32.mrb[200].mxu1 }
 0x8c3   :  { %v4596_v7 = vpop.f32.mrb[201].mxu1 }
 0x8c4   :  { %v4597_v45 = vadd.f32 %v4596_v7, %v4595_v61  ;;  %v4598_v1 = vpop.f32.mrb[202].mxu1 }
 0x8c5   :  { %v4599_v32 = vpop.f32.mrb[203].mxu1 }
 0x8c6   :  { %v4134_v55 = vadd.f32 %v4597_v45, %v3973_v44  ;;  %v4600_v51 = vadd.f32 %v4599_v32, %v4598_v1 }
 0x8c8   :  { %5286 = vtanh.f32 %v4134_v55  ;;  %v4137_v37 = vadd.f32 %v4600_v51, %v3976_v16 }
 0x8ca   :  { %v5283_v36 = vpop.eup %5282  ;;  %5288 = vtanh.f32 %v4137_v37 }
 0x8cb   :  { %4200 = vst [vmem:[#allocation23 + $0xe0] sm:$0xff] %v5283_v36 }
 0x8cc   :  { %v5285_v22 = vpop.eup %5284 }
 0x8cd   :  { %4201 = vst [vmem:[#allocation23 + $0xe8] sm:$0xff] %v5285_v22 }
 0x8d2   :  { %v5287_v33 = vpop.eup %5286 }
 0x8d3   :  { %4202 = vst [vmem:[#allocation23 + $0xf0] sm:$0xff] %v5287_v33 }
 0x8d4   :  { %v5289_v35 = vpop.eup %5288 }
 0x8d5   :  { %4203 = vst [vmem:[#allocation23 + $0xf8] sm:$0xff] %v5289_v35 }
 0x8d6   :  { %5588 = shalt.err (!%p5585_p10)
}
 0x8d7   :  { %s5589_s16 = scalar_lea.hbm %s9456_s13, 4096 }
 0x8d8   :  { %p5590_p11 = scmp.ne.s32.totalorder %s9456_s13, %s5589_s16  ;;  %p5593_p12 = scmp.lt.u32.totalorder %s5589_s16, %s9456_s13 }
 0x8da   :  { %p5595_p13 = pnand %p5593_p12, %p5590_p11 }
 0x8dc   :  { %5598 = shalt.err (!%p5595_p13)
}
 0x8dd   :  { %4215 = dma.vmem_to_hbm [thread:$0]  %s4210_s2, 4096, %s9456_s13, [#allocation4], %s5620_s26, %s5620_s26, %s5621_s17  }
 0x8de   :  { %5613 = dma.done.wait [#allocation4], 4096  }
 0x8df   :  { %5614 = vsyncadd [#allocation4], 4294963200 }
 0x8e0   :  { %4219 = vsyncpa [#allocation3], 1 }
 0x8e1   :  { %4220 = vsyncpa [#allocation6], 1 }
 0x8e2   :  { %4221 = vsyncpa [#allocation9], 1 }
 0x8e3   :  { %4222 = vsyncpa [#allocation12], 1 }
 0x8e4   :  { %4223 = vsyncpa [#allocation15], 1 }
 0x8e5   :  { %4224 = vsyncpa [#allocation18], 1 }
 0x8e6   :  { %4225 = vsyncpa [#allocation21], 1 }
 0x8e7   :  { %4226 = vsyncpa [#allocation4], 1 }

</bundles_post_ra>
